<compile_context>
chip_gen: v7x
topology: tpu7x:2x2x1
jax: 0.10.0
libtpu: 0.0.40
codegen_flags: <defaults>
</compile_context>

<pallas_src>
import numpy as np
import jax
import jax.numpy as jnp
from jax.experimental import pallas as pl
from jax.experimental.pallas import tpu as pltpu


# Static geometry implied by MNISTmodel (fc1 = Linear(484*16, 256) -> 28x28 in).
H0 = W0 = 28
C1, C2 = 8, 16
H1, W1 = 26, 26          # conv1 "valid" output
HP1, WP1 = 25, 25        # after MaxPool2d(2, stride=1)
H2, W2 = 23, 23          # conv2 "valid" output
HP2, WP2 = 22, 22        # after MaxPool2d(2, stride=1)
FEAT = HP2 * WP2 * C2    # 7744
HID = 256
OUT = 10
HID_BLK = 128            # fc1 hidden chunk -> 2 grid steps (DMA/compute overlap)


# ----------------------------------------------------------------------------
# Fused kernel.  Grid axis j runs over fc1 hidden chunks; the conv stack runs
# once (j == 0) and leaves lane-dense (H, W*C) features in VMEM scratch.
# Conv weights arrive as banded matrices: out_row_i = sum_kh x_row_{i+kh} @ band[kh].
# ----------------------------------------------------------------------------
def _fused_kernel(x_ref, s1_ref, b1_ref, t2_ref, b2_ref,
                  fw1_ref, fb1_ref, fw2_ref, fb2_ref,
                  o_ref, feat_ref):
    j = pl.program_id(0)
    B = x_ref.shape[0]

    @pl.when(j == 0)
    def _conv_stack():
        for b in range(B):                                   # B is tiny; unrolled
            x = x_ref[b]                                     # (28, 28) f32, W on lanes

            # conv1: 3 MXU dots (bf16 operands, f32 accumulate) -> (26, 26*8)
            c1 = jnp.dot(x[0:H1, :].astype(jnp.bfloat16), s1_ref[0],
                         preferred_element_type=jnp.float32)
            for kh in (1, 2):
                c1 = c1 + jnp.dot(x[kh:kh + H1, :].astype(jnp.bfloat16), s1_ref[kh],
                                  preferred_element_type=jnp.float32)
            c1 = c1 + b1_ref[...]
            # MaxPool2d(2, stride=1) + ReLU: W-neighbor is +C1 lanes, H-neighbor +1 row
            pw1 = jnp.maximum(c1[:, :WP1 * C1], c1[:, C1:])
            a1 = jnp.maximum(jnp.maximum(pw1[:HP1, :], pw1[1:, :]), 0.0)   # (25, 200)

            # conv2: 3 MXU dots -> (23, 23*16)
            c2 = jnp.dot(a1[0:H2, :].astype(jnp.bfloat16), t2_ref[0],
                         preferred_element_type=jnp.float32)
            for kh in (1, 2):
                c2 = c2 + jnp.dot(a1[kh:kh + H2, :].astype(jnp.bfloat16), t2_ref[kh],
                                  preferred_element_type=jnp.float32)
            c2 = c2 + b2_ref[...]
            pw2 = jnp.maximum(c2[:, :WP2 * C2], c2[:, C2:])
            feat_ref[b] = jnp.maximum(jnp.maximum(pw2[:HP2, :], pw2[1:, :]), 0.0)

        o_ref[...] = jnp.zeros_like(o_ref)

    # fc1 chunk j: contraction over the 22 feature rows (torch.flatten's NCHW
    # permutation is folded into fw1 host-side, so no reshape is needed here).
    h = jnp.dot(feat_ref[:, 0, :].astype(jnp.bfloat16), fw1_ref[0],
                preferred_element_type=jnp.float32)
    for r in range(1, HP2):
        h = h + jnp.dot(feat_ref[:, r, :].astype(jnp.bfloat16), fw1_ref[r],
                        preferred_element_type=jnp.float32)
    h = jnp.maximum(h + fb1_ref[...], 0.0)
    # TODO(synk): Dropout(p=0.2) is applied as eval-mode identity (no RNG mask/scale).
    o_ref[...] = o_ref[...] + jnp.dot(h, fw2_ref[...],
                                      preferred_element_type=jnp.float32)

    @pl.when(j == pl.num_programs(0) - 1)
    def _fini():
        o_ref[...] = o_ref[...] + fb2_ref[...]


def mnist_forward(x_nchw, kp):
    B = x_nchw.shape[0]
    x = x_nchw.reshape(B, H0, W0)                 # Cin = 1 -> W on the lane axis
    n_blk = HID // HID_BLK

    flops = (2 * B * (3 * H1 * W0 * (W1 * C1) + 3 * H2 * (WP1 * C1) * (W2 * C2))
             + 2 * B * (FEAT * HID + HID * OUT))
    bytes_acc = (B * H0 * W0 * 4
                 + kp["s1"].size * 2 + kp["b1t"].size * 4
                 + kp["t2"].size * 2 + kp["b2t"].size * 4
                 + kp["fw1"].size * 2 + kp["fb1"].size * 4
                 + kp["fw2"].size * 4 + kp["fb2"].size * 4
                 + B * OUT * 4)

    return pl.pallas_call(
        _fused_kernel,
        out_shape=jax.ShapeDtypeStruct((B, OUT), jnp.float32),
        grid=(n_blk,),
        in_specs=[
            pl.BlockSpec((B, H0, W0), lambda j: (0, 0, 0)),             # images
            pl.BlockSpec((3, W0, W1 * C1), lambda j: (0, 0, 0)),        # conv1 banded w (bf16)
            pl.BlockSpec((1, W1 * C1), lambda j: (0, 0)),               # conv1 bias (tiled)
            pl.BlockSpec((3, WP1 * C1, W2 * C2), lambda j: (0, 0, 0)),  # conv2 banded w (bf16)
            pl.BlockSpec((1, W2 * C2), lambda j: (0, 0)),               # conv2 bias (tiled)
            pl.BlockSpec((HP2, WP2 * C2, HID_BLK), lambda j: (0, 0, j)),# fc1 w chunk (bf16)
            pl.BlockSpec((1, HID_BLK), lambda j: (0, j)),               # fc1 bias chunk
            pl.BlockSpec((HID_BLK, OUT), lambda j: (j, 0)),             # fc2 w chunk
            pl.BlockSpec((1, OUT), lambda j: (0, 0)),                   # fc2 bias
        ],
        out_specs=pl.BlockSpec((B, OUT), lambda j: (0, 0)),
        scratch_shapes=[pltpu.VMEM((B, HP2, WP2 * C2), jnp.float32)],   # features, VMEM-resident
        compiler_params=pltpu.CompilerParams(
            dimension_semantics=("arbitrary",)),
        cost_estimate=pl.CostEstimate(flops=flops, transcendentals=0,
                                      bytes_accessed=bytes_acc),
    )(x, kp["s1"], kp["b1t"], kp["t2"], kp["b2t"],
      kp["fw1"], kp["fb1"], kp["fw2"], kp["fb2"])


# ----------------------------------------------------------------------------
# Parameter preparation (host-side, done once).
# ----------------------------------------------------------------------------
def _band_conv_weights(w_hwio, w_in):
    """Banded matmul weights for a 3x3 conv row on lane-dense (H, W*Cin) data.

    band[kh, (j+kw)*Cin + ci, j*Cout + co] = w_hwio[kh, kw, ci, co]
    so   out[i, j*Cout+co] = sum_kh (x_row_{i+kh} @ band[kh])[j*Cout+co].
    """
    kh_n, kw_n, cin, cout = w_hwio.shape
    w_out = w_in - kw_n + 1
    band = np.zeros((kh_n, w_in * cin, w_out * cout), np.float32)
    w_np = np.asarray(w_hwio, np.float32)
    for kh in range(kh_n):
        for j in range(w_out):
            for kw in range(kw_n):
                band[kh, (j + kw) * cin:(j + kw + 1) * cin,
                     j * cout:(j + 1) * cout] = w_np[kh, kw]
    return jnp.asarray(band)


def init_torch_params(key):
    """Deterministic synthetic parameters in PyTorch layouts (OIHW / [out, in])."""
    ks = jax.random.split(key, 8)
    return {
        "conv1_w": jax.random.normal(ks[0], (C1, 1, 3, 3), jnp.float32) * 0.1,
        "conv1_b": jax.random.normal(ks[1], (C1,), jnp.float32) * 0.1,
        "conv2_w": jax.random.normal(ks[2], (C2, C1, 3, 3), jnp.float32) * 0.1,
        "conv2_b": jax.random.normal(ks[3], (C2,), jnp.float32) * 0.1,
        "fc1_w": jax.random.normal(ks[4], (HID, FEAT), jnp.float32) * 0.02,
        "fc1_b": jax.random.normal(ks[5], (HID,), jnp.float32) * 0.02,
        "fc2_w": jax.random.normal(ks[6], (OUT, HID), jnp.float32) * 0.1,
        "fc2_b": jax.random.normal(ks[7], (OUT,), jnp.float32) * 0.1,
    }


def prepare_kernel_params(tp):
    w1_hwio = jnp.transpose(tp["conv1_w"], (2, 3, 1, 0))    # (3,3,1,8)
    w2_hwio = jnp.transpose(tp["conv2_w"], (2, 3, 1, 0))    # (3,3,8,16)
    # Fold torch.flatten's NCHW order into fc1: (C,H,W) columns -> (H, W*C, HID).
    fw1 = tp["fc1_w"].T.reshape(C2, HP2, WP2, HID)
    fw1 = jnp.transpose(fw1, (1, 2, 0, 3)).reshape(HP2, WP2 * C2, HID)
    return {
        "s1": _band_conv_weights(w1_hwio, W0).astype(jnp.bfloat16),   # (3, 28, 208)
        "b1t": jnp.tile(tp["conv1_b"], W1)[None, :],                  # (1, 208) f32
        "t2": _band_conv_weights(w2_hwio, WP1).astype(jnp.bfloat16),  # (3, 200, 368)
        "b2t": jnp.tile(tp["conv2_b"], W2)[None, :],                  # (1, 368) f32
        "fw1": fw1.astype(jnp.bfloat16),                              # (22, 352, 256) bf16
        "fb1": tp["fc1_b"][None, :].astype(jnp.float32),              # (1, 256)
        "fw2": tp["fc2_w"].T.astype(jnp.float32),                     # (256, 10)
        "fb2": tp["fc2_b"][None, :].astype(jnp.float32),              # (1, 10)
    }


# ----------------------------------------------------------------------------
# Pure-JAX reference with PyTorch semantics (correctness check only).
# ----------------------------------------------------------------------------
def ref_forward(x_nchw, tp):
    def conv_block(x, w_oihw, b):
        y = jax.lax.conv_general_dilated(
            x, w_oihw, window_strides=(1, 1), padding="VALID",
            dimension_numbers=("NCHW", "OIHW", "NCHW"))
        y = y + b[None, :, None, None]
        y = jax.lax.reduce_window(y, -jnp.inf, jax.lax.max,
                                  (1, 1, 2, 2), (1, 1, 1, 1), "VALID")
        return jnp.maximum(y, 0.0)

    y = conv_block(x_nchw, tp["conv1_w"], tp["conv1_b"])
    y = conv_block(y, tp["conv2_w"], tp["conv2_b"])
    y = y.reshape(y.shape[0], -1)                     # torch.flatten(x, 1) on NCHW
    h = jnp.maximum(y @ tp["fc1_w"].T + tp["fc1_b"], 0.0)
    return h @ tp["fc2_w"].T + tp["fc2_b"]


if __name__ == "__main__":
    x = jax.random.normal(jax.random.PRNGKey(0), (2, 1, H0, W0), jnp.float32)
    torch_params = init_torch_params(jax.random.PRNGKey(42))
    kernel_params = prepare_kernel_params(torch_params)

    out = jax.jit(mnist_forward)(x, kernel_params)
    out = jax.block_until_ready(out)
    assert out.shape == (2, OUT), out.shape

    ref = ref_forward(x, torch_params)
    max_err = jnp.max(jnp.abs(out - ref))
    assert jnp.allclose(out, ref, atol=3e-2, rtol=5e-2), (max_err, out, ref)

    print("KERNEL_OK")
</pallas_src>

<mosaic_0001>
module attributes {stable_mosaic.version = 11 : i64} {
  func.func @_fused_kernel(%arg0: i32, %arg1: memref<2x28x28xf32, #tpu.memory_space<vmem>>, %arg2: memref<3x28x208xbf16, #tpu.memory_space<vmem>>, %arg3: memref<1x208xf32, #tpu.memory_space<vmem>>, %arg4: memref<3x200x368xbf16, #tpu.memory_space<vmem>>, %arg5: memref<1x368xf32, #tpu.memory_space<vmem>>, %arg6: memref<22x352x128xbf16, #tpu.memory_space<vmem>>, %arg7: memref<1x128xf32, #tpu.memory_space<vmem>>, %arg8: memref<128x10xf32, #tpu.memory_space<vmem>>, %arg9: memref<1x10xf32, #tpu.memory_space<vmem>>, %arg10: memref<2x10xf32, #tpu.memory_space<vmem>>, %arg11: memref<2x22x352xf32, #tpu.memory_space<vmem>>) attributes {dimension_semantics = [#tpu.dimension_semantics<arbitrary>], iteration_bounds = array<i64: 2>, scalar_prefetch = 0 : i64, scratch_operands = 1 : i64, tpu.core_type = #tpu.core_type<tc>, window_params = [{pipeline_mode = #tpu.pipeline_mode<synchronous>, transform_indices = @transform_0, window_bounds = array<i64: 2, 28, 28>}, {pipeline_mode = #tpu.pipeline_mode<synchronous>, transform_indices = @transform_1, window_bounds = array<i64: 3, 28, 208>}, {pipeline_mode = #tpu.pipeline_mode<synchronous>, transform_indices = @transform_2, window_bounds = array<i64: 1, 208>}, {pipeline_mode = #tpu.pipeline_mode<synchronous>, transform_indices = @transform_3, window_bounds = array<i64: 3, 200, 368>}, {pipeline_mode = #tpu.pipeline_mode<synchronous>, transform_indices = @transform_4, window_bounds = array<i64: 1, 368>}, {transform_indices = @transform_5, window_bounds = array<i64: 22, 352, 128>}, {transform_indices = @transform_6, window_bounds = array<i64: 1, 128>}, {transform_indices = @transform_7, window_bounds = array<i64: 128, 10>}, {pipeline_mode = #tpu.pipeline_mode<synchronous>, transform_indices = @transform_8, window_bounds = array<i64: 1, 10>}, {pipeline_mode = #tpu.pipeline_mode<synchronous>, transform_indices = @transform_9, window_bounds = array<i64: 2, 10>}]} {
    %c0_i32 = arith.constant 0 : i32
    %0 = arith.cmpi eq, %arg0, %c0_i32 : i32
    %1 = arith.extui %0 : i1 to i32
    %c0_i32_0 = arith.constant 0 : i32
    %2 = arith.cmpi ne, %1, %c0_i32_0 : i32
    scf.if %2 {
      %c0_143 = arith.constant 0 : index
      %c0_144 = arith.constant 0 : index
      %c0_145 = arith.constant 0 : index
      %169 = vector.load %arg1[%c0_143, %c0_144, %c0_145] : memref<2x28x28xf32, #tpu.memory_space<vmem>>, vector<1x28x28xf32>
      %170 = vector.shape_cast %169 : vector<1x28x28xf32> to vector<28x28xf32>
      %171 = vector.extract_strided_slice %170 {offsets = [0, 0], sizes = [26, 28], strides = [1, 1]} : vector<28x28xf32> to vector<26x28xf32>
      %172 = arith.truncf %171 : vector<26x28xf32> to vector<26x28xbf16>
      %c0_146 = arith.constant 0 : index
      %c0_147 = arith.constant 0 : index
      %c0_148 = arith.constant 0 : index
      %173 = vector.load %arg2[%c0_146, %c0_147, %c0_148] : memref<3x28x208xbf16, #tpu.memory_space<vmem>>, vector<1x28x208xbf16>
      %174 = vector.shape_cast %173 : vector<1x28x208xbf16> to vector<28x208xbf16>
      %cst_149 = arith.constant dense<0.000000e+00> : vector<26x208xf32>
      %175 = tpu.matmul %172, %174, %cst_149 {dimension_numbers = #tpu.dot_dimension_numbers<[1], [0], [0], [1], [0, 0, 1, 1], [], []>} : vector<26x28xbf16>, vector<28x208xbf16>, vector<26x208xf32> -> vector<26x208xf32>
      %176 = vector.extract_strided_slice %170 {offsets = [1, 0], sizes = [26, 28], strides = [1, 1]} : vector<28x28xf32> to vector<26x28xf32>
      %177 = arith.truncf %176 : vector<26x28xf32> to vector<26x28xbf16>
      %c1_150 = arith.constant 1 : index
      %c0_151 = arith.constant 0 : index
      %c0_152 = arith.constant 0 : index
      %178 = vector.load %arg2[%c1_150, %c0_151, %c0_152] : memref<3x28x208xbf16, #tpu.memory_space<vmem>>, vector<1x28x208xbf16>
      %179 = vector.shape_cast %178 : vector<1x28x208xbf16> to vector<28x208xbf16>
      %cst_153 = arith.constant dense<0.000000e+00> : vector<26x208xf32>
      %180 = tpu.matmul %177, %179, %cst_153 {dimension_numbers = #tpu.dot_dimension_numbers<[1], [0], [0], [1], [0, 0, 1, 1], [], []>} : vector<26x28xbf16>, vector<28x208xbf16>, vector<26x208xf32> -> vector<26x208xf32>
      %181 = arith.addf %175, %180 : vector<26x208xf32>
      %182 = vector.extract_strided_slice %170 {offsets = [2, 0], sizes = [26, 28], strides = [1, 1]} : vector<28x28xf32> to vector<26x28xf32>
      %183 = arith.truncf %182 : vector<26x28xf32> to vector<26x28xbf16>
      %c2_154 = arith.constant 2 : index
      %c0_155 = arith.constant 0 : index
      %c0_156 = arith.constant 0 : index
      %184 = vector.load %arg2[%c2_154, %c0_155, %c0_156] : memref<3x28x208xbf16, #tpu.memory_space<vmem>>, vector<1x28x208xbf16>
      %185 = vector.shape_cast %184 : vector<1x28x208xbf16> to vector<28x208xbf16>
      %cst_157 = arith.constant dense<0.000000e+00> : vector<26x208xf32>
      %186 = tpu.matmul %183, %185, %cst_157 {dimension_numbers = #tpu.dot_dimension_numbers<[1], [0], [0], [1], [0, 0, 1, 1], [], []>} : vector<26x28xbf16>, vector<28x208xbf16>, vector<26x208xf32> -> vector<26x208xf32>
      %187 = arith.addf %181, %186 : vector<26x208xf32>
      %c0_158 = arith.constant 0 : index
      %c0_159 = arith.constant 0 : index
      %188 = vector.load %arg3[%c0_158, %c0_159] : memref<1x208xf32, #tpu.memory_space<vmem>>, vector<1x208xf32>
      %189 = vector.broadcast %188 : vector<1x208xf32> to vector<26x208xf32>
      %190 = arith.addf %187, %189 : vector<26x208xf32>
      %191 = vector.extract_strided_slice %190 {offsets = [0, 0], sizes = [26, 200], strides = [1, 1]} : vector<26x208xf32> to vector<26x200xf32>
      %192 = vector.extract_strided_slice %190 {offsets = [0, 8], sizes = [26, 200], strides = [1, 1]} : vector<26x208xf32> to vector<26x200xf32>
      %193 = arith.maximumf %191, %192 : vector<26x200xf32>
      %194 = vector.extract_strided_slice %193 {offsets = [0, 0], sizes = [25, 200], strides = [1, 1]} : vector<26x200xf32> to vector<25x200xf32>
      %195 = vector.extract_strided_slice %193 {offsets = [1, 0], sizes = [25, 200], strides = [1, 1]} : vector<26x200xf32> to vector<25x200xf32>
      %196 = arith.maximumf %194, %195 : vector<25x200xf32>
      %cst_160 = arith.constant 0.000000e+00 : f32
      %197 = vector.broadcast %cst_160 : f32 to vector<25x200xf32>
      %198 = arith.maximumf %196, %197 : vector<25x200xf32>
      %199 = vector.extract_strided_slice %198 {offsets = [0, 0], sizes = [23, 200], strides = [1, 1]} : vector<25x200xf32> to vector<23x200xf32>
      %200 = arith.truncf %199 : vector<23x200xf32> to vector<23x200xbf16>
      %c0_161 = arith.constant 0 : index
      %c0_162 = arith.constant 0 : index
      %c0_163 = arith.constant 0 : index
      %201 = vector.load %arg4[%c0_161, %c0_162, %c0_163] : memref<3x200x368xbf16, #tpu.memory_space<vmem>>, vector<1x200x368xbf16>
      %202 = vector.shape_cast %201 : vector<1x200x368xbf16> to vector<200x368xbf16>
      %cst_164 = arith.constant dense<0.000000e+00> : vector<23x368xf32>
      %203 = tpu.matmul %200, %202, %cst_164 {dimension_numbers = #tpu.dot_dimension_numbers<[1], [0], [0], [1], [0, 0, 1, 1], [], []>} : vector<23x200xbf16>, vector<200x368xbf16>, vector<23x368xf32> -> vector<23x368xf32>
      %204 = vector.extract_strided_slice %198 {offsets = [1, 0], sizes = [23, 200], strides = [1, 1]} : vector<25x200xf32> to vector<23x200xf32>
      %205 = arith.truncf %204 : vector<23x200xf32> to vector<23x200xbf16>
      %c1_165 = arith.constant 1 : index
      %c0_166 = arith.constant 0 : index
      %c0_167 = arith.constant 0 : index
      %206 = vector.load %arg4[%c1_165, %c0_166, %c0_167] : memref<3x200x368xbf16, #tpu.memory_space<vmem>>, vector<1x200x368xbf16>
      %207 = vector.shape_cast %206 : vector<1x200x368xbf16> to vector<200x368xbf16>
      %cst_168 = arith.constant dense<0.000000e+00> : vector<23x368xf32>
      %208 = tpu.matmul %205, %207, %cst_168 {dimension_numbers = #tpu.dot_dimension_numbers<[1], [0], [0], [1], [0, 0, 1, 1], [], []>} : vector<23x200xbf16>, vector<200x368xbf16>, vector<23x368xf32> -> vector<23x368xf32>
      %209 = arith.addf %203, %208 : vector<23x368xf32>
      %210 = vector.extract_strided_slice %198 {offsets = [2, 0], sizes = [23, 200], strides = [1, 1]} : vector<25x200xf32> to vector<23x200xf32>
      %211 = arith.truncf %210 : vector<23x200xf32> to vector<23x200xbf16>
      %c2_169 = arith.constant 2 : index
      %c0_170 = arith.constant 0 : index
      %c0_171 = arith.constant 0 : index
      %212 = vector.load %arg4[%c2_169, %c0_170, %c0_171] : memref<3x200x368xbf16, #tpu.memory_space<vmem>>, vector<1x200x368xbf16>
      %213 = vector.shape_cast %212 : vector<1x200x368xbf16> to vector<200x368xbf16>
      %cst_172 = arith.constant dense<0.000000e+00> : vector<23x368xf32>
      %214 = tpu.matmul %211, %213, %cst_172 {dimension_numbers = #tpu.dot_dimension_numbers<[1], [0], [0], [1], [0, 0, 1, 1], [], []>} : vector<23x200xbf16>, vector<200x368xbf16>, vector<23x368xf32> -> vector<23x368xf32>
      %215 = arith.addf %209, %214 : vector<23x368xf32>
      %c0_173 = arith.constant 0 : index
      %c0_174 = arith.constant 0 : index
      %216 = vector.load %arg5[%c0_173, %c0_174] : memref<1x368xf32, #tpu.memory_space<vmem>>, vector<1x368xf32>
      %217 = vector.broadcast %216 : vector<1x368xf32> to vector<23x368xf32>
      %218 = arith.addf %215, %217 : vector<23x368xf32>
      %219 = vector.extract_strided_slice %218 {offsets = [0, 0], sizes = [23, 352], strides = [1, 1]} : vector<23x368xf32> to vector<23x352xf32>
      %220 = vector.extract_strided_slice %218 {offsets = [0, 16], sizes = [23, 352], strides = [1, 1]} : vector<23x368xf32> to vector<23x352xf32>
      %221 = arith.maximumf %219, %220 : vector<23x352xf32>
      %222 = vector.extract_strided_slice %221 {offsets = [0, 0], sizes = [22, 352], strides = [1, 1]} : vector<23x352xf32> to vector<22x352xf32>
      %223 = vector.extract_strided_slice %221 {offsets = [1, 0], sizes = [22, 352], strides = [1, 1]} : vector<23x352xf32> to vector<22x352xf32>
      %224 = arith.maximumf %222, %223 : vector<22x352xf32>
      %cst_175 = arith.constant 0.000000e+00 : f32
      %225 = vector.broadcast %cst_175 : f32 to vector<22x352xf32>
      %226 = arith.maximumf %224, %225 : vector<22x352xf32>
      %c0_176 = arith.constant 0 : index
      %c0_177 = arith.constant 0 : index
      %c0_178 = arith.constant 0 : index
      %227 = vector.load %arg11[%c0_176, %c0_177, %c0_178] : memref<2x22x352xf32, #tpu.memory_space<vmem>>, vector<1x22x352xf32>
      %228 = vector.shape_cast %227 : vector<1x22x352xf32> to vector<22x352xf32>
      %229 = vector.shape_cast %226 : vector<22x352xf32> to vector<1x22x352xf32>
      tpu.vector_store %arg11[%c0_176, %c0_177, %c0_178], %229 {strides = array<i32>} : memref<2x22x352xf32, #tpu.memory_space<vmem>>, vector<1x22x352xf32>,
      %c1_179 = arith.constant 1 : index
      %c0_180 = arith.constant 0 : index
      %c0_181 = arith.constant 0 : index
      %230 = vector.load %arg1[%c1_179, %c0_180, %c0_181] : memref<2x28x28xf32, #tpu.memory_space<vmem>>, vector<1x28x28xf32>
      %231 = vector.shape_cast %230 : vector<1x28x28xf32> to vector<28x28xf32>
      %232 = vector.extract_strided_slice %231 {offsets = [0, 0], sizes = [26, 28], strides = [1, 1]} : vector<28x28xf32> to vector<26x28xf32>
      %233 = arith.truncf %232 : vector<26x28xf32> to vector<26x28xbf16>
      %c0_182 = arith.constant 0 : index
      %c0_183 = arith.constant 0 : index
      %c0_184 = arith.constant 0 : index
      %234 = vector.load %arg2[%c0_182, %c0_183, %c0_184] : memref<3x28x208xbf16, #tpu.memory_space<vmem>>, vector<1x28x208xbf16>
      %235 = vector.shape_cast %234 : vector<1x28x208xbf16> to vector<28x208xbf16>
      %cst_185 = arith.constant dense<0.000000e+00> : vector<26x208xf32>
      %236 = tpu.matmul %233, %235, %cst_185 {dimension_numbers = #tpu.dot_dimension_numbers<[1], [0], [0], [1], [0, 0, 1, 1], [], []>} : vector<26x28xbf16>, vector<28x208xbf16>, vector<26x208xf32> -> vector<26x208xf32>
      %237 = vector.extract_strided_slice %231 {offsets = [1, 0], sizes = [26, 28], strides = [1, 1]} : vector<28x28xf32> to vector<26x28xf32>
      %238 = arith.truncf %237 : vector<26x28xf32> to vector<26x28xbf16>
      %c1_186 = arith.constant 1 : index
      %c0_187 = arith.constant 0 : index
      %c0_188 = arith.constant 0 : index
      %239 = vector.load %arg2[%c1_186, %c0_187, %c0_188] : memref<3x28x208xbf16, #tpu.memory_space<vmem>>, vector<1x28x208xbf16>
      %240 = vector.shape_cast %239 : vector<1x28x208xbf16> to vector<28x208xbf16>
      %cst_189 = arith.constant dense<0.000000e+00> : vector<26x208xf32>
      %241 = tpu.matmul %238, %240, %cst_189 {dimension_numbers = #tpu.dot_dimension_numbers<[1], [0], [0], [1], [0, 0, 1, 1], [], []>} : vector<26x28xbf16>, vector<28x208xbf16>, vector<26x208xf32> -> vector<26x208xf32>
      %242 = arith.addf %236, %241 : vector<26x208xf32>
      %243 = vector.extract_strided_slice %231 {offsets = [2, 0], sizes = [26, 28], strides = [1, 1]} : vector<28x28xf32> to vector<26x28xf32>
      %244 = arith.truncf %243 : vector<26x28xf32> to vector<26x28xbf16>
      %c2_190 = arith.constant 2 : index
      %c0_191 = arith.constant 0 : index
      %c0_192 = arith.constant 0 : index
      %245 = vector.load %arg2[%c2_190, %c0_191, %c0_192] : memref<3x28x208xbf16, #tpu.memory_space<vmem>>, vector<1x28x208xbf16>
      %246 = vector.shape_cast %245 : vector<1x28x208xbf16> to vector<28x208xbf16>
      %cst_193 = arith.constant dense<0.000000e+00> : vector<26x208xf32>
      %247 = tpu.matmul %244, %246, %cst_193 {dimension_numbers = #tpu.dot_dimension_numbers<[1], [0], [0], [1], [0, 0, 1, 1], [], []>} : vector<26x28xbf16>, vector<28x208xbf16>, vector<26x208xf32> -> vector<26x208xf32>
      %248 = arith.addf %242, %247 : vector<26x208xf32>
      %c0_194 = arith.constant 0 : index
      %c0_195 = arith.constant 0 : index
      %249 = vector.load %arg3[%c0_194, %c0_195] : memref<1x208xf32, #tpu.memory_space<vmem>>, vector<1x208xf32>
      %250 = vector.broadcast %249 : vector<1x208xf32> to vector<26x208xf32>
      %251 = arith.addf %248, %250 : vector<26x208xf32>
      %252 = vector.extract_strided_slice %251 {offsets = [0, 0], sizes = [26, 200], strides = [1, 1]} : vector<26x208xf32> to vector<26x200xf32>
      %253 = vector.extract_strided_slice %251 {offsets = [0, 8], sizes = [26, 200], strides = [1, 1]} : vector<26x208xf32> to vector<26x200xf32>
      %254 = arith.maximumf %252, %253 : vector<26x200xf32>
      %255 = vector.extract_strided_slice %254 {offsets = [0, 0], sizes = [25, 200], strides = [1, 1]} : vector<26x200xf32> to vector<25x200xf32>
      %256 = vector.extract_strided_slice %254 {offsets = [1, 0], sizes = [25, 200], strides = [1, 1]} : vector<26x200xf32> to vector<25x200xf32>
      %257 = arith.maximumf %255, %256 : vector<25x200xf32>
      %cst_196 = arith.constant 0.000000e+00 : f32
      %258 = vector.broadcast %cst_196 : f32 to vector<25x200xf32>
      %259 = arith.maximumf %257, %258 : vector<25x200xf32>
      %260 = vector.extract_strided_slice %259 {offsets = [0, 0], sizes = [23, 200], strides = [1, 1]} : vector<25x200xf32> to vector<23x200xf32>
      %261 = arith.truncf %260 : vector<23x200xf32> to vector<23x200xbf16>
      %c0_197 = arith.constant 0 : index
      %c0_198 = arith.constant 0 : index
      %c0_199 = arith.constant 0 : index
      %262 = vector.load %arg4[%c0_197, %c0_198, %c0_199] : memref<3x200x368xbf16, #tpu.memory_space<vmem>>, vector<1x200x368xbf16>
      %263 = vector.shape_cast %262 : vector<1x200x368xbf16> to vector<200x368xbf16>
      %cst_200 = arith.constant dense<0.000000e+00> : vector<23x368xf32>
      %264 = tpu.matmul %261, %263, %cst_200 {dimension_numbers = #tpu.dot_dimension_numbers<[1], [0], [0], [1], [0, 0, 1, 1], [], []>} : vector<23x200xbf16>, vector<200x368xbf16>, vector<23x368xf32> -> vector<23x368xf32>
      %265 = vector.extract_strided_slice %259 {offsets = [1, 0], sizes = [23, 200], strides = [1, 1]} : vector<25x200xf32> to vector<23x200xf32>
      %266 = arith.truncf %265 : vector<23x200xf32> to vector<23x200xbf16>
      %c1_201 = arith.constant 1 : index
      %c0_202 = arith.constant 0 : index
      %c0_203 = arith.constant 0 : index
      %267 = vector.load %arg4[%c1_201, %c0_202, %c0_203] : memref<3x200x368xbf16, #tpu.memory_space<vmem>>, vector<1x200x368xbf16>
      %268 = vector.shape_cast %267 : vector<1x200x368xbf16> to vector<200x368xbf16>
      %cst_204 = arith.constant dense<0.000000e+00> : vector<23x368xf32>
      %269 = tpu.matmul %266, %268, %cst_204 {dimension_numbers = #tpu.dot_dimension_numbers<[1], [0], [0], [1], [0, 0, 1, 1], [], []>} : vector<23x200xbf16>, vector<200x368xbf16>, vector<23x368xf32> -> vector<23x368xf32>
      %270 = arith.addf %264, %269 : vector<23x368xf32>
      %271 = vector.extract_strided_slice %259 {offsets = [2, 0], sizes = [23, 200], strides = [1, 1]} : vector<25x200xf32> to vector<23x200xf32>
      %272 = arith.truncf %271 : vector<23x200xf32> to vector<23x200xbf16>
      %c2_205 = arith.constant 2 : index
      %c0_206 = arith.constant 0 : index
      %c0_207 = arith.constant 0 : index
      %273 = vector.load %arg4[%c2_205, %c0_206, %c0_207] : memref<3x200x368xbf16, #tpu.memory_space<vmem>>, vector<1x200x368xbf16>
      %274 = vector.shape_cast %273 : vector<1x200x368xbf16> to vector<200x368xbf16>
      %cst_208 = arith.constant dense<0.000000e+00> : vector<23x368xf32>
      %275 = tpu.matmul %272, %274, %cst_208 {dimension_numbers = #tpu.dot_dimension_numbers<[1], [0], [0], [1], [0, 0, 1, 1], [], []>} : vector<23x200xbf16>, vector<200x368xbf16>, vector<23x368xf32> -> vector<23x368xf32>
      %276 = arith.addf %270, %275 : vector<23x368xf32>
      %c0_209 = arith.constant 0 : index
      %c0_210 = arith.constant 0 : index
      %277 = vector.load %arg5[%c0_209, %c0_210] : memref<1x368xf32, #tpu.memory_space<vmem>>, vector<1x368xf32>
      %278 = vector.broadcast %277 : vector<1x368xf32> to vector<23x368xf32>
      %279 = arith.addf %276, %278 : vector<23x368xf32>
      %280 = vector.extract_strided_slice %279 {offsets = [0, 0], sizes = [23, 352], strides = [1, 1]} : vector<23x368xf32> to vector<23x352xf32>
      %281 = vector.extract_strided_slice %279 {offsets = [0, 16], sizes = [23, 352], strides = [1, 1]} : vector<23x368xf32> to vector<23x352xf32>
      %282 = arith.maximumf %280, %281 : vector<23x352xf32>
      %283 = vector.extract_strided_slice %282 {offsets = [0, 0], sizes = [22, 352], strides = [1, 1]} : vector<23x352xf32> to vector<22x352xf32>
      %284 = vector.extract_strided_slice %282 {offsets = [1, 0], sizes = [22, 352], strides = [1, 1]} : vector<23x352xf32> to vector<22x352xf32>
      %285 = arith.maximumf %283, %284 : vector<22x352xf32>
      %cst_211 = arith.constant 0.000000e+00 : f32
      %286 = vector.broadcast %cst_211 : f32 to vector<22x352xf32>
      %287 = arith.maximumf %285, %286 : vector<22x352xf32>
      %c1_212 = arith.constant 1 : index
      %c0_213 = arith.constant 0 : index
      %c0_214 = arith.constant 0 : index
      %288 = vector.load %arg11[%c1_212, %c0_213, %c0_214] : memref<2x22x352xf32, #tpu.memory_space<vmem>>, vector<1x22x352xf32>
      %289 = vector.shape_cast %288 : vector<1x22x352xf32> to vector<22x352xf32>
      %290 = vector.shape_cast %287 : vector<22x352xf32> to vector<1x22x352xf32>
      tpu.vector_store %arg11[%c1_212, %c0_213, %c0_214], %290 {strides = array<i32>} : memref<2x22x352xf32, #tpu.memory_space<vmem>>, vector<1x22x352xf32>,
      %cst_215 = arith.constant 0.000000e+00 : f32
      %291 = vector.broadcast %cst_215 : f32 to vector<2x10xf32>
      %c0_216 = arith.constant 0 : index
      %c0_217 = arith.constant 0 : index
      %292 = vector.load %arg10[%c0_216, %c0_217] : memref<2x10xf32, #tpu.memory_space<vmem>>, vector<2x10xf32>
      tpu.vector_store %arg10[%c0_216, %c0_217], %291 {strides = array<i32>} : memref<2x10xf32, #tpu.memory_space<vmem>>, vector<2x10xf32>,
    } else {
    }
    %c0 = arith.constant 0 : index
    %c0_1 = arith.constant 0 : index
    %c0_2 = arith.constant 0 : index
    %3 = vector.load %arg11[%c0, %c0_1, %c0_2] : memref<2x22x352xf32, #tpu.memory_space<vmem>>, vector<2x1x352xf32>
    %4 = vector.shape_cast %3 : vector<2x1x352xf32> to vector<2x352xf32>
    %5 = arith.truncf %4 : vector<2x352xf32> to vector<2x352xbf16>
    %c0_3 = arith.constant 0 : index
    %c0_4 = arith.constant 0 : index
    %c0_5 = arith.constant 0 : index
    %6 = vector.load %arg6[%c0_3, %c0_4, %c0_5] : memref<22x352x128xbf16, #tpu.memory_space<vmem>>, vector<1x352x128xbf16>
    %7 = vector.shape_cast %6 : vector<1x352x128xbf16> to vector<352x128xbf16>
    %cst = arith.constant dense<0.000000e+00> : vector<2x128xf32>
    %8 = tpu.matmul %5, %7, %cst {dimension_numbers = #tpu.dot_dimension_numbers<[1], [0], [0], [1], [0, 0, 1, 1], [], []>} : vector<2x352xbf16>, vector<352x128xbf16>, vector<2x128xf32> -> vector<2x128xf32>
    %c0_6 = arith.constant 0 : index
    %c1 = arith.constant 1 : index
    %c0_7 = arith.constant 0 : index
    %9 = vector.load %arg11[%c0_6, %c1, %c0_7] : memref<2x22x352xf32, #tpu.memory_space<vmem>>, vector<2x1x352xf32>
    %10 = vector.shape_cast %9 : vector<2x1x352xf32> to vector<2x352xf32>
    %11 = arith.truncf %10 : vector<2x352xf32> to vector<2x352xbf16>
    %c1_8 = arith.constant 1 : index
    %c0_9 = arith.constant 0 : index
    %c0_10 = arith.constant 0 : index
    %12 = vector.load %arg6[%c1_8, %c0_9, %c0_10] : memref<22x352x128xbf16, #tpu.memory_space<vmem>>, vector<1x352x128xbf16>
    %13 = vector.shape_cast %12 : vector<1x352x128xbf16> to vector<352x128xbf16>
    %cst_11 = arith.constant dense<0.000000e+00> : vector<2x128xf32>
    %14 = tpu.matmul %11, %13, %cst_11 {dimension_numbers = #tpu.dot_dimension_numbers<[1], [0], [0], [1], [0, 0, 1, 1], [], []>} : vector<2x352xbf16>, vector<352x128xbf16>, vector<2x128xf32> -> vector<2x128xf32>
    %15 = arith.addf %8, %14 : vector<2x128xf32>
    %c0_12 = arith.constant 0 : index
    %c2 = arith.constant 2 : index
    %c0_13 = arith.constant 0 : index
    %16 = vector.load %arg11[%c0_12, %c2, %c0_13] : memref<2x22x352xf32, #tpu.memory_space<vmem>>, vector<2x1x352xf32>
    %17 = vector.shape_cast %16 : vector<2x1x352xf32> to vector<2x352xf32>
    %18 = arith.truncf %17 : vector<2x352xf32> to vector<2x352xbf16>
    %c2_14 = arith.constant 2 : index
    %c0_15 = arith.constant 0 : index
    %c0_16 = arith.constant 0 : index
    %19 = vector.load %arg6[%c2_14, %c0_15, %c0_16] : memref<22x352x128xbf16, #tpu.memory_space<vmem>>, vector<1x352x128xbf16>
    %20 = vector.shape_cast %19 : vector<1x352x128xbf16> to vector<352x128xbf16>
    %cst_17 = arith.constant dense<0.000000e+00> : vector<2x128xf32>
    %21 = tpu.matmul %18, %20, %cst_17 {dimension_numbers = #tpu.dot_dimension_numbers<[1], [0], [0], [1], [0, 0, 1, 1], [], []>} : vector<2x352xbf16>, vector<352x128xbf16>, vector<2x128xf32> -> vector<2x128xf32>
    %22 = arith.addf %15, %21 : vector<2x128xf32>
    %c0_18 = arith.constant 0 : index
    %c3 = arith.constant 3 : index
    %c0_19 = arith.constant 0 : index
    %23 = vector.load %arg11[%c0_18, %c3, %c0_19] : memref<2x22x352xf32, #tpu.memory_space<vmem>>, vector<2x1x352xf32>
    %24 = vector.shape_cast %23 : vector<2x1x352xf32> to vector<2x352xf32>
    %25 = arith.truncf %24 : vector<2x352xf32> to vector<2x352xbf16>
    %c3_20 = arith.constant 3 : index
    %c0_21 = arith.constant 0 : index
    %c0_22 = arith.constant 0 : index
    %26 = vector.load %arg6[%c3_20, %c0_21, %c0_22] : memref<22x352x128xbf16, #tpu.memory_space<vmem>>, vector<1x352x128xbf16>
    %27 = vector.shape_cast %26 : vector<1x352x128xbf16> to vector<352x128xbf16>
    %cst_23 = arith.constant dense<0.000000e+00> : vector<2x128xf32>
    %28 = tpu.matmul %25, %27, %cst_23 {dimension_numbers = #tpu.dot_dimension_numbers<[1], [0], [0], [1], [0, 0, 1, 1], [], []>} : vector<2x352xbf16>, vector<352x128xbf16>, vector<2x128xf32> -> vector<2x128xf32>
    %29 = arith.addf %22, %28 : vector<2x128xf32>
    %c0_24 = arith.constant 0 : index
    %c4 = arith.constant 4 : index
    %c0_25 = arith.constant 0 : index
    %30 = vector.load %arg11[%c0_24, %c4, %c0_25] : memref<2x22x352xf32, #tpu.memory_space<vmem>>, vector<2x1x352xf32>
    %31 = vector.shape_cast %30 : vector<2x1x352xf32> to vector<2x352xf32>
    %32 = arith.truncf %31 : vector<2x352xf32> to vector<2x352xbf16>
    %c4_26 = arith.constant 4 : index
    %c0_27 = arith.constant 0 : index
    %c0_28 = arith.constant 0 : index
    %33 = vector.load %arg6[%c4_26, %c0_27, %c0_28] : memref<22x352x128xbf16, #tpu.memory_space<vmem>>, vector<1x352x128xbf16>
    %34 = vector.shape_cast %33 : vector<1x352x128xbf16> to vector<352x128xbf16>
    %cst_29 = arith.constant dense<0.000000e+00> : vector<2x128xf32>
    %35 = tpu.matmul %32, %34, %cst_29 {dimension_numbers = #tpu.dot_dimension_numbers<[1], [0], [0], [1], [0, 0, 1, 1], [], []>} : vector<2x352xbf16>, vector<352x128xbf16>, vector<2x128xf32> -> vector<2x128xf32>
    %36 = arith.addf %29, %35 : vector<2x128xf32>
    %c0_30 = arith.constant 0 : index
    %c5 = arith.constant 5 : index
    %c0_31 = arith.constant 0 : index
    %37 = vector.load %arg11[%c0_30, %c5, %c0_31] : memref<2x22x352xf32, #tpu.memory_space<vmem>>, vector<2x1x352xf32>
    %38 = vector.shape_cast %37 : vector<2x1x352xf32> to vector<2x352xf32>
    %39 = arith.truncf %38 : vector<2x352xf32> to vector<2x352xbf16>
    %c5_32 = arith.constant 5 : index
    %c0_33 = arith.constant 0 : index
    %c0_34 = arith.constant 0 : index
    %40 = vector.load %arg6[%c5_32, %c0_33, %c0_34] : memref<22x352x128xbf16, #tpu.memory_space<vmem>>, vector<1x352x128xbf16>
    %41 = vector.shape_cast %40 : vector<1x352x128xbf16> to vector<352x128xbf16>
    %cst_35 = arith.constant dense<0.000000e+00> : vector<2x128xf32>
    %42 = tpu.matmul %39, %41, %cst_35 {dimension_numbers = #tpu.dot_dimension_numbers<[1], [0], [0], [1], [0, 0, 1, 1], [], []>} : vector<2x352xbf16>, vector<352x128xbf16>, vector<2x128xf32> -> vector<2x128xf32>
    %43 = arith.addf %36, %42 : vector<2x128xf32>
    %c0_36 = arith.constant 0 : index
    %c6 = arith.constant 6 : index
    %c0_37 = arith.constant 0 : index
    %44 = vector.load %arg11[%c0_36, %c6, %c0_37] : memref<2x22x352xf32, #tpu.memory_space<vmem>>, vector<2x1x352xf32>
    %45 = vector.shape_cast %44 : vector<2x1x352xf32> to vector<2x352xf32>
    %46 = arith.truncf %45 : vector<2x352xf32> to vector<2x352xbf16>
    %c6_38 = arith.constant 6 : index
    %c0_39 = arith.constant 0 : index
    %c0_40 = arith.constant 0 : index
    %47 = vector.load %arg6[%c6_38, %c0_39, %c0_40] : memref<22x352x128xbf16, #tpu.memory_space<vmem>>, vector<1x352x128xbf16>
    %48 = vector.shape_cast %47 : vector<1x352x128xbf16> to vector<352x128xbf16>
    %cst_41 = arith.constant dense<0.000000e+00> : vector<2x128xf32>
    %49 = tpu.matmul %46, %48, %cst_41 {dimension_numbers = #tpu.dot_dimension_numbers<[1], [0], [0], [1], [0, 0, 1, 1], [], []>} : vector<2x352xbf16>, vector<352x128xbf16>, vector<2x128xf32> -> vector<2x128xf32>
    %50 = arith.addf %43, %49 : vector<2x128xf32>
    %c0_42 = arith.constant 0 : index
    %c7 = arith.constant 7 : index
    %c0_43 = arith.constant 0 : index
    %51 = vector.load %arg11[%c0_42, %c7, %c0_43] : memref<2x22x352xf32, #tpu.memory_space<vmem>>, vector<2x1x352xf32>
    %52 = vector.shape_cast %51 : vector<2x1x352xf32> to vector<2x352xf32>
    %53 = arith.truncf %52 : vector<2x352xf32> to vector<2x352xbf16>
    %c7_44 = arith.constant 7 : index
    %c0_45 = arith.constant 0 : index
    %c0_46 = arith.constant 0 : index
    %54 = vector.load %arg6[%c7_44, %c0_45, %c0_46] : memref<22x352x128xbf16, #tpu.memory_space<vmem>>, vector<1x352x128xbf16>
    %55 = vector.shape_cast %54 : vector<1x352x128xbf16> to vector<352x128xbf16>
    %cst_47 = arith.constant dense<0.000000e+00> : vector<2x128xf32>
    %56 = tpu.matmul %53, %55, %cst_47 {dimension_numbers = #tpu.dot_dimension_numbers<[1], [0], [0], [1], [0, 0, 1, 1], [], []>} : vector<2x352xbf16>, vector<352x128xbf16>, vector<2x128xf32> -> vector<2x128xf32>
    %57 = arith.addf %50, %56 : vector<2x128xf32>
    %c0_48 = arith.constant 0 : index
    %c8 = arith.constant 8 : index
    %c0_49 = arith.constant 0 : index
    %58 = vector.load %arg11[%c0_48, %c8, %c0_49] : memref<2x22x352xf32, #tpu.memory_space<vmem>>, vector<2x1x352xf32>
    %59 = vector.shape_cast %58 : vector<2x1x352xf32> to vector<2x352xf32>
    %60 = arith.truncf %59 : vector<2x352xf32> to vector<2x352xbf16>
    %c8_50 = arith.constant 8 : index
    %c0_51 = arith.constant 0 : index
    %c0_52 = arith.constant 0 : index
    %61 = vector.load %arg6[%c8_50, %c0_51, %c0_52] : memref<22x352x128xbf16, #tpu.memory_space<vmem>>, vector<1x352x128xbf16>
    %62 = vector.shape_cast %61 : vector<1x352x128xbf16> to vector<352x128xbf16>
    %cst_53 = arith.constant dense<0.000000e+00> : vector<2x128xf32>
    %63 = tpu.matmul %60, %62, %cst_53 {dimension_numbers = #tpu.dot_dimension_numbers<[1], [0], [0], [1], [0, 0, 1, 1], [], []>} : vector<2x352xbf16>, vector<352x128xbf16>, vector<2x128xf32> -> vector<2x128xf32>
    %64 = arith.addf %57, %63 : vector<2x128xf32>
    %c0_54 = arith.constant 0 : index
    %c9 = arith.constant 9 : index
    %c0_55 = arith.constant 0 : index
    %65 = vector.load %arg11[%c0_54, %c9, %c0_55] : memref<2x22x352xf32, #tpu.memory_space<vmem>>, vector<2x1x352xf32>
    %66 = vector.shape_cast %65 : vector<2x1x352xf32> to vector<2x352xf32>
    %67 = arith.truncf %66 : vector<2x352xf32> to vector<2x352xbf16>
    %c9_56 = arith.constant 9 : index
    %c0_57 = arith.constant 0 : index
    %c0_58 = arith.constant 0 : index
    %68 = vector.load %arg6[%c9_56, %c0_57, %c0_58] : memref<22x352x128xbf16, #tpu.memory_space<vmem>>, vector<1x352x128xbf16>
    %69 = vector.shape_cast %68 : vector<1x352x128xbf16> to vector<352x128xbf16>
    %cst_59 = arith.constant dense<0.000000e+00> : vector<2x128xf32>
    %70 = tpu.matmul %67, %69, %cst_59 {dimension_numbers = #tpu.dot_dimension_numbers<[1], [0], [0], [1], [0, 0, 1, 1], [], []>} : vector<2x352xbf16>, vector<352x128xbf16>, vector<2x128xf32> -> vector<2x128xf32>
    %71 = arith.addf %64, %70 : vector<2x128xf32>
    %c0_60 = arith.constant 0 : index
    %c10 = arith.constant 10 : index
    %c0_61 = arith.constant 0 : index
    %72 = vector.load %arg11[%c0_60, %c10, %c0_61] : memref<2x22x352xf32, #tpu.memory_space<vmem>>, vector<2x1x352xf32>
    %73 = vector.shape_cast %72 : vector<2x1x352xf32> to vector<2x352xf32>
    %74 = arith.truncf %73 : vector<2x352xf32> to vector<2x352xbf16>
    %c10_62 = arith.constant 10 : index
    %c0_63 = arith.constant 0 : index
    %c0_64 = arith.constant 0 : index
    %75 = vector.load %arg6[%c10_62, %c0_63, %c0_64] : memref<22x352x128xbf16, #tpu.memory_space<vmem>>, vector<1x352x128xbf16>
    %76 = vector.shape_cast %75 : vector<1x352x128xbf16> to vector<352x128xbf16>
    %cst_65 = arith.constant dense<0.000000e+00> : vector<2x128xf32>
    %77 = tpu.matmul %74, %76, %cst_65 {dimension_numbers = #tpu.dot_dimension_numbers<[1], [0], [0], [1], [0, 0, 1, 1], [], []>} : vector<2x352xbf16>, vector<352x128xbf16>, vector<2x128xf32> -> vector<2x128xf32>
    %78 = arith.addf %71, %77 : vector<2x128xf32>
    %c0_66 = arith.constant 0 : index
    %c11 = arith.constant 11 : index
    %c0_67 = arith.constant 0 : index
    %79 = vector.load %arg11[%c0_66, %c11, %c0_67] : memref<2x22x352xf32, #tpu.memory_space<vmem>>, vector<2x1x352xf32>
    %80 = vector.shape_cast %79 : vector<2x1x352xf32> to vector<2x352xf32>
    %81 = arith.truncf %80 : vector<2x352xf32> to vector<2x352xbf16>
    %c11_68 = arith.constant 11 : index
    %c0_69 = arith.constant 0 : index
    %c0_70 = arith.constant 0 : index
    %82 = vector.load %arg6[%c11_68, %c0_69, %c0_70] : memref<22x352x128xbf16, #tpu.memory_space<vmem>>, vector<1x352x128xbf16>
    %83 = vector.shape_cast %82 : vector<1x352x128xbf16> to vector<352x128xbf16>
    %cst_71 = arith.constant dense<0.000000e+00> : vector<2x128xf32>
    %84 = tpu.matmul %81, %83, %cst_71 {dimension_numbers = #tpu.dot_dimension_numbers<[1], [0], [0], [1], [0, 0, 1, 1], [], []>} : vector<2x352xbf16>, vector<352x128xbf16>, vector<2x128xf32> -> vector<2x128xf32>
    %85 = arith.addf %78, %84 : vector<2x128xf32>
    %c0_72 = arith.constant 0 : index
    %c12 = arith.constant 12 : index
    %c0_73 = arith.constant 0 : index
    %86 = vector.load %arg11[%c0_72, %c12, %c0_73] : memref<2x22x352xf32, #tpu.memory_space<vmem>>, vector<2x1x352xf32>
    %87 = vector.shape_cast %86 : vector<2x1x352xf32> to vector<2x352xf32>
    %88 = arith.truncf %87 : vector<2x352xf32> to vector<2x352xbf16>
    %c12_74 = arith.constant 12 : index
    %c0_75 = arith.constant 0 : index
    %c0_76 = arith.constant 0 : index
    %89 = vector.load %arg6[%c12_74, %c0_75, %c0_76] : memref<22x352x128xbf16, #tpu.memory_space<vmem>>, vector<1x352x128xbf16>
    %90 = vector.shape_cast %89 : vector<1x352x128xbf16> to vector<352x128xbf16>
    %cst_77 = arith.constant dense<0.000000e+00> : vector<2x128xf32>
    %91 = tpu.matmul %88, %90, %cst_77 {dimension_numbers = #tpu.dot_dimension_numbers<[1], [0], [0], [1], [0, 0, 1, 1], [], []>} : vector<2x352xbf16>, vector<352x128xbf16>, vector<2x128xf32> -> vector<2x128xf32>
    %92 = arith.addf %85, %91 : vector<2x128xf32>
    %c0_78 = arith.constant 0 : index
    %c13 = arith.constant 13 : index
    %c0_79 = arith.constant 0 : index
    %93 = vector.load %arg11[%c0_78, %c13, %c0_79] : memref<2x22x352xf32, #tpu.memory_space<vmem>>, vector<2x1x352xf32>
    %94 = vector.shape_cast %93 : vector<2x1x352xf32> to vector<2x352xf32>
    %95 = arith.truncf %94 : vector<2x352xf32> to vector<2x352xbf16>
    %c13_80 = arith.constant 13 : index
    %c0_81 = arith.constant 0 : index
    %c0_82 = arith.constant 0 : index
    %96 = vector.load %arg6[%c13_80, %c0_81, %c0_82] : memref<22x352x128xbf16, #tpu.memory_space<vmem>>, vector<1x352x128xbf16>
    %97 = vector.shape_cast %96 : vector<1x352x128xbf16> to vector<352x128xbf16>
    %cst_83 = arith.constant dense<0.000000e+00> : vector<2x128xf32>
    %98 = tpu.matmul %95, %97, %cst_83 {dimension_numbers = #tpu.dot_dimension_numbers<[1], [0], [0], [1], [0, 0, 1, 1], [], []>} : vector<2x352xbf16>, vector<352x128xbf16>, vector<2x128xf32> -> vector<2x128xf32>
    %99 = arith.addf %92, %98 : vector<2x128xf32>
    %c0_84 = arith.constant 0 : index
    %c14 = arith.constant 14 : index
    %c0_85 = arith.constant 0 : index
    %100 = vector.load %arg11[%c0_84, %c14, %c0_85] : memref<2x22x352xf32, #tpu.memory_space<vmem>>, vector<2x1x352xf32>
    %101 = vector.shape_cast %100 : vector<2x1x352xf32> to vector<2x352xf32>
    %102 = arith.truncf %101 : vector<2x352xf32> to vector<2x352xbf16>
    %c14_86 = arith.constant 14 : index
    %c0_87 = arith.constant 0 : index
    %c0_88 = arith.constant 0 : index
    %103 = vector.load %arg6[%c14_86, %c0_87, %c0_88] : memref<22x352x128xbf16, #tpu.memory_space<vmem>>, vector<1x352x128xbf16>
    %104 = vector.shape_cast %103 : vector<1x352x128xbf16> to vector<352x128xbf16>
    %cst_89 = arith.constant dense<0.000000e+00> : vector<2x128xf32>
    %105 = tpu.matmul %102, %104, %cst_89 {dimension_numbers = #tpu.dot_dimension_numbers<[1], [0], [0], [1], [0, 0, 1, 1], [], []>} : vector<2x352xbf16>, vector<352x128xbf16>, vector<2x128xf32> -> vector<2x128xf32>
    %106 = arith.addf %99, %105 : vector<2x128xf32>
    %c0_90 = arith.constant 0 : index
    %c15 = arith.constant 15 : index
    %c0_91 = arith.constant 0 : index
    %107 = vector.load %arg11[%c0_90, %c15, %c0_91] : memref<2x22x352xf32, #tpu.memory_space<vmem>>, vector<2x1x352xf32>
    %108 = vector.shape_cast %107 : vector<2x1x352xf32> to vector<2x352xf32>
    %109 = arith.truncf %108 : vector<2x352xf32> to vector<2x352xbf16>
    %c15_92 = arith.constant 15 : index
    %c0_93 = arith.constant 0 : index
    %c0_94 = arith.constant 0 : index
    %110 = vector.load %arg6[%c15_92, %c0_93, %c0_94] : memref<22x352x128xbf16, #tpu.memory_space<vmem>>, vector<1x352x128xbf16>
    %111 = vector.shape_cast %110 : vector<1x352x128xbf16> to vector<352x128xbf16>
    %cst_95 = arith.constant dense<0.000000e+00> : vector<2x128xf32>
    %112 = tpu.matmul %109, %111, %cst_95 {dimension_numbers = #tpu.dot_dimension_numbers<[1], [0], [0], [1], [0, 0, 1, 1], [], []>} : vector<2x352xbf16>, vector<352x128xbf16>, vector<2x128xf32> -> vector<2x128xf32>
    %113 = arith.addf %106, %112 : vector<2x128xf32>
    %c0_96 = arith.constant 0 : index
    %c16 = arith.constant 16 : index
    %c0_97 = arith.constant 0 : index
    %114 = vector.load %arg11[%c0_96, %c16, %c0_97] : memref<2x22x352xf32, #tpu.memory_space<vmem>>, vector<2x1x352xf32>
    %115 = vector.shape_cast %114 : vector<2x1x352xf32> to vector<2x352xf32>
    %116 = arith.truncf %115 : vector<2x352xf32> to vector<2x352xbf16>
    %c16_98 = arith.constant 16 : index
    %c0_99 = arith.constant 0 : index
    %c0_100 = arith.constant 0 : index
    %117 = vector.load %arg6[%c16_98, %c0_99, %c0_100] : memref<22x352x128xbf16, #tpu.memory_space<vmem>>, vector<1x352x128xbf16>
    %118 = vector.shape_cast %117 : vector<1x352x128xbf16> to vector<352x128xbf16>
    %cst_101 = arith.constant dense<0.000000e+00> : vector<2x128xf32>
    %119 = tpu.matmul %116, %118, %cst_101 {dimension_numbers = #tpu.dot_dimension_numbers<[1], [0], [0], [1], [0, 0, 1, 1], [], []>} : vector<2x352xbf16>, vector<352x128xbf16>, vector<2x128xf32> -> vector<2x128xf32>
    %120 = arith.addf %113, %119 : vector<2x128xf32>
    %c0_102 = arith.constant 0 : index
    %c17 = arith.constant 17 : index
    %c0_103 = arith.constant 0 : index
    %121 = vector.load %arg11[%c0_102, %c17, %c0_103] : memref<2x22x352xf32, #tpu.memory_space<vmem>>, vector<2x1x352xf32>
    %122 = vector.shape_cast %121 : vector<2x1x352xf32> to vector<2x352xf32>
    %123 = arith.truncf %122 : vector<2x352xf32> to vector<2x352xbf16>
    %c17_104 = arith.constant 17 : index
    %c0_105 = arith.constant 0 : index
    %c0_106 = arith.constant 0 : index
    %124 = vector.load %arg6[%c17_104, %c0_105, %c0_106] : memref<22x352x128xbf16, #tpu.memory_space<vmem>>, vector<1x352x128xbf16>
    %125 = vector.shape_cast %124 : vector<1x352x128xbf16> to vector<352x128xbf16>
    %cst_107 = arith.constant dense<0.000000e+00> : vector<2x128xf32>
    %126 = tpu.matmul %123, %125, %cst_107 {dimension_numbers = #tpu.dot_dimension_numbers<[1], [0], [0], [1], [0, 0, 1, 1], [], []>} : vector<2x352xbf16>, vector<352x128xbf16>, vector<2x128xf32> -> vector<2x128xf32>
    %127 = arith.addf %120, %126 : vector<2x128xf32>
    %c0_108 = arith.constant 0 : index
    %c18 = arith.constant 18 : index
    %c0_109 = arith.constant 0 : index
    %128 = vector.load %arg11[%c0_108, %c18, %c0_109] : memref<2x22x352xf32, #tpu.memory_space<vmem>>, vector<2x1x352xf32>
    %129 = vector.shape_cast %128 : vector<2x1x352xf32> to vector<2x352xf32>
    %130 = arith.truncf %129 : vector<2x352xf32> to vector<2x352xbf16>
    %c18_110 = arith.constant 18 : index
    %c0_111 = arith.constant 0 : index
    %c0_112 = arith.constant 0 : index
    %131 = vector.load %arg6[%c18_110, %c0_111, %c0_112] : memref<22x352x128xbf16, #tpu.memory_space<vmem>>, vector<1x352x128xbf16>
    %132 = vector.shape_cast %131 : vector<1x352x128xbf16> to vector<352x128xbf16>
    %cst_113 = arith.constant dense<0.000000e+00> : vector<2x128xf32>
    %133 = tpu.matmul %130, %132, %cst_113 {dimension_numbers = #tpu.dot_dimension_numbers<[1], [0], [0], [1], [0, 0, 1, 1], [], []>} : vector<2x352xbf16>, vector<352x128xbf16>, vector<2x128xf32> -> vector<2x128xf32>
    %134 = arith.addf %127, %133 : vector<2x128xf32>
    %c0_114 = arith.constant 0 : index
    %c19 = arith.constant 19 : index
    %c0_115 = arith.constant 0 : index
    %135 = vector.load %arg11[%c0_114, %c19, %c0_115] : memref<2x22x352xf32, #tpu.memory_space<vmem>>, vector<2x1x352xf32>
    %136 = vector.shape_cast %135 : vector<2x1x352xf32> to vector<2x352xf32>
    %137 = arith.truncf %136 : vector<2x352xf32> to vector<2x352xbf16>
    %c19_116 = arith.constant 19 : index
    %c0_117 = arith.constant 0 : index
    %c0_118 = arith.constant 0 : index
    %138 = vector.load %arg6[%c19_116, %c0_117, %c0_118] : memref<22x352x128xbf16, #tpu.memory_space<vmem>>, vector<1x352x128xbf16>
    %139 = vector.shape_cast %138 : vector<1x352x128xbf16> to vector<352x128xbf16>
    %cst_119 = arith.constant dense<0.000000e+00> : vector<2x128xf32>
    %140 = tpu.matmul %137, %139, %cst_119 {dimension_numbers = #tpu.dot_dimension_numbers<[1], [0], [0], [1], [0, 0, 1, 1], [], []>} : vector<2x352xbf16>, vector<352x128xbf16>, vector<2x128xf32> -> vector<2x128xf32>
    %141 = arith.addf %134, %140 : vector<2x128xf32>
    %c0_120 = arith.constant 0 : index
    %c20 = arith.constant 20 : index
    %c0_121 = arith.constant 0 : index
    %142 = vector.load %arg11[%c0_120, %c20, %c0_121] : memref<2x22x352xf32, #tpu.memory_space<vmem>>, vector<2x1x352xf32>
    %143 = vector.shape_cast %142 : vector<2x1x352xf32> to vector<2x352xf32>
    %144 = arith.truncf %143 : vector<2x352xf32> to vector<2x352xbf16>
    %c20_122 = arith.constant 20 : index
    %c0_123 = arith.constant 0 : index
    %c0_124 = arith.constant 0 : index
    %145 = vector.load %arg6[%c20_122, %c0_123, %c0_124] : memref<22x352x128xbf16, #tpu.memory_space<vmem>>, vector<1x352x128xbf16>
    %146 = vector.shape_cast %145 : vector<1x352x128xbf16> to vector<352x128xbf16>
    %cst_125 = arith.constant dense<0.000000e+00> : vector<2x128xf32>
    %147 = tpu.matmul %144, %146, %cst_125 {dimension_numbers = #tpu.dot_dimension_numbers<[1], [0], [0], [1], [0, 0, 1, 1], [], []>} : vector<2x352xbf16>, vector<352x128xbf16>, vector<2x128xf32> -> vector<2x128xf32>
    %148 = arith.addf %141, %147 : vector<2x128xf32>
    %c0_126 = arith.constant 0 : index
    %c21 = arith.constant 21 : index
    %c0_127 = arith.constant 0 : index
    %149 = vector.load %arg11[%c0_126, %c21, %c0_127] : memref<2x22x352xf32, #tpu.memory_space<vmem>>, vector<2x1x352xf32>
    %150 = vector.shape_cast %149 : vector<2x1x352xf32> to vector<2x352xf32>
    %151 = arith.truncf %150 : vector<2x352xf32> to vector<2x352xbf16>
    %c21_128 = arith.constant 21 : index
    %c0_129 = arith.constant 0 : index
    %c0_130 = arith.constant 0 : index
    %152 = vector.load %arg6[%c21_128, %c0_129, %c0_130] : memref<22x352x128xbf16, #tpu.memory_space<vmem>>, vector<1x352x128xbf16>
    %153 = vector.shape_cast %152 : vector<1x352x128xbf16> to vector<352x128xbf16>
    %cst_131 = arith.constant dense<0.000000e+00> : vector<2x128xf32>
    %154 = tpu.matmul %151, %153, %cst_131 {dimension_numbers = #tpu.dot_dimension_numbers<[1], [0], [0], [1], [0, 0, 1, 1], [], []>} : vector<2x352xbf16>, vector<352x128xbf16>, vector<2x128xf32> -> vector<2x128xf32>
    %155 = arith.addf %148, %154 : vector<2x128xf32>
    %c0_132 = arith.constant 0 : index
    %c0_133 = arith.constant 0 : index
    %156 = vector.load %arg7[%c0_132, %c0_133] : memref<1x128xf32, #tpu.memory_space<vmem>>, vector<1x128xf32>
    %157 = vector.broadcast %156 : vector<1x128xf32> to vector<2x128xf32>
    %158 = arith.addf %155, %157 : vector<2x128xf32>
    %cst_134 = arith.constant 0.000000e+00 : f32
    %159 = vector.broadcast %cst_134 : f32 to vector<2x128xf32>
    %160 = arith.maximumf %158, %159 : vector<2x128xf32>
    %c0_135 = arith.constant 0 : index
    %c0_136 = arith.constant 0 : index
    %161 = vector.load %arg10[%c0_135, %c0_136] : memref<2x10xf32, #tpu.memory_space<vmem>>, vector<2x10xf32>
    %c0_137 = arith.constant 0 : index
    %c0_138 = arith.constant 0 : index
    %162 = vector.load %arg8[%c0_137, %c0_138] : memref<128x10xf32, #tpu.memory_space<vmem>>, vector<128x10xf32>
    %cst_139 = arith.constant dense<0.000000e+00> : vector<2x10xf32>
    %163 = tpu.matmul %160, %162, %cst_139 {dimension_numbers = #tpu.dot_dimension_numbers<[1], [0], [0], [1], [0, 0, 1, 1], [], []>} : vector<2x128xf32>, vector<128x10xf32>, vector<2x10xf32> -> vector<2x10xf32>
    %164 = arith.addf %161, %163 : vector<2x10xf32>
    %c0_140 = arith.constant 0 : index
    %c0_141 = arith.constant 0 : index
    %165 = vector.load %arg10[%c0_140, %c0_141] : memref<2x10xf32, #tpu.memory_space<vmem>>, vector<2x10xf32>
    tpu.vector_store %arg10[%c0_140, %c0_141], %164 {strides = array<i32>} : memref<2x10xf32, #tpu.memory_space<vmem>>, vector<2x10xf32>,
    %c1_i32 = arith.constant 1 : i32
    %166 = arith.cmpi eq, %arg0, %c1_i32 : i32
    %167 = arith.extui %166 : i1 to i32
    %c0_i32_142 = arith.constant 0 : i32
    %168 = arith.cmpi ne, %167, %c0_i32_142 : i32
    scf.if %168 {
      %c0_143 = arith.constant 0 : index
      %c0_144 = arith.constant 0 : index
      %169 = vector.load %arg10[%c0_143, %c0_144] : memref<2x10xf32, #tpu.memory_space<vmem>>, vector<2x10xf32>
      %c0_145 = arith.constant 0 : index
      %c0_146 = arith.constant 0 : index
      %170 = vector.load %arg9[%c0_145, %c0_146] : memref<1x10xf32, #tpu.memory_space<vmem>>, vector<1x10xf32>
      %171 = vector.broadcast %170 : vector<1x10xf32> to vector<2x10xf32>
      %172 = arith.addf %169, %171 : vector<2x10xf32>
      %c0_147 = arith.constant 0 : index
      %c0_148 = arith.constant 0 : index
      %173 = vector.load %arg10[%c0_147, %c0_148] : memref<2x10xf32, #tpu.memory_space<vmem>>, vector<2x10xf32>
      tpu.vector_store %arg10[%c0_147, %c0_148], %172 {strides = array<i32>} : memref<2x10xf32, #tpu.memory_space<vmem>>, vector<2x10xf32>,
    } else {
    }
    return
  }
  func.func @transform_0(%arg0: i32) -> (i32, i32, i32) {
    %c0_i32 = arith.constant 0 : i32
    %c0_i32_0 = arith.constant 0 : i32
    %c0_i32_1 = arith.constant 0 : i32
    %c0_i32_2 = arith.constant 0 : i32
    return %c0_i32, %c0_i32_0, %c0_i32_1 : i32, i32, i32
  }
  func.func @transform_1(%arg0: i32) -> (i32, i32, i32) {
    %c0_i32 = arith.constant 0 : i32
    %c0_i32_0 = arith.constant 0 : i32
    %c0_i32_1 = arith.constant 0 : i32
    %c0_i32_2 = arith.constant 0 : i32
    return %c0_i32, %c0_i32_0, %c0_i32_1 : i32, i32, i32
  }
  func.func @transform_2(%arg0: i32) -> (i32, i32) {
    %c0_i32 = arith.constant 0 : i32
    %c0_i32_0 = arith.constant 0 : i32
    %c0_i32_1 = arith.constant 0 : i32
    return %c0_i32, %c0_i32_0 : i32, i32
  }
  func.func @transform_3(%arg0: i32) -> (i32, i32, i32) {
    %c0_i32 = arith.constant 0 : i32
    %c0_i32_0 = arith.constant 0 : i32
    %c0_i32_1 = arith.constant 0 : i32
    %c0_i32_2 = arith.constant 0 : i32
    return %c0_i32, %c0_i32_0, %c0_i32_1 : i32, i32, i32
  }
  func.func @transform_4(%arg0: i32) -> (i32, i32) {
    %c0_i32 = arith.constant 0 : i32
    %c0_i32_0 = arith.constant 0 : i32
    %c0_i32_1 = arith.constant 0 : i32
    return %c0_i32, %c0_i32_0 : i32, i32
  }
  func.func @transform_5(%arg0: i32) -> (i32, i32, i32) {
    %c0_i32 = arith.constant 0 : i32
    %c0_i32_0 = arith.constant 0 : i32
    %c0_i32_1 = arith.constant 0 : i32
    return %c0_i32, %c0_i32_0, %arg0 : i32, i32, i32
  }
  func.func @transform_6(%arg0: i32) -> (i32, i32) {
    %c0_i32 = arith.constant 0 : i32
    %c0_i32_0 = arith.constant 0 : i32
    return %c0_i32, %arg0 : i32, i32
  }
  func.func @transform_7(%arg0: i32) -> (i32, i32) {
    %c0_i32 = arith.constant 0 : i32
    %c0_i32_0 = arith.constant 0 : i32
    return %arg0, %c0_i32 : i32, i32
  }
  func.func @transform_8(%arg0: i32) -> (i32, i32) {
    %c0_i32 = arith.constant 0 : i32
    %c0_i32_0 = arith.constant 0 : i32
    %c0_i32_1 = arith.constant 0 : i32
    return %c0_i32, %c0_i32_0 : i32, i32
  }
  func.func @transform_9(%arg0: i32) -> (i32, i32) {
    %c0_i32 = arith.constant 0 : i32
    %c0_i32_0 = arith.constant 0 : i32
    %c0_i32_1 = arith.constant 0 : i32
    return %c0_i32, %c0_i32_0 : i32, i32
  }
}

</mosaic_0001>

<bundles_post_ra>
// kernel: mnist_forward.1
= control target key start
LH: loop header
LB: loop body
LE: loop exit
PB: predicated region body
PF: predicated region fallthrough
CT: control target
= control target key end

     0   :  { %s17508_s0 = inlined_call_operand.vmem [shape: f32[2,28,28], index: 0, kind: input, shape index: {}]   ;;  %s17509_s1 = inlined_call_operand.hbm [shape: bf16[3,28,208], index: 1, kind: input, shape index: {}]   ;;  %s17510_s2 = inlined_call_operand.hbm [shape: f32[1,208], index: 2, kind: input, shape index: {}]   ;;  %s17511_s3 = inlined_call_operand.hbm [shape: bf16[3,200,368], index: 3, kind: input, shape index: {}]   ;;  %s17512_s4 = inlined_call_operand.hbm [shape: f32[1,368], index: 4, kind: input, shape index: {}]   ;;  %s17513_s5 = inlined_call_operand.hbm [shape: bf16[22,352,256], index: 5, kind: input, shape index: {}]   ;;  %s17514_s6 = inlined_call_operand.hbm [shape: f32[1,256], index: 6, kind: input, shape index: {}]   ;;  %s17515_s7 = inlined_call_operand.vmem [shape: f32[256,10], index: 7, kind: input, shape index: {}]   ;;  %s17516_s8 = inlined_call_operand.hbm [shape: f32[1,10], index: 8, kind: input, shape index: {}]   ;;  %s17517_s9 = inlined_call_operand.hbm [shape: f32[2,10], index: 9, kind: output, shape index: {}]  }
   0x1   :  { %17527 = sst [smem:[#allocation22_spill]] %s17509_s1 }
   0x2   :  { %17528 = sst [smem:[#allocation23_spill]] %s17510_s2 }
   0x3   :  { %17529 = sst [smem:[#allocation24_spill]] %s17511_s3 }
   0x4   :  { %17530 = sst [smem:[#allocation25_spill]] %s17513_s5 }
   0x5   :  { %17531 = sst [smem:[#allocation26_spill]] %s17517_s9 }
   0x6   :  { %14 = vsyncpa [#allocation4], 0 }
   0x7   :  { %15 = vsyncpa [#allocation7], 0 }
   0x8   :  { %16 = vsyncpa [#allocation10], 0 }
   0x9   :  { %17 = vsyncpa [#allocation5], 0  ;;  %s15489_s30 = smov 0   ;;  %s15491_s10 = smov 0  }
   0xa   :  { %s15493_s11 = smov 0   ;;  %s15495_s12 = smov 0  }
   0xb LB: > { %s15508_s13 = sadd.s32 4294967295, %s15416_s12   ;;  %p148_p0 = scmp.ne.s32.totalorder %s15408_s10, %s15404_s30  ;;  %s15416_s12 = sphi %s15495_s12, %s17563_s12   ;;  %s15412_s11 = sphi %s15493_s11, %s17562_s11   ;;  %s15408_s10 = sphi %s15491_s10, %s17561_s10   ;;  %s15404_s30 = sphi %s15489_s30, %s17560_s30  }
   0xc   : > { %p17518_p1 = scmp.eq.s32.totalorder %s15508_s13, 0  ;;  %p11274_p2 = scmp.ge.s32.totalorder %s15416_s12, 1 }
   0xd   : > { %p253_p3 = scmp.lt.s32.totalorder %s15416_s12, 3  ;;  %s15418_s16 = smov [#allocation3]  }
   0xe   : > { %p15517_p5 = por %p17518_p1, %p148_p0  ;;  %s268_s17 = sshll.u32 %s15418_s16, 4  ;;  %s15525_s17 = int_to_ptr.vmem [resolvable:$true] %s268_s17 }
   0xf   : > { %p15521_p6 = pnand %p11274_p2, %p253_p3  ;;  %s15419_s19 = smov [#allocation6]  }
  0x10   : > { %s17532_s14 = scalar_select %p15517_p5, 1, 0 }
  0x11   : > { %s17533_s15 = scalar_select %p15521_p6, 1, 0 }
  0x12   : > { %p14183_p7 = pneg %p15521_p6  ;;  %s282_s20 = sshll.u32 %s15419_s19, 4  ;;  %s15535_s20 = int_to_ptr.vmem [resolvable:$true] %s282_s20 }
  0x13   : > { %s15420_s21 = smov [#allocation8]   ;;  %s17535_s1 = sld [smem:[#allocation22_spill]] }
  0x14   : > { %p15531_p8 = pnand %p14183_p7, %p17518_p1  ;;  %s15537_s22 = sshll.u32 %s15420_s21, 4  ;;  %s293_s22 = int_to_ptr.vmem [resolvable:$true] %s15537_s22 }
  0x16   : > { %s17534_s18 = scalar_select %p15531_p8, 1, 0 }
  0x17   : > { %p15547_p10 = pneg %p15531_p8 }
  0x19   : > { %s15136_s25 = scalar_lea.hbm %s17535_s1, 1536 }
  0x1a   : > { %p15137_p9 = scmp.ne.s32.totalorder %s17535_s1, %s15136_s25  ;;  %p15143_p13 = scmp.lt.u32.totalorder %s15136_s25, %s17535_s1 }
  0x1c   : > { %p15139_p11 = pnand %p15547_p10, %p15137_p9 }
  0x1e   : > { %p15140_p12 = pneg %p15139_p11 }
  0x20   : > { %p15145_p0 = pnand %p15143_p13, %p15140_p12 }
  0x22   : > { %15148 = shalt.err (!%p15145_p0)
}
  0x23   : > { %s15149_s16 = scalar_lea.vmem %s15525_s17, 1536  ;;  %p15157_p4 = scmp.lt.s32.totalorder %s15525_s17, %s15525_s17 }
  0x24   : > { %p15150_p2 = scmp.ne.s32.totalorder %s15525_s17, %s15149_s16  ;;  %p15158_p1 = scmp.lt.s32.totalorder %s15149_s16, %s15149_s16 }
  0x26   : > { %p15152_p3 = pnand %p15150_p2, %p15547_p10  ;;  %p15159_p9 = por %p15158_p1, %p15157_p4 }
  0x28   : > { %p15153_p7 = pneg %p15152_p3 }
  0x2a   : > { %p15160_p11 = pnand %p15159_p9, %p15153_p7 }
  0x2c   : > { %15163 = shalt.err (!%p15160_p11)
}
  0x2d   : > { %s17522_s19 = smov 128   ;;  %s15422_s21 = smov 8  }
  0x2e   : > { %14186 = dma.hbm_to_vmem [thread:$0]  (!%p15531_p8), %s17535_s1, 1536, %s15525_s17, [#allocation4], %s17522_s19, %s17522_s19, %s15422_s21  }
  0x2f   : > { %s17537_s2 = sld [smem:[#allocation23_spill]] }
  0x35   : > { %s15164_s27 = scalar_lea.hbm %s17537_s2, 32 }
  0x36   : > { %p15165_p1 = scmp.ne.s32.totalorder %s17537_s2, %s15164_s27  ;;  %p15171_p13 = scmp.lt.u32.totalorder %s15164_s27, %s17537_s2 }
  0x38   : > { %p15167_p4 = pnand %p15165_p1, %p15547_p10 }
  0x3a   : > { %p15168_p12 = pneg %p15167_p4 }
  0x3c   : > { %p15173_p0 = pnand %p15171_p13, %p15168_p12 }
  0x3e   : > { %15176 = shalt.err (!%p15173_p0)
}
  0x3f   : > { %s15177_s17 = scalar_lea.vmem %s15535_s20, 32  ;;  %p15185_p9 = scmp.lt.s32.totalorder %s15535_s20, %s15535_s20 }
  0x40   : > { %p15178_p2 = scmp.ne.s32.totalorder %s15535_s20, %s15177_s17  ;;  %p15186_p11 = scmp.lt.s32.totalorder %s15177_s17, %s15177_s17 }
  0x42   : > { %p15180_p3 = pnand %p15178_p2, %p15547_p10  ;;  %p15187_p1 = por %p15186_p11, %p15185_p9 }
  0x44   : > { %p15181_p7 = pneg %p15180_p3 }
  0x46   : > { %p15188_p4 = pnand %p15187_p1, %p15181_p7 }
  0x48   : > { %15191 = shalt.err (!%p15188_p4)
}
  0x49   : > { %14189 = dma.hbm_to_vmem [thread:$0]  (!%p15531_p8), %s17537_s2, 32, %s15535_s20, [#allocation7]  }
  0x4a   : > { %s17538_s3 = sld [smem:[#allocation24_spill]] }
  0x50   : > { %s15192_s25 = scalar_lea.hbm %s17538_s3, 14400 }
  0x51   : > { %p15193_p12 = scmp.ne.s32.totalorder %s17538_s3, %s15192_s25  ;;  %p15199_p2 = scmp.lt.u32.totalorder %s15192_s25, %s17538_s3 }
  0x53   : > { %p15195_p13 = pnand %p15193_p12, %p15547_p10 }
  0x55   : > { %p15196_p0 = pneg %p15195_p13 }
  0x57   : > { %p15201_p3 = pnand %p15199_p2, %p15196_p0 }
  0x59   : > { %15204 = shalt.err (!%p15201_p3)
}
  0x5a   : > { %s15205_s16 = scalar_lea.vmem %s293_s22, 14400  ;;  %p15213_p1 = scmp.lt.s32.totalorder %s293_s22, %s293_s22 }
  0x5b   : > { %p15206_p7 = scmp.ne.s32.totalorder %s293_s22, %s15205_s16  ;;  %p15214_p4 = scmp.lt.s32.totalorder %s15205_s16, %s15205_s16 }
  0x5d   : > { %p15208_p9 = pnand %p15206_p7, %p15547_p10  ;;  %p15215_p5 = por %p15214_p4, %p15213_p1 }
  0x5f   : > { %p15209_p11 = pneg %p15208_p9 }
  0x61   : > { %p15216_p6 = pnand %p15215_p5, %p15209_p11 }
  0x63   : > { %15219 = shalt.err (!%p15216_p6)
}
  0x64   : > { %s15423_s20 = smov 192   ;;  %s15424_s17 = smov 12  }
  0x65   : > { %14192 = dma.hbm_to_vmem [thread:$0]  (!%p15531_p8), %s17538_s3, 14400, %s293_s22, [#allocation7], %s15423_s20, %s15423_s20, %s15424_s17  }
  0x66   : > { %s15613_s23 = sadd.s32 1, %s15416_s12   ;;  %s135_s25 = sadd.s32 1, %s15412_s11 }
  0x67   : > { %s132_s24 = ssub.s32 %s15416_s12, %s15613_s23  ;;  %p142_p6 = scmp.ne.s32.totalorder %s15412_s11, %s15408_s10 }
  0x68   : > { %p133_p5 = scmp.eq.s32.totalorder %s132_s24, 0  ;;  %p143_p12 = scmp.eq.s32.totalorder %s15416_s12, 0 }
  0x69   : > { %p14211_p13 = scmp.lt.s32.totalorder %s15416_s12, 2  ;;  %s328_s27 = sand.u32 1, %s15416_s12  }
  0x6a   : > { %s15623_s26 = scalar_select %p133_p5, %s15412_s11, %s135_s25  }
  0x6b   : > { %p144_p0 = por %p143_p12, %p142_p6  ;;  %s17523_s29 = sand.u32 1, %s15412_s11  }
  0x6c   : > { %17539 = sst [smem:[#allocation21_spill]] %s15623_s26  ;;  %s14153_s30 = smul.u32 3872, %s17523_s29 }
  0x6d   : > { %s11281_s16 = sshll.u32 %s15416_s12, 6  ;;  %s17540_s5 = sld [smem:[#allocation25_spill]] }
  0x6e   : > { %p15635_p2 = pnand %p14211_p13, %p144_p0  ;;  %s332_s17 = scalar_lea.vmem [#allocation11], %s14153_s30 }
  0x6f   : > { %s338_s21 = sshll.u32 %s332_s17, 4  ;;  %s15641_s24 = scalar_lea.sflag [#allocation4], %s328_s27  ;;  %s15639_s21 = int_to_ptr.vmem [resolvable:$true] %s338_s21 }
  0x70   : > { %p17526_p7 = pneg %p15635_p2 }
  0x73   : > { %s15633_s22 = scalar_lea.hbm %s17540_s5, %s11281_s16  ;;  %s15225_s9 = scalar_lea.hbm %s17540_s5, 123904 }
  0x74   : > { %s15220_s25 = scalar_lea.hbm %s15633_s22, 61952  ;;  %p15226_p1 = scmp.lt.u32.totalorder %s15633_s22, %s17540_s5 }
  0x75   : > { %p15221_p3 = scmp.ne.s32.totalorder %s15633_s22, %s15220_s25  ;;  %p15227_p4 = scmp.lt.u32.totalorder %s15225_s9, %s15220_s25 }
  0x76   : > { %p15229_p6 = scmp.lt.u32.totalorder %s15220_s25, %s15633_s22 }
  0x77   : > { %p15223_p9 = pnand %p17526_p7, %p15221_p3  ;;  %p15228_p5 = por %p15227_p4, %p15226_p1 }
  0x79   : > { %p15224_p11 = pneg %p15223_p9  ;;  %p15230_p12 = por %p15229_p6, %p15228_p5 }
  0x7b   : > { %p15231_p13 = pnand %p15230_p12, %p15224_p11 }
  0x7d   : > { %15234 = shalt.err (!%p15231_p13)
}
  0x7e   : > { %s15235_s27 = scalar_lea.vmem %s15639_s21, 61952  ;;  %s15425_s30 = smov [#allocation11]  }
  0x7f   : > { %p15236_p0 = scmp.ne.s32.totalorder %s15639_s21, %s15235_s27  ;;  %s15240_s17 = sshll.u32 %s15425_s30, 4  ;;  %s15241_s17 = int_to_ptr.vmem [resolvable:$false] %s15240_s17 }
  0x80   : > { %s15242_s1 = scalar_lea.vmem %s15241_s17, 123904  ;;  %p15243_p8 = scmp.lt.s32.totalorder %s15639_s21, %s15241_s17 }
  0x81   : > { %p15238_p3 = pnand %p15236_p0, %p17526_p7  ;;  %p15244_p1 = scmp.lt.s32.totalorder %s15242_s1, %s15235_s27 }
  0x83   : > { %p15239_p9 = pneg %p15238_p3  ;;  %p15245_p4 = por %p15244_p1, %p15243_p8 }
  0x85   : > { %p15246_p5 = pnand %p15245_p4, %p15239_p9 }
  0x87   : > { %15249 = shalt.err (!%p15246_p5)
}
  0x88   : > { %s15426_s29 = smov 64   ;;  %s15427_s25 = smov 4  }
  0x89   : > { %s17542_s19 = smov 128   ;;  %s15428_s16 = smov [#allocation9]  }
  0x8a   : > { %14202 = dma.hbm_to_vmem [thread:$0]  (!%p15635_p2), %s15633_s22, 61952, %s15639_s21, %s15641_s24, %s17542_s19, %s15426_s29, %s15427_s25  }
  0x8b   : > { %s306_s9 = sshll.u32 %s15428_s16, 4  ;;  %s15429_s30 = smov [#allocation13]   ;;  %s307_s9 = int_to_ptr.vmem [resolvable:$true] %s306_s9 }
  0x8c   : > { %s317_s2 = sshll.u32 %s15429_s30, 4  ;;  %s15250_s1 = scalar_lea.hbm %s17512_s4, 48  ;;  %s15670_s2 = int_to_ptr.vmem [resolvable:$true] %s317_s2 }
  0x8d   : > { %p15251_p8 = scmp.ne.s32.totalorder %s17512_s4, %s15250_s1  ;;  %p15257_p12 = scmp.lt.u32.totalorder %s15250_s1, %s17512_s4 }
  0x8f   : > { %p15253_p11 = pnand %p15251_p8, %p15547_p10 }
  0x91   : > { %p15254_p6 = pneg %p15253_p11 }
  0x93   : > { %p15259_p13 = pnand %p15257_p12, %p15254_p6 }
  0x95   : > { %15262 = shalt.err (!%p15259_p13)
}
  0x96   : > { %s15263_s21 = scalar_lea.vmem %s307_s9, 48  ;;  %s15270_s29 = scalar_lea.vmem %s307_s9, 64 }
  0x97   : > { %p15264_p0 = scmp.ne.s32.totalorder %s307_s9, %s15263_s21  ;;  %p15271_p1 = scmp.lt.s32.totalorder %s307_s9, %s307_s9 }
  0x98   : > { %p15272_p4 = scmp.lt.s32.totalorder %s15270_s29, %s15263_s21 }
  0x99   : > { %p15266_p3 = pnand %p15264_p0, %p15547_p10 }
  0x9a   : > { %p15273_p5 = por %p15272_p4, %p15271_p1 }
  0x9b   : > { %p15267_p9 = pneg %p15266_p3 }
  0x9d   : > { %p15274_p7 = pnand %p15273_p5, %p15267_p9 }
  0x9f   : > { %15277 = shalt.err (!%p15274_p7)
}
  0xa0   : > { %p17543_p8 = scmp.ne.s32.totalorder %s17534_s18, 0  ;;  %s15278_s19 = scalar_lea.hbm %s17516_s8, 16 }
  0xa1   : > { %p15279_p11 = scmp.ne.s32.totalorder %s17516_s8, %s15278_s19  ;;  %p15285_p7 = scmp.lt.u32.totalorder %s15278_s19, %s17516_s8 }
  0xa2   : > { %14195 = dma.hbm_to_vmem [thread:$0]  (!%p17543_p8), %s17512_s4, 48, %s307_s9, [#allocation10]  }
  0xa3   : > { %p15281_p6 = pnand %p15279_p11, %p15547_p10 }
  0xa5   : > { %p15282_p12 = pneg %p15281_p6 }
  0xa7   : > { %p15287_p13 = pnand %p15285_p7, %p15282_p12 }
  0xa9   : > { %15290 = shalt.err (!%p15287_p13)
}
  0xaa   : > { %s15291_s9 = scalar_lea.vmem %s15670_s2, 16  ;;  %s15298_s1 = scalar_lea.vmem %s15670_s2, 32 }
  0xab   : > { %p15292_p0 = scmp.ne.s32.totalorder %s15670_s2, %s15291_s9  ;;  %p15299_p1 = scmp.lt.s32.totalorder %s15670_s2, %s15670_s2 }
  0xac   : > { %p15300_p4 = scmp.lt.s32.totalorder %s15298_s1, %s15291_s9 }
  0xad   : > { %p15294_p3 = pnand %p15292_p0, %p15547_p10 }
  0xae   : > { %p15301_p5 = por %p15300_p4, %p15299_p1 }
  0xaf   : > { %p15295_p9 = pneg %p15294_p3 }
  0xb1   : > { %p15302_p11 = pnand %p15301_p5, %p15295_p9 }
  0xb3   : > { %15305 = shalt.err (!%p15302_p11)
}
  0xb4   : > { %14198 = dma.hbm_to_vmem [thread:$0]  (!%p17543_p8), %s17516_s8, 16, %s15670_s2, [#allocation7]  }
  0xb5   : > { %s11282_s28 = sshll.u32 %s15416_s12, 4  ;;  %s17544_s26 = sand.u32 1, %s15412_s11  }
  0xb6   : > { %s15718_s5 = scalar_lea.hbm %s17514_s6, %s11282_s28  ;;  %s351_s18 = scalar_lea.vmem [#allocation12], %s17544_s26 }
  0xb7   : > { %s358_s25 = sshll.u32 %s351_s18, 4  ;;  %s15306_s19 = scalar_lea.hbm %s15718_s5, 16  ;;  %s359_s25 = int_to_ptr.vmem [resolvable:$true] %s358_s25 }
  0xb8   : > { %p15307_p10 = scmp.ne.s32.totalorder %s15718_s5, %s15306_s19  ;;  %p17545_p6 = pneg %p15635_p2 }
  0xb9   : > { %s15311_s16 = scalar_lea.hbm %s17514_s6, 32  ;;  %p15312_p7 = scmp.lt.u32.totalorder %s15718_s5, %s17514_s6 }
  0xba   : > { %p15309_p12 = pnand %p15307_p10, %p17545_p6  ;;  %p15313_p13 = scmp.lt.u32.totalorder %s15311_s16, %s15306_s19 }
  0xbb   : > { %p15315_p3 = scmp.lt.u32.totalorder %s15306_s19, %s15718_s5 }
  0xbc   : > { %p15310_p8 = pneg %p15309_p12  ;;  %p15314_p0 = por %p15313_p13, %p15312_p7 }
  0xbe   : > { %p15316_p9 = por %p15315_p3, %p15314_p0 }
  0xc0   : > { %p15317_p1 = pnand %p15316_p9, %p15310_p8 }
  0xc2   : > { %15320 = shalt.err (!%p15317_p1)
}
  0xc3   : > { %s15321_s17 = scalar_lea.vmem %s359_s25, 16  ;;  %p17546_p5 = pmov %p17545_p6 }
  0xc4   : > { %p15322_p4 = scmp.ne.s32.totalorder %s359_s25, %s15321_s17  ;;  %s15430_s9 = smov [#allocation12]  }
  0xc5   : > { %s15326_s1 = sshll.u32 %s15430_s9, 4  ;;  %s15327_s1 = int_to_ptr.vmem [resolvable:$false] %s15326_s1 }
  0xc6   : > { %p15324_p11 = pnand %p15322_p4, %p17546_p5  ;;  %s15328_s22 = scalar_lea.vmem %s15327_s1, 32 }
  0xc7   : > { %p15329_p6 = scmp.lt.s32.totalorder %s359_s25, %s15327_s1  ;;  %p15330_p12 = scmp.lt.s32.totalorder %s15328_s22, %s15321_s17 }
  0xc8   : > { %p15325_p10 = pneg %p15324_p11 }
  0xc9   : > { %p15331_p7 = por %p15330_p12, %p15329_p6 }
  0xcb   : > { %p15332_p13 = pnand %p15331_p7, %p15325_p10 }
  0xcd   : > { %15335 = shalt.err (!%p15332_p13)
}
  0xce   : > { %14205 = dma.hbm_to_vmem [thread:$0]  (!%p15635_p2), %s15718_s5, 16, %s359_s25, %s15641_s24  }
  0xcf   : > { %p17547_p8 = scmp.ne.s32.totalorder %s17533_s15, 0 }
  0xd0   : > { %p17548_p0 = scmp.eq.s32.totalorder (!%p17547_p8), %s15508_s13, 0 }
  0xd1   : > { %376 = sbr.rel (%p17547_p8) target bundleno = 2743 (0xab7), region = 56 }
  0xd8   : > { %15379 = dma.done.wait (%p17548_p0), [#allocation4], 1536   ;;  %p17549_p3 = pmov %p17548_p0 }
  0xd9   : > { %p17550_p9 = pmov %p17548_p0 }
  0xda   : > { %15381 = vsyncadd (%p17549_p3), [#allocation4], 4294965760 }
  0xdb   : > { %15383 = dma.done.wait (%p17550_p9), [#allocation7], 14432   ;;  %p17551_p1 = pmov %p17548_p0 }
  0xdc   : > { %p17552_p4 = pmov %p17548_p0 }
  0xdd   : > { %15385 = vsyncadd (%p17551_p1), [#allocation7], 4294952864 }
  0xde   : > { %15387 = dma.done.wait (%p17552_p4), [#allocation10], 48   ;;  %p17553_p2 = pmov %p17548_p0 }
  0xdf   : > { %s394_s15 = sand.u32 1, %s15508_s13   ;;  %s396_s20 = sand.u32 1, %s15408_s10  }
  0xe0   : > { %15389 = vsyncadd (%p17553_p2), [#allocation10], 4294967248  ;;  %s14154_s24 = smul.u32 3872, %s396_s20  ;;  %s395_s21 = scalar_lea.sflag [#allocation4], %s394_s15 }
  0xe1   : > { %p17554_p5 = scmp.ne.s32.totalorder %s17532_s14, 0 }
  0xe2   : > { %s15758_s28 = scalar_lea.vmem [#allocation11], %s14154_s24 }
  0xe3   : > { %15391 = dma.done.wait (%p17554_p5), %s395_s21, 61968  }
  0xe4   : > { %15393 = vsyncadd (%p17554_p5), %s395_s21, 4294905328  ;;  %s15764_s29 = scalar_lea.vmem [#allocation12], %s396_s20  ;;  %p17555_p11 = pmov %p17548_p0 }
  0xe5   : > { %p17556_p10 = pmov %p17548_p0 }
  0xe6   : > { %15395 = dma.done.wait (%p17555_p11), [#allocation7], 16  }
  0xe7   : > { %15397 = vsyncadd (%p17556_p10), [#allocation7], 4294967280  ;;  %s11289_s3 = sshll.u32 %s15508_s13, 4  ;;  %p17557_p12 = scmp.ne.s32.totalorder %s15508_s13, 0 }
  0xe8   : > { %p450_p6 = scmp.lt.s32.totalorder %s11289_s3, 31  ;;  %v14310_v0 = vld [vmem:[#allocation3 + $0x24] ss:$8 sps:$4 sm:$0xff] (!%p17557_p12)   ;;  %v14312_v1 = vld [vmem:[#allocation3 + $0x20] ss:$8 sps:$4 sm:$0xff] (!%p17557_p12)   ;;  %vm516_vm0 = vcmask (!%p17557_p12), 1045504   ;;  %v761_v52 = vlaneseq (!%p17557_p12) }
  0xe9   : > { %459 = sbr.rel (%p17557_p12) target bundleno = 1623 (0x657), region = 88  ;;  %v15431_v2 = vmov (!%p17557_p12), 0   ;;  %523 = vmatprep.subr.bf16.mxu0 (!%p17557_p12), %v14310_v0  ;;  %v14313_v3 = vld [vmem:[#allocation3 + $0x34] ss:$8 sps:$4 sm:$0x3f] (!%p17557_p12)   ;;  %v462_v7 = vld [vmem:[%s17508_s0 + $0x10] sm:$0xff] (!%p17557_p12) }
  0xea   : > { %s17565_s3 = smov (!%p450_p6, %s11289_s3), 31  ;;  %555 = vmatprep.mubr.bf16.mxu0 (!%p17557_p12), %v15431_v2  ;;  %v14315_v4 = vld [vmem:[#allocation3 + $0x30] ss:$8 sps:$4 sm:$0x3f] (!%p17557_p12)   ;;  %524 = vmatpush1.bf16.msra.mxu0 (!%p17557_p12), %v14312_v1  ;;  %v463_v9 = vld [vmem:[%s17508_s0 + $0x18] sm:$0xf] (!%p17557_p12) }
  0xeb   : > { %s11290_s5 = sshll.u32 %s17565_s3, 3  ;;  %v460_v5 = vld [vmem:[%s17508_s0] sm:$0xff] (!%p17557_p12)  ;;  %v461_v6 = vld [vmem:[%s17508_s0 + $0x8] sm:$0xff] (!%p17557_p12)  ;;  %11296 = vmatprep.subr.msk.bf16.mxu0 (!%p17557_p12), %vm516_vm0, %v14313_v3  ;;  %v518_v8 = vsel (!%p17557_p12), %vm516_vm0, %v14315_v4, 0  ;;  %v465_v11 = vpack.c.bf16 (!%p17557_p12), %v463_v9, %v462_v7  ;;  %v14318_v12 = vld [vmem:[#allocation3 + $0x4] ss:$8 sps:$4 sm:$0xff] (!%p17557_p12)  }
  0xec   : > { %s15774_s25 = scalar_lea.vmem %s17515_s7, %s11290_s5  ;;  %v464_v10 = vpack.c.bf16 (!%p17557_p12), %v461_v6, %v460_v5  ;;  %vm475_vm1 = vsmask.f32 (!%p17557_p12), 7424  ;;  %vm509_vm2 = vcmask (!%p17557_p12), 228352   ;;  %v14316_v19 = vld [vmem:[#allocation3] ss:$8 sps:$4 sm:$0xff] (!%p17557_p12)   ;;  %vm664_vm3 = vcmask (!%p17557_p12), 1046528  }
  0xed   : > { %v484_v15 = vshll.u32 (!%p17557_p12), %v465_v11, 16  ;;  %v14319_v20 = vld [vmem:[#allocation3 + $0x14] ss:$8 sps:$4 sm:$0x3f] (!%p17557_p12)   ;;  %v488_v23 = vshrl.u32 (!%p17557_p12), %v465_v11, 16  ;;  %v666_v32 = vrot.slane (!%p17557_p12), %v465_v11, 1 }
  0xee   : > { %v477_v13 = vshrl.u32 (!%p17557_p12), %v464_v10, 16  ;;  %v479_v14 = vshll.u32 (!%p17557_p12), %v464_v10, 16  ;;  %526 = vmatpush1.bf16.msra.mxu0 (!%p17557_p12), %v518_v8  ;;  %v14321_v21 = vld [vmem:[#allocation3 + $0x10] ss:$8 sps:$4 sm:$0x3f] (!%p17557_p12)   ;;  %v665_v31 = vrot.slane (!%p17557_p12), %v464_v10, 1 }
  0xef   : > { %604 = vmatprep.subr.bf16.mxu0 (!%p17557_p12), %v14318_v12  ;;  %v486_v17 = vrot.slane (!%p17557_p12), %v484_v15, 1  ;;  %v14324_v24 = vld [vmem:[#allocation3 + $0x44] ss:$8 sps:$4 sm:$0xff] (!%p17557_p12)   ;;  %v599_v25 = vsel (!%p17557_p12), %vm516_vm0, %v14321_v21, 0  ;;  %v14322_v27 = vld [vmem:[#allocation3 + $0x40] ss:$8 sps:$4 sm:$0xff] (!%p17557_p12)  }
  0xf0   : > { %v481_v16 = vrot.slane %v479_v14, 1  ;;  %v14325_v28 = vld [vmem:[#allocation3 + $0x54] ss:$8 sps:$4 sm:$0x3f]   ;;  %v667_v33 = vsel %vm664_vm3, %v665_v31, %v666_v32  ;;  %v14336_v40 = vld [vmem:[#allocation8 + $0x160] ss:$12 sps:$4 sm:$0xff]  }
  0xf1   : > { %v490_v26 = vor.u32 %v488_v23, %v486_v17  ;;  %v14327_v29 = vld [vmem:[#allocation3 + $0x50] ss:$8 sps:$4 sm:$0x3f]   ;;  %v14338_v42 = vld [vmem:[#allocation8 + $0x15c] ss:$12 sps:$4 sm:$0xff]   ;;  %v15817_v53 = vshrl.u32 %v761_v52, 7 }
  0xf2   : > { %v482_v18 = vor.u32 %v481_v16, %v477_v13  ;;  %v693_v30 = vsel %vm516_vm0, %v14327_v29, 0  ;;  %v14328_v34 = vld [vmem:[#allocation8 + $0x130] ss:$12 sps:$4 sm:$0xff]   ;;  %v14330_v35 = vld [vmem:[#allocation8 + $0x12c] ss:$12 sps:$4 sm:$0xff]   ;;  %s15432_s9 = smov 120  }
  0xf3   : > { %v14331_v36 = vld [vmem:[#allocation8 + $0x134] ss:$12 sps:$4 sm:$0xff]   ;;  %1225 = vmatprep.subr.bf16.mxu1 %v14328_v34  ;;  %v14335_v38 = vld [vmem:[#allocation8 + $0x14c] ss:$12 sps:$4 sm:$0xff]   ;;  %v14334_v39 = vld [vmem:[#allocation8 + $0x144] ss:$12 sps:$4 sm:$0xff]  }
  0xf4   : > { %v487_v22 = vsel %vm475_vm1, %v482_v18, %v486_v17  ;;  %v14332_v37 = vld [vmem:[#allocation8 + $0x148] ss:$12 sps:$4 sm:$0xff]   ;;  %1226 = vmatpush1.bf16.msra.mxu1 %v14330_v35  ;;  %v14339_v41 = vld [vmem:[#allocation8 + $0x164] ss:$12 sps:$4 sm:$0xff]   ;;  %v14346_v48 = vld [vmem:[#allocation8 + $0x18c] ss:$12 sps:$4 sm:$0xff]  }
  0xf5   : > { %11297 = vmatmul.mubr.msk.bf16.vlgmr.msra.gmra.mrb[0].mxu0 %vm509_vm2, %v487_v22  ;;  %1227 = vmatprep.subr.bf16.mxu1 %v14332_v37  ;;  %v14340_v43 = vld [vmem:[#allocation8 + $0x178] ss:$12 sps:$4 sm:$0xff]   ;;  %v14343_v44 = vld [vmem:[#allocation8 + $0x17c] ss:$12 sps:$4 sm:$0xff]   ;;  %v14342_v45 = vld [vmem:[#allocation8 + $0x174] ss:$12 sps:$4 sm:$0xff]  }
  0xf6   : > { %605 = vmatpush1.bf16.msra.mxu0 %v14316_v19  ;;  %565 = vmatprep.mubr.bf16.mxu0 %v15431_v2  ;;  %v14344_v46 = vld [vmem:[#allocation8 + $0x190] ss:$12 sps:$4 sm:$0xff]   ;;  %v14347_v47 = vld [vmem:[#allocation8 + $0x194] ss:$12 sps:$4 sm:$0xff]   ;;  %v14351_v50 = vld [vmem:[#allocation8 + $0x1ac] ss:$12 sps:$4 sm:$0xff]  }
  0xf7   : > { %11303 = vmatprep.subr.msk.bf16.mxu0 %vm516_vm0, %v14319_v20  ;;  %v14348_v49 = vld [vmem:[#allocation8 + $0x1a8] ss:$12 sps:$4 sm:$0xff]   ;;  %v14350_v51 = vld [vmem:[#allocation8 + $0x1a4] ss:$12 sps:$4 sm:$0xff]   ;;  %v759_v54 = vld [vmem:[#allocation6] sm:$0x3] }
  0xf8   : > { %1228 = vmatpush1.bf16.msra.mxu1 %v14334_v39  ;;  %v15820_v55 = vsub.s32 0, %v15817_v53  ;;  %v14352_v56 = vld [vmem:[#allocation8 + $0x1c0] ss:$12 sps:$4 sm:$0xff]   ;;  %v15823_v57 = vsub.s32 1, %v15817_v53  ;;  %v14354_v58 = vld [vmem:[#allocation8 + $0x1bc] ss:$12 sps:$4 sm:$0xff]  }
  0xf9   : > { %1229 = vmatprep.subr.bf16.mxu1 %v14336_v40  ;;  %v14355_v59 = vld [vmem:[#allocation8 + $0x1c4] ss:$12 sps:$4 sm:$0xff]   ;;  %v14358_v63 = vld [vmem:[#allocation8 + $0x1d4] ss:$12 sps:$4 sm:$0xff]   ;;  %v14359_v0 = vld [vmem:[#allocation8 + $0x1dc] ss:$12 sps:$4 sm:$0xff]  }
  0xfa   : > { %607 = vmatpush1.bf16.msra.mxu0 %v599_v25  ;;  %v764_v60 = vrot.slane %v759_v54, %v15820_v55  ;;  %v14356_v61 = vld [vmem:[#allocation8 + $0x1d8] ss:$12 sps:$4 sm:$0xff]   ;;  %v768_v62 = vrot.slane %v759_v54, %v15823_v57  ;;  %v14360_v5 = vld [vmem:[#allocation8 + $0x1f0] ss:$12 sps:$4 sm:$0xff]   ;;  %v14363_v9 = vld [vmem:[#allocation8 + $0x1f4] ss:$12 sps:$4 sm:$0xff]  }
  0xfb   : > { %698 = vmatprep.subr.bf16.mxu0 %v14324_v24  ;;  %v14362_v8 = vld [vmem:[#allocation8 + $0x1ec] ss:$12 sps:$4 sm:$0xff]   ;;  %v14364_v14 = vld [vmem:[#allocation8 + $0x208] ss:$12 sps:$4 sm:$0xff]   ;;  %v14366_v15 = vld [vmem:[#allocation8 + $0x204] ss:$12 sps:$4 sm:$0xff]  }
  0xfc   : > { %1230 = vmatpush1.bf16.msra.mxu1 %v14338_v42  ;;  %v14367_v16 = vld [vmem:[#allocation8 + $0x20c] ss:$12 sps:$4 sm:$0xff]   ;;  %v14370_v24 = vld [vmem:[#allocation8 + $0x21c] ss:$12 sps:$4 sm:$0xff]   ;;  %v14371_v25 = vld [vmem:[#allocation8 + $0x224] ss:$12 sps:$4 sm:$0xff]  }
  0xfd   : > { %11298 = vmatmul.mubr.msk.bf16.gmra.mrb[4].mxu0 %vm509_vm2, %v490_v26  ;;  %1231 = vmatprep.subr.bf16.mxu1 %v14340_v43  ;;  %v14368_v21 = vld [vmem:[#allocation8 + $0x220] ss:$12 sps:$4 sm:$0xff]   ;;  %vm1215_vm4 = vcmask 1043456   ;;  %v14378_v35 = vld [vmem:[#allocation8 + $0x254] ss:$0 sps:$4 sm:$0xff]   ;;  %vm803_vm5 = vcmask 982016  }
  0xfe   : > { %636 = vmatprep.mubr.bf16.mxu0 %v15431_v2  ;;  %v14374_v31 = vld [vmem:[#allocation8 + $0x234] ss:$12 sps:$4 sm:$0xff]   ;;  %v974_v34 = vld [vmem:[#allocation8 + $0x24c] sm:$0xff]  ;;  %vm1208_vm6 = vcmask 588800   ;;  %s15433_s26 = smov 112   ;;  %vm2077_vm7 = vcmask 916480  }
  0xff   : > { %v11349_v37 = vcombine.low %v974_v34, %v974_v34  ;;  %v14381_v40 = vld [vmem:[#allocation8 + $0x4] ss:$12 sps:$4 sm:$0xff]   ;;  %vm2155_vm8 = vcmask 785408   ;;  %vm2162_vm9 = vcmask 783360   ;;  %vm3855_vm10 = vcmask 74752  }
 0x100   : > { %1232 = vmatpush1.bf16.msra.mxu1 %v14342_v45 }
 0x101   : > { %1233 = vmatprep.subr.bf16.mxu1 %v14344_v46  ;;  %v1217_v39 = vsel %vm1215_vm4, %v11349_v37, 0 }
 0x104   : > { %1234 = vmatpush1.bf16.msra.mxu1 %v14346_v48 }
 0x105   : > { %11304 = vmatmul.mubr.msk.bf16.vlgmr.msra.gmra.mrb[0].mxu0 %vm509_vm2, %v464_v10  ;;  %1235 = vmatprep.subr.bf16.mxu1 %v14348_v49 }
 0x106   : > { %699 = vmatpush1.bf16.msra.mxu0 %v14322_v27  ;;  %646 = vmatprep.mubr.bf16.mxu0 %v15431_v2 }
 0x107   : > { %11310 = vmatprep.subr.msk.bf16.mxu0 %vm516_vm0, %v14325_v28 }
 0x108   : > { %1236 = vmatpush1.bf16.msra.mxu1 %v14350_v51 }
 0x109   : > { %1237 = vmatprep.subr.bf16.mxu1 %v14352_v56 }
 0x10a   : > { %701 = vmatpush1.bf16.msra.mxu0 %v693_v30  ;;  %v14372_v30 = vld [vmem:[#allocation8 + $0x238] ss:$12 sps:$4 sm:$0xff]  }
 0x10b   : > { %1276 = vmatprep.subr.bf16.mxu0 %v15431_v2 }
 0x10c   : > { %1238 = vmatpush1.bf16.msra.mxu1 %v14354_v58 }
 0x10d   : > { %11305 = vmatmul.mubr.msk.bf16.gmra.mrb[4].mxu0 %vm509_vm2, %v465_v11  ;;  %1239 = vmatprep.subr.bf16.mxu1 %v14356_v61 }
 0x10e   : > { %730 = vmatprep.mubr.bf16.mxu0 %v15431_v2 }
 0x110   : > { %1240 = vmatpush1.bf16.msra.mxu1 %v14358_v63 }
 0x111   : > { %1241 = vmatprep.subr.bf16.mxu1 %v14360_v5 }
 0x114   : > { %1242 = vmatpush1.bf16.msra.mxu1 %v14362_v8 }
 0x115   : > { %11311 = vmatmul.mubr.msk.bf16.vlgmr.msra.gmra.mrb[0].mxu0 %vm509_vm2, %v667_v33  ;;  %1243 = vmatprep.subr.bf16.mxu1 %v14364_v14 }
 0x116   : > { %740 = vmatprep.mubr.bf16.mxu0 %v15431_v2  ;;  %1277 = vmatpush1.bf16.msra.mxu0 %v14331_v36  ;;  %v11350_v36 = vcombine.high %v974_v34, %v974_v34 }
 0x117   : > { %1278 = vmatprep.subr.bf16.mxu0 %v15431_v2 }
 0x118   : > { %1244 = vmatpush1.bf16.msra.mxu1 %v14366_v15 }
 0x119   : > { %1245 = vmatprep.subr.bf16.mxu1 %v14368_v21 }
 0x11a   : > { %1279 = vmatpush1.bf16.msra.mxu0 %v14335_v38  ;;  %v1223_v38 = vsel %vm1215_vm4, %v14378_v35, 0 }
 0x11b   : > { %1280 = vmatprep.subr.bf16.mxu0 %v15431_v2 }
 0x11c   : > { %1246 = vmatpush1.bf16.msra.mxu1 %v14370_v24 }
 0x11d   : > { %11312 = vmatmul.mubr.msk.bf16.gmra.mrb[4].mxu0 %vm509_vm2, %v666_v32  ;;  %v14375_v32 = vld [vmem:[#allocation8 + $0x23c] ss:$12 sps:$4 sm:$0xff]   ;;  %1247 = vmatprep.subr.bf16.mxu1 %v14372_v30 }
 0x11e   : > { %1281 = vmatpush1.bf16.msra.mxu0 %v14339_v41 }
 0x11f   : > { %1282 = vmatprep.subr.bf16.mxu0 %v15431_v2 }
 0x120   : > { %1248 = vmatpush1.bf16.msra.mxu1 %v14374_v31 }
 0x121   : > { %11352 = vmatprep.subr.msk.bf16.mxu1 %vm1215_vm4, %v11350_v36 }
 0x122   : > { %1283 = vmatpush1.bf16.msra.mxu0 %v14343_v44 }
 0x123   : > { %1284 = vmatprep.subr.bf16.mxu0 %v15431_v2 }
 0x124   : > { %1250 = vmatpush1.bf16.msra.mxu1 %v1217_v39 }
 0x125   : > { %1537 = vmatprep.subr.bf16.mxu1 %v14381_v40 }
 0x126   : > { %1285 = vmatpush1.bf16.msra.mxu0 %v14347_v47 }
 0x127   : > { %1286 = vmatprep.subr.bf16.mxu0 %v15431_v2 }
 0x12a   : > { %1287 = vmatpush1.bf16.msra.mxu0 %v14351_v50 }
 0x12b   : > { %1288 = vmatprep.subr.bf16.mxu0 %v15431_v2 }
 0x12e   : > { %1289 = vmatpush1.bf16.msra.mxu0 %v14355_v59 }
 0x12f   : > { %1290 = vmatprep.subr.bf16.mxu0 %v15431_v2 }
 0x132   : > { %1291 = vmatpush1.bf16.msra.mxu0 %v14359_v0 }
 0x133   : > { %1292 = vmatprep.subr.bf16.mxu0 %v15431_v2 }
 0x136   : > { %1293 = vmatpush1.bf16.msra.mxu0 %v14363_v9 }
 0x137   : > { %1294 = vmatprep.subr.bf16.mxu0 %v15431_v2 }
 0x13a   : > { %1295 = vmatpush1.bf16.msra.mxu0 %v14367_v16 }
 0x13b   : > { %1296 = vmatprep.subr.bf16.mxu0 %v15431_v2 }
 0x13e   : > { %1297 = vmatpush1.bf16.msra.mxu0 %v14371_v25 }
 0x13f   : > { %1298 = vmatprep.subr.bf16.mxu0 %v15431_v2 }
 0x142   : > { %1299 = vmatpush1.bf16.msra.mxu0 %v14375_v32 }
 0x143   : > { %1300 = vmatprep.subr.bf16.mxu0 %v15431_v2 }
 0x146   : > { %1301 = vmatpush1.bf16.msra.mxu0 %v1223_v38 }
 0x147   : > { %1588 = vmatprep.subr.bf16.mxu0 %v15431_v2 }
 0x1e8   : > { %v732_v1 = vpop.f32.mrb[0].mxu0 }
 0x1e9   : > { %v15828_v3 = vadd.f32 %v764_v60, %v732_v1  ;;  %v734_v4 = vpop.f32.mrb[1].mxu0 }
 0x1ea   : > { %v15831_v6 = vadd.f32 %v768_v62, %v734_v4  ;;  %v736_v7 = vpop.f32.mrb[2].mxu0 }
 0x1eb   : > { %v738_v10 = vpop.f32.mrb[3].mxu0  ;;  %v15833_v11 = vadd.f32 %v764_v60, %v736_v7 }
 0x1ec   : > { %v15835_v12 = vadd.f32 %v768_v62, %v738_v10  ;;  %v14270_v13 = vpack.i.bf16 %v15831_v6, %v15828_v3 }
 0x1ee   : > { %14271 = vrot.lane.b32.xlu0 %v14270_v13, %s15432_s9  ;;  %v14275_v17 = vpack.i.bf16 %v15835_v12, %v15833_v11 }
 0x1f0   : > { %v742_v18 = vpop.f32.mrb[4].mxu0 }
 0x1f1   : > { %v15843_v19 = vadd.f32 %v764_v60, %v742_v18  ;;  %v744_v20 = vpop.f32.mrb[5].mxu0 }
 0x1f2   : > { %v776_v22 = vadd.f32 %v768_v62, %v744_v20  ;;  %14276 = vrot.lane.b32.xlu0 %v14275_v17, %s15432_s9  ;;  %v746_v23 = vpop.f32.mrb[6].mxu0 }
 0x1f3   : > { %v748_v26 = vpop.f32.mrb[7].mxu0  ;;  %v15847_v27 = vadd.f32 %v764_v60, %v746_v23 }
 0x1f4   : > { %v778_v28 = vadd.f32 %v768_v62, %v748_v26  ;;  %v14280_v29 = vpack.i.bf16 %v776_v22, %v15843_v19 }
 0x1f6   : > { %14281 = vrot.lane.b32.xlu1 %v14280_v29, %s15432_s9  ;;  %v14285_v33 = vpack.i.bf16 %v778_v28, %v15847_v27 }
 0x1fa   : > { %14286 = vrot.lane.b32.xlu1 %v14285_v33, %s15432_s9 }
 0x260   : > { %v14272_v41 = vpop.permute.xlu0 %14271 }
 0x261   : > { %v14274_v42 = vunpack.i.h.bf16 %v14272_v41  ;;  %v14273_v43 = vunpack.i.l.bf16 %v14272_v41 }
 0x263   : > { %v804_v44 = vsel %vm803_vm5, %v14273_v43, %v14274_v42  ;;  %v817_v46 = vmax.f32 %v15831_v6, %v14274_v42 }
 0x264   : > { %v14277_v45 = vpop.permute.xlu0 %14276  ;;  %v816_v49 = vmax.f32 %v15828_v3, %v804_v44 }
 0x265   : > { %v14279_v47 = vunpack.i.h.bf16 %v14277_v45  ;;  %v14278_v48 = vunpack.i.l.bf16 %v14277_v45  ;;  %v836_v56 = vrot.slane %v817_v46, 1 }
 0x266   : > { %v833_v61 = vrot.slane %v816_v49, 1 }
 0x267   : > { %v819_v50 = vmax.f32 %v15835_v12, %v14279_v47  ;;  %v805_v51 = vsel %vm803_vm5, %v14278_v48, %v14279_v47 }
 0x268   : > { %v818_v52 = vmax.f32 %v15833_v11, %v805_v51  ;;  %v14282_v54 = vpop.permute.xlu1 %14281 }
 0x269   : > { %v837_v58 = vrot.slane %v819_v50, 1  ;;  %v14284_v59 = vunpack.i.h.bf16 %v14282_v54  ;;  %v14283_v60 = vunpack.i.l.bf16 %v14282_v54 }
 0x26a   : > { %v834_v62 = vrot.slane %v818_v52, 1 }
 0x26b   : > { %v838_v63 = vsel %vm664_vm3, %v836_v56, %v837_v58  ;;  %v821_v0 = vmax.f32 %v776_v22, %v14284_v59  ;;  %v806_v1 = vsel %vm803_vm5, %v14283_v60, %v14284_v59  ;;  %v14379_v60 = vld [vmem:[#allocation8] ss:$12 sps:$4 sm:$0xff]  }
 0x26c   : > { %v835_v3 = vsel %vm664_vm3, %v833_v61, %v834_v62  ;;  %v820_v4 = vmax.f32 %v15843_v19, %v806_v1  ;;  %v14287_v5 = vpop.permute.xlu1 %14286  ;;  %v856_v9 = vmax.f32 %v817_v46, %v838_v63  ;;  %v14382_v63 = vld [vmem:[#allocation8 + $0x8] ss:$12 sps:$4 sm:$0xff]  }
 0x26d   : > { %v841_v6 = vrot.slane %v821_v0, 1  ;;  %v14289_v7 = vunpack.i.h.bf16 %v14287_v5  ;;  %v14288_v8 = vunpack.i.l.bf16 %v14287_v5  ;;  %v855_v11 = vmax.f32 %v816_v49, %v835_v3  ;;  %v14385_v5 = vld [vmem:[#allocation8 + $0x1c] ss:$12 sps:$4 sm:$0xff]  }
 0x26e   : > { %v839_v10 = vrot.slane %v820_v4, 1  ;;  %v864_v19 = vmax.f32 %v856_v9, 0.0 }
 0x26f   : > { %v842_v12 = vsel %vm664_vm3, %v837_v58, %v841_v6  ;;  %v823_v13 = vmax.f32 %v778_v28, %v14289_v7  ;;  %v807_v14 = vsel %vm803_vm5, %v14288_v8, %v14289_v7  ;;  %v863_v23 = vmax.f32 %v855_v11, 0.0  ;;  %v14386_v7 = vld [vmem:[#allocation8 + $0x20] ss:$12 sps:$4 sm:$0xff]   ;;  %v14390_v11 = vld [vmem:[#allocation8 + $0x38] ss:$12 sps:$4 sm:$0xff]  }
 0x270   : > { %v858_v15 = vmax.f32 %v819_v50, %v842_v12  ;;  %v840_v16 = vsel %vm664_vm3, %v834_v62, %v839_v10  ;;  %v822_v17 = vmax.f32 %v15847_v27, %v807_v14  ;;  %v14389_v8 = vld [vmem:[#allocation8 + $0x34] ss:$12 sps:$4 sm:$0xff]  }
 0x271   : > { %v857_v18 = vmax.f32 %v818_v52, %v840_v16  ;;  %v845_v20 = vrot.slane %v823_v13, 1  ;;  %v14391_v14 = vld [vmem:[#allocation8 + $0x48] ss:$12 sps:$4 sm:$0xff]   ;;  %v14397_v16 = vld [vmem:[#allocation8 + $0x64] ss:$12 sps:$4 sm:$0xff]  }
 0x272   : > { %v866_v21 = vmax.f32 %v858_v15, 0.0  ;;  %v843_v22 = vrot.slane %v822_v17, 1  ;;  %v14394_v15 = vld [vmem:[#allocation8 + $0x50] ss:$12 sps:$4 sm:$0xff]  }
 0x273   : > { %v865_v24 = vmax.f32 %v857_v18, 0.0  ;;  %v846_v25 = vsel %vm664_vm3, %v841_v6, %v845_v20  ;;  %v862_v26 = vmax.f32 %v823_v13, %v845_v20  ;;  %v14383_v6 = vld [vmem:[#allocation8 + $0x18] ss:$12 sps:$4 sm:$0xff]   ;;  %v14398_v18 = vld [vmem:[#allocation8 + $0x68] ss:$12 sps:$4 sm:$0xff]  }
 0x274   : > { %v15874_v29 = vpack.c.bf16 %v866_v21, %v864_v19  ;;  %v860_v28 = vmax.f32 %v821_v0, %v846_v25  ;;  %v844_v30 = vsel %vm664_vm3, %v839_v10, %v843_v22  ;;  %v861_v31 = vmax.f32 %v822_v17, %v843_v22  ;;  %v14387_v10 = vld [vmem:[#allocation8 + $0x30] ss:$12 sps:$4 sm:$0xff]   ;;  %v14393_v13 = vld [vmem:[#allocation8 + $0x4c] ss:$12 sps:$4 sm:$0xff]   ;;  %v14405_v22 = vld [vmem:[#allocation8 + $0x94] ss:$12 sps:$4 sm:$0xff]  }
 0x275   : > { %v15877_v32 = vpack.c.bf16 %v865_v24, %v863_v23  ;;  %v870_v33 = vmax.f32 %v862_v26, 0.0  ;;  %v859_v27 = vmax.f32 %v820_v4, %v844_v30  ;;  %v14395_v17 = vld [vmem:[#allocation8 + $0x60] ss:$12 sps:$4 sm:$0xff]   ;;  %v14401_v20 = vld [vmem:[#allocation8 + $0x7c] ss:$12 sps:$4 sm:$0xff]  }
 0x276   : > { %v868_v34 = vmax.f32 %v860_v28, 0.0  ;;  %v869_v35 = vmax.f32 %v861_v31, 0.0  ;;  %v991_v36 = vshll.u32 %v15874_v29, 16  ;;  %v989_v45 = vshrl.u32 %v15874_v29, 16  ;;  %v14399_v19 = vld [vmem:[#allocation8 + $0x78] ss:$12 sps:$4 sm:$0xff]  }
 0x277   : > { %v867_v37 = vmax.f32 %v859_v27, 0.0  ;;  %v979_v38 = vshll.u32 %v15877_v32, 16  ;;  %v1696_v47 = vrot.slane %v15874_v29, 1  ;;  %v977_v49 = vshrl.u32 %v15877_v32, 16  ;;  %v14402_v21 = vld [vmem:[#allocation8 + $0x80] ss:$12 sps:$4 sm:$0xff]  }
 0x278   : > { %v15881_v39 = vpack.c.bf16 %v868_v34, %v868_v34  ;;  %v1637_v40 = vpack.c.bf16 %v870_v33, %v868_v34  ;;  %v993_v41 = vrot.slane %v991_v36, 1  ;;  %v1693_v51 = vrot.slane %v15877_v32, 1  ;;  %v14403_v23 = vld [vmem:[#allocation8 + $0x90] ss:$12 sps:$4 sm:$0xff]   ;;  %v14406_v24 = vld [vmem:[#allocation8 + $0x98] ss:$12 sps:$4 sm:$0xff]  }
 0x279   : > { %v15883_v42 = vpack.c.bf16 %v867_v37, %v867_v37  ;;  %v981_v43 = vrot.slane %v979_v38, 1  ;;  %v1636_v44 = vpack.c.bf16 %v869_v35, %v867_v37  ;;  %v14409_v25 = vld [vmem:[#allocation8 + $0xac] ss:$12 sps:$4 sm:$0xff]   ;;  %v14407_v26 = vld [vmem:[#allocation8 + $0xa8] ss:$12 sps:$4 sm:$0xff]  }
 0x27a   : > { %v996_v46 = vshll.u32 %v15881_v39, 16  ;;  %v15888_v48 = vrot.slane %v1637_v40, 1  ;;  %v994_v54 = vor.u32 %v993_v41, %v989_v45  ;;  %v1003_v58 = vshrl.u32 %v15881_v39, 16  ;;  %v14413_v28 = vld [vmem:[#allocation8 + $0xc4] ss:$12 sps:$4 sm:$0xff]  }
 0x27b   : > { %v984_v50 = vshll.u32 %v15883_v42, 16  ;;  %v15893_v52 = vrot.slane %v1636_v44, 1  ;;  %v982_v61 = vor.u32 %v981_v43, %v977_v49  ;;  %v1000_v9 = vshrl.u32 %v15883_v42, 16  ;;  %v14411_v30 = vld [vmem:[#allocation8 + $0xc0] ss:$12 sps:$4 sm:$0xff]  }
 0x27c   : > { %v998_v56 = vrot.slane %v996_v46, 1  ;;  %v15898_v59 = vsel %vm664_vm3, %v1696_v47, %v15888_v48  ;;  %v14414_v31 = vld [vmem:[#allocation8 + $0xc8] ss:$12 sps:$4 sm:$0xff]   ;;  %v14415_v27 = vld [vmem:[#allocation8 + $0xd8] ss:$12 sps:$4 sm:$0xff]  }
 0x27d   : > { %v986_v62 = vrot.slane %v984_v50, 1  ;;  %v15902_v0 = vsel %vm664_vm3, %v1693_v51, %v15893_v52  ;;  %v14417_v33 = vld [vmem:[#allocation8 + $0xdc] ss:$12 sps:$4 sm:$0xff]   ;;  %v14418_v34 = vld [vmem:[#allocation8 + $0xe0] ss:$12 sps:$4 sm:$0xff]  }
 0x27e   : > { %v999_v1 = vsel %vm475_vm1, %v994_v54, %v998_v56  ;;  %v1005_v3 = vor.u32 %v1003_v58, %v998_v56  ;;  %v14421_v35 = vld [vmem:[#allocation8 + $0xf4] ss:$12 sps:$4 sm:$0xff]   ;;  %v14419_v36 = vld [vmem:[#allocation8 + $0xf0] ss:$12 sps:$4 sm:$0xff]   ;;  %v14422_v37 = vld [vmem:[#allocation8 + $0xf8] ss:$12 sps:$4 sm:$0xff]  }
 0x27f   : > { %11353 = vmatprep.mubr.msk.bf16.mxu1 %vm1208_vm6, %v999_v1  ;;  %11355 = vmatprep.mubr.msk.bf16.mxu0 %vm1208_vm6, %v999_v1  ;;  %v987_v4 = vsel %vm475_vm1, %v982_v61, %v986_v62  ;;  %v1002_v12 = vor.u32 %v1000_v9, %v986_v62  ;;  %v14425_v38 = vld [vmem:[#allocation8 + $0x10c] ss:$12 sps:$4 sm:$0xff]   ;;  %v923_v40 = vld [vmem:[#allocation8 + $0x120] sm:$0xff]  ;;  %v14423_v41 = vld [vmem:[#allocation8 + $0x108] ss:$12 sps:$4 sm:$0xff]  }
 0x280   : > { %1258 = vmatmul.mubr.bf16.vlgmr.msra.gmra.mrb[0].mxu1 %v987_v4  ;;  %1309 = vmatmul.mubr.bf16.vlgmr.msra.gmra.mrb[8].mxu0 %v987_v4  ;;  %v14426_v43 = vld [vmem:[#allocation8 + $0x110] ss:$12 sps:$4 sm:$0xff]   ;;  %v11394_v44 = vcombine.high %v923_v40, %v923_v40  ;;  %v11393_v45 = vcombine.low %v923_v40, %v923_v40  ;;  %v14429_v46 = vld [vmem:[#allocation8 + $0x128] ss:$0 sps:$4 sm:$0xff]   ;;  %v14430_v51 = vld [vmem:[#allocation8 + $0x258] ss:$12 sps:$4 sm:$0xff]  }
 0x281   : > { %1538 = vmatpush1.bf16.msra.mxu1 %v14379_v60  ;;  %1589 = vmatpush1.bf16.msra.mxu0 %v14382_v63  ;;  %v1535_v49 = vsel %vm1215_vm4, %v14429_v46, 0  ;;  %v14432_v50 = vld [vmem:[#allocation8 + $0x25c] ss:$12 sps:$4 sm:$0xff]   ;;  %v14433_v54 = vld [vmem:[#allocation8 + $0x260] ss:$12 sps:$4 sm:$0xff]  }
 0x282   : > { %11354 = vmatprep.mubr.msk.bf16.mxu1 %vm1208_vm6, %v1005_v3  ;;  %11356 = vmatprep.mubr.msk.bf16.mxu0 %vm1208_vm6, %v1005_v3  ;;  %v1529_v47 = vsel %vm1215_vm4, %v11393_v45, 0  ;;  %v14436_v56 = vld [vmem:[#allocation8 + $0x274] ss:$12 sps:$4 sm:$0xff]   ;;  %v14434_v58 = vld [vmem:[#allocation8 + $0x270] ss:$12 sps:$4 sm:$0xff]  }
 0x283   : > { %1539 = vmatprep.subr.bf16.mxu1 %v14385_v5  ;;  %1590 = vmatprep.subr.bf16.mxu0 %v15431_v2  ;;  %v14437_v60 = vld [vmem:[#allocation8 + $0x278] ss:$12 sps:$4 sm:$0xff]   ;;  %v14438_v62 = vld [vmem:[#allocation8 + $0x288] ss:$12 sps:$4 sm:$0xff]   ;;  %v14441_v63 = vld [vmem:[#allocation8 + $0x290] ss:$12 sps:$4 sm:$0xff]  }
 0x284   : > { %v14440_v61 = vld [vmem:[#allocation8 + $0x28c] ss:$12 sps:$4 sm:$0xff]   ;;  %v14445_v1 = vld [vmem:[#allocation8 + $0x2a8] ss:$12 sps:$4 sm:$0xff]   ;;  %v14457_v9 = vld [vmem:[#allocation8 + $0x2f0] ss:$12 sps:$4 sm:$0xff]  }
 0x285   : > { %1540 = vmatpush1.bf16.msra.mxu1 %v14383_v6  ;;  %1591 = vmatpush1.bf16.msra.mxu0 %v14386_v7  ;;  %v14448_v3 = vld [vmem:[#allocation8 + $0x2bc] ss:$12 sps:$4 sm:$0xff]   ;;  %v14446_v4 = vld [vmem:[#allocation8 + $0x2b8] ss:$12 sps:$4 sm:$0xff]   ;;  %v14449_v5 = vld [vmem:[#allocation8 + $0x2c0] ss:$12 sps:$4 sm:$0xff]  }
 0x286   : > { %1541 = vmatprep.subr.bf16.mxu1 %v14389_v8  ;;  %1592 = vmatprep.subr.bf16.mxu0 %v15431_v2  ;;  %v14450_v6 = vld [vmem:[#allocation8 + $0x2d0] ss:$12 sps:$4 sm:$0xff]   ;;  %v14456_v7 = vld [vmem:[#allocation8 + $0x2ec] ss:$12 sps:$4 sm:$0xff]   ;;  %v14454_v8 = vld [vmem:[#allocation8 + $0x2e8] ss:$12 sps:$4 sm:$0xff]  }
 0x287   : > { %v14484_v40 = vld [vmem:[#allocation3 + $0x34] ss:$8 sps:$4 sm:$0x3f]   ;;  %v14489_v46 = vld [vmem:[#allocation3 + $0x4] ss:$8 sps:$4 sm:$0xff]  }
 0x288   : > { %1268 = vmatmul.mubr.bf16.gmra.mrb[4].mxu1 %v1002_v12  ;;  %1317 = vmatmul.mubr.bf16.gmra.mrb[12].mxu0 %v1002_v12  ;;  %v14461_v12 = vld [vmem:[#allocation8 + $0x308] ss:$12 sps:$4 sm:$0xff]  }
 0x289   : > { %1542 = vmatpush1.bf16.msra.mxu1 %v14387_v10  ;;  %1593 = vmatpush1.bf16.msra.mxu0 %v14390_v11  ;;  %v14460_v10 = vld [vmem:[#allocation8 + $0x304] ss:$12 sps:$4 sm:$0xff]   ;;  %v14458_v11 = vld [vmem:[#allocation8 + $0x300] ss:$12 sps:$4 sm:$0xff]  }
 0x28a   : > { %11397 = vmatprep.mubr.msk.bf16.mxu1 %vm1208_vm6, %v15874_v29  ;;  %11399 = vmatprep.mubr.msk.bf16.mxu0 %vm1208_vm6, %v15874_v29  ;;  %v14410_v29 = vld [vmem:[#allocation8 + $0xb0] ss:$12 sps:$4 sm:$0xff]  }
 0x28b   : > { %1543 = vmatprep.subr.bf16.mxu1 %v14393_v13  ;;  %1594 = vmatprep.subr.bf16.mxu0 %v15431_v2  ;;  %v14464_v13 = vld [vmem:[#allocation8 + $0x31c] ss:$12 sps:$4 sm:$0xff]  }
 0x28d   : > { %1544 = vmatpush1.bf16.msra.mxu1 %v14391_v14  ;;  %1595 = vmatpush1.bf16.msra.mxu0 %v14394_v15  ;;  %v14462_v14 = vld [vmem:[#allocation8 + $0x318] ss:$12 sps:$4 sm:$0xff]   ;;  %v14465_v15 = vld [vmem:[#allocation8 + $0x320] ss:$12 sps:$4 sm:$0xff]  }
 0x28e   : > { %1545 = vmatprep.subr.bf16.mxu1 %v14397_v16  ;;  %1596 = vmatprep.subr.bf16.mxu0 %v15431_v2  ;;  %v14468_v16 = vld [vmem:[#allocation8 + $0x334] ss:$12 sps:$4 sm:$0xff]  }
 0x291   : > { %1546 = vmatpush1.bf16.msra.mxu1 %v14395_v17  ;;  %1597 = vmatpush1.bf16.msra.mxu0 %v14398_v18  ;;  %v14466_v17 = vld [vmem:[#allocation8 + $0x330] ss:$12 sps:$4 sm:$0xff]   ;;  %v14469_v18 = vld [vmem:[#allocation8 + $0x338] ss:$12 sps:$4 sm:$0xff]  }
 0x292   : > { %1547 = vmatprep.subr.bf16.mxu1 %v14401_v20  ;;  %1598 = vmatprep.subr.bf16.mxu0 %v15431_v2  ;;  %v14472_v20 = vld [vmem:[#allocation8 + $0x34c] ss:$12 sps:$4 sm:$0xff]  }
 0x295   : > { %1548 = vmatpush1.bf16.msra.mxu1 %v14399_v19  ;;  %1599 = vmatpush1.bf16.msra.mxu0 %v14402_v21  ;;  %v14470_v19 = vld [vmem:[#allocation8 + $0x348] ss:$12 sps:$4 sm:$0xff]   ;;  %v14473_v21 = vld [vmem:[#allocation8 + $0x350] ss:$12 sps:$4 sm:$0xff]  }
 0x296   : > { %1549 = vmatprep.subr.bf16.mxu1 %v14405_v22  ;;  %1600 = vmatprep.subr.bf16.mxu0 %v15431_v2  ;;  %v14476_v22 = vld [vmem:[#allocation8 + $0x364] ss:$12 sps:$4 sm:$0xff]  }
 0x299   : > { %1550 = vmatpush1.bf16.msra.mxu1 %v14403_v23  ;;  %1601 = vmatpush1.bf16.msra.mxu0 %v14406_v24  ;;  %v1687_v23 = vld [vmem:[#allocation8 + $0x378] sm:$0xff]  ;;  %v14474_v24 = vld [vmem:[#allocation8 + $0x360] ss:$12 sps:$4 sm:$0xff]  }
 0x29a   : > { %1551 = vmatprep.subr.bf16.mxu1 %v14409_v25  ;;  %1602 = vmatprep.subr.bf16.mxu0 %v15431_v2  ;;  %v14477_v25 = vld [vmem:[#allocation8 + $0x368] ss:$12 sps:$4 sm:$0xff]  }
 0x29d   : > { %1552 = vmatpush1.bf16.msra.mxu1 %v14407_v26  ;;  %1603 = vmatpush1.bf16.msra.mxu0 %v14410_v29  ;;  %v11438_v26 = vcombine.high %v1687_v23, %v1687_v23  ;;  %v11437_v29 = vcombine.low %v1687_v23, %v1687_v23  ;;  %v14501_v23 = vld [vmem:[#allocation8 + $0x130] ss:$12 sps:$4 sm:$0xff]  }
 0x29e   : > { %1553 = vmatprep.subr.bf16.mxu1 %v14413_v28  ;;  %1604 = vmatprep.subr.bf16.mxu0 %v15431_v2  ;;  %v14480_v28 = vld [vmem:[#allocation8 + $0x380] ss:$0 sps:$4 sm:$0xff]  }
 0x2a1   : > { %1554 = vmatpush1.bf16.msra.mxu1 %v14411_v30  ;;  %1605 = vmatpush1.bf16.msra.mxu0 %v14414_v31  ;;  %v1908_v30 = vsel %vm1215_vm4, %v11437_v29, 0  ;;  %v1914_v31 = vsel %vm1215_vm4, %v14480_v28, 0  ;;  %v14505_v29 = vld [vmem:[#allocation8 + $0x148] ss:$12 sps:$4 sm:$0xff]  }
 0x2a2   : > { %1555 = vmatprep.subr.bf16.mxu1 %v14417_v33  ;;  %1606 = vmatprep.subr.bf16.mxu0 %v15431_v2  ;;  %v14483_v33 = vld [vmem:[#allocation3 + $0x24] ss:$8 sps:$4 sm:$0xff]  }
 0x2a5   : > { %1556 = vmatpush1.bf16.msra.mxu1 %v14415_v27  ;;  %1607 = vmatpush1.bf16.msra.mxu0 %v14418_v34  ;;  %v11445_v27 = vld [vmem:[%s17508_s0 + $0x20] sm:$0xff]  ;;  %v11446_v34 = vld [vmem:[%s17508_s0 + $0x28] sm:$0xff] }
 0x2a6   : > { %1557 = vmatprep.subr.bf16.mxu1 %v14421_v35  ;;  %1608 = vmatprep.subr.bf16.mxu0 %v15431_v2  ;;  %v2169_v35 = vpack.c.bf16 %v11446_v34, %v11445_v27  ;;  %v14506_v27 = vld [vmem:[#allocation8 + $0x14c] ss:$12 sps:$4 sm:$0xff]  }
 0x2a9   : > { %1558 = vmatpush1.bf16.msra.mxu1 %v14419_v36  ;;  %1609 = vmatpush1.bf16.msra.mxu0 %v14422_v37  ;;  %v14481_v36 = vld [vmem:[#allocation3 + $0x20] ss:$8 sps:$4 sm:$0xff]  }
 0x2aa   : > { %1559 = vmatprep.subr.bf16.mxu1 %v14425_v38  ;;  %1610 = vmatprep.subr.bf16.mxu0 %v15431_v2  ;;  %v11447_v37 = vld [vmem:[%s17508_s0 + $0x30] sm:$0xff]  ;;  %v11448_v38 = vld [vmem:[%s17508_s0 + $0x38] sm:$0xf] }
 0x2ad   : > { %1560 = vmatpush1.bf16.msra.mxu1 %v14423_v41  ;;  %1611 = vmatpush1.bf16.msra.mxu0 %v14426_v43  ;;  %v14486_v41 = vld [vmem:[#allocation3 + $0x30] ss:$8 sps:$4 sm:$0x3f]   ;;  %v2170_v43 = vpack.c.bf16 %v11448_v38, %v11447_v37 }
 0x2ae   : > { %11396 = vmatprep.subr.msk.bf16.mxu1 %vm1215_vm4, %v11394_v44  ;;  %1612 = vmatprep.subr.bf16.mxu0 %v15431_v2  ;;  %v2182_v44 = vshll.u32 %v2169_v35, 16  ;;  %v2219_v45 = vsel %vm516_vm0, %v14486_v41, 0  ;;  %v14503_v37 = vld [vmem:[#allocation8 + $0x144] ss:$12 sps:$4 sm:$0xff]   ;;  %v14509_v41 = vld [vmem:[#allocation8 + $0x160] ss:$12 sps:$4 sm:$0xff]  }
 0x2b1   : > { %1562 = vmatpush1.bf16.msra.mxu1 %v1529_v47  ;;  %1613 = vmatpush1.bf16.msra.mxu0 %v1535_v49  ;;  %v2180_v47 = vshrl.u32 %v2169_v35, 16  ;;  %v2184_v49 = vrot.slane %v2182_v44, 1  ;;  %v14507_v44 = vld [vmem:[#allocation8 + $0x15c] ss:$12 sps:$4 sm:$0xff]  }
 0x2b2   : > { %1916 = vmatprep.subr.bf16.mxu1 %v14432_v50  ;;  %1967 = vmatprep.subr.bf16.mxu0 %v15431_v2  ;;  %v2187_v50 = vshll.u32 %v2170_v43, 16 }
 0x2b4   : > { %1570 = vmatmul.mubr.bf16.vlgmr.msra.gmra.mrb[0].mxu1 %v15877_v32  ;;  %1621 = vmatmul.mubr.bf16.vlgmr.msra.gmra.mrb[16].mxu0 %v15877_v32  ;;  %v14444_v32 = vld [vmem:[#allocation8 + $0x2a4] ss:$12 sps:$4 sm:$0xff]  }
 0x2b5   : > { %11398 = vmatprep.mubr.msk.bf16.mxu1 %vm1208_vm6, %v15881_v39  ;;  %11400 = vmatprep.mubr.msk.bf16.mxu0 %vm1208_vm6, %v15881_v39  ;;  %v14442_v39 = vld [vmem:[#allocation8 + $0x2a0] ss:$12 sps:$4 sm:$0xff]  }
 0x2b6   : > { %1917 = vmatpush1.bf16.msra.mxu1 %v14430_v51  ;;  %1968 = vmatpush1.bf16.msra.mxu0 %v14433_v54  ;;  %v14487_v54 = vld [vmem:[#allocation3] ss:$8 sps:$4 sm:$0xff]  }
 0x2b7   : > { %1918 = vmatprep.subr.bf16.mxu1 %v14436_v56  ;;  %1969 = vmatprep.subr.bf16.mxu0 %v15431_v2  ;;  %v14490_v56 = vld [vmem:[#allocation3 + $0x14] ss:$8 sps:$4 sm:$0x3f]  }
 0x2ba   : > { %1919 = vmatpush1.bf16.msra.mxu1 %v14434_v58  ;;  %1970 = vmatpush1.bf16.msra.mxu0 %v14437_v60  ;;  %v14492_v58 = vld [vmem:[#allocation3 + $0x10] ss:$8 sps:$4 sm:$0x3f]   ;;  %v2191_v60 = vshrl.u32 %v2170_v43, 16 }
 0x2bb   : > { %1920 = vmatprep.subr.bf16.mxu1 %v14440_v61  ;;  %1971 = vmatprep.subr.bf16.mxu0 %v15431_v2  ;;  %v2300_v61 = vsel %vm516_vm0, %v14492_v58, 0 }
 0x2bc   : > { %1580 = vmatmul.mubr.bf16.gmra.mrb[8].mxu1 %v15883_v42  ;;  %1629 = vmatmul.mubr.bf16.gmra.mrb[20].mxu0 %v15883_v42  ;;  %v14452_v42 = vld [vmem:[#allocation8 + $0x2d4] ss:$12 sps:$4 sm:$0xff]  }
 0x2bd   : > { %11441 = vmatprep.mubr.msk.bf16.mxu1 %vm1208_vm6, %v15898_v59  ;;  %11443 = vmatprep.mubr.msk.bf16.mxu0 %vm1208_vm6, %v15898_v59  ;;  %v14453_v59 = vld [vmem:[#allocation8 + $0x2d8] ss:$12 sps:$4 sm:$0xff]  }
 0x2be   : > { %1921 = vmatpush1.bf16.msra.mxu1 %v14438_v62  ;;  %1972 = vmatpush1.bf16.msra.mxu0 %v14441_v63  ;;  %v14493_v63 = vld [vmem:[#allocation3 + $0x40] ss:$8 sps:$4 sm:$0xff]  }
 0x2bf   : > { %1922 = vmatprep.subr.bf16.mxu1 %v14444_v32  ;;  %1973 = vmatprep.subr.bf16.mxu0 %v15431_v2  ;;  %v14496_v32 = vld [vmem:[#allocation3 + $0x54] ss:$8 sps:$4 sm:$0x3f]  }
 0x2c2   : > { %1923 = vmatpush1.bf16.msra.mxu1 %v14442_v39  ;;  %1974 = vmatpush1.bf16.msra.mxu0 %v14445_v1  ;;  %v14498_v39 = vld [vmem:[#allocation3 + $0x50] ss:$8 sps:$4 sm:$0x3f]  }
 0x2c3   : > { %1924 = vmatprep.subr.bf16.mxu1 %v14448_v3  ;;  %1975 = vmatprep.subr.bf16.mxu0 %v15431_v2  ;;  %v2392_v1 = vsel %vm516_vm0, %v14498_v39, 0  ;;  %v2364_v3 = vrot.slane %v2169_v35, 1 }
 0x2c6   : > { %1925 = vmatpush1.bf16.msra.mxu1 %v14446_v4  ;;  %1976 = vmatpush1.bf16.msra.mxu0 %v14449_v5  ;;  %v2365_v4 = vrot.slane %v2170_v43, 1 }
 0x2c7   : > { %1926 = vmatprep.subr.bf16.mxu1 %v14452_v42  ;;  %1977 = vmatprep.subr.bf16.mxu0 %v15431_v2 }
 0x2c8   : > { %v2366_v5 = vsel %vm664_vm3, %v2364_v3, %v2365_v4 }
 0x2ca   : > { %1927 = vmatpush1.bf16.msra.mxu1 %v14450_v6  ;;  %1978 = vmatpush1.bf16.msra.mxu0 %v14453_v59 }
 0x2cb   : > { %1928 = vmatprep.subr.bf16.mxu1 %v14456_v7  ;;  %1979 = vmatprep.subr.bf16.mxu0 %v15431_v2 }
 0x2ce   : > { %1929 = vmatpush1.bf16.msra.mxu1 %v14454_v8  ;;  %1980 = vmatpush1.bf16.msra.mxu0 %v14457_v9 }
 0x2cf   : > { %1930 = vmatprep.subr.bf16.mxu1 %v14460_v10  ;;  %1981 = vmatprep.subr.bf16.mxu0 %v15431_v2 }
 0x2d2   : > { %1931 = vmatpush1.bf16.msra.mxu1 %v14458_v11  ;;  %1982 = vmatpush1.bf16.msra.mxu0 %v14461_v12 }
 0x2d3   : > { %1932 = vmatprep.subr.bf16.mxu1 %v14464_v13  ;;  %1983 = vmatprep.subr.bf16.mxu0 %v15431_v2 }
 0x2d6   : > { %1933 = vmatpush1.bf16.msra.mxu1 %v14462_v14  ;;  %1984 = vmatpush1.bf16.msra.mxu0 %v14465_v15 }
 0x2d7   : > { %1934 = vmatprep.subr.bf16.mxu1 %v14468_v16  ;;  %1985 = vmatprep.subr.bf16.mxu0 %v15431_v2 }
 0x2da   : > { %1935 = vmatpush1.bf16.msra.mxu1 %v14466_v17  ;;  %1986 = vmatpush1.bf16.msra.mxu0 %v14469_v18 }
 0x2db   : > { %1936 = vmatprep.subr.bf16.mxu1 %v14472_v20  ;;  %1987 = vmatprep.subr.bf16.mxu0 %v15431_v2 }
 0x2de   : > { %1937 = vmatpush1.bf16.msra.mxu1 %v14470_v19  ;;  %1988 = vmatpush1.bf16.msra.mxu0 %v14473_v21 }
 0x2df   : > { %1938 = vmatprep.subr.bf16.mxu1 %v14476_v22  ;;  %1989 = vmatprep.subr.bf16.mxu0 %v15431_v2  ;;  %v14499_v22 = vld [vmem:[#allocation8 + $0x12c] ss:$12 sps:$4 sm:$0xff]  }
 0x2e2   : > { %1939 = vmatpush1.bf16.msra.mxu1 %v14474_v24  ;;  %1990 = vmatpush1.bf16.msra.mxu0 %v14477_v25  ;;  %v14502_v24 = vld [vmem:[#allocation8 + $0x134] ss:$12 sps:$4 sm:$0xff]  }
 0x2e3   : > { %11440 = vmatprep.subr.msk.bf16.mxu1 %vm1215_vm4, %v11438_v26  ;;  %1991 = vmatprep.subr.bf16.mxu0 %v15431_v2 }
 0x2e6   : > { %1941 = vmatpush1.bf16.msra.mxu1 %v1908_v30  ;;  %1992 = vmatpush1.bf16.msra.mxu0 %v1914_v31 }
 0x2e7   : > { %2224 = vmatprep.subr.bf16.mxu1 %v14483_v33  ;;  %2919 = vmatprep.subr.bf16.mxu0 %v14501_v23  ;;  %v14531_v23 = vld [vmem:[#allocation8 + $0x1ec] ss:$12 sps:$4 sm:$0xff]  }
 0x2e9   : > { %1949 = vmatmul.mubr.bf16.vlgmr.msra.gmra.mrb[0].mxu1 %v15902_v0  ;;  %2000 = vmatmul.mubr.bf16.vlgmr.msra.gmra.mrb[24].mxu0 %v15902_v0  ;;  %v2189_v0 = vrot.slane %v2187_v50, 1  ;;  %v14518_v50 = vld [vmem:[#allocation8 + $0x194] ss:$12 sps:$4 sm:$0xff]  }
 0x2ea   : > { %11442 = vmatprep.mubr.msk.bf16.mxu1 %vm1208_vm6, %v15888_v48  ;;  %11444 = vmatprep.mubr.msk.bf16.mxu0 %vm1208_vm6, %v15888_v48  ;;  %v2185_v48 = vor.u32 %v2184_v49, %v2180_v47  ;;  %v14511_v47 = vld [vmem:[#allocation8 + $0x174] ss:$12 sps:$4 sm:$0xff]   ;;  %v14517_v49 = vld [vmem:[#allocation8 + $0x190] ss:$12 sps:$4 sm:$0xff]  }
 0x2eb   : > { %2225 = vmatpush1.bf16.msra.mxu1 %v14481_v36  ;;  %v2193_v62 = vor.u32 %v2191_v60, %v2189_v0  ;;  %2920 = vmatpush1.bf16.msra.mxu0 %v14499_v22 }
 0x2ec   : > { %11453 = vmatprep.subr.msk.bf16.mxu1 %vm516_vm0, %v14484_v40  ;;  %v2190_v51 = vsel %vm475_vm1, %v2185_v48, %v2189_v0  ;;  %2921 = vmatprep.subr.bf16.mxu0 %v14505_v29  ;;  %v14515_v48 = vld [vmem:[#allocation8 + $0x18c] ss:$12 sps:$4 sm:$0xff]   ;;  %v14521_v0 = vld [vmem:[#allocation8 + $0x1a8] ss:$12 sps:$4 sm:$0xff]  }
 0x2ef   : > { %2227 = vmatpush1.bf16.msra.mxu1 %v2219_v45  ;;  %2922 = vmatpush1.bf16.msra.mxu0 %v14503_v37  ;;  %v14513_v45 = vld [vmem:[#allocation8 + $0x178] ss:$12 sps:$4 sm:$0xff]  }
 0x2f0   : > { %2305 = vmatprep.subr.bf16.mxu1 %v14489_v46  ;;  %2923 = vmatprep.subr.bf16.mxu0 %v14509_v41  ;;  %v14514_v46 = vld [vmem:[#allocation8 + $0x17c] ss:$12 sps:$4 sm:$0xff]  }
 0x2f1   : > { %1959 = vmatmul.mubr.bf16.gmra.mrb[12].mxu1 %v15893_v52  ;;  %2008 = vmatmul.mubr.bf16.gmra.mrb[28].mxu0 %v15893_v52  ;;  %v14495_v52 = vld [vmem:[#allocation3 + $0x44] ss:$8 sps:$4 sm:$0xff]  }
 0x2f2   : > { %2256 = vmatprep.mubr.bf16.mxu1 %v15431_v2 }
 0x2f3   : > { %2924 = vmatpush1.bf16.msra.mxu0 %v14507_v44 }
 0x2f4   : > { %2925 = vmatprep.subr.bf16.mxu0 %v14513_v45 }
 0x2f7   : > { %2926 = vmatpush1.bf16.msra.mxu0 %v14511_v47 }
 0x2f8   : > { %2927 = vmatprep.subr.bf16.mxu0 %v14517_v49  ;;  %v14541_v49 = vld [vmem:[#allocation8 + $0x220] ss:$12 sps:$4 sm:$0xff]  }
 0x2f9   : > { %11454 = vmatmul.mubr.msk.bf16.vlgmr.msra.gmra.mrb[16].mxu1 %vm509_vm2, %v2190_v51  ;;  %v14522_v51 = vld [vmem:[#allocation8 + $0x1ac] ss:$12 sps:$4 sm:$0xff]  }
 0x2fa   : > { %2306 = vmatpush1.bf16.msra.mxu1 %v14487_v54  ;;  %2266 = vmatprep.mubr.bf16.mxu1 %v15431_v2  ;;  %v14519_v54 = vld [vmem:[#allocation8 + $0x1a4] ss:$12 sps:$4 sm:$0xff]  }
 0x2fb   : > { %11460 = vmatprep.subr.msk.bf16.mxu1 %vm516_vm0, %v14490_v56  ;;  %2928 = vmatpush1.bf16.msra.mxu0 %v14515_v48  ;;  %v2036_v48 = vsub.s32 2, %v15817_v53 }
 0x2fc   : > { %2929 = vmatprep.subr.bf16.mxu0 %v14521_v0 }
 0x2fe   : > { %2308 = vmatpush1.bf16.msra.mxu1 %v2300_v61 }
 0x2ff   : > { %2397 = vmatprep.subr.bf16.mxu1 %v14495_v52  ;;  %2930 = vmatpush1.bf16.msra.mxu0 %v14519_v54  ;;  %v14539_v54 = vld [vmem:[#allocation8 + $0x21c] ss:$12 sps:$4 sm:$0xff]  }
 0x301   : > { %11455 = vmatmul.mubr.msk.bf16.gmra.mrb[20].mxu1 %vm509_vm2, %v2193_v62 }
 0x302   : > { %2337 = vmatprep.mubr.bf16.mxu1 %v15431_v2 }
 0x309   : > { %11461 = vmatmul.mubr.msk.bf16.vlgmr.msra.gmra.mrb[16].mxu1 %vm509_vm2, %v2169_v35 }
 0x30a   : > { %2398 = vmatpush1.bf16.msra.mxu1 %v14493_v63  ;;  %2347 = vmatprep.mubr.bf16.mxu1 %v15431_v2 }
 0x30b   : > { %11467 = vmatprep.subr.msk.bf16.mxu1 %vm516_vm0, %v14496_v32 }
 0x30e   : > { %2400 = vmatpush1.bf16.msra.mxu1 %v2392_v1 }
 0x30f   : > { %2970 = vmatprep.subr.bf16.mxu1 %v15431_v2 }
 0x311   : > { %11462 = vmatmul.mubr.msk.bf16.gmra.mrb[20].mxu1 %vm509_vm2, %v2170_v43  ;;  %v14510_v43 = vld [vmem:[#allocation8 + $0x164] ss:$12 sps:$4 sm:$0xff]  }
 0x312   : > { %2429 = vmatprep.mubr.bf16.mxu1 %v15431_v2 }
 0x319   : > { %11468 = vmatmul.mubr.msk.bf16.vlgmr.msra.gmra.mrb[16].mxu1 %vm509_vm2, %v2366_v5 }
 0x31a   : > { %2439 = vmatprep.mubr.bf16.mxu1 %v15431_v2  ;;  %2971 = vmatpush1.bf16.msra.mxu1 %v14502_v24  ;;  %v14534_v24 = vld [vmem:[#allocation8 + $0x1f4] ss:$12 sps:$4 sm:$0xff]  }
 0x31b   : > { %2972 = vmatprep.subr.bf16.mxu1 %v15431_v2 }
 0x31e   : > { %2973 = vmatpush1.bf16.msra.mxu1 %v14506_v27 }
 0x31f   : > { %2974 = vmatprep.subr.bf16.mxu1 %v15431_v2 }
 0x321   : > { %11469 = vmatmul.mubr.msk.bf16.gmra.mrb[20].mxu1 %vm509_vm2, %v2365_v4 }
 0x322   : > { %2975 = vmatpush1.bf16.msra.mxu1 %v14510_v43 }
 0x323   : > { %2976 = vmatprep.subr.bf16.mxu1 %v15431_v2 }
 0x326   : > { %2977 = vmatpush1.bf16.msra.mxu1 %v14514_v46 }
 0x327   : > { %2978 = vmatprep.subr.bf16.mxu1 %v15431_v2 }
 0x32a   : > { %2979 = vmatpush1.bf16.msra.mxu1 %v14518_v50 }
 0x32b   : > { %2980 = vmatprep.subr.bf16.mxu1 %v15431_v2 }
 0x32e   : > { %2981 = vmatpush1.bf16.msra.mxu1 %v14522_v51 }
 0x32f   : > { %2982 = vmatprep.subr.bf16.mxu1 %v15431_v2 }
 0x353   : > { %v1310_v42 = vpop.f32.mrb[8].mxu0 }
 0x354   : > { %v1312_v6 = vpop.f32.mrb[9].mxu0 }
 0x355   : > { %v1313_v59 = vpop.f32.mrb[10].mxu0 }
 0x356   : > { %v1315_v7 = vpop.f32.mrb[11].mxu0 }
 0x35b   : > { %v1269_v8 = vpop.f32.mrb[4].mxu1  ;;  %v1318_v9 = vpop.f32.mrb[12].mxu0 }
 0x35c   : > { %v1271_v10 = vpop.f32.mrb[5].mxu1  ;;  %v1320_v11 = vpop.f32.mrb[13].mxu0 }
 0x35d   : > { %v1273_v12 = vpop.f32.mrb[6].mxu1  ;;  %v1321_v13 = vpop.f32.mrb[14].mxu0 }
 0x35e   : > { %v1274_v14 = vpop.f32.mrb[7].mxu1  ;;  %v1322_v15 = vpop.f32.mrb[15].mxu0  ;;  %v14525_v12 = vld [vmem:[#allocation8 + $0x1c0] ss:$12 sps:$4 sm:$0xff]   ;;  %v14523_v13 = vld [vmem:[#allocation8 + $0x1bc] ss:$12 sps:$4 sm:$0xff]  }
 0x35f   : > { %v14526_v14 = vld [vmem:[#allocation8 + $0x1c4] ss:$12 sps:$4 sm:$0xff]   ;;  %2931 = vmatprep.subr.bf16.mxu0 %v14525_v12  ;;  %v2458_v15 = vld [vmem:[#allocation6] sm:$0x3] }
 0x360   : > { %2932 = vmatpush1.bf16.msra.mxu0 %v14523_v13  ;;  %2983 = vmatpush1.bf16.msra.mxu1 %v14526_v14 }
 0x361   : > { %2984 = vmatprep.subr.bf16.mxu1 %v15431_v2 }
 0x387   : > { %v1622_v16 = vpop.f32.mrb[16].mxu0 }
 0x388   : > { %v1623_v17 = vadd.f32 %v1622_v16, %v1310_v42  ;;  %v1624_v18 = vpop.f32.mrb[17].mxu0  ;;  %v14529_v16 = vld [vmem:[#allocation8 + $0x1d8] ss:$12 sps:$4 sm:$0xff]  }
 0x389   : > { %v1625_v20 = vpop.f32.mrb[18].mxu0  ;;  %v14530_v18 = vld [vmem:[#allocation8 + $0x1dc] ss:$12 sps:$4 sm:$0xff]   ;;  %2933 = vmatprep.subr.bf16.mxu0 %v14529_v16 }
 0x38a   : > { %v1626_v19 = vadd.f32 %v1625_v20, %v1313_v59  ;;  %v1627_v21 = vpop.f32.mrb[19].mxu0  ;;  %v2463_v20 = vrot.slane %v2458_v15, %v15820_v55  ;;  %2985 = vmatpush1.bf16.msra.mxu1 %v14530_v18 }
 0x38b   : > { %v14533_v21 = vld [vmem:[#allocation8 + $0x1f0] ss:$12 sps:$4 sm:$0xff]   ;;  %2986 = vmatprep.subr.bf16.mxu1 %v15431_v2 }
 0x38e   : > { %2987 = vmatpush1.bf16.msra.mxu1 %v14534_v24 }
 0x38f   : > { %v1581_v25 = vpop.f32.mrb[8].mxu1  ;;  %v1630_v26 = vpop.f32.mrb[20].mxu0  ;;  %2988 = vmatprep.subr.bf16.mxu1 %v15431_v2 }
 0x390   : > { %v1582_v28 = vadd.f32 %v1581_v25, %v1269_v8  ;;  %v1631_v30 = vadd.f32 %v1630_v26, %v1318_v9  ;;  %v1583_v31 = vpop.f32.mrb[9].mxu1  ;;  %v1632_v33 = vpop.f32.mrb[21].mxu0 }
 0x391   : > { %v1584_v34 = vadd.f32 %v1583_v31, %v1271_v10  ;;  %v1585_v35 = vpop.f32.mrb[10].mxu1  ;;  %v1633_v36 = vpop.f32.mrb[22].mxu0 }
 0x392   : > { %v1586_v38 = vpop.f32.mrb[11].mxu1  ;;  %v1634_v40 = vpop.f32.mrb[23].mxu0  ;;  %v14535_v35 = vld [vmem:[#allocation8 + $0x204] ss:$12 sps:$4 sm:$0xff]   ;;  %v14538_v36 = vld [vmem:[#allocation8 + $0x20c] ss:$12 sps:$4 sm:$0xff]  }
 0x393   : > { %2989 = vmatpush1.bf16.msra.mxu1 %v14538_v36  ;;  %v2024_v40 = vld [vmem:[#allocation9] sm:$0x7] }
 0x394   : > { %2990 = vmatprep.subr.bf16.mxu1 %v15431_v2  ;;  %v2029_v50 = vrot.slane %v2024_v40, %v15820_v55 }
 0x3bc   : > { %v16005_v56 = vpop.f32.mrb[0].mxu1  ;;  %v2001_v58 = vpop.f32.mrb[24].mxu0 }
 0x3bd   : > { %v16007_v60 = vadd.f32 %v2001_v58, %v1623_v17  ;;  %v16009_v61 = vpop.f32.mrb[1].mxu1  ;;  %v2003_v52 = vpop.f32.mrb[25].mxu0  ;;  %v14527_v17 = vld [vmem:[#allocation8 + $0x1d4] ss:$12 sps:$4 sm:$0xff]   ;;  %v14542_v58 = vld [vmem:[#allocation8 + $0x224] ss:$12 sps:$4 sm:$0xff]  }
 0x3be   : > { %v16011_v62 = vpop.f32.mrb[2].mxu1  ;;  %v2004_v63 = vpop.f32.mrb[26].mxu0  ;;  %2934 = vmatpush1.bf16.msra.mxu0 %v14527_v17  ;;  %v2033_v52 = vrot.slane %v2024_v40, %v15823_v57  ;;  %2991 = vmatpush1.bf16.msra.mxu1 %v14542_v58 }
 0x3bf   : > { %v16013_v32 = vadd.f32 %v2004_v63, %v1626_v19  ;;  %v16015_v39 = vpop.f32.mrb[3].mxu1  ;;  %v2006_v1 = vpop.f32.mrb[27].mxu0  ;;  %v2467_v19 = vrot.slane %v2458_v15, %v15823_v57  ;;  %2935 = vmatprep.subr.bf16.mxu0 %v14533_v21  ;;  %2992 = vmatprep.subr.bf16.mxu1 %v15431_v2  ;;  %v16081_v14 = vadd.f32 %v2029_v50, %v16011_v62 }
 0x3c0   : > { %v14545_v1 = vld [vmem:[#allocation8 + $0x238] ss:$12 sps:$4 sm:$0xff]   ;;  %v16086_v15 = vadd.f32 %v2033_v52, %v16015_v39 }
 0x3c2   : > { %2936 = vmatpush1.bf16.msra.mxu0 %v14531_v23 }
 0x3c4   : > { %v1960_v3 = vpop.f32.mrb[12].mxu1  ;;  %v2009_v4 = vpop.f32.mrb[28].mxu0 }
 0x3c5   : > { %v16017_v5 = vadd.f32 %v1960_v3, %v1582_v28  ;;  %v16019_v42 = vadd.f32 %v2009_v4, %v1631_v30  ;;  %v1962_v6 = vpop.f32.mrb[13].mxu1  ;;  %v2011_v59 = vpop.f32.mrb[29].mxu0  ;;  %v16060_v3 = vadd.f32 %v2029_v50, %v16005_v56  ;;  %v2037_v4 = vrot.slane %v2024_v40, %v2036_v48  ;;  %v2670_v56 = vld [vmem:[#allocation8 + $0x24c] sm:$0xff] }
 0x3c6   : > { %v16021_v7 = vadd.f32 %v1962_v6, %v1584_v34  ;;  %v1964_v8 = vpop.f32.mrb[14].mxu1  ;;  %v2012_v9 = vpop.f32.mrb[30].mxu0  ;;  %v14537_v34 = vld [vmem:[#allocation8 + $0x208] ss:$12 sps:$4 sm:$0xff]  }
 0x3c7   : > { %v1965_v10 = vpop.f32.mrb[15].mxu1  ;;  %v2013_v11 = vpop.f32.mrb[31].mxu0  ;;  %2937 = vmatprep.subr.bf16.mxu0 %v14537_v34  ;;  %v14543_v6 = vld [vmem:[#allocation8 + $0x234] ss:$12 sps:$4 sm:$0xff]   ;;  %v14546_v59 = vld [vmem:[#allocation8 + $0x23c] ss:$12 sps:$4 sm:$0xff]   ;;  %v16067_v8 = vadd.f32 %v2033_v52, %v16009_v61  ;;  %v11507_v9 = vcombine.high %v2670_v56, %v2670_v56  ;;  %v16072_v12 = vadd.f32 %v2037_v4, %v16007_v60  ;;  %v16092_v16 = vadd.f32 %v2037_v4, %v16013_v32 }
 0x3c8   : > { %2938 = vmatpush1.bf16.msra.mxu0 %v14535_v35  ;;  %2993 = vmatpush1.bf16.msra.mxu1 %v14546_v59  ;;  %v11506_v10 = vcombine.low %v2670_v56, %v2670_v56  ;;  %v14549_v11 = vld [vmem:[#allocation8 + $0x254] ss:$0 sps:$4 sm:$0xff]   ;;  %v14552_v60 = vld [vmem:[#allocation8 + $0x4] ss:$12 sps:$4 sm:$0xff]   ;;  %v16097_v62 = vadd.f32 %v2029_v50, %v16017_v5  ;;  %v16102_v39 = vadd.f32 %v2033_v52, %v16021_v7 }
 0x3c9   : > { %2939 = vmatprep.subr.bf16.mxu0 %v14541_v49  ;;  %2994 = vmatprep.subr.bf16.mxu1 %v15431_v2  ;;  %v2917_v13 = vsel %vm1215_vm4, %v14549_v11, 0  ;;  %v16107_v17 = vadd.f32 %v2037_v4, %v16019_v42 }
 0x3ca   : > { %v2911_v61 = vsel %vm1215_vm4, %v11506_v10, 0 }
 0x3cc   : > { %2940 = vmatpush1.bf16.msra.mxu0 %v14539_v54  ;;  %2995 = vmatpush1.bf16.msra.mxu1 %v2917_v13 }
 0x3cd   : > { %2941 = vmatprep.subr.bf16.mxu0 %v14545_v1  ;;  %3282 = vmatprep.subr.bf16.mxu1 %v15431_v2 }
 0x3d0   : > { %2942 = vmatpush1.bf16.msra.mxu0 %v14543_v6 }
 0x3d1   : > { %11509 = vmatprep.subr.msk.bf16.mxu0 %vm1215_vm4, %v11507_v9 }
 0x3d4   : > { %2944 = vmatpush1.bf16.msra.mxu0 %v2911_v61 }
 0x3d5   : > { %3231 = vmatprep.subr.bf16.mxu0 %v14552_v60 }
 0x3ec   : > { %v2431_v22 = vpop.f32.mrb[16].mxu1 }
 0x3ed   : > { %v16027_v25 = vadd.f32 %v2463_v20, %v2431_v22  ;;  %v2433_v26 = vpop.f32.mrb[17].mxu1 }
 0x3ee   : > { %v16029_v29 = vadd.f32 %v2467_v19, %v2433_v26  ;;  %v2435_v28 = vpop.f32.mrb[18].mxu1 }
 0x3ef   : > { %v16031_v30 = vadd.f32 %v2463_v20, %v2435_v28  ;;  %v2437_v31 = vpop.f32.mrb[19].mxu1 }
 0x3f0   : > { %v14290_v33 = vpack.i.bf16 %v16029_v29, %v16027_v25  ;;  %v16036_v27 = vadd.f32 %v2467_v19, %v2437_v31 }
 0x3f2   : > { %v14295_v37 = vpack.i.bf16 %v16036_v27, %v16031_v30  ;;  %14291 = vrot.lane.b32.xlu0 %v14290_v33, %s15432_s9 }
 0x3f4   : > { %14296 = vrot.lane.b32.xlu1 %v14295_v37, %s15432_s9  ;;  %v2441_v38 = vpop.f32.mrb[20].mxu1 }
 0x3f5   : > { %v16043_v41 = vadd.f32 %v2463_v20, %v2441_v38  ;;  %v2443_v43 = vpop.f32.mrb[21].mxu1 }
 0x3f6   : > { %v16045_v44 = vadd.f32 %v2467_v19, %v2443_v43  ;;  %v2445_v45 = vpop.f32.mrb[22].mxu1 }
 0x3f7   : > { %v16047_v46 = vadd.f32 %v2463_v20, %v2445_v45  ;;  %v2447_v47 = vpop.f32.mrb[23].mxu1 }
 0x3f8   : > { %v14300_v0 = vpack.i.bf16 %v16045_v44, %v16043_v41  ;;  %v16053_v51 = vadd.f32 %v2467_v19, %v2447_v47 }
 0x3fa   : > { %v14305_v63 = vpack.i.bf16 %v16053_v51, %v16047_v46  ;;  %14301 = vrot.lane.b32.xlu0 %v14300_v0, %s15432_s9 }
 0x3fc   : > { %14306 = vrot.lane.b32.xlu1 %v14305_v63, %s15432_s9 }
 0x3fe   : > { %2059 = vrot.lane.b32.xlu0 %v16060_v3, %s15433_s26 }
 0x400   : > { %2061 = vrot.lane.b32.xlu1 %v16067_v8, %s15433_s26 }
 0x402   : > { %2063 = vrot.lane.b32.xlu0 %v16072_v12, %s15433_s26 }
 0x404   : > { %2065 = vrot.lane.b32.xlu1 %v16081_v14, %s15433_s26 }
 0x406   : > { %2067 = vrot.lane.b32.xlu0 %v16086_v15, %s15433_s26 }
 0x408   : > { %2069 = vrot.lane.b32.xlu1 %v16092_v16, %s15433_s26 }
 0x40a   : > { %2071 = vrot.lane.b32.xlu0 %v16097_v62, %s15433_s26 }
 0x40c   : > { %2073 = vrot.lane.b32.xlu1 %v16102_v39, %s15433_s26 }
 0x40e   : > { %2075 = vrot.lane.b32.xlu0 %v16107_v17, %s15433_s26 }
 0x464   : > { %v14292_v32 = vpop.permute.xlu0 %14291 }
 0x465   : > { %v14294_v5 = vunpack.i.h.bf16 %v14292_v32  ;;  %v14293_v18 = vunpack.i.l.bf16 %v14292_v32 }
 0x466   : > { %v14297_v20 = vpop.permute.xlu1 %14296 }
 0x467   : > { %v2515_v19 = vmax.f32 %v16029_v29, %v14294_v5  ;;  %v2502_v7 = vsel %vm803_vm5, %v14293_v18, %v14294_v5  ;;  %v14299_v21 = vunpack.i.h.bf16 %v14297_v20  ;;  %v14298_v22 = vunpack.i.l.bf16 %v14297_v20 }
 0x468   : > { %v2514_v23 = vmax.f32 %v16027_v25, %v2502_v7 }
 0x469   : > { %v2517_v42 = vmax.f32 %v16036_v27, %v14299_v21  ;;  %v2503_v24 = vsel %vm803_vm5, %v14298_v22, %v14299_v21  ;;  %v2533_v28 = vrot.slane %v2515_v19, 1 }
 0x46a   : > { %v2516_v26 = vmax.f32 %v16031_v30, %v2503_v24  ;;  %v2530_v33 = vrot.slane %v2514_v23, 1 }
 0x46b   : > { %v2534_v31 = vrot.slane %v2517_v42, 1 }
 0x46c   : > { %v2531_v34 = vrot.slane %v2516_v26, 1  ;;  %v14302_v35 = vpop.permute.xlu0 %14301 }
 0x46d   : > { %v2535_v36 = vsel %vm664_vm3, %v2533_v28, %v2534_v31  ;;  %v14304_v29 = vunpack.i.h.bf16 %v14302_v35  ;;  %v14303_v37 = vunpack.i.l.bf16 %v14302_v35 }
 0x46e   : > { %v2553_v38 = vmax.f32 %v2515_v19, %v2535_v36  ;;  %v2532_v40 = vsel %vm664_vm3, %v2530_v33, %v2531_v34  ;;  %v14307_v43 = vpop.permute.xlu1 %14306 }
 0x46f   : > { %v2519_v25 = vmax.f32 %v16045_v44, %v14304_v29  ;;  %v2504_v27 = vsel %vm803_vm5, %v14303_v37, %v14304_v29  ;;  %v14309_v45 = vunpack.i.h.bf16 %v14307_v43  ;;  %v2552_v47 = vmax.f32 %v2514_v23, %v2532_v40 }
 0x470   : > { %v2518_v30 = vmax.f32 %v16043_v41, %v2504_v27  ;;  %v14308_v49 = vunpack.i.l.bf16 %v14307_v43  ;;  %v2060_v50 = vpop.permute.xlu0 %2059  ;;  %v2561_v58 = vmax.f32 %v2553_v38, 0.0 }
 0x471   : > { %v2538_v0 = vrot.slane %v2519_v25, 1  ;;  %v2521_v54 = vmax.f32 %v16053_v51, %v14309_v45  ;;  %v2560_v56 = vmax.f32 %v2552_v47, 0.0 }
 0x472   : > { %v2536_v52 = vrot.slane %v2518_v30, 1  ;;  %v2505_v63 = vsel %vm803_vm5, %v14308_v49, %v14309_v45  ;;  %v2062_v1 = vpop.permute.xlu1 %2061 }
 0x473   : > { %v2539_v4 = vsel %vm664_vm3, %v2534_v31, %v2538_v0  ;;  %v2542_v44 = vrot.slane %v2521_v54, 1  ;;  %v2520_v6 = vmax.f32 %v16047_v46, %v2505_v63  ;;  %v2078_v59 = vsel %vm2077_vm7, %v2060_v50, %v2062_v1 }
 0x474   : > { %v2555_v41 = vmax.f32 %v2517_v42, %v2539_v4  ;;  %v2537_v9 = vsel %vm664_vm3, %v2531_v34, %v2536_v52  ;;  %v2093_v10 = vmax.f32 %v16060_v3, %v2078_v59  ;;  %v2064_v11 = vpop.permute.xlu0 %2063 }
 0x475   : > { %v2554_v51 = vmax.f32 %v2516_v26, %v2537_v9  ;;  %v2543_v61 = vsel %vm664_vm3, %v2538_v0, %v2542_v44  ;;  %v2559_v13 = vmax.f32 %v2521_v54, %v2542_v44  ;;  %v2540_v60 = vrot.slane %v2520_v6, 1 }
 0x476   : > { %v2563_v32 = vmax.f32 %v2555_v41, 0.0  ;;  %v2557_v5 = vmax.f32 %v2519_v25, %v2543_v61  ;;  %v2111_v18 = vrot.slane %v2093_v10, 1  ;;  %v2079_v20 = vsel %vm2077_vm7, %v2062_v1, %v2064_v11  ;;  %v2066_v46 = vpop.permute.xlu1 %2065 }
 0x477   : > { %v2562_v19 = vmax.f32 %v2554_v51, 0.0  ;;  %v2567_v7 = vmax.f32 %v2559_v13, 0.0  ;;  %v2541_v21 = vsel %vm664_vm3, %v2536_v52, %v2540_v60  ;;  %v16134_v22 = vmax.f32 %v2520_v6, %v2540_v60 }
 0x478   : > { %v16136_v23 = vpack.c.bf16 %v2563_v32, %v2561_v58  ;;  %v2565_v3 = vmax.f32 %v2557_v5, 0.0  ;;  %v2556_v42 = vmax.f32 %v2518_v30, %v2541_v21  ;;  %v2094_v24 = vmax.f32 %v16067_v8, %v2079_v20  ;;  %v2068_v26 = vpop.permute.xlu0 %2067 }
 0x479   : > { %v16139_v28 = vpack.c.bf16 %v2562_v19, %v2560_v56  ;;  %v2566_v31 = vmax.f32 %v16134_v22, 0.0  ;;  %v2095_v33 = vmax.f32 %v16072_v12, %v2064_v11  ;;  %v2080_v34 = vsel %vm2077_vm7, %v2066_v46, %v2068_v26 }
 0x47a   : > { %v16144_v35 = vpack.c.bf16 %v2565_v3, %v2565_v3  ;;  %v16146_v36 = vpack.c.bf16 %v2567_v7, %v2565_v3  ;;  %v16148_v29 = vmax.f32 %v2556_v42, 0.0  ;;  %v2114_v37 = vrot.slane %v2094_v24, 1  ;;  %v2070_v38 = vpop.permute.xlu1 %2069 }
 0x47b   : > { %v2117_v40 = vrot.slane %v2095_v33, 1  ;;  %v2096_v8 = vmax.f32 %v16081_v14, %v2080_v34  ;;  %v2081_v43 = vsel %vm2077_vm7, %v2068_v26, %v2070_v38  ;;  %v2098_v25 = vmax.f32 %v16092_v16, %v2070_v38 }
 0x47c   : > { %v16155_v12 = vpack.c.bf16 %v16148_v29, %v16148_v29  ;;  %v16158_v27 = vmax.f32 %v16086_v15, %v2081_v43  ;;  %v2072_v45 = vpop.permute.xlu0 %2071  ;;  %v2685_v47 = vshrl.u32 %v16136_v23, 16  ;;  %v2687_v30 = vshll.u32 %v16136_v23, 16  ;;  %v14556_v43 = vld [vmem:[#allocation8 + $0x1c] ss:$12 sps:$4 sm:$0xff]  }
 0x47d   : > { %v2112_v49 = vrot.slane %v2096_v8, 1  ;;  %v2118_v50 = vrot.slane %v2098_v25, 1  ;;  %v2692_v14 = vshll.u32 %v16144_v35, 16  ;;  %v2673_v0 = vshrl.u32 %v16139_v28, 16 }
 0x47e   : > { %v2115_v16 = vrot.slane %v16158_v27, 1  ;;  %v2074_v54 = vpop.permute.xlu1 %2073  ;;  %v2689_v58 = vrot.slane %v2687_v30, 1  ;;  %v2675_v52 = vshll.u32 %v16139_v28, 16  ;;  %v2680_v15 = vshll.u32 %v16155_v12, 16 }
 0x47f   : > { %v2113_v63 = vsel %vm664_vm3, %v2111_v18, %v2112_v49  ;;  %v2119_v1 = vsel %vm664_vm3, %v2117_v40, %v2118_v50  ;;  %v2082_v4 = vsel %vm2077_vm7, %v2072_v45, %v2074_v54  ;;  %v2694_v44 = vrot.slane %v2692_v14, 1 }
 0x480   : > { %v2135_v6 = vmax.f32 %v2093_v10, %v2113_v63  ;;  %v2116_v59 = vsel %vm664_vm3, %v2114_v37, %v2115_v16  ;;  %v2137_v56 = vmax.f32 %v2095_v33, %v2119_v1  ;;  %v2099_v41 = vmax.f32 %v16097_v62, %v2082_v4  ;;  %v2076_v9 = vpop.permute.xlu0 %2075  ;;  %v14553_v33 = vld [vmem:[#allocation8 + $0x8] ss:$12 sps:$4 sm:$0xff]  }
 0x481   : > { %v2136_v11 = vmax.f32 %v2094_v24, %v2116_v59  ;;  %v2083_v51 = vsel %vm2077_vm7, %v2074_v54, %v2076_v9  ;;  %v2101_v61 = vmax.f32 %v16107_v17, %v2076_v9  ;;  %v2690_v13 = vor.u32 %v2689_v58, %v2685_v47  ;;  %v14550_v24 = vld [vmem:[#allocation8] ss:$12 sps:$4 sm:$0xff]   ;;  %v14562_v59 = vld [vmem:[#allocation8 + $0x48] ss:$12 sps:$4 sm:$0xff]  }
 0x482   : > { %v2144_v60 = vmax.f32 %v2135_v6, 0.0  ;;  %v2146_v32 = vmax.f32 %v2137_v56, 0.0  ;;  %v2120_v5 = vrot.slane %v2099_v41, 1  ;;  %v2100_v18 = vmax.f32 %v16102_v39, %v2083_v51  ;;  %v14564_v6 = vld [vmem:[#allocation8 + $0x4c] ss:$12 sps:$4 sm:$0xff]  }
 0x483   : > { %v2145_v20 = vmax.f32 %v2136_v11, 0.0  ;;  %v2124_v46 = vrot.slane %v2101_v61, 1  ;;  %v2695_v10 = vsel %vm475_vm1, %v2690_v13, %v2694_v44  ;;  %v2677_v19 = vrot.slane %v2675_v52, 1  ;;  %v14565_v56 = vld [vmem:[#allocation8 + $0x50] ss:$12 sps:$4 sm:$0xff]  }
 0x484   : > { %2153 = vst [vmem:[#allocation2] sm:$0xff] %v2144_v60  ;;  %2156 = vst.msk [vmem:[#allocation2 + $0x10] sm:$0xff] %vm2155_vm8, %v2146_v32  ;;  %v2121_v62 = vsel %vm664_vm3, %v2112_v49, %v2120_v5  ;;  %v2141_v7 = vmax.f32 %v2099_v41, %v2120_v5  ;;  %v2122_v21 = vrot.slane %v2100_v18, 1  ;;  %11510 = vmatprep.mubr.msk.bf16.mxu0 %vm1208_vm6, %v2695_v10  ;;  %11512 = vmatprep.mubr.msk.bf16.mxu1 %vm1208_vm6, %v2695_v10  ;;  %v14568_v41 = vld [vmem:[#allocation8 + $0x64] ss:$12 sps:$4 sm:$0xff]  }
 0x485   : > { %v2682_v17 = vrot.slane %v2680_v15, 1  ;;  %2154 = vst [vmem:[#allocation2 + $0x8] sm:$0xff] %v2145_v20  ;;  %v2138_v3 = vmax.f32 %v2096_v8, %v2121_v62  ;;  %v2125_v39 = vsel %vm664_vm3, %v2118_v50, %v2124_v46  ;;  %v2143_v42 = vmax.f32 %v2101_v61, %v2124_v46  ;;  %v14560_v15 = vld [vmem:[#allocation8 + $0x34] ss:$12 sps:$4 sm:$0xff]   ;;  %v14572_v51 = vld [vmem:[#allocation8 + $0x7c] ss:$12 sps:$4 sm:$0xff]  }
 0x486   : > { %v2678_v26 = vor.u32 %v2677_v19, %v2673_v0  ;;  %v2150_v34 = vmax.f32 %v2141_v7, 0.0  ;;  %v2123_v37 = vsel %vm664_vm3, %v2115_v16, %v2122_v21  ;;  %v2140_v38 = vmax.f32 %v2098_v25, %v2125_v39  ;;  %v14554_v0 = vld [vmem:[#allocation8 + $0x18] ss:$12 sps:$4 sm:$0xff]   ;;  %v14557_v25 = vld [vmem:[#allocation8 + $0x20] ss:$12 sps:$4 sm:$0xff]  }
 0x487   : > { %v2142_v40 = vmax.f32 %v2100_v18, %v2122_v21  ;;  %v2147_v45 = vmax.f32 %v2138_v3, 0.0  ;;  %v2139_v47 = vmax.f32 %v16158_v27, %v2123_v37  ;;  %v2152_v30 = vmax.f32 %v2143_v42, 0.0  ;;  %v14566_v9 = vld [vmem:[#allocation8 + $0x60] ss:$12 sps:$4 sm:$0xff]   ;;  %v14569_v11 = vld [vmem:[#allocation8 + $0x68] ss:$12 sps:$4 sm:$0xff]  }
 0x488   : > { %v2683_v49 = vsel %vm475_vm1, %v2678_v26, %v2682_v17  ;;  %2160 = vst [vmem:[#allocation2 + $0x30] sm:$0x3f] %v2150_v34  ;;  %v2149_v8 = vmax.f32 %v2140_v38, 0.0  ;;  %v2699_v50 = vshrl.u32 %v16144_v35, 16  ;;  %v3389_v16 = vrot.slane %v16136_v23, 1 }
 0x489   : > { %v2151_v14 = vmax.f32 %v2142_v40, 0.0  ;;  %2952 = vmatmul.mubr.bf16.vlgmr.msra.gmra.mrb[32].mxu0 %v2683_v49  ;;  %3003 = vmatmul.mubr.bf16.vlgmr.msra.gmra.mrb[24].mxu1 %v2683_v49  ;;  %2157 = vst [vmem:[#allocation2 + $0x18] sm:$0xff] %v2147_v45  ;;  %v2148_v54 = vmax.f32 %v2139_v47, 0.0  ;;  %v16187_v27 = vrot.slane %v16146_v36, 1  ;;  %v3330_v58 = vpack.c.bf16 %v2566_v31, %v16148_v29  ;;  %2163 = vst.msk [vmem:[#allocation2 + $0x40] sm:$0x3f] %vm2162_vm9, %v2152_v30 }
 0x48a   : > { %3232 = vmatpush1.bf16.msra.mxu0 %v14550_v24  ;;  %3283 = vmatpush1.bf16.msra.mxu1 %v14553_v33  ;;  %2159 = vst.msk [vmem:[#allocation2 + $0x28] sm:$0xff] %vm2155_vm8, %v2149_v8  ;;  %v2701_v52 = vor.u32 %v2699_v50, %v2694_v44  ;;  %v3386_v36 = vrot.slane %v16139_v28, 1  ;;  %v2696_v22 = vshrl.u32 %v16155_v12, 16  ;;  %v14558_v31 = vld [vmem:[#allocation8 + $0x30] ss:$12 sps:$4 sm:$0xff]   ;;  %v2620_v24 = vld [vmem:[#allocation8 + $0x120] sm:$0xff] }
 0x48b   : > { %2161 = vst [vmem:[#allocation2 + $0x38] sm:$0x3f] %v2151_v14  ;;  %3233 = vmatprep.subr.bf16.mxu0 %v14556_v43  ;;  %3284 = vmatprep.subr.bf16.mxu1 %v15431_v2  ;;  %2158 = vst [vmem:[#allocation2 + $0x20] sm:$0xff] %v2148_v54  ;;  %v16197_v63 = vsel %vm664_vm3, %v3389_v16, %v16187_v27  ;;  %v16200_v1 = vrot.slane %v3330_v58, 1  ;;  %v14561_v29 = vld [vmem:[#allocation8 + $0x38] ss:$12 sps:$4 sm:$0xff]   ;;  %v11551_v34 = vcombine.high %v2620_v24, %v2620_v24 }
 0x48c   : > { %11511 = vmatprep.mubr.msk.bf16.mxu0 %vm1208_vm6, %v2701_v52  ;;  %11513 = vmatprep.mubr.msk.bf16.mxu1 %vm1208_vm6, %v2701_v52  ;;  %v2698_v44 = vor.u32 %v2696_v22, %v2682_v17  ;;  %v14570_v61 = vld [vmem:[#allocation8 + $0x78] ss:$12 sps:$4 sm:$0xff]   ;;  %v14573_v13 = vld [vmem:[#allocation8 + $0x80] ss:$12 sps:$4 sm:$0xff]   ;;  %v14574_v60 = vld [vmem:[#allocation8 + $0x90] ss:$12 sps:$4 sm:$0xff]   ;;  %v11550_v37 = vcombine.low %v2620_v24, %v2620_v24 }
 0x48d   : > { %v16207_v4 = vsel %vm664_vm3, %v3386_v36, %v16200_v1  ;;  %v14577_v32 = vld [vmem:[#allocation8 + $0x98] ss:$12 sps:$4 sm:$0xff]   ;;  %v14578_v18 = vld [vmem:[#allocation8 + $0xa8] ss:$12 sps:$4 sm:$0xff]   ;;  %v14581_v20 = vld [vmem:[#allocation8 + $0xb0] ss:$12 sps:$4 sm:$0xff]  }
 0x48e   : > { %3234 = vmatpush1.bf16.msra.mxu0 %v14554_v0  ;;  %3285 = vmatpush1.bf16.msra.mxu1 %v14557_v25  ;;  %v14580_v5 = vld [vmem:[#allocation8 + $0xac] ss:$12 sps:$4 sm:$0xff]   ;;  %v14584_v46 = vld [vmem:[#allocation8 + $0xc4] ss:$12 sps:$4 sm:$0xff]   ;;  %v14585_v19 = vld [vmem:[#allocation8 + $0xc8] ss:$12 sps:$4 sm:$0xff]  }
 0x48f   : > { %3235 = vmatprep.subr.bf16.mxu0 %v14560_v15  ;;  %3286 = vmatprep.subr.bf16.mxu1 %v15431_v2  ;;  %v14582_v10 = vld [vmem:[#allocation8 + $0xc0] ss:$12 sps:$4 sm:$0xff]   ;;  %v14588_v62 = vld [vmem:[#allocation8 + $0xdc] ss:$12 sps:$4 sm:$0xff]   ;;  %v14586_v7 = vld [vmem:[#allocation8 + $0xd8] ss:$12 sps:$4 sm:$0xff]  }
 0x490   : > { %v14589_v21 = vld [vmem:[#allocation8 + $0xe0] ss:$12 sps:$4 sm:$0xff]   ;;  %v14590_v3 = vld [vmem:[#allocation8 + $0xf0] ss:$12 sps:$4 sm:$0xff]   ;;  %v14593_v39 = vld [vmem:[#allocation8 + $0xf8] ss:$12 sps:$4 sm:$0xff]  }
 0x491   : > { %2962 = vmatmul.mubr.bf16.gmra.mrb[36].mxu0 %v2698_v44  ;;  %3011 = vmatmul.mubr.bf16.gmra.mrb[28].mxu1 %v2698_v44  ;;  %v14592_v17 = vld [vmem:[#allocation8 + $0xf4] ss:$12 sps:$4 sm:$0xff]   ;;  %v14596_v42 = vld [vmem:[#allocation8 + $0x10c] ss:$12 sps:$4 sm:$0xff]   ;;  %v14597_v33 = vld [vmem:[#allocation8 + $0x110] ss:$12 sps:$4 sm:$0xff]  }
 0x492   : > { %3236 = vmatpush1.bf16.msra.mxu0 %v14558_v31  ;;  %3287 = vmatpush1.bf16.msra.mxu1 %v14561_v29  ;;  %v14594_v26 = vld [vmem:[#allocation8 + $0x108] ss:$12 sps:$4 sm:$0xff]   ;;  %v3223_v40 = vsel %vm1215_vm4, %v11550_v37, 0  ;;  %v14601_v47 = vld [vmem:[#allocation8 + $0x258] ss:$12 sps:$4 sm:$0xff]  }
 0x493   : > { %11554 = vmatprep.mubr.msk.bf16.mxu0 %vm1208_vm6, %v16136_v23  ;;  %11556 = vmatprep.mubr.msk.bf16.mxu1 %vm1208_vm6, %v16136_v23  ;;  %v14576_v23 = vld [vmem:[#allocation8 + $0x94] ss:$12 sps:$4 sm:$0xff]   ;;  %v14600_v38 = vld [vmem:[#allocation8 + $0x128] ss:$0 sps:$4 sm:$0xff]   ;;  %v14605_v8 = vld [vmem:[#allocation8 + $0x270] ss:$12 sps:$4 sm:$0xff]  }
 0x494   : > { %3237 = vmatprep.subr.bf16.mxu0 %v14564_v6  ;;  %3288 = vmatprep.subr.bf16.mxu1 %v15431_v2  ;;  %v3229_v43 = vsel %vm1215_vm4, %v14600_v38, 0  ;;  %v14603_v45 = vld [vmem:[#allocation8 + $0x25c] ss:$12 sps:$4 sm:$0xff]   ;;  %v14604_v30 = vld [vmem:[#allocation8 + $0x260] ss:$12 sps:$4 sm:$0xff]  }
 0x495   : > { %v14607_v49 = vld [vmem:[#allocation8 + $0x274] ss:$12 sps:$4 sm:$0xff]   ;;  %v14608_v14 = vld [vmem:[#allocation8 + $0x278] ss:$12 sps:$4 sm:$0xff]   ;;  %v14612_v54 = vld [vmem:[#allocation8 + $0x290] ss:$12 sps:$4 sm:$0xff]  }
 0x496   : > { %3238 = vmatpush1.bf16.msra.mxu0 %v14562_v59  ;;  %3289 = vmatpush1.bf16.msra.mxu1 %v14565_v56  ;;  %v14611_v50 = vld [vmem:[#allocation8 + $0x28c] ss:$12 sps:$4 sm:$0xff]   ;;  %v14609_v0 = vld [vmem:[#allocation8 + $0x288] ss:$12 sps:$4 sm:$0xff]   ;;  %v14621_v15 = vld [vmem:[#allocation8 + $0x2d0] ss:$12 sps:$4 sm:$0xff]  }
 0x497   : > { %3239 = vmatprep.subr.bf16.mxu0 %v14568_v41  ;;  %3290 = vmatprep.subr.bf16.mxu1 %v15431_v2  ;;  %v14616_v25 = vld [vmem:[#allocation8 + $0x2a8] ss:$12 sps:$4 sm:$0xff]   ;;  %v14617_v58 = vld [vmem:[#allocation8 + $0x2b8] ss:$12 sps:$4 sm:$0xff]   ;;  %v14620_v52 = vld [vmem:[#allocation8 + $0x2c0] ss:$12 sps:$4 sm:$0xff]  }
 0x498   : > { %v14619_v16 = vld [vmem:[#allocation8 + $0x2bc] ss:$12 sps:$4 sm:$0xff]   ;;  %v14627_v36 = vld [vmem:[#allocation8 + $0x2ec] ss:$12 sps:$4 sm:$0xff]   ;;  %v14631_v29 = vld [vmem:[#allocation8 + $0x304] ss:$12 sps:$4 sm:$0xff]  }
 0x499   : > { %v14625_v22 = vld [vmem:[#allocation8 + $0x2e8] ss:$12 sps:$4 sm:$0xff]   ;;  %v14628_v31 = vld [vmem:[#allocation8 + $0x2f0] ss:$12 sps:$4 sm:$0xff]   ;;  %v14629_v44 = vld [vmem:[#allocation8 + $0x300] ss:$12 sps:$4 sm:$0xff]  }
 0x49a   : > { %3240 = vmatpush1.bf16.msra.mxu0 %v14566_v9  ;;  %3291 = vmatpush1.bf16.msra.mxu1 %v14569_v11  ;;  %v14632_v6 = vld [vmem:[#allocation8 + $0x308] ss:$12 sps:$4 sm:$0xff]   ;;  %v14633_v56 = vld [vmem:[#allocation8 + $0x318] ss:$12 sps:$4 sm:$0xff]   ;;  %v14636_v41 = vld [vmem:[#allocation8 + $0x320] ss:$12 sps:$4 sm:$0xff]  }
 0x49b   : > { %3241 = vmatprep.subr.bf16.mxu0 %v14572_v51  ;;  %3292 = vmatprep.subr.bf16.mxu1 %v15431_v2  ;;  %v14635_v59 = vld [vmem:[#allocation8 + $0x31c] ss:$12 sps:$4 sm:$0xff]   ;;  %v14639_v9 = vld [vmem:[#allocation8 + $0x334] ss:$12 sps:$4 sm:$0xff]   ;;  %v14640_v51 = vld [vmem:[#allocation8 + $0x338] ss:$12 sps:$4 sm:$0xff]  }
 0x49c   : > { %v14637_v11 = vld [vmem:[#allocation8 + $0x330] ss:$12 sps:$4 sm:$0xff]  }
 0x49e   : > { %3242 = vmatpush1.bf16.msra.mxu0 %v14570_v61  ;;  %3293 = vmatpush1.bf16.msra.mxu1 %v14573_v13  ;;  %v14643_v61 = vld [vmem:[#allocation8 + $0x34c] ss:$12 sps:$4 sm:$0xff]   ;;  %v14641_v13 = vld [vmem:[#allocation8 + $0x348] ss:$12 sps:$4 sm:$0xff]  }
 0x49f   : > { %3243 = vmatprep.subr.bf16.mxu0 %v14576_v23  ;;  %3294 = vmatprep.subr.bf16.mxu1 %v15431_v2  ;;  %v14644_v23 = vld [vmem:[#allocation8 + $0x350] ss:$12 sps:$4 sm:$0xff]  }
 0x4a2   : > { %3244 = vmatpush1.bf16.msra.mxu0 %v14574_v60  ;;  %3295 = vmatpush1.bf16.msra.mxu1 %v14577_v32  ;;  %v14647_v60 = vld [vmem:[#allocation8 + $0x364] ss:$12 sps:$4 sm:$0xff]   ;;  %v3380_v32 = vld [vmem:[#allocation8 + $0x378] sm:$0xff] }
 0x4a3   : > { %3245 = vmatprep.subr.bf16.mxu0 %v14580_v5  ;;  %3296 = vmatprep.subr.bf16.mxu1 %v15431_v2  ;;  %v14645_v5 = vld [vmem:[#allocation8 + $0x360] ss:$12 sps:$4 sm:$0xff]  }
 0x4a6   : > { %3246 = vmatpush1.bf16.msra.mxu0 %v14578_v18  ;;  %3297 = vmatpush1.bf16.msra.mxu1 %v14581_v20  ;;  %v14648_v18 = vld [vmem:[#allocation8 + $0x368] ss:$12 sps:$4 sm:$0xff]   ;;  %v11595_v20 = vcombine.high %v3380_v32, %v3380_v32 }
 0x4a7   : > { %3247 = vmatprep.subr.bf16.mxu0 %v14584_v46  ;;  %3298 = vmatprep.subr.bf16.mxu1 %v15431_v2  ;;  %v11594_v46 = vcombine.low %v3380_v32, %v3380_v32 }
 0x4aa   : > { %3248 = vmatpush1.bf16.msra.mxu0 %v14582_v10  ;;  %3299 = vmatpush1.bf16.msra.mxu1 %v14585_v19  ;;  %v14651_v10 = vld [vmem:[#allocation8 + $0x380] ss:$0 sps:$4 sm:$0xff]   ;;  %v3601_v19 = vsel %vm1215_vm4, %v11594_v46, 0 }
 0x4ab   : > { %3249 = vmatprep.subr.bf16.mxu0 %v14588_v62  ;;  %3300 = vmatprep.subr.bf16.mxu1 %v15431_v2  ;;  %v3607_v62 = vsel %vm1215_vm4, %v14651_v10, 0 }
 0x4ae   : > { %3250 = vmatpush1.bf16.msra.mxu0 %v14586_v7  ;;  %3301 = vmatpush1.bf16.msra.mxu1 %v14589_v21 }
 0x4af   : > { %3251 = vmatprep.subr.bf16.mxu0 %v14592_v17  ;;  %3302 = vmatprep.subr.bf16.mxu1 %v15431_v2 }
 0x4b2   : > { %3252 = vmatpush1.bf16.msra.mxu0 %v14590_v3  ;;  %3303 = vmatpush1.bf16.msra.mxu1 %v14593_v39 }
 0x4b3   : > { %3253 = vmatprep.subr.bf16.mxu0 %v14596_v42  ;;  %3304 = vmatprep.subr.bf16.mxu1 %v15431_v2 }
 0x4b6   : > { %3254 = vmatpush1.bf16.msra.mxu0 %v14594_v26  ;;  %3305 = vmatpush1.bf16.msra.mxu1 %v14597_v33 }
 0x4b7   : > { %11553 = vmatprep.subr.msk.bf16.mxu0 %vm1215_vm4, %v11551_v34  ;;  %3306 = vmatprep.subr.bf16.mxu1 %v15431_v2 }
 0x4ba   : > { %3256 = vmatpush1.bf16.msra.mxu0 %v3223_v40  ;;  %3307 = vmatpush1.bf16.msra.mxu1 %v3229_v43 }
 0x4bb   : > { %3609 = vmatprep.subr.bf16.mxu0 %v14603_v45  ;;  %3660 = vmatprep.subr.bf16.mxu1 %v15431_v2 }
 0x4bd   : > { %3264 = vmatmul.mubr.bf16.vlgmr.msra.gmra.mrb[32].mxu0 %v16139_v28  ;;  %3315 = vmatmul.mubr.bf16.vlgmr.msra.gmra.mrb[32].mxu1 %v16139_v28  ;;  %v14615_v28 = vld [vmem:[#allocation8 + $0x2a4] ss:$12 sps:$4 sm:$0xff]  }
 0x4be   : > { %11555 = vmatprep.mubr.msk.bf16.mxu0 %vm1208_vm6, %v16144_v35  ;;  %11557 = vmatprep.mubr.msk.bf16.mxu1 %vm1208_vm6, %v16144_v35  ;;  %v14613_v35 = vld [vmem:[#allocation8 + $0x2a0] ss:$12 sps:$4 sm:$0xff]  }
 0x4bf   : > { %3610 = vmatpush1.bf16.msra.mxu0 %v14601_v47  ;;  %3661 = vmatpush1.bf16.msra.mxu1 %v14604_v30 }
 0x4c0   : > { %3611 = vmatprep.subr.bf16.mxu0 %v14607_v49  ;;  %3662 = vmatprep.subr.bf16.mxu1 %v15431_v2 }
 0x4c3   : > { %3612 = vmatpush1.bf16.msra.mxu0 %v14605_v8  ;;  %3663 = vmatpush1.bf16.msra.mxu1 %v14608_v14 }
 0x4c4   : > { %3613 = vmatprep.subr.bf16.mxu0 %v14611_v50  ;;  %3664 = vmatprep.subr.bf16.mxu1 %v15431_v2 }
 0x4c5   : > { %3274 = vmatmul.mubr.bf16.gmra.mrb[40].mxu0 %v16155_v12  ;;  %3323 = vmatmul.mubr.bf16.gmra.mrb[36].mxu1 %v16155_v12  ;;  %v14623_v12 = vld [vmem:[#allocation8 + $0x2d4] ss:$12 sps:$4 sm:$0xff]  }
 0x4c6   : > { %11598 = vmatprep.mubr.msk.bf16.mxu0 %vm1208_vm6, %v16197_v63  ;;  %11600 = vmatprep.mubr.msk.bf16.mxu1 %vm1208_vm6, %v16197_v63  ;;  %v14624_v63 = vld [vmem:[#allocation8 + $0x2d8] ss:$12 sps:$4 sm:$0xff]  }
 0x4c7   : > { %3614 = vmatpush1.bf16.msra.mxu0 %v14609_v0  ;;  %3665 = vmatpush1.bf16.msra.mxu1 %v14612_v54 }
 0x4c8   : > { %3615 = vmatprep.subr.bf16.mxu0 %v14615_v28  ;;  %3666 = vmatprep.subr.bf16.mxu1 %v15431_v2 }
 0x4cb   : > { %3616 = vmatpush1.bf16.msra.mxu0 %v14613_v35  ;;  %3667 = vmatpush1.bf16.msra.mxu1 %v14616_v25  ;;  %v3717_v25 = vld [vmem:[#allocation9] sm:$0x7] }
 0x4cc   : > { %3617 = vmatprep.subr.bf16.mxu0 %v14619_v16  ;;  %3668 = vmatprep.subr.bf16.mxu1 %v15431_v2  ;;  %v3722_v16 = vrot.slane %v3717_v25, %v15820_v55 }
 0x4cf   : > { %3618 = vmatpush1.bf16.msra.mxu0 %v14617_v58  ;;  %3669 = vmatpush1.bf16.msra.mxu1 %v14620_v52  ;;  %v3726_v58 = vrot.slane %v3717_v25, %v15823_v57 }
 0x4d0   : > { %3619 = vmatprep.subr.bf16.mxu0 %v14623_v12  ;;  %3670 = vmatprep.subr.bf16.mxu1 %v15431_v2 }
 0x4d3   : > { %3620 = vmatpush1.bf16.msra.mxu0 %v14621_v15  ;;  %3671 = vmatpush1.bf16.msra.mxu1 %v14624_v63 }
 0x4d4   : > { %3621 = vmatprep.subr.bf16.mxu0 %v14627_v36  ;;  %3672 = vmatprep.subr.bf16.mxu1 %v15431_v2  ;;  %v3730_v36 = vrot.slane %v3717_v25, %v2036_v48 }
 0x4d7   : > { %3622 = vmatpush1.bf16.msra.mxu0 %v14625_v22  ;;  %3673 = vmatpush1.bf16.msra.mxu1 %v14628_v31 }
 0x4d8   : > { %3623 = vmatprep.subr.bf16.mxu0 %v14631_v29  ;;  %3674 = vmatprep.subr.bf16.mxu1 %v15431_v2 }
 0x4db   : > { %3624 = vmatpush1.bf16.msra.mxu0 %v14629_v44  ;;  %3675 = vmatpush1.bf16.msra.mxu1 %v14632_v6 }
 0x4dc   : > { %3625 = vmatprep.subr.bf16.mxu0 %v14635_v59  ;;  %3676 = vmatprep.subr.bf16.mxu1 %v15431_v2 }
 0x4df   : > { %3626 = vmatpush1.bf16.msra.mxu0 %v14633_v56  ;;  %3677 = vmatpush1.bf16.msra.mxu1 %v14636_v41 }
 0x4e0   : > { %3627 = vmatprep.subr.bf16.mxu0 %v14639_v9  ;;  %3678 = vmatprep.subr.bf16.mxu1 %v15431_v2 }
 0x4e3   : > { %3628 = vmatpush1.bf16.msra.mxu0 %v14637_v11  ;;  %3679 = vmatpush1.bf16.msra.mxu1 %v14640_v51 }
 0x4e4   : > { %3629 = vmatprep.subr.bf16.mxu0 %v14643_v61  ;;  %3680 = vmatprep.subr.bf16.mxu1 %v15431_v2 }
 0x4e7   : > { %3630 = vmatpush1.bf16.msra.mxu0 %v14641_v13  ;;  %3681 = vmatpush1.bf16.msra.mxu1 %v14644_v23 }
 0x4e8   : > { %3631 = vmatprep.subr.bf16.mxu0 %v14647_v60  ;;  %3682 = vmatprep.subr.bf16.mxu1 %v15431_v2 }
 0x4eb   : > { %3632 = vmatpush1.bf16.msra.mxu0 %v14645_v5  ;;  %3683 = vmatpush1.bf16.msra.mxu1 %v14648_v18 }
 0x4ec   : > { %11597 = vmatprep.subr.msk.bf16.mxu0 %vm1215_vm4, %v11595_v20  ;;  %3684 = vmatprep.subr.bf16.mxu1 %v15431_v2 }
 0x4ef   : > { %3634 = vmatpush1.bf16.msra.mxu0 %v3601_v19  ;;  %3685 = vmatpush1.bf16.msra.mxu1 %v3607_v62  ;;  %v15434_v62 = vmov 0.0  }
 0x4f0   : > { %3856 = vst.msk [vmem:[#allocation14] sm:$0x3] %vm3855_vm10, %v15434_v62 }
 0x4f2   : > { %3642 = vmatmul.mubr.bf16.vlgmr.msra.gmra.mrb[32].mxu0 %v16207_v4  ;;  %3693 = vmatmul.mubr.bf16.vlgmr.msra.gmra.mrb[40].mxu1 %v16207_v4 }
 0x4f3   : > { %11599 = vmatprep.mubr.msk.bf16.mxu0 %vm1208_vm6, %v16187_v27  ;;  %11601 = vmatprep.mubr.msk.bf16.mxu1 %vm1208_vm6, %v16187_v27 }
 0x4fa   : > { %3652 = vmatmul.mubr.bf16.gmra.mrb[44].mxu0 %v16200_v1  ;;  %3701 = vmatmul.mubr.bf16.gmra.mrb[44].mxu1 %v16200_v1 }
 0x55c   : > { %v3004_v2 = vpop.f32.mrb[24].mxu1 }
 0x55d   : > { %v3006_v7 = vpop.f32.mrb[25].mxu1 }
 0x55e   : > { %v3007_v21 = vpop.f32.mrb[26].mxu1 }
 0x55f   : > { %v3009_v17 = vpop.f32.mrb[27].mxu1 }
 0x564   : > { %v2963_v3 = vpop.f32.mrb[36].mxu0  ;;  %v3012_v39 = vpop.f32.mrb[28].mxu1 }
 0x565   : > { %v2965_v42 = vpop.f32.mrb[37].mxu0  ;;  %v3014_v24 = vpop.f32.mrb[29].mxu1 }
 0x566   : > { %v2967_v26 = vpop.f32.mrb[38].mxu0  ;;  %v3015_v4 = vpop.f32.mrb[30].mxu1 }
 0x567   : > { %v2968_v33 = vpop.f32.mrb[39].mxu0  ;;  %v3016_v34 = vpop.f32.mrb[31].mxu1 }
 0x590   : > { %v3316_v37 = vpop.f32.mrb[32].mxu1 }
 0x591   : > { %v3317_v38 = vadd.f32 %v3316_v37, %v3004_v2  ;;  %v3318_v40 = vpop.f32.mrb[33].mxu1 }
 0x592   : > { %v3319_v27 = vpop.f32.mrb[34].mxu1 }
 0x593   : > { %v3320_v43 = vadd.f32 %v3319_v27, %v3007_v21  ;;  %v3321_v45 = vpop.f32.mrb[35].mxu1 }
 0x598   : > { %v3275_v47 = vpop.f32.mrb[40].mxu0  ;;  %v3324_v1 = vpop.f32.mrb[36].mxu1 }
 0x599   : > { %v3276_v30 = vadd.f32 %v3275_v47, %v2963_v3  ;;  %v3325_v49 = vadd.f32 %v3324_v1, %v3012_v39  ;;  %v3277_v8 = vpop.f32.mrb[41].mxu0  ;;  %v3326_v14 = vpop.f32.mrb[37].mxu1 }
 0x59a   : > { %v3278_v50 = vadd.f32 %v3277_v8, %v2965_v42  ;;  %v3279_v0 = vpop.f32.mrb[42].mxu0  ;;  %v3327_v54 = vpop.f32.mrb[38].mxu1 }
 0x59b   : > { %v3280_v28 = vpop.f32.mrb[43].mxu0  ;;  %v3328_v35 = vpop.f32.mrb[39].mxu1 }
 0x5c5   : > { %v3643_v52 = vpop.f32.mrb[32].mxu0  ;;  %v3694_v12 = vpop.f32.mrb[40].mxu1 }
 0x5c6   : > { %v3734_v15 = vadd.f32 %v3722_v16, %v3643_v52  ;;  %v3710_v63 = vadd.f32 %v3694_v12, %v3317_v38  ;;  %v3645_v22 = vpop.f32.mrb[33].mxu0  ;;  %v3696_v31 = vpop.f32.mrb[41].mxu1 }
 0x5c7   : > { %v3735_v29 = vadd.f32 %v3726_v58, %v3645_v22  ;;  %v3647_v44 = vpop.f32.mrb[34].mxu0  ;;  %v3697_v6 = vpop.f32.mrb[42].mxu1 }
 0x5c8   : > { %v3713_v59 = vadd.f32 %v3697_v6, %v3320_v43  ;;  %v3649_v56 = vpop.f32.mrb[35].mxu0  ;;  %v3699_v41 = vpop.f32.mrb[43].mxu1  ;;  %3752 = vrot.lane.b32.xlu1 %v3734_v15, %s15433_s26  ;;  %v3736_v55 = vadd.f32 %v3730_v36, %v3710_v63  ;;  %v3737_v57 = vadd.f32 %v3722_v16, %v3647_v44 }
 0x5c9   : > { %3754 = vrot.lane.b32.xlu0 %v3735_v29, %s15433_s26  ;;  %v3738_v53 = vadd.f32 %v3726_v58, %v3649_v56 }
 0x5ca   : > { %v3739_v23 = vadd.f32 %v3730_v36, %v3713_v59 }
 0x5cc   : > { %3756 = vrot.lane.b32.xlu1 %v3736_v55, %s15433_s26 }
 0x5cd   : > { %v3653_v9 = vpop.f32.mrb[44].mxu0  ;;  %v3702_v11 = vpop.f32.mrb[44].mxu1  ;;  %3758 = vrot.lane.b32.xlu0 %v3737_v57, %s15433_s26 }
 0x5ce   : > { %v3714_v48 = vadd.f32 %v3653_v9, %v3276_v30  ;;  %v3716_v51 = vadd.f32 %v3702_v11, %v3325_v49  ;;  %v3655_v61 = vpop.f32.mrb[45].mxu0  ;;  %v3704_v13 = vpop.f32.mrb[45].mxu1 }
 0x5cf   : > { %v3715_v60 = vadd.f32 %v3655_v61, %v3278_v50  ;;  %v3657_v32 = vpop.f32.mrb[46].mxu0  ;;  %v3705_v5 = vpop.f32.mrb[46].mxu1 }
 0x5d0   : > { %v3658_v18 = vpop.f32.mrb[47].mxu0  ;;  %v3706_v20 = vpop.f32.mrb[47].mxu1  ;;  %3760 = vrot.lane.b32.xlu1 %v3738_v53, %s15433_s26  ;;  %v3740_v46 = vadd.f32 %v3722_v16, %v3714_v48  ;;  %v3742_v19 = vadd.f32 %v3730_v36, %v3716_v51 }
 0x5d1   : > { %3762 = vrot.lane.b32.xlu0 %v3739_v23, %s15433_s26  ;;  %v3741_v10 = vadd.f32 %v3726_v58, %v3715_v60 }
 0x5d4   : > { %3764 = vrot.lane.b32.xlu1 %v3740_v46, %s15433_s26 }
 0x5d5   : > { %3766 = vrot.lane.b32.xlu0 %v3741_v10, %s15433_s26 }
 0x5d8   : > { %3768 = vrot.lane.b32.xlu1 %v3742_v19, %s15433_s26 }
 0x63a   : > { %v3753_v2 = vpop.permute.xlu1 %3752 }
 0x63b   : > { %v3755_v7 = vpop.permute.xlu0 %3754 }
 0x63c   : > { %v3770_v17 = vsel %vm2077_vm7, %v3753_v2, %v3755_v7 }
 0x63d   : > { %v3785_v42 = vmax.f32 %v3734_v15, %v3770_v17 }
 0x63e   : > { %v3757_v21 = vpop.permute.xlu1 %3756 }
 0x63f   : > { %v3759_v3 = vpop.permute.xlu0 %3758  ;;  %v3771_v39 = vsel %vm2077_vm7, %v3755_v7, %v3757_v21  ;;  %v3787_v24 = vmax.f32 %v3736_v55, %v3757_v21  ;;  %v3803_v43 = vrot.slane %v3785_v42, 1 }
 0x640   : > { %v3786_v4 = vmax.f32 %v3735_v29, %v3771_v39 }
 0x641   : > { %v3809_v45 = vrot.slane %v3787_v24, 1 }
 0x642   : > { %v3761_v26 = vpop.permute.xlu1 %3760  ;;  %v3806_v49 = vrot.slane %v3786_v4, 1 }
 0x643   : > { %v3772_v33 = vsel %vm2077_vm7, %v3759_v3, %v3761_v26  ;;  %v3763_v34 = vpop.permute.xlu0 %3762 }
 0x644   : > { %v3788_v37 = vmax.f32 %v3737_v57, %v3772_v33  ;;  %v3773_v38 = vsel %vm2077_vm7, %v3761_v26, %v3763_v34  ;;  %v3790_v40 = vmax.f32 %v3739_v23, %v3763_v34 }
 0x645   : > { %v3789_v27 = vmax.f32 %v3738_v53, %v3773_v38 }
 0x646   : > { %v3804_v47 = vrot.slane %v3788_v37, 1  ;;  %v3810_v1 = vrot.slane %v3790_v40, 1  ;;  %v3765_v30 = vpop.permute.xlu1 %3764 }
 0x647   : > { %v3807_v8 = vrot.slane %v3789_v27, 1  ;;  %v3767_v14 = vpop.permute.xlu0 %3766 }
 0x648   : > { %v3805_v50 = vsel %vm664_vm3, %v3803_v43, %v3804_v47  ;;  %v3811_v0 = vsel %vm664_vm3, %v3809_v45, %v3810_v1  ;;  %v3774_v54 = vsel %vm2077_vm7, %v3765_v30, %v3767_v14 }
 0x649   : > { %v3827_v28 = vmax.f32 %v3785_v42, %v3805_v50  ;;  %v3808_v35 = vsel %vm664_vm3, %v3806_v49, %v3807_v8  ;;  %v3829_v25 = vmax.f32 %v3787_v24, %v3811_v0  ;;  %v3791_v16 = vmax.f32 %v3740_v46, %v3774_v54 }
 0x64a   : > { %v3828_v58 = vmax.f32 %v3786_v4, %v3808_v35  ;;  %v3769_v52 = vpop.permute.xlu1 %3768 }
 0x64b   : > { %v3836_v12 = vmax.f32 %v3827_v28, 0.0  ;;  %v3838_v15 = vmax.f32 %v3829_v25, 0.0  ;;  %v3812_v63 = vrot.slane %v3791_v16, 1  ;;  %v3775_v36 = vsel %vm2077_vm7, %v3767_v14, %v3769_v52 }
 0x64c   : > { %v3837_v22 = vmax.f32 %v3828_v58, 0.0  ;;  %v3792_v31 = vmax.f32 %v3741_v10, %v3775_v36  ;;  %v3793_v29 = vmax.f32 %v3742_v19, %v3769_v52 }
 0x64d   : > { %3846 = vst [vmem:[#allocation2 + $0x48] sm:$0xff] %v3836_v12  ;;  %3848 = vst.msk [vmem:[#allocation2 + $0x58] sm:$0xff] %vm2155_vm8, %v3838_v15  ;;  %v3813_v44 = vsel %vm664_vm3, %v3804_v47, %v3812_v63  ;;  %v3833_v6 = vmax.f32 %v3791_v16, %v3812_v63 }
 0x64e   : > { %3847 = vst [vmem:[#allocation2 + $0x50] sm:$0xff] %v3837_v22  ;;  %v3830_v59 = vmax.f32 %v3788_v37, %v3813_v44  ;;  %v3814_v56 = vrot.slane %v3792_v31, 1  ;;  %v3816_v41 = vrot.slane %v3793_v29, 1 }
 0x64f   : > { %v3842_v55 = vmax.f32 %v3833_v6, 0.0 }
 0x650   : > { %v3839_v57 = vmax.f32 %v3830_v59, 0.0  ;;  %v3815_v9 = vsel %vm664_vm3, %v3807_v8, %v3814_v56  ;;  %v3817_v11 = vsel %vm664_vm3, %v3810_v1, %v3816_v41  ;;  %v3834_v53 = vmax.f32 %v3792_v31, %v3814_v56 }
 0x651   : > { %3852 = vst [vmem:[#allocation2 + $0x78] sm:$0x3f] %v3842_v55  ;;  %v3831_v48 = vmax.f32 %v3789_v27, %v3815_v9  ;;  %v3832_v51 = vmax.f32 %v3790_v40, %v3817_v11  ;;  %v3835_v61 = vmax.f32 %v3793_v29, %v3816_v41 }
 0x652   : > { %3849 = vst [vmem:[#allocation2 + $0x60] sm:$0xff] %v3839_v57  ;;  %v3843_v13 = vmax.f32 %v3834_v53, 0.0 }
 0x653   : > { %v3840_v23 = vmax.f32 %v3831_v48, 0.0  ;;  %v3841_v60 = vmax.f32 %v3832_v51, 0.0  ;;  %v3844_v32 = vmax.f32 %v3835_v61, 0.0 }
 0x654   : > { %3853 = vst [vmem:[#allocation2 + $0x80] sm:$0x3f] %v3843_v13 }
 0x655   : > { %3850 = vst [vmem:[#allocation2 + $0x68] sm:$0xff] %v3840_v23  ;;  %3851 = vst.msk [vmem:[#allocation2 + $0x70] sm:$0xff] %vm2155_vm8, %v3841_v60 }
 0x656   : > { %3854 = vst.msk [vmem:[#allocation2 + $0x88] sm:$0x3f] %vm2162_vm9, %v3844_v32 }
 0x657 PF: > { %v14652_v5 = vld [vmem:[%s15758_s28 + $0xf0] sm:$0xff]   ;;  %v15435_v18 = vmov 0.0   ;;  %vm15436_vm11 = vmmov 0   ;;  %v14655_v10 = vld [vmem:[%s15758_s28 + $0xf8] sm:$0xff]   ;;  %v14658_v2 = vld [vmem:[%s15758_s28 + $0x100] sm:$0xff]   ;;  %v3862_v7 = vlaneseq  ;;  %vm4042_vm12 = vcmask 1041409  }
 0x658   : > { %13694 = vmatprep.subr.bf16.mxu1 %v15435_v18  ;;  %v14653_v20 = vld [vmem:[%s15758_s28 + $0x130] sm:$0xff]   ;;  %13039 = vmatprep.subr.bf16.mxu0 %v14652_v5  ;;  %v14656_v19 = vld [vmem:[%s15758_s28 + $0x138] sm:$0xff]   ;;  %v14659_v21 = vld [vmem:[%s15758_s28 + $0x140] sm:$0xff]   ;;  %vm4185_vm13 = vcmask 785408   ;;  %vm11124_vm14 = vcmask 74752   ;;  %p13033_p7 = scmp.ne.s32.totalorder %s15508_s13, 1 }
 0x659   : > { %v14654_v46 = vld [vmem:[%s15758_s28 + $0xb0] sm:$0xff]   ;;  %13706 = vmatprep.mubr.msk.bf16.mxu1 %vm15436_vm11, %v15435_v18  ;;  %13695 = vmatpush3.bf16.msra.mxu1 %v14653_v20  ;;  %v14657_v62 = vld [vmem:[%s15758_s28 + $0xb8] sm:$0xff]   ;;  %v14660_v17 = vld [vmem:[%s15758_s28 + $0xc0] sm:$0xff]   ;;  %v3863_v39 = vshrl.u32 %v3862_v7, 7 }
 0x65a   : > { %13040 = vmatpush3.bf16.msra.mxu0 %v14654_v46  ;;  %13696 = vmatprep.subr.bf16.mxu1 %v15435_v18  ;;  %v14661_v3 = vld [vmem:[%s15758_s28 + $0x108] sm:$0xff]   ;;  %v14664_v26 = vld [vmem:[%s15758_s28 + $0x110] sm:$0xff]   ;;  %v14667_v38 = vld [vmem:[%s15758_s28 + $0x118] sm:$0xff]  }
 0x65b   : > { %13041 = vmatprep.subr.bf16.mxu0 %v14655_v10  ;;  %v14662_v42 = vld [vmem:[%s15758_s28 + $0x148] sm:$0xff]   ;;  %v14665_v4 = vld [vmem:[%s15758_s28 + $0x150] sm:$0xff]   ;;  %v16311_v33 = vsub.s32 2, %v3863_v39  ;;  %v16314_v37 = vsub.s32 1, %v3863_v39  ;;  %v16318_v40 = vsub.s32 0, %v3863_v39  ;;  %v14668_v27 = vld [vmem:[%s15758_s28 + $0x158] sm:$0xff]  }
 0x65c   : > { %v14663_v24 = vld [vmem:[%s15758_s28 + $0xc8] sm:$0xff]   ;;  %v14666_v34 = vld [vmem:[%s15758_s28 + $0xd0] sm:$0xff]   ;;  %v14669_v47 = vld [vmem:[%s15758_s28 + $0xd8] sm:$0xff]  }
 0x65d   : > { %13697 = vmatpush3.bf16.msra.mxu1 %v14656_v19  ;;  %v3943_v43 = vld [vmem:[#allocation2 + $0x1] ss:$8 sm:$0x7]  ;;  %v14680_v32 = vld [vmem:[%s15758_s28 + $0x58] sm:$0xff]  }
 0x65e   : > { %13042 = vmatpush3.bf16.msra.mxu0 %v14657_v62  ;;  %13698 = vmatprep.subr.bf16.mxu1 %v15435_v18  ;;  %v3945_v45 = vld [vmem:[#allocation2 + $0x49] ss:$8 sm:$0x7]  ;;  %v3959_v1 = vrot.slane %v3943_v43, %v16311_v33  ;;  %v3955_v49 = vrot.slane %v3943_v43, %v16314_v37  ;;  %v14670_v14 = vld [vmem:[%s15758_s28 + $0x40] sm:$0xff]   ;;  %v3951_v50 = vrot.slane %v3943_v43, %v16318_v40 }
 0x65f   : > { %13043 = vmatprep.subr.bf16.mxu0 %v14658_v2  ;;  %v3971_v30 = vrot.slane %v3945_v45, %v16311_v33  ;;  %v3967_v8 = vrot.slane %v3945_v45, %v16314_v37  ;;  %v3963_v0 = vrot.slane %v3945_v45, %v16318_v40  ;;  %v14671_v35 = vld [vmem:[%s15758_s28 + $0x120] sm:$0xff]   ;;  %v14675_v44 = vld [vmem:[%s15758_s28 + $0x128] sm:$0xff]   ;;  %v14678_v23 = vld [vmem:[%s15758_s28 + $0x50] sm:$0xff]  }
 0x660   : > { %v3980_v54 = vpack.c.bf16 %v3959_v1, %v3959_v1  ;;  %v3979_v25 = vpack.c.bf16 %v3955_v49, %v3955_v49  ;;  %v3978_v58 = vpack.c.bf16 %v3951_v50, %v3951_v50  ;;  %v14673_v36 = vld [vmem:[%s15758_s28 + $0xe0] sm:$0xff]   ;;  %v14674_v55 = vld [vmem:[%s15758_s28 + $0x48] sm:$0xff]   ;;  %v14679_v60 = vld [vmem:[%s15758_s28 + $0x10] sm:$0xff]  }
 0x661   : > { %13699 = vmatpush3.bf16.msra.mxu1 %v14659_v21  ;;  %v3983_v28 = vpack.c.bf16 %v3971_v30, %v3971_v30  ;;  %v3982_v16 = vpack.c.bf16 %v3967_v8, %v3967_v8  ;;  %v3981_v52 = vpack.c.bf16 %v3963_v0, %v3963_v0  ;;  %v14672_v59 = vld [vmem:[%s15758_s28] sm:$0xff]   ;;  %v14677_v11 = vld [vmem:[%s15758_s28 + $0xe8] sm:$0xff]   ;;  %v14681_v5 = vld [vmem:[%s15758_s28 + $0x18] sm:$0xff]  }
 0x662   : > { %13044 = vmatpush3.bf16.msra.mxu0 %v14660_v17  ;;  %13700 = vmatprep.subr.bf16.mxu1 %v15435_v18  ;;  %v4037_v12 = vunpack.c.l.b16 %v3980_v54  ;;  %v4036_v22 = vunpack.c.l.b16 %v3979_v25  ;;  %v4035_v6 = vunpack.c.l.b16 %v3978_v58  ;;  %v14676_v61 = vld [vmem:[%s15758_s28 + $0x8] sm:$0xff]   ;;  %v14682_v10 = vld [vmem:[%s15758_s28 + $0x60] sm:$0xff]   ;;  %v14686_v43 = vld [vmem:[%s15758_s28 + $0x70] sm:$0xff]  }
 0x663   : > { %13045 = vmatprep.subr.bf16.mxu0 %v14661_v3  ;;  %v4040_v15 = vunpack.c.l.b16 %v3983_v28  ;;  %v4039_v63 = vunpack.c.l.b16 %v3982_v16  ;;  %v4038_v31 = vunpack.c.l.b16 %v3981_v52  ;;  %v16345_v20 = vld [vmem:[#allocation2] ss:$8 sm:$0x7]  ;;  %v14688_v50 = vld [vmem:[%s15758_s28 + $0x78] sm:$0xff]  }
 0x664   : > { %v3859_v46 = vld [vmem:[#allocation2 + $0x48] ss:$8 sm:$0x7]  ;;  %v3869_v19 = vrot.slane %v16345_v20, %v16314_v37  ;;  %v14683_v7 = vld [vmem:[%s15758_s28 + $0x20] sm:$0xff]   ;;  %v3865_v39 = vrot.slane %v16345_v20, %v16318_v40 }
 0x665   : > { %13701 = vmatpush3.bf16.msra.mxu1 %v14662_v42  ;;  %v4046_v29 = vrot.slane %v4040_v15, 7  ;;  %v4044_v56 = vrot.slane %v4039_v63, 7  ;;  %v4041_v57 = vrot.slane %v4038_v31, 7  ;;  %v3881_v62 = vrot.slane %v3859_v46, %v16314_v37  ;;  %v14684_v3 = vld [vmem:[%s15758_s28 + $0x68] sm:$0xff]   ;;  %v14687_v49 = vld [vmem:[%s15758_s28 + $0x30] sm:$0xff]   ;;  %v14702_v25 = vld [vmem:[%s15758_s28 + $0x1b8] sm:$0xff]  }
 0x666   : > { %13046 = vmatpush3.bf16.msra.mxu0 %v14663_v24  ;;  %13702 = vmatprep.subr.bf16.mxu1 %v15435_v18  ;;  %v3877_v2 = vrot.slane %v3859_v46, %v16318_v40  ;;  %v3893_v21 = vpack.c.bf16 %v3869_v19, %v3869_v19  ;;  %v3892_v45 = vpack.c.bf16 %v3865_v39, %v3865_v39  ;;  %v14697_v30 = vld [vmem:[%s15758_s28 + $0x1a8] sm:$0xff]   ;;  %v14700_v28 = vld [vmem:[%s15758_s28 + $0x1b0] sm:$0xff]   ;;  %v14689_v16 = vld [vmem:[%s15758_s28 + $0x38] sm:$0xff]  }
 0x667   : > { %13047 = vmatprep.subr.bf16.mxu0 %v14664_v26  ;;  %v4047_v41 = vsel %vm4042_vm12, %v4046_v29, %v4037_v12  ;;  %v4045_v53 = vsel %vm4042_vm12, %v4044_v56, %v4036_v22  ;;  %v4043_v51 = vsel %vm4042_vm12, %v4041_v57, %v4035_v6  ;;  %v3896_v17 = vpack.c.bf16 %v3881_v62, %v3881_v62  ;;  %v14704_v52 = vld [vmem:[%s15758_s28 + $0x178] sm:$0xff]   ;;  %v14705_v12 = vld [vmem:[%s15758_s28 + $0x1c0] sm:$0xff]   ;;  %v14708_v22 = vld [vmem:[%s15758_s28 + $0x1c8] sm:$0xff]  }
 0x668   : > { %v4050_v9 = vpack.c.b16 %v4047_v41, %v4047_v41  ;;  %v4049_v48 = vpack.c.b16 %v4045_v53, %v4045_v53  ;;  %v4048_v13 = vpack.c.b16 %v4043_v51, %v4043_v51  ;;  %v3895_v42 = vpack.c.bf16 %v3877_v2, %v3877_v2  ;;  %v14690_v63 = vld [vmem:[%s15758_s28 + $0x80] sm:$0xff]   ;;  %v14691_v29 = vld [vmem:[%s15758_s28 + $0x88] sm:$0xff]   ;;  %v14711_v6 = vld [vmem:[%s15758_s28 + $0x1d0] sm:$0xff]  }
 0x669   : > { %13703 = vmatpush3.bf16.msra.mxu1 %v14665_v4  ;;  %v4276_v24 = vunpack.c.l.b16 %v3893_v21  ;;  %v4279_v26 = vunpack.c.l.b16 %v3896_v17  ;;  %v14694_v4 = vld [vmem:[%s15758_s28 + $0x1a0] sm:$0xff]   ;;  %v4275_v0 = vunpack.c.l.b16 %v3892_v45  ;;  %v3885_v31 = vrot.slane %v3859_v46, %v16311_v33  ;;  %v14692_v41 = vld [vmem:[%s15758_s28 + $0x90] sm:$0xff]  }
 0x66a   : > { %13048 = vmatpush3.bf16.msra.mxu0 %v14666_v34  ;;  %13704 = vmatprep.subr.bf16.mxu1 %v15435_v18  ;;  %v14695_v34 = vld [vmem:[%s15758_s28 + $0x160] sm:$0xff]   ;;  %v14713_v57 = vld [vmem:[%s15758_s28 + $0x190] sm:$0xff]  }
 0x66b   : > { %13049 = vmatprep.subr.bf16.mxu0 %v14667_v38  ;;  %4221 = vmatprep.mubr.bf16.mxu0 %v4049_v48  ;;  %v14685_v38 = vld [vmem:[%s15758_s28 + $0x28] sm:$0xff]   ;;  %v3897_v56 = vpack.c.bf16 %v3885_v31, %v3885_v31  ;;  %v14714_v48 = vld [vmem:[%s15758_s28 + $0x1d8] sm:$0xff]  }
 0x66d   : > { %13705 = vmatpush3.bf16.msra.mxu1 %v14668_v27  ;;  %v4283_v27 = vrot.slane %v4279_v26, 7 }
 0x66e   : > { %13050 = vmatpush3.bf16.msra.mxu0 %v14669_v47  ;;  %13068 = vmatprep.subr.bf16.mxu1 %v14670_v14  ;;  %v4278_v47 = vunpack.c.l.b16 %v3895_v42  ;;  %v14698_v14 = vld [vmem:[%s15758_s28 + $0x168] sm:$0xff]  }
 0x66f   : > { %13051 = vmatprep.subr.bf16.mxu0 %v14671_v35  ;;  %v4284_v1 = vsel %vm4042_vm12, %v4283_v27, %v4276_v24  ;;  %v14701_v35 = vld [vmem:[%s15758_s28 + $0x170] sm:$0xff]   ;;  %v14699_v27 = vld [vmem:[%s15758_s28 + $0xa8] sm:$0xff]  }
 0x670   : > { %13707 = vmatmul.mubr.msk.bf16.vlgmr.msra.gmra.mrb[0].mxu1 %vm4185_vm13, %v4050_v9  ;;  %v4288_v8 = vpack.c.b16 %v4284_v1, %v4284_v1  ;;  %v4281_v54 = vrot.slane %v4278_v47, 7  ;;  %v4510_v9 = vld [vmem:[#allocation2 + $0x4a] ss:$8 sm:$0x7] }
 0x671   : > { %13069 = vmatpush3.bf16.msra.mxu1 %v14672_v59  ;;  %v3873_v59 = vrot.slane %v16345_v20, %v16311_v33  ;;  %v4532_v51 = vrot.slane %v4510_v9, %v16314_v37  ;;  %v14721_v47 = vld [vmem:[%s15758_s28 + $0x298] sm:$0xff]   ;;  %v14703_v1 = vld [vmem:[%s15758_s28 + $0x1e0] sm:$0xff]  }
 0x672   : > { %13052 = vmatpush3.bf16.msra.mxu0 %v14673_v36  ;;  %13070 = vmatprep.subr.bf16.mxu1 %v14674_v55  ;;  %v4282_v58 = vsel %vm4042_vm12, %v4281_v54, %v4275_v0  ;;  %v14707_v36 = vld [vmem:[%s15758_s28 + $0x180] sm:$0xff]   ;;  %v16386_v55 = vld [vmem:[#allocation2 + $0x2] ss:$8 sm:$0x7] }
 0x673   : > { %13053 = vmatprep.subr.bf16.mxu0 %v14675_v44  ;;  %4459 = vmatprep.mubr.bf16.mxu1 %v4288_v8  ;;  %v4287_v15 = vpack.c.b16 %v4282_v58, %v4282_v58  ;;  %v14710_v44 = vld [vmem:[%s15758_s28 + $0x188] sm:$0xff]   ;;  %v4516_v53 = vrot.slane %v16386_v55, %v16318_v40  ;;  %v4547_v20 = vpack.c.bf16 %v4532_v51, %v4532_v51 }
 0x674   : > { %v4536_v8 = vrot.slane %v4510_v9, %v16311_v33  ;;  %v14727_v54 = vld [vmem:[%s15758_s28 + $0x2a8] sm:$0xff]  }
 0x675   : > { %13071 = vmatpush3.bf16.msra.mxu1 %v14676_v61  ;;  %v4528_v61 = vrot.slane %v4510_v9, %v16318_v40  ;;  %v4604_v62 = vunpack.c.l.b16 %v4547_v20  ;;  %v14717_v51 = vld [vmem:[%s15758_s28 + $0x208] sm:$0xff]   ;;  %v14719_v20 = vld [vmem:[%s15758_s28 + $0x250] sm:$0xff]  }
 0x676   : > { %13054 = vmatpush3.bf16.msra.mxu0 %v14677_v11  ;;  %13072 = vmatprep.subr.bf16.mxu1 %v14678_v23  ;;  %v4520_v11 = vrot.slane %v16386_v55, %v16314_v37  ;;  %v4543_v23 = vpack.c.bf16 %v4516_v53, %v4516_v53  ;;  %v4548_v58 = vpack.c.bf16 %v4536_v8, %v4536_v8  ;;  %v14751_v8 = vld [vmem:[%s15758_s28 + $0x2e0] sm:$0xff]  }
 0x677   : > { %13097 = vmatprep.subr.bf16.mxu0 %v14694_v4  ;;  %v4546_v46 = vpack.c.bf16 %v4528_v61, %v4528_v61  ;;  %v4608_v39 = vrot.slane %v4604_v62, 7  ;;  %v14741_v62 = vld [vmem:[%s15758_s28 + $0x2c8] sm:$0xff]  }
 0x678   : > { %v4600_v2 = vunpack.c.l.b16 %v4543_v23 }
 0x679   : > { %4222 = vmatmul.mubr.bf16.vlgmr.msra.gmra.mrb[0].mxu0 %v4048_v13  ;;  %13073 = vmatpush3.bf16.msra.mxu1 %v14679_v60  ;;  %v4544_v13 = vpack.c.bf16 %v4520_v11, %v4520_v11  ;;  %v3894_v60 = vpack.c.bf16 %v3873_v59, %v3873_v59 }
 0x67a   : > { %13074 = vmatprep.subr.bf16.mxu1 %v14680_v32  ;;  %13098 = vmatpush3.bf16.msra.mxu0 %v14695_v34  ;;  %v4280_v32 = vunpack.c.l.b16 %v3897_v56  ;;  %v14715_v56 = vld [vmem:[%s15758_s28 + $0x200] sm:$0xff]  }
 0x67b   : > { %13099 = vmatprep.subr.bf16.mxu0 %v14697_v30  ;;  %v4601_v19 = vunpack.c.l.b16 %v4544_v13  ;;  %v4277_v21 = vunpack.c.l.b16 %v3894_v60  ;;  %v14724_v30 = vld [vmem:[%s15758_s28 + $0x2a0] sm:$0xff]  }
 0x67c   : > { %v4285_v17 = vrot.slane %v4280_v32, 7  ;;  %v14737_v60 = vld [vmem:[%s15758_s28 + $0x2c0] sm:$0xff]  }
 0x67d   : > { %13075 = vmatpush3.bf16.msra.mxu1 %v14681_v5  ;;  %v14693_v5 = vld [vmem:[%s15758_s28 + $0x98] sm:$0xff]   ;;  %v4609_v24 = vsel %vm4042_vm12, %v4608_v39, %v4601_v19 }
 0x67e   : > { %13076 = vmatprep.subr.bf16.mxu1 %v14682_v10  ;;  %13100 = vmatpush3.bf16.msra.mxu0 %v14698_v14  ;;  %v14716_v10 = vld [vmem:[%s15758_s28 + $0x198] sm:$0xff]   ;;  %v4613_v4 = vpack.c.b16 %v4609_v24, %v4609_v24  ;;  %v14726_v24 = vld [vmem:[%s15758_s28 + $0x220] sm:$0xff]  }
 0x67f   : > { %13101 = vmatprep.subr.bf16.mxu0 %v14700_v28  ;;  %v16423_v14 = vld [vmem:[#allocation2 + $0x3] ss:$8 sm:$0x7] }
 0x680   : > { %4784 = vmatprep.mubr.bf16.mxu0 %v4613_v4  ;;  %v4850_v0 = vrot.slane %v16423_v14, %v16311_v33  ;;  %v14746_v39 = vld [vmem:[%s15758_s28 + $0x318] sm:$0xff]  }
 0x681   : > { %13077 = vmatpush3.bf16.msra.mxu1 %v14683_v7  ;;  %v4603_v7 = vunpack.c.l.b16 %v4546_v46  ;;  %v14720_v46 = vld [vmem:[%s15758_s28 + $0x210] sm:$0xff]  }
 0x682   : > { %13078 = vmatprep.subr.bf16.mxu1 %v14684_v3  ;;  %13102 = vmatpush3.bf16.msra.mxu0 %v14701_v35  ;;  %v14696_v3 = vld [vmem:[%s15758_s28 + $0xa0] sm:$0xff]  }
 0x683   : > { %13103 = vmatprep.subr.bf16.mxu0 %v14702_v25  ;;  %v4606_v42 = vrot.slane %v4603_v7, 7  ;;  %v14709_v25 = vld [vmem:[%s15758_s28 + $0x1f0] sm:$0xff]   ;;  %v14722_v7 = vld [vmem:[%s15758_s28 + $0x258] sm:$0xff]  }
 0x684   : > { %v16471_v4 = vld [vmem:[#allocation2 + $0x4c] ss:$8 sm:$0x7] }
 0x685   : > { %13079 = vmatpush3.bf16.msra.mxu1 %v14685_v38  ;;  %v4607_v26 = vsel %vm4042_vm12, %v4606_v42, %v4600_v2  ;;  %v14718_v38 = vld [vmem:[%s15758_s28 + $0x290] sm:$0xff]   ;;  %v14725_v42 = vld [vmem:[%s15758_s28 + $0x260] sm:$0xff]  }
 0x686   : > { %13080 = vmatprep.subr.bf16.mxu1 %v14686_v43  ;;  %13104 = vmatpush3.bf16.msra.mxu0 %v14704_v52  ;;  %v4612_v34 = vpack.c.b16 %v4607_v26, %v4607_v26  ;;  %v4286_v43 = vsel %vm4042_vm12, %v4285_v17, %v4277_v21  ;;  %v4871_v52 = vpack.c.bf16 %v4850_v0, %v4850_v0  ;;  %v14744_v2 = vld [vmem:[%s15758_s28 + $0x310] sm:$0xff]   ;;  %v14723_v17 = vld [vmem:[%s15758_s28 + $0x218] sm:$0xff]  }
 0x687   : > { %13105 = vmatprep.subr.bf16.mxu0 %v14705_v12  ;;  %v4289_v45 = vpack.c.b16 %v4286_v43, %v4286_v43  ;;  %v16469_v26 = vld [vmem:[#allocation2 + $0x4] ss:$8 sm:$0x7]  ;;  %v14749_v43 = vld [vmem:[%s15758_s28 + $0x320] sm:$0xff]  }
 0x689   : > { %13081 = vmatpush3.bf16.msra.mxu1 %v14687_v49  ;;  %v14706_v49 = vld [vmem:[%s15758_s28 + $0x1e8] sm:$0xff]  }
 0x68a   : > { %13082 = vmatprep.subr.bf16.mxu1 %v14688_v50  ;;  %13106 = vmatpush3.bf16.msra.mxu0 %v14707_v36  ;;  %v16425_v50 = vld [vmem:[#allocation2 + $0x4b] ss:$8 sm:$0x7] }
 0x68b   : > { %13107 = vmatprep.subr.bf16.mxu0 %v14708_v22  ;;  %v4862_v28 = vrot.slane %v16425_v50, %v16311_v33  ;;  %v4858_v35 = vrot.slane %v16425_v50, %v16314_v37  ;;  %v14730_v36 = vld [vmem:[%s15758_s28 + $0x2b0] sm:$0xff]   ;;  %v4928_v22 = vunpack.c.l.b16 %v4871_v52 }
 0x68d   : > { %13083 = vmatpush3.bf16.msra.mxu1 %v14689_v16  ;;  %v4524_v16 = vrot.slane %v16386_v55, %v16311_v33  ;;  %v4874_v12 = vpack.c.bf16 %v4862_v28, %v4862_v28  ;;  %v5168_v28 = vrot.slane %v16469_v26, %v16318_v40 }
 0x68e   : > { %13710 = vmatprep.subr.bf16.mxu1 %v15435_v18  ;;  %13108 = vmatpush3.bf16.msra.mxu0 %v14710_v44 }
 0x68f   : > { %13109 = vmatprep.subr.bf16.mxu0 %v14711_v6  ;;  %v4931_v31 = vunpack.c.l.b16 %v4874_v12  ;;  %v4545_v44 = vpack.c.bf16 %v4524_v16, %v4524_v16  ;;  %v4605_v6 = vunpack.c.l.b16 %v4548_v58  ;;  %v14752_v16 = vld [vmem:[%s15758_s28 + $0x328] sm:$0xff]   ;;  %v14731_v58 = vld [vmem:[%s15758_s28 + $0x270] sm:$0xff]  }
 0x690   : > { %4460 = vmatmul.mubr.bf16.vlgmr.msra.gmra.mrb[4].mxu1 %v4287_v15  ;;  %v4846_v15 = vrot.slane %v16423_v14, %v16314_v37  ;;  %v14732_v12 = vld [vmem:[%s15758_s28 + $0x230] sm:$0xff]  }
 0x691   : > { %13711 = vmatpush3.bf16.msra.mxu1 %v14690_v63  ;;  %13722 = vmatprep.mubr.msk.bf16.mxu1 %vm15436_vm11, %v15435_v18  ;;  %v4873_v63 = vpack.c.bf16 %v4858_v35, %v4858_v35  ;;  %v4936_v59 = vrot.slane %v4931_v31, 7  ;;  %v4602_v11 = vunpack.c.l.b16 %v4545_v44  ;;  %v4610_v53 = vrot.slane %v4605_v6, 7  ;;  %v14734_v6 = vld [vmem:[%s15758_s28 + $0x278] sm:$0xff]  }
 0x692   : > { %13712 = vmatprep.subr.bf16.mxu1 %v15435_v18  ;;  %13110 = vmatpush3.bf16.msra.mxu0 %v14713_v57  ;;  %v14733_v57 = vld [vmem:[%s15758_s28 + $0x2b8] sm:$0xff]  }
 0x693   : > { %13111 = vmatprep.subr.bf16.mxu0 %v14714_v48  ;;  %v4930_v55 = vunpack.c.l.b16 %v4873_v63  ;;  %v4937_v9 = vsel %vm4042_vm12, %v4936_v59, %v4928_v22  ;;  %v14736_v48 = vld [vmem:[%s15758_s28 + $0x300] sm:$0xff]   ;;  %v4611_v32 = vsel %vm4042_vm12, %v4610_v53, %v4602_v11  ;;  %v14735_v59 = vld [vmem:[%s15758_s28 + $0x238] sm:$0xff]  }
 0x694   : > { %v4940_v61 = vpack.c.b16 %v4937_v9, %v4937_v9  ;;  %v4614_v19 = vpack.c.b16 %v4611_v32, %v4611_v32  ;;  %v14758_v9 = vld [vmem:[%s15758_s28 + $0x338] sm:$0xff]   ;;  %v14738_v11 = vld [vmem:[%s15758_s28 + $0x280] sm:$0xff]   ;;  %v14762_v32 = vld [vmem:[%s15758_s28 + $0x3f0] sm:$0xff]  }
 0x695   : > { %13713 = vmatpush3.bf16.msra.mxu1 %v14691_v29  ;;  %v14712_v29 = vld [vmem:[%s15758_s28 + $0x1f8] sm:$0xff]   ;;  %v4934_v23 = vrot.slane %v4930_v55, 7 }
 0x696   : > { %13714 = vmatprep.subr.bf16.mxu1 %v15435_v18  ;;  %13112 = vmatpush3.bf16.msra.mxu0 %v14716_v10  ;;  %v14760_v53 = vld [vmem:[%s15758_s28 + $0x2f8] sm:$0xff]  }
 0x697   : > { %13742 = vmatprep.subr.bf16.mxu0 %v15435_v18 }
 0x699   : > { %13715 = vmatpush3.bf16.msra.mxu1 %v14692_v41  ;;  %4785 = vmatmul.mubr.bf16.vlgmr.msra.gmra.mrb[4].mxu0 %v4612_v34  ;;  %v4870_v41 = vpack.c.bf16 %v4846_v15, %v4846_v15  ;;  %v14748_v34 = vld [vmem:[%s15758_s28 + $0x2d8] sm:$0xff]   ;;  %v14754_v15 = vld [vmem:[%s15758_s28 + $0x2e8] sm:$0xff]  }
 0x69a   : > { %13716 = vmatprep.subr.bf16.mxu1 %v15435_v18  ;;  %13743 = vmatpush3.bf16.msra.mxu0 %v14718_v38  ;;  %v5172_v38 = vrot.slane %v16469_v26, %v16314_v37 }
 0x69b   : > { %13754 = vmatprep.mubr.msk.bf16.mxu0 %vm15436_vm11, %v15435_v18  ;;  %13744 = vmatprep.subr.bf16.mxu0 %v15435_v18  ;;  %v4927_v13 = vunpack.c.l.b16 %v4870_v41 }
 0x69d   : > { %13717 = vmatpush3.bf16.msra.mxu1 %v14693_v5  ;;  %v14740_v5 = vld [vmem:[%s15758_s28 + $0x308] sm:$0xff]   ;;  %v4935_v10 = vsel %vm4042_vm12, %v4934_v23, %v4927_v13 }
 0x69e   : > { %13718 = vmatprep.subr.bf16.mxu1 %v15435_v18  ;;  %13745 = vmatpush3.bf16.msra.mxu0 %v14721_v47  ;;  %v4939_v21 = vpack.c.b16 %v4935_v10, %v4935_v10  ;;  %v14728_v47 = vld [vmem:[%s15758_s28 + $0x268] sm:$0xff]  }
 0x69f   : > { %13746 = vmatprep.subr.bf16.mxu0 %v15435_v18  ;;  %v14742_v23 = vld [vmem:[%s15758_s28 + $0x288] sm:$0xff]  }
 0x6a0   : > { %v16511_v10 = vld [vmem:[#allocation2 + $0x5] ss:$8 sm:$0x7] }
 0x6a1   : > { %13719 = vmatpush3.bf16.msra.mxu1 %v14696_v3  ;;  %v14745_v3 = vld [vmem:[%s15758_s28 + $0x2d0] sm:$0xff]  }
 0x6a2   : > { %13720 = vmatprep.subr.bf16.mxu1 %v15435_v18  ;;  %13747 = vmatpush3.bf16.msra.mxu0 %v14724_v30 }
 0x6a3   : > { %13748 = vmatprep.subr.bf16.mxu0 %v15435_v18 }
 0x6a5   : > { %13721 = vmatpush3.bf16.msra.mxu1 %v14699_v27  ;;  %v5184_v27 = vrot.slane %v16471_v4, %v16314_v37 }
 0x6a6   : > { %13726 = vmatprep.subr.bf16.mxu1 %v15435_v18  ;;  %13749 = vmatpush3.bf16.msra.mxu0 %v14727_v54 }
 0x6a7   : > { %13750 = vmatprep.subr.bf16.mxu0 %v15435_v18  ;;  %v5199_v30 = vpack.c.bf16 %v5184_v27, %v5184_v27 }
 0x6a8   : > { %13723 = vmatmul.mubr.msk.bf16.vlgmr.msra.gmra.mrb[8].mxu1 %vm4185_vm13, %v4289_v45  ;;  %v5180_v45 = vrot.slane %v16471_v4, %v16318_v40 }
 0x6a9   : > { %13727 = vmatpush3.bf16.msra.mxu1 %v14703_v1  ;;  %13738 = vmatprep.mubr.msk.bf16.mxu1 %vm15436_vm11, %v15435_v18  ;;  %v5196_v1 = vpack.c.bf16 %v5172_v38, %v5172_v38  ;;  %v5256_v54 = vunpack.c.l.b16 %v5199_v30  ;;  %v14774_v30 = vld [vmem:[%s15758_s28 + $0x410] sm:$0xff]  }
 0x6aa   : > { %13728 = vmatprep.subr.bf16.mxu1 %v15435_v18  ;;  %13751 = vmatpush3.bf16.msra.mxu0 %v14730_v36  ;;  %v5198_v35 = vpack.c.bf16 %v5180_v45, %v5180_v45  ;;  %v5195_v36 = vpack.c.bf16 %v5168_v28, %v5168_v28  ;;  %v14759_v28 = vld [vmem:[%s15758_s28 + $0x360] sm:$0xff]  }
 0x6ab   : > { %13752 = vmatprep.subr.bf16.mxu0 %v15435_v18  ;;  %v5253_v0 = vunpack.c.l.b16 %v5196_v1  ;;  %v5260_v52 = vrot.slane %v5256_v54, 7 }
 0x6ac   : > { %v5255_v22 = vunpack.c.l.b16 %v5198_v35  ;;  %v5252_v41 = vunpack.c.l.b16 %v5195_v36 }
 0x6ad   : > { %13729 = vmatpush3.bf16.msra.mxu1 %v14706_v49  ;;  %v14729_v49 = vld [vmem:[%s15758_s28 + $0x228] sm:$0xff]   ;;  %v5261_v63 = vsel %vm4042_vm12, %v5260_v52, %v5253_v0  ;;  %v14756_v0 = vld [vmem:[%s15758_s28 + $0x358] sm:$0xff]  }
 0x6ae   : > { %13730 = vmatprep.subr.bf16.mxu1 %v15435_v18  ;;  %13753 = vmatpush3.bf16.msra.mxu0 %v14733_v57  ;;  %v5265_v44 = vpack.c.b16 %v5261_v63, %v5261_v63  ;;  %v5258_v55 = vrot.slane %v5255_v22, 7  ;;  %v14761_v63 = vld [vmem:[%s15758_s28 + $0x368] sm:$0xff]   ;;  %v14781_v22 = vld [vmem:[%s15758_s28 + $0x420] sm:$0xff]  }
 0x6af   : > { %13155 = vmatprep.subr.bf16.mxu0 %v14736_v48 }
 0x6b0   : > { %v5259_v48 = vsel %vm4042_vm12, %v5258_v55, %v5252_v41 }
 0x6b1   : > { %13731 = vmatpush3.bf16.msra.mxu1 %v14709_v25  ;;  %13755 = vmatmul.mubr.msk.bf16.vlgmr.msra.gmra.mrb[8].mxu0 %vm4185_vm13, %v4940_v61  ;;  %v4854_v25 = vrot.slane %v16425_v50, %v16318_v40  ;;  %v4842_v50 = vrot.slane %v16423_v14, %v16318_v40 }
 0x6b2   : > { %13732 = vmatprep.subr.bf16.mxu1 %v15435_v18  ;;  %13156 = vmatpush3.bf16.msra.mxu0 %v14737_v60  ;;  %v5264_v60 = vpack.c.b16 %v5259_v48, %v5259_v48 }
 0x6b3   : > { %13157 = vmatprep.subr.bf16.mxu0 %v14740_v5  ;;  %v4872_v31 = vpack.c.bf16 %v4854_v25, %v4854_v25  ;;  %5436 = vmatprep.mubr.bf16.mxu0 %v5265_v44  ;;  %v4869_v57 = vpack.c.bf16 %v4842_v50, %v4842_v50  ;;  %v14743_v5 = vld [vmem:[%s15758_s28 + $0x248] sm:$0xff]  }
 0x6b5   : > { %13733 = vmatpush3.bf16.msra.mxu1 %v14712_v29  ;;  %v14755_v29 = vld [vmem:[%s15758_s28 + $0x330] sm:$0xff]   ;;  %v4929_v14 = vunpack.c.l.b16 %v4872_v31  ;;  %v4926_v61 = vunpack.c.l.b16 %v4869_v57 }
 0x6b6   : > { %13734 = vmatprep.subr.bf16.mxu1 %v15435_v18  ;;  %13158 = vmatpush3.bf16.msra.mxu0 %v14741_v62  ;;  %v14765_v62 = vld [vmem:[%s15758_s28 + $0x3f8] sm:$0xff]   ;;  %v14764_v57 = vld [vmem:[%s15758_s28 + $0x370] sm:$0xff]  }
 0x6b7   : > { %13159 = vmatprep.subr.bf16.mxu0 %v14744_v2  ;;  %v4932_v13 = vrot.slane %v4929_v14, 7 }
 0x6b9   : > { %13735 = vmatpush3.bf16.msra.mxu1 %v14715_v56  ;;  %v14757_v56 = vld [vmem:[%s15758_s28 + $0x2f0] sm:$0xff]  }
 0x6ba   : > { %13736 = vmatprep.subr.bf16.mxu1 %v15435_v18  ;;  %13160 = vmatpush3.bf16.msra.mxu0 %v14745_v3 }
 0x6bb   : > { %13161 = vmatprep.subr.bf16.mxu0 %v14746_v39  ;;  %v14750_v39 = vld [vmem:[%s15758_s28 + $0x348] sm:$0xff]  }
 0x6bd   : > { %13737 = vmatpush3.bf16.msra.mxu1 %v14717_v51  ;;  %v14739_v51 = vld [vmem:[%s15758_s28 + $0x240] sm:$0xff]  }
 0x6be   : > { %13126 = vmatprep.subr.bf16.mxu1 %v14719_v20  ;;  %13162 = vmatpush3.bf16.msra.mxu0 %v14748_v34  ;;  %v4933_v20 = vsel %vm4042_vm12, %v4932_v13, %v4926_v61  ;;  %v14771_v34 = vld [vmem:[%s15758_s28 + $0x408] sm:$0xff]   ;;  %v14766_v61 = vld [vmem:[%s15758_s28 + $0x3b8] sm:$0xff]  }
 0x6bf   : > { %13163 = vmatprep.subr.bf16.mxu0 %v14749_v43  ;;  %v14753_v43 = vld [vmem:[%s15758_s28 + $0x350] sm:$0xff]  }
 0x6c0   : > { %13739 = vmatmul.mubr.msk.bf16.vlgmr.msra.gmra.mrb[12].mxu1 %vm4185_vm13, %v4614_v19  ;;  %v4938_v19 = vpack.c.b16 %v4933_v20, %v4933_v20 }
 0x6c1   : > { %13127 = vmatpush3.bf16.msra.mxu1 %v14720_v46  ;;  %5110 = vmatprep.mubr.bf16.mxu1 %v4939_v21  ;;  %v16509_v46 = vld [vmem:[#allocation2 + $0x4d] ss:$8 sm:$0x7] }
 0x6c2   : > { %13128 = vmatprep.subr.bf16.mxu1 %v14722_v7  ;;  %13164 = vmatpush3.bf16.msra.mxu0 %v14751_v8  ;;  %v5514_v2 = vrot.slane %v16509_v46, %v16311_v33  ;;  %v14747_v7 = vld [vmem:[%s15758_s28 + $0x340] sm:$0xff]  }
 0x6c3   : > { %13165 = vmatprep.subr.bf16.mxu0 %v14752_v16  ;;  %v14768_v21 = vld [vmem:[%s15758_s28 + $0x400] sm:$0xff]   ;;  %v14777_v16 = vld [vmem:[%s15758_s28 + $0x418] sm:$0xff]  }
 0x6c4   : > { %v5526_v3 = vpack.c.bf16 %v5514_v2, %v5514_v2 }
 0x6c5   : > { %13129 = vmatpush3.bf16.msra.mxu1 %v14723_v17  ;;  %v5502_v17 = vrot.slane %v16511_v10, %v16311_v33 }
 0x6c6   : > { %13130 = vmatprep.subr.bf16.mxu1 %v14725_v42  ;;  %13166 = vmatpush3.bf16.msra.mxu0 %v14754_v15  ;;  %v5188_v42 = vrot.slane %v16471_v4, %v16311_v33  ;;  %v5583_v27 = vunpack.c.l.b16 %v5526_v3  ;;  %v5176_v4 = vrot.slane %v16469_v26, %v16311_v33  ;;  %v14780_v15 = vld [vmem:[%s15758_s28 + $0x460] sm:$0xff]  }
 0x6c7   : > { %13167 = vmatprep.subr.bf16.mxu0 %v14755_v29  ;;  %v5523_v38 = vpack.c.bf16 %v5502_v17, %v5502_v17  ;;  %v14784_v29 = vld [vmem:[%s15758_s28 + $0x468] sm:$0xff]   ;;  %v14792_v17 = vld [vmem:[%s15758_s28 + $0x438] sm:$0xff]  }
 0x6c8   : > { %v5200_v45 = vpack.c.bf16 %v5188_v42, %v5188_v42  ;;  %v5588_v8 = vrot.slane %v5583_v27, 7  ;;  %v5197_v54 = vpack.c.bf16 %v5176_v4, %v5176_v4  ;;  %v14772_v42 = vld [vmem:[%s15758_s28 + $0x3c8] sm:$0xff]  }
 0x6c9   : > { %13131 = vmatpush3.bf16.msra.mxu1 %v14726_v24  ;;  %v5510_v24 = vrot.slane %v16509_v46, %v16314_v37  ;;  %v14796_v4 = vld [vmem:[%s15758_s28 + $0x488] sm:$0xff]  }
 0x6ca   : > { %13132 = vmatprep.subr.bf16.mxu1 %v14728_v47  ;;  %13168 = vmatpush3.bf16.msra.mxu0 %v14757_v56  ;;  %v5498_v47 = vrot.slane %v16511_v10, %v16314_v37  ;;  %v5257_v26 = vunpack.c.l.b16 %v5200_v45  ;;  %v5254_v52 = vunpack.c.l.b16 %v5197_v54  ;;  %v14763_v56 = vld [vmem:[%s15758_s28 + $0x3b0] sm:$0xff]   ;;  %v14778_v54 = vld [vmem:[%s15758_s28 + $0x3d8] sm:$0xff]  }
 0x6cb   : > { %13169 = vmatprep.subr.bf16.mxu0 %v14758_v9  ;;  %v5525_v1 = vpack.c.bf16 %v5510_v24, %v5510_v24  ;;  %v14773_v24 = vld [vmem:[%s15758_s28 + $0x388] sm:$0xff]   ;;  %v14775_v45 = vld [vmem:[%s15758_s28 + $0x3d0] sm:$0xff]  }
 0x6cc   : > { %v5522_v35 = vpack.c.bf16 %v5498_v47, %v5498_v47  ;;  %v14776_v47 = vld [vmem:[%s15758_s28 + $0x390] sm:$0xff]  }
 0x6cd   : > { %13133 = vmatpush3.bf16.msra.mxu1 %v14729_v49  ;;  %v5580_v49 = vunpack.c.l.b16 %v5523_v38  ;;  %v5582_v25 = vunpack.c.l.b16 %v5525_v1  ;;  %v14798_v1 = vld [vmem:[%s15758_s28 + $0x448] sm:$0xff]  }
 0x6ce   : > { %13134 = vmatprep.subr.bf16.mxu1 %v14731_v58  ;;  %13170 = vmatpush3.bf16.msra.mxu0 %v14760_v53  ;;  %v5579_v50 = vunpack.c.l.b16 %v5522_v35 }
 0x6cf   : > { %13774 = vmatprep.subr.bf16.mxu0 %v15435_v18  ;;  %v5589_v58 = vsel %vm4042_vm12, %v5588_v8, %v5580_v49  ;;  %v5586_v31 = vrot.slane %v5582_v25, 7  ;;  %v5494_v8 = vrot.slane %v16511_v10, %v16318_v40  ;;  %v14782_v10 = vld [vmem:[%s15758_s28 + $0x3e0] sm:$0xff]  }
 0x6d0   : > { %v5592_v36 = vpack.c.b16 %v5589_v58, %v5589_v58 }
 0x6d1   : > { %13135 = vmatpush3.bf16.msra.mxu1 %v14732_v12  ;;  %5437 = vmatmul.mubr.bf16.vlgmr.msra.gmra.mrb[12].mxu0 %v5264_v60  ;;  %v5262_v12 = vrot.slane %v5257_v26, 7  ;;  %v5587_v14 = vsel %vm4042_vm12, %v5586_v31, %v5579_v50  ;;  %v14779_v26 = vld [vmem:[%s15758_s28 + $0x398] sm:$0xff]   ;;  %v14786_v50 = vld [vmem:[%s15758_s28 + $0x3e8] sm:$0xff]  }
 0x6d2   : > { %13136 = vmatprep.subr.bf16.mxu1 %v14734_v6  ;;  %13775 = vmatpush3.bf16.msra.mxu0 %v14762_v32  ;;  %v16555_v6 = vld [vmem:[#allocation2 + $0x6] ss:$8 sm:$0x7]  ;;  %v5591_v13 = vpack.c.b16 %v5587_v14, %v5587_v14 }
 0x6d3   : > { %13786 = vmatprep.mubr.msk.bf16.mxu0 %vm15436_vm11, %v15435_v18  ;;  %13776 = vmatprep.subr.bf16.mxu0 %v15435_v18  ;;  %v5263_v44 = vsel %vm4042_vm12, %v5262_v12, %v5254_v52  ;;  %v5824_v41 = vrot.slane %v16555_v6, %v16314_v37  ;;  %v14767_v32 = vld [vmem:[%s15758_s28 + $0x378] sm:$0xff]   ;;  %v5820_v38 = vrot.slane %v16555_v6, %v16318_v40 }
 0x6d4   : > { %v5266_v9 = vpack.c.b16 %v5263_v44, %v5263_v44  ;;  %v14802_v52 = vld [vmem:[%s15758_s28 + $0x498] sm:$0xff]   ;;  %v14806_v44 = vld [vmem:[%s15758_s28 + $0x550] sm:$0xff]  }
 0x6d5   : > { %13137 = vmatpush3.bf16.msra.mxu1 %v14735_v59  ;;  %v16557_v59 = vld [vmem:[#allocation2 + $0x4e] ss:$8 sm:$0x7]  ;;  %v5848_v53 = vpack.c.bf16 %v5824_v41, %v5824_v41 }
 0x6d6   : > { %13138 = vmatprep.subr.bf16.mxu1 %v14738_v11  ;;  %13777 = vmatpush3.bf16.msra.mxu0 %v14765_v62  ;;  %v5836_v55 = vrot.slane %v16557_v59, %v16314_v37  ;;  %v14785_v11 = vld [vmem:[%s15758_s28 + $0x428] sm:$0xff]   ;;  %v14769_v62 = vld [vmem:[%s15758_s28 + $0x3c0] sm:$0xff]   ;;  %v5832_v3 = vrot.slane %v16557_v59, %v16318_v40  ;;  %v14804_v12 = vld [vmem:[%s15758_s28 + $0x458] sm:$0xff]  }
 0x6d7   : > { %13778 = vmatprep.subr.bf16.mxu0 %v15435_v18  ;;  %v14809_v14 = vld [vmem:[%s15758_s28 + $0x558] sm:$0xff]  }
 0x6d8   : > { %v5851_v48 = vpack.c.bf16 %v5836_v55, %v5836_v55  ;;  %v5850_v27 = vpack.c.bf16 %v5832_v3, %v5832_v3  ;;  %v16611_v55 = vld [vmem:[#allocation2 + $0x7] ss:$8 sm:$0x7] }
 0x6d9   : > { %13139 = vmatpush3.bf16.msra.mxu1 %v14739_v51  ;;  %v14788_v51 = vld [vmem:[%s15758_s28 + $0x470] sm:$0xff]  }
 0x6da   : > { %13140 = vmatprep.subr.bf16.mxu1 %v14742_v23  ;;  %13779 = vmatpush3.bf16.msra.mxu0 %v14768_v21  ;;  %v5905_v23 = vunpack.c.l.b16 %v5848_v53  ;;  %v5908_v60 = vunpack.c.l.b16 %v5851_v48  ;;  %v5907_v49 = vunpack.c.l.b16 %v5850_v27  ;;  %v14812_v53 = vld [vmem:[%s15758_s28 + $0x560] sm:$0xff]   ;;  %v6154_v48 = vrot.slane %v16611_v55, %v16311_v33 }
 0x6db   : > { %13780 = vmatprep.subr.bf16.mxu0 %v15435_v18 }
 0x6dc   : > { %v5912_v20 = vrot.slane %v5908_v60, 7  ;;  %v5910_v25 = vrot.slane %v5907_v49, 7  ;;  %v14815_v60 = vld [vmem:[%s15758_s28 + $0x568] sm:$0xff]  }
 0x6dd   : > { %13141 = vmatpush3.bf16.msra.mxu1 %v14743_v5  ;;  %v14789_v5 = vld [vmem:[%s15758_s28 + $0x430] sm:$0xff]  }
 0x6de   : > { %13758 = vmatprep.subr.bf16.mxu1 %v15435_v18  ;;  %13781 = vmatpush3.bf16.msra.mxu0 %v14771_v34  ;;  %v5913_v2 = vsel %vm4042_vm12, %v5912_v20, %v5905_v23  ;;  %v14795_v34 = vld [vmem:[%s15758_s28 + $0x440] sm:$0xff]   ;;  %v14797_v20 = vld [vmem:[%s15758_s28 + $0x4b0] sm:$0xff]  }
 0x6df   : > { %13782 = vmatprep.subr.bf16.mxu0 %v15435_v18  ;;  %v5917_v21 = vpack.c.b16 %v5913_v2, %v5913_v2 }
 0x6e0   : > { %5111 = vmatmul.mubr.bf16.vlgmr.msra.gmra.mrb[16].mxu1 %v4938_v19  ;;  %v14790_v19 = vld [vmem:[%s15758_s28 + $0x478] sm:$0xff]  }
 0x6e1   : > { %13759 = vmatpush3.bf16.msra.mxu1 %v14747_v7  ;;  %13770 = vmatprep.mubr.msk.bf16.mxu1 %vm15436_vm11, %v15435_v18  ;;  %v14770_v7 = vld [vmem:[%s15758_s28 + $0x380] sm:$0xff]  }
 0x6e2   : > { %13760 = vmatprep.subr.bf16.mxu1 %v15435_v18  ;;  %13783 = vmatpush3.bf16.msra.mxu0 %v14774_v30  ;;  %v5847_v30 = vpack.c.bf16 %v5820_v38, %v5820_v38 }
 0x6e3   : > { %13784 = vmatprep.subr.bf16.mxu0 %v15435_v18 }
 0x6e4   : > { %v5904_v35 = vunpack.c.l.b16 %v5847_v30 }
 0x6e5   : > { %13761 = vmatpush3.bf16.msra.mxu1 %v14750_v39  ;;  %v14793_v39 = vld [vmem:[%s15758_s28 + $0x480] sm:$0xff]  }
 0x6e6   : > { %13762 = vmatprep.subr.bf16.mxu1 %v15435_v18  ;;  %13785 = vmatpush3.bf16.msra.mxu0 %v14777_v16  ;;  %v5521_v16 = vpack.c.bf16 %v5494_v8, %v5494_v8 }
 0x6e7   : > { %13213 = vmatprep.subr.bf16.mxu0 %v14780_v15  ;;  %v5911_v15 = vsel %vm4042_vm12, %v5910_v25, %v5904_v35 }
 0x6e8   : > { %v5916_v31 = vpack.c.b16 %v5911_v15, %v5911_v15 }
 0x6e9   : > { %13763 = vmatpush3.bf16.msra.mxu1 %v14753_v43  ;;  %13787 = vmatmul.mubr.msk.bf16.vlgmr.msra.gmra.mrb[16].mxu0 %vm4185_vm13, %v5592_v36  ;;  %v5506_v43 = vrot.slane %v16509_v46, %v16318_v40  ;;  %v14799_v46 = vld [vmem:[%s15758_s28 + $0x490] sm:$0xff]   ;;  %v5578_v36 = vunpack.c.l.b16 %v5521_v16 }
 0x6ea   : > { %13764 = vmatprep.subr.bf16.mxu1 %v15435_v18  ;;  %13214 = vmatpush3.bf16.msra.mxu0 %v14781_v22 }
 0x6eb   : > { %13215 = vmatprep.subr.bf16.mxu0 %v14784_v29  ;;  %6088 = vmatprep.mubr.bf16.mxu0 %v5917_v21  ;;  %v16605_v29 = vld [vmem:[#allocation2 + $0x4f] ss:$8 sm:$0x7]  ;;  %v16643_v21 = vld [vmem:[#allocation2 + $0x60] ss:$8 sm:$0x7] }
 0x6ec   : > { %v6162_v23 = vrot.slane %v16605_v29, %v16314_v37 }
 0x6ed   : > { %13765 = vmatpush3.bf16.msra.mxu1 %v14756_v0  ;;  %v5524_v0 = vpack.c.bf16 %v5506_v43, %v5506_v43 }
 0x6ee   : > { %13766 = vmatprep.subr.bf16.mxu1 %v15435_v18  ;;  %13216 = vmatpush3.bf16.msra.mxu0 %v14785_v11  ;;  %v14791_v11 = vld [vmem:[%s15758_s28 + $0x4a0] sm:$0xff]   ;;  %v6177_v2 = vpack.c.bf16 %v6162_v23, %v6162_v23  ;;  %v14817_v23 = vld [vmem:[%s15758_s28 + $0x4e8] sm:$0xff]  }
 0x6ef   : > { %13217 = vmatprep.subr.bf16.mxu0 %v14788_v51  ;;  %v5581_v58 = vunpack.c.l.b16 %v5524_v0 }
 0x6f1   : > { %13767 = vmatpush3.bf16.msra.mxu1 %v14759_v28  ;;  %v14801_v28 = vld [vmem:[%s15758_s28 + $0x450] sm:$0xff]   ;;  %v5584_v22 = vrot.slane %v5581_v58, 7  ;;  %v14825_v58 = vld [vmem:[%s15758_s28 + $0x580] sm:$0xff]  }
 0x6f2   : > { %13768 = vmatprep.subr.bf16.mxu1 %v15435_v18  ;;  %13218 = vmatpush3.bf16.msra.mxu0 %v14789_v5 }
 0x6f3   : > { %13219 = vmatprep.subr.bf16.mxu0 %v14790_v19  ;;  %v5585_v41 = vsel %vm4042_vm12, %v5584_v22, %v5578_v36  ;;  %v14808_v36 = vld [vmem:[%s15758_s28 + $0x4d0] sm:$0xff]  }
 0x6f5   : > { %13769 = vmatpush3.bf16.msra.mxu1 %v14761_v63  ;;  %v14783_v63 = vld [vmem:[%s15758_s28 + $0x3a0] sm:$0xff]  }
 0x6f6   : > { %13184 = vmatprep.subr.bf16.mxu1 %v14763_v56  ;;  %13220 = vmatpush3.bf16.msra.mxu0 %v14792_v17  ;;  %v14787_v56 = vld [vmem:[%s15758_s28 + $0x3a8] sm:$0xff]   ;;  %v14818_v17 = vld [vmem:[%s15758_s28 + $0x570] sm:$0xff]  }
 0x6f7   : > { %13221 = vmatprep.subr.bf16.mxu0 %v14793_v39 }
 0x6f8   : > { %13771 = vmatmul.mubr.msk.bf16.vlgmr.msra.gmra.mrb[20].mxu1 %vm4185_vm13, %v5266_v9  ;;  %v6166_v9 = vrot.slane %v16605_v29, %v16311_v33 }
 0x6f9   : > { %13185 = vmatpush3.bf16.msra.mxu1 %v14764_v57  ;;  %5762 = vmatprep.mubr.bf16.mxu1 %v5591_v13  ;;  %v5590_v57 = vpack.c.b16 %v5585_v41, %v5585_v41  ;;  %v5840_v13 = vrot.slane %v16557_v59, %v16311_v33  ;;  %v5828_v59 = vrot.slane %v16555_v6, %v16311_v33 }
 0x6fa   : > { %13186 = vmatprep.subr.bf16.mxu1 %v14766_v61  ;;  %13222 = vmatpush3.bf16.msra.mxu0 %v14795_v34  ;;  %v6178_v51 = vpack.c.bf16 %v6166_v9, %v6166_v9  ;;  %v14794_v61 = vld [vmem:[%s15758_s28 + $0x4a8] sm:$0xff]   ;;  %v14834_v9 = vld [vmem:[%s15758_s28 + $0x5d8] sm:$0xff]  }
 0x6fb   : > { %13223 = vmatprep.subr.bf16.mxu0 %v14796_v4  ;;  %v5852_v19 = vpack.c.bf16 %v5840_v13, %v5840_v13  ;;  %v5849_v34 = vpack.c.bf16 %v5828_v59, %v5828_v59  ;;  %v14803_v4 = vld [vmem:[%s15758_s28 + $0x4c0] sm:$0xff]   ;;  %v14816_v13 = vld [vmem:[%s15758_s28 + $0x528] sm:$0xff]  }
 0x6fc   : > { %v6235_v5 = vunpack.c.l.b16 %v6178_v51  ;;  %v14814_v51 = vld [vmem:[%s15758_s28 + $0x4e0] sm:$0xff]   ;;  %v14840_v59 = vld [vmem:[%s15758_s28 + $0x5e8] sm:$0xff]  }
 0x6fd   : > { %13187 = vmatpush3.bf16.msra.mxu1 %v14767_v32  ;;  %v6175_v32 = vpack.c.bf16 %v6154_v48, %v6154_v48  ;;  %v5909_v38 = vunpack.c.l.b16 %v5852_v19  ;;  %v5906_v0 = vunpack.c.l.b16 %v5849_v34  ;;  %v6484_v48 = vrot.slane %v16643_v21, %v16318_v40  ;;  %v14819_v19 = vld [vmem:[%s15758_s28 + $0x530] sm:$0xff]  }
 0x6fe   : > { %13188 = vmatprep.subr.bf16.mxu1 %v14769_v62  ;;  %13224 = vmatpush3.bf16.msra.mxu0 %v14798_v1  ;;  %v6150_v62 = vrot.slane %v16611_v55, %v16314_v37  ;;  %v6240_v39 = vrot.slane %v6235_v5, 7  ;;  %v14821_v1 = vld [vmem:[%s15758_s28 + $0x578] sm:$0xff]   ;;  %v14845_v34 = vld [vmem:[%s15758_s28 + $0x5b0] sm:$0xff]  }
 0x6ff   : > { %13225 = vmatprep.subr.bf16.mxu0 %v14799_v46  ;;  %v6232_v3 = vunpack.c.l.b16 %v6175_v32  ;;  %v5914_v46 = vrot.slane %v5909_v38, 7  ;;  %v6502_v5 = vpack.c.bf16 %v6484_v48, %v6484_v48 }
 0x701   : > { %13189 = vmatpush3.bf16.msra.mxu1 %v14770_v7  ;;  %v16641_v7 = vld [vmem:[#allocation2 + $0x18] ss:$8 sm:$0x7]  ;;  %v6241_v30 = vsel %vm4042_vm12, %v6240_v39, %v6232_v3  ;;  %v6559_v3 = vunpack.c.l.b16 %v6502_v5  ;;  %v6146_v39 = vrot.slane %v16611_v55, %v16318_v40 }
 0x702   : > { %13190 = vmatprep.subr.bf16.mxu1 %v14772_v42  ;;  %13226 = vmatpush3.bf16.msra.mxu0 %v14801_v28  ;;  %v6476_v6 = vrot.slane %v16641_v7, %v16314_v37  ;;  %v6488_v42 = vrot.slane %v16643_v21, %v16314_v37  ;;  %v14805_v28 = vld [vmem:[%s15758_s28 + $0x4c8] sm:$0xff]   ;;  %v6244_v35 = vpack.c.b16 %v6241_v30, %v6241_v30  ;;  %v14826_v55 = vld [vmem:[%s15758_s28 + $0x540] sm:$0xff]  }
 0x703   : > { %13227 = vmatprep.subr.bf16.mxu0 %v14802_v52  ;;  %v6472_v32 = vrot.slane %v16641_v7, %v16318_v40 }
 0x704   : > { %v6500_v27 = vpack.c.bf16 %v6476_v6, %v6476_v6  ;;  %v6503_v43 = vpack.c.bf16 %v6488_v42, %v6488_v42  ;;  %v14822_v42 = vld [vmem:[%s15758_s28 + $0x538] sm:$0xff]  }
 0x705   : > { %13191 = vmatpush3.bf16.msra.mxu1 %v14773_v24  ;;  %v14800_v24 = vld [vmem:[%s15758_s28 + $0x4b8] sm:$0xff]  }
 0x706   : > { %13192 = vmatprep.subr.bf16.mxu1 %v14775_v45  ;;  %13228 = vmatpush3.bf16.msra.mxu0 %v14804_v12  ;;  %v6174_v45 = vpack.c.bf16 %v6150_v62, %v6150_v62  ;;  %v6557_v49 = vunpack.c.l.b16 %v6500_v27  ;;  %v6560_v8 = vunpack.c.l.b16 %v6503_v43  ;;  %v14828_v12 = vld [vmem:[%s15758_s28 + $0x5c8] sm:$0xff]   ;;  %v14820_v62 = vld [vmem:[%s15758_s28 + $0x4f0] sm:$0xff]   ;;  %v6562_v27 = vrot.slane %v6559_v3, 7 }
 0x707   : > { %13806 = vmatprep.subr.bf16.mxu0 %v15435_v18  ;;  %v6173_v43 = vpack.c.bf16 %v6146_v39, %v6146_v39  ;;  %v14862_v39 = vld [vmem:[%s15758_s28 + $0x6d0] sm:$0xff]  }
 0x708   : > { %v6231_v25 = vunpack.c.l.b16 %v6174_v45  ;;  %v14846_v45 = vld [vmem:[%s15758_s28 + $0x5f8] sm:$0xff]  }
 0x709   : > { %13193 = vmatpush3.bf16.msra.mxu1 %v14776_v47  ;;  %6089 = vmatmul.mubr.bf16.vlgmr.msra.gmra.mrb[20].mxu0 %v5916_v31  ;;  %v6234_v47 = vunpack.c.l.b16 %v6177_v2  ;;  %v14829_v31 = vld [vmem:[%s15758_s28 + $0x588] sm:$0xff]  }
 0x70a   : > { %13194 = vmatprep.subr.bf16.mxu1 %v14778_v54  ;;  %13807 = vmatpush3.bf16.msra.mxu0 %v14806_v44  ;;  %v14824_v54 = vld [vmem:[%s15758_s28 + $0x5c0] sm:$0xff]   ;;  %v14832_v44 = vld [vmem:[%s15758_s28 + $0x5d0] sm:$0xff]   ;;  %v14842_v2 = vld [vmem:[%s15758_s28 + $0x5a8] sm:$0xff]  }
 0x70b   : > { %13818 = vmatprep.mubr.msk.bf16.mxu0 %vm15436_vm11, %v15435_v18  ;;  %13808 = vmatprep.subr.bf16.mxu0 %v15435_v18  ;;  %v6238_v16 = vrot.slane %v6234_v47, 7 }
 0x70d   : > { %13195 = vmatpush3.bf16.msra.mxu1 %v14779_v26  ;;  %v6564_v26 = vrot.slane %v6560_v8, 7  ;;  %v6239_v22 = vsel %vm4042_vm12, %v6238_v16, %v6231_v25  ;;  %v16705_v25 = vld [vmem:[#allocation2 + $0x61] ss:$8 sm:$0x7] }
 0x70e   : > { %13196 = vmatprep.subr.bf16.mxu1 %v14782_v10  ;;  %13809 = vmatpush3.bf16.msra.mxu0 %v14809_v14  ;;  %v5915_v10 = vsel %vm4042_vm12, %v5914_v46, %v5906_v0  ;;  %v6243_v41 = vpack.c.b16 %v6239_v22, %v6239_v22  ;;  %v14833_v14 = vld [vmem:[%s15758_s28 + $0x590] sm:$0xff]   ;;  %v6230_v46 = vunpack.c.l.b16 %v6173_v43  ;;  %v16712_v22 = vld [vmem:[#allocation2 + $0x19] ss:$8 sm:$0x7] }
 0x70f   : > { %13810 = vmatprep.subr.bf16.mxu0 %v15435_v18  ;;  %v6565_v52 = vsel %vm4042_vm12, %v6564_v26, %v6557_v49  ;;  %v14848_v49 = vld [vmem:[%s15758_s28 + $0x5b8] sm:$0xff]  }
 0x710   : > { %v6569_v15 = vpack.c.b16 %v6565_v52, %v6565_v52 }
 0x711   : > { %13197 = vmatpush3.bf16.msra.mxu1 %v14783_v63  ;;  %v14807_v63 = vld [vmem:[%s15758_s28 + $0x510] sm:$0xff]  }
 0x712   : > { %13198 = vmatprep.subr.bf16.mxu1 %v14786_v50  ;;  %13811 = vmatpush3.bf16.msra.mxu0 %v14812_v53  ;;  %v5918_v50 = vpack.c.b16 %v5915_v10, %v5915_v10  ;;  %v14836_v53 = vld [vmem:[%s15758_s28 + $0x598] sm:$0xff]   ;;  %v14831_v10 = vld [vmem:[%s15758_s28 + $0x508] sm:$0xff]  }
 0x713   : > { %13812 = vmatprep.subr.bf16.mxu0 %v15435_v18 }
 0x715   : > { %13199 = vmatpush3.bf16.msra.mxu1 %v14787_v56  ;;  %v14810_v56 = vld [vmem:[%s15758_s28 + $0x518] sm:$0xff]  }
 0x716   : > { %13790 = vmatprep.subr.bf16.mxu1 %v15435_v18  ;;  %13813 = vmatpush3.bf16.msra.mxu0 %v14815_v60  ;;  %v14839_v60 = vld [vmem:[%s15758_s28 + $0x5a0] sm:$0xff]  }
 0x717   : > { %13814 = vmatprep.subr.bf16.mxu0 %v15435_v18 }
 0x718   : > { %5763 = vmatmul.mubr.bf16.vlgmr.msra.gmra.mrb[24].mxu1 %v5590_v57  ;;  %v14811_v57 = vld [vmem:[%s15758_s28 + $0x4d8] sm:$0xff]  }
 0x719   : > { %13791 = vmatpush3.bf16.msra.mxu1 %v14791_v11  ;;  %13802 = vmatprep.mubr.msk.bf16.mxu1 %vm15436_vm11, %v15435_v18  ;;  %v14813_v11 = vld [vmem:[%s15758_s28 + $0x520] sm:$0xff]  }
 0x71a   : > { %13792 = vmatprep.subr.bf16.mxu1 %v15435_v18  ;;  %13815 = vmatpush3.bf16.msra.mxu0 %v14818_v17  ;;  %v6499_v17 = vpack.c.bf16 %v6472_v32, %v6472_v32  ;;  %v14859_v32 = vld [vmem:[%s15758_s28 + $0x6c8] sm:$0xff]  }
 0x71b   : > { %13816 = vmatprep.subr.bf16.mxu0 %v15435_v18 }
 0x71c   : > { %v6556_v38 = vunpack.c.l.b16 %v6499_v17  ;;  %v6802_v17 = vrot.slane %v16712_v22, %v16314_v37 }
 0x71d   : > { %13793 = vmatpush3.bf16.msra.mxu1 %v14794_v61  ;;  %v14837_v61 = vld [vmem:[%s15758_s28 + $0x5e0] sm:$0xff]  }
 0x71e   : > { %13794 = vmatprep.subr.bf16.mxu1 %v15435_v18  ;;  %13817 = vmatpush3.bf16.msra.mxu0 %v14821_v1  ;;  %v14827_v1 = vld [vmem:[%s15758_s28 + $0x500] sm:$0xff]   ;;  %v6563_v8 = vsel %vm4042_vm12, %v6562_v27, %v6556_v38  ;;  %v6826_v43 = vpack.c.bf16 %v6802_v17, %v6802_v17  ;;  %v14863_v17 = vld [vmem:[%s15758_s28 + $0x690] sm:$0xff]  }
 0x71f   : > { %13271 = vmatprep.subr.bf16.mxu0 %v14824_v54  ;;  %v14847_v27 = vld [vmem:[%s15758_s28 + $0x620] sm:$0xff]  }
 0x721   : > { %13795 = vmatpush3.bf16.msra.mxu1 %v14797_v20  ;;  %13819 = vmatmul.mubr.msk.bf16.vlgmr.msra.gmra.mrb[24].mxu0 %vm4185_vm13, %v6244_v35  ;;  %v6158_v20 = vrot.slane %v16605_v29, %v16318_v40  ;;  %v14843_v29 = vld [vmem:[%s15758_s28 + $0x5f0] sm:$0xff]   ;;  %v6568_v35 = vpack.c.b16 %v6563_v8, %v6563_v8  ;;  %v14849_v8 = vld [vmem:[%s15758_s28 + $0x628] sm:$0xff]  }
 0x722   : > { %13796 = vmatprep.subr.bf16.mxu1 %v15435_v18  ;;  %13272 = vmatpush3.bf16.msra.mxu0 %v14825_v58  ;;  %v14850_v58 = vld [vmem:[%s15758_s28 + $0x6b0] sm:$0xff]  }
 0x723   : > { %6740 = vmatprep.mubr.bf16.mxu0 %v6569_v15  ;;  %13273 = vmatprep.subr.bf16.mxu0 %v14828_v12  ;;  %v6176_v6 = vpack.c.bf16 %v6158_v20, %v6158_v20 }
 0x725   : > { %13797 = vmatpush3.bf16.msra.mxu1 %v14800_v24  ;;  %v14823_v24 = vld [vmem:[%s15758_s28 + $0x4f8] sm:$0xff]  }
 0x726   : > { %13798 = vmatprep.subr.bf16.mxu1 %v15435_v18  ;;  %13274 = vmatpush3.bf16.msra.mxu0 %v14829_v31 }
 0x727   : > { %13275 = vmatprep.subr.bf16.mxu0 %v14832_v44 }
 0x729   : > { %13799 = vmatpush3.bf16.msra.mxu1 %v14803_v4  ;;  %v6233_v4 = vunpack.c.l.b16 %v6176_v6 }
 0x72a   : > { %13800 = vmatprep.subr.bf16.mxu1 %v15435_v18  ;;  %13276 = vmatpush3.bf16.msra.mxu0 %v14833_v14  ;;  %v16724_v14 = vld [vmem:[#allocation2 + $0x62] ss:$8 sm:$0x7] }
 0x72b   : > { %13277 = vmatprep.subr.bf16.mxu0 %v14834_v9  ;;  %v6236_v54 = vrot.slane %v6233_v4, 7  ;;  %v7140_v9 = vrot.slane %v16724_v14, %v16314_v37 }
 0x72d   : > { %13801 = vmatpush3.bf16.msra.mxu1 %v14805_v28  ;;  %v14830_v28 = vld [vmem:[%s15758_s28 + $0x548] sm:$0xff]   ;;  %v6237_v12 = vsel %vm4042_vm12, %v6236_v54, %v6230_v46  ;;  %v6883_v46 = vunpack.c.l.b16 %v6826_v43  ;;  %v14889_v43 = vld [vmem:[%s15758_s28 + $0x710] sm:$0xff]  }
 0x72e   : > { %13242 = vmatprep.subr.bf16.mxu1 %v14807_v63  ;;  %13278 = vmatpush3.bf16.msra.mxu0 %v14836_v53  ;;  %v6242_v44 = vpack.c.b16 %v6237_v12, %v6237_v12  ;;  %v6806_v53 = vrot.slane %v16712_v22, %v16311_v33 }
 0x72f   : > { %13279 = vmatprep.subr.bf16.mxu0 %v14837_v61  ;;  %v6492_v61 = vrot.slane %v16643_v21, %v16311_v33  ;;  %v14841_v21 = vld [vmem:[%s15758_s28 + $0x610] sm:$0xff]  }
 0x730   : > { %13803 = vmatmul.mubr.msk.bf16.vlgmr.msra.gmra.mrb[28].mxu1 %vm4185_vm13, %v5918_v50  ;;  %v6827_v5 = vpack.c.bf16 %v6806_v53, %v6806_v53  ;;  %v14855_v53 = vld [vmem:[%s15758_s28 + $0x638] sm:$0xff]  }
 0x731   : > { %13243 = vmatpush3.bf16.msra.mxu1 %v14808_v36  ;;  %6414 = vmatprep.mubr.bf16.mxu1 %v6243_v41  ;;  %v14835_v36 = vld [vmem:[%s15758_s28 + $0x600] sm:$0xff]   ;;  %v6818_v41 = vrot.slane %v16705_v25, %v16311_v33 }
 0x732   : > { %13244 = vmatprep.subr.bf16.mxu1 %v14810_v56  ;;  %13280 = vmatpush3.bf16.msra.mxu0 %v14839_v60  ;;  %v14853_v56 = vld [vmem:[%s15758_s28 + $0x6b8] sm:$0xff]   ;;  %v6814_v60 = vrot.slane %v16705_v25, %v16314_v37  ;;  %v6884_v6 = vunpack.c.l.b16 %v6827_v5  ;;  %v14860_v5 = vld [vmem:[%s15758_s28 + $0x688] sm:$0xff]  }
 0x733   : > { %13281 = vmatprep.subr.bf16.mxu0 %v14840_v59  ;;  %v6830_v48 = vpack.c.bf16 %v6818_v41, %v6818_v41  ;;  %v6480_v59 = vrot.slane %v16641_v7, %v16311_v33 }
 0x734   : > { %v6829_v3 = vpack.c.bf16 %v6814_v60, %v6814_v60  ;;  %v14880_v60 = vld [vmem:[%s15758_s28 + $0x6f8] sm:$0xff]  }
 0x735   : > { %13245 = vmatpush3.bf16.msra.mxu1 %v14811_v57  ;;  %v16722_v57 = vld [vmem:[#allocation2 + $0x1a] ss:$8 sm:$0x7]  ;;  %v6887_v20 = vunpack.c.l.b16 %v6830_v48  ;;  %v6501_v7 = vpack.c.bf16 %v6480_v59, %v6480_v59 }
 0x736   : > { %13246 = vmatprep.subr.bf16.mxu1 %v14813_v11  ;;  %13282 = vmatpush3.bf16.msra.mxu0 %v14842_v2  ;;  %v14856_v11 = vld [vmem:[%s15758_s28 + $0x6c0] sm:$0xff]   ;;  %v6886_v4 = vunpack.c.l.b16 %v6829_v3  ;;  %v7124_v59 = vrot.slane %v16722_v57, %v16318_v40  ;;  %v14864_v3 = vld [vmem:[%s15758_s28 + $0x650] sm:$0xff]  }
 0x737   : > { %13283 = vmatprep.subr.bf16.mxu0 %v14843_v29  ;;  %v6892_v29 = vrot.slane %v6887_v20, 7  ;;  %v14861_v20 = vld [vmem:[%s15758_s28 + $0x648] sm:$0xff]  }
 0x738   : > { %v6890_v54 = vrot.slane %v6886_v4, 7 }
 0x739   : > { %13247 = vmatpush3.bf16.msra.mxu1 %v14814_v51  ;;  %v14838_v51 = vld [vmem:[%s15758_s28 + $0x608] sm:$0xff]  }
 0x73a   : > { %13248 = vmatprep.subr.bf16.mxu1 %v14816_v13  ;;  %13284 = vmatpush3.bf16.msra.mxu0 %v14845_v34  ;;  %v7128_v13 = vrot.slane %v16722_v57, %v16314_v37  ;;  %v6891_v12 = vsel %vm4042_vm12, %v6890_v54, %v6883_v46 }
 0x73b   : > { %13285 = vmatprep.subr.bf16.mxu0 %v14846_v45  ;;  %v14865_v45 = vld [vmem:[%s15758_s28 + $0x6d8] sm:$0xff]  }
 0x73d   : > { %13249 = vmatpush3.bf16.msra.mxu1 %v14817_v23  ;;  %v7155_v23 = vpack.c.bf16 %v7140_v9, %v7140_v9  ;;  %v14854_v9 = vld [vmem:[%s15758_s28 + $0x678] sm:$0xff]  }
 0x73e   : > { %13250 = vmatprep.subr.bf16.mxu1 %v14819_v19  ;;  %13286 = vmatpush3.bf16.msra.mxu0 %v14848_v49  ;;  %v6504_v19 = vpack.c.bf16 %v6492_v61, %v6492_v61  ;;  %v14878_v61 = vld [vmem:[%s15758_s28 + $0x738] sm:$0xff]  }
 0x73f   : > { %13838 = vmatprep.subr.bf16.mxu0 %v15435_v18  ;;  %v7212_v2 = vunpack.c.l.b16 %v7155_v23  ;;  %v14858_v23 = vld [vmem:[%s15758_s28 + $0x640] sm:$0xff]  }
 0x741   : > { %13251 = vmatpush3.bf16.msra.mxu1 %v14820_v62  ;;  %6741 = vmatmul.mubr.bf16.vlgmr.msra.gmra.mrb[28].mxu0 %v6568_v35  ;;  %v7152_v62 = vpack.c.bf16 %v7128_v13, %v7128_v13  ;;  %v7216_v38 = vrot.slane %v7212_v2, 7  ;;  %v14857_v13 = vld [vmem:[%s15758_s28 + $0x680] sm:$0xff]   ;;  %v14884_v2 = vld [vmem:[%s15758_s28 + $0x748] sm:$0xff]  }
 0x742   : > { %13252 = vmatprep.subr.bf16.mxu1 %v14822_v42  ;;  %13839 = vmatpush3.bf16.msra.mxu0 %v14850_v58  ;;  %v14844_v42 = vld [vmem:[%s15758_s28 + $0x618] sm:$0xff]   ;;  %v14851_v58 = vld [vmem:[%s15758_s28 + $0x670] sm:$0xff]  }
 0x743   : > { %v4263_v47 = vpop.f32.mrb[0].mxu1  ;;  %13850 = vmatprep.mubr.msk.bf16.mxu0 %vm15436_vm11, %v15435_v18  ;;  %13840 = vmatprep.subr.bf16.mxu0 %v15435_v18  ;;  %v7209_v34 = vunpack.c.l.b16 %v7152_v62  ;;  %v6810_v62 = vrot.slane %v16705_v25, %v16318_v40  ;;  %v14866_v25 = vld [vmem:[%s15758_s28 + $0x698] sm:$0xff]  }
 0x744   : > { %v13708_v30 = vpop.f32.mrb[1].mxu1 }
 0x745   : > { %v4266_v0 = vpop.f32.mrb[2].mxu1  ;;  %13253 = vmatpush3.bf16.msra.mxu1 %v14823_v24  ;;  %v6561_v24 = vunpack.c.l.b16 %v6504_v19  ;;  %v14868_v30 = vld [vmem:[%s15758_s28 + $0x720] sm:$0xff]   ;;  %v7217_v49 = vsel %vm4042_vm12, %v7216_v38, %v7209_v34  ;;  %v14867_v38 = vld [vmem:[%s15758_s28 + $0x658] sm:$0xff]  }
 0x746   : > { %v13709_v26 = vpop.f32.mrb[3].mxu1  ;;  %13254 = vmatprep.subr.bf16.mxu1 %v14826_v55  ;;  %13841 = vmatpush3.bf16.msra.mxu0 %v14853_v56  ;;  %v6893_v55 = vsel %vm4042_vm12, %v6892_v29, %v6884_v6  ;;  %v14876_v56 = vld [vmem:[%s15758_s28 + $0x730] sm:$0xff]   ;;  %v7151_v6 = vpack.c.bf16 %v7124_v59, %v7124_v59  ;;  %v14903_v59 = vld [vmem:[%s15758_s28 + $0x828] sm:$0xff]  }
 0x747   : > { %13842 = vmatprep.subr.bf16.mxu0 %v15435_v18  ;;  %v6896_v0 = vpack.c.b16 %v6893_v55, %v6893_v55  ;;  %v14869_v26 = vld [vmem:[%s15758_s28 + $0x6e0] sm:$0xff]  }
 0x749   : > { %13255 = vmatpush3.bf16.msra.mxu1 %v14827_v1  ;;  %v6566_v1 = vrot.slane %v6561_v24, 7  ;;  %v14887_v24 = vld [vmem:[%s15758_s28 + $0x750] sm:$0xff]  }
 0x74a   : > { %13256 = vmatprep.subr.bf16.mxu1 %v14830_v28  ;;  %13843 = vmatpush3.bf16.msra.mxu0 %v14856_v11  ;;  %v7221_v28 = vpack.c.b16 %v7217_v49, %v7217_v49  ;;  %v6895_v11 = vpack.c.b16 %v6891_v12, %v6891_v12  ;;  %v14874_v12 = vld [vmem:[%s15758_s28 + $0x6a8] sm:$0xff]  }
 0x74b   : > { %13844 = vmatprep.subr.bf16.mxu0 %v15435_v18 }
 0x74c   : > { %v13055_v16 = vpop.f32.mrb[0].mxu0 }
 0x74d   : > { %v13056_v52 = vpop.f32.mrb[1].mxu0  ;;  %13257 = vmatpush3.bf16.msra.mxu1 %v14831_v10  ;;  %v14852_v10 = vld [vmem:[%s15758_s28 + $0x630] sm:$0xff]  }
 0x74e   : > { %v13057_v15 = vadd.f32 %v13056_v52, %v13055_v16  ;;  %v13058_v63 = vpop.f32.mrb[2].mxu0  ;;  %13822 = vmatprep.subr.bf16.mxu1 %v15435_v18  ;;  %13845 = vmatpush3.bf16.msra.mxu0 %v14859_v32  ;;  %v14872_v16 = vld [vmem:[%s15758_s28 + $0x728] sm:$0xff]   ;;  %v14881_v32 = vld [vmem:[%s15758_s28 + $0x740] sm:$0xff]  }
 0x74f   : > { %v13059_v50 = vpop.f32.mrb[3].mxu0  ;;  %13846 = vmatprep.subr.bf16.mxu0 %v15435_v18 }
 0x750   : > { %v16714_v31 = vadd.f32 %v13057_v15, %v4263_v47  ;;  %6415 = vmatmul.mubr.bf16.vlgmr.msra.gmra.mrb[32].mxu1 %v6242_v44  ;;  %v6558_v47 = vunpack.c.l.b16 %v6501_v7  ;;  %v6828_v7 = vpack.c.bf16 %v6810_v62, %v6810_v62 }
 0x751   : > { %13823 = vmatpush3.bf16.msra.mxu1 %v14835_v36  ;;  %13834 = vmatprep.mubr.msk.bf16.mxu1 %vm15436_vm11, %v15435_v18  ;;  %v14873_v36 = vld [vmem:[%s15758_s28 + $0x6e8] sm:$0xff]  }
 0x752   : > { %13824 = vmatprep.subr.bf16.mxu1 %v15435_v18  ;;  %13847 = vmatpush3.bf16.msra.mxu0 %v14862_v39  ;;  %v6567_v35 = vsel %vm4042_vm12, %v6566_v1, %v6558_v47  ;;  %v14886_v39 = vld [vmem:[%s15758_s28 + $0x708] sm:$0xff]   ;;  %v6885_v1 = vunpack.c.l.b16 %v6828_v7 }
 0x753   : > { %13848 = vmatprep.subr.bf16.mxu0 %v15435_v18  ;;  %v6570_v63 = vpack.c.b16 %v6567_v35, %v6567_v35 }
 0x755   : > { %13825 = vmatpush3.bf16.msra.mxu1 %v14838_v51  ;;  %v14877_v51 = vld [vmem:[%s15758_s28 + $0x6f0] sm:$0xff]  }
 0x756   : > { %13826 = vmatprep.subr.bf16.mxu1 %v15435_v18  ;;  %13849 = vmatpush3.bf16.msra.mxu0 %v14865_v45  ;;  %v7208_v45 = vunpack.c.l.b16 %v7151_v6 }
 0x757   : > { %13329 = vmatprep.subr.bf16.mxu0 %v14868_v30  ;;  %v14890_v30 = vld [vmem:[%s15758_s28 + $0x758] sm:$0xff]  }
 0x759   : > { %13827 = vmatpush3.bf16.msra.mxu1 %v14841_v21  ;;  %13851 = vmatmul.mubr.msk.bf16.vlgmr.msra.gmra.mrb[32].mxu0 %vm4185_vm13, %v6896_v0  ;;  %v14883_v21 = vld [vmem:[%s15758_s28 + $0x700] sm:$0xff]  }
 0x75a   : > { %13828 = vmatprep.subr.bf16.mxu1 %v15435_v18  ;;  %13330 = vmatpush3.bf16.msra.mxu0 %v14869_v26  ;;  %v14871_v26 = vld [vmem:[%s15758_s28 + $0x660] sm:$0xff]  }
 0x75b   : > { %7392 = vmatprep.mubr.bf16.mxu0 %v7221_v28  ;;  %13331 = vmatprep.subr.bf16.mxu0 %v14872_v16  ;;  %v14892_v28 = vld [vmem:[%s15758_s28 + $0x718] sm:$0xff]  }
 0x75d   : > { %13829 = vmatpush3.bf16.msra.mxu1 %v14844_v42  ;;  %v6798_v42 = vrot.slane %v16712_v22, %v16318_v40 }
 0x75e   : > { %13830 = vmatprep.subr.bf16.mxu1 %v15435_v18  ;;  %13332 = vmatpush3.bf16.msra.mxu0 %v14873_v36  ;;  %v14894_v36 = vld [vmem:[%s15758_s28 + $0x810] sm:$0xff]  }
 0x75f   : > { %13333 = vmatprep.subr.bf16.mxu0 %v14876_v56  ;;  %v6825_v22 = vpack.c.bf16 %v6798_v42, %v6798_v42  ;;  %v14906_v42 = vld [vmem:[%s15758_s28 + $0x830] sm:$0xff]  }
 0x761   : > { %13831 = vmatpush3.bf16.msra.mxu1 %v14847_v27 }
 0x762   : > { %13832 = vmatprep.subr.bf16.mxu1 %v15435_v18  ;;  %13334 = vmatpush3.bf16.msra.mxu0 %v14877_v51  ;;  %v14879_v51 = vld [vmem:[%s15758_s28 + $0x760] sm:$0xff]  }
 0x763   : > { %v13084_v52 = vpop.f32.mrb[4].mxu1  ;;  %13335 = vmatprep.subr.bf16.mxu0 %v14878_v61 }
 0x764   : > { %v13085_v15 = vpop.f32.mrb[5].mxu1 }
 0x765   : > { %v13086_v50 = vadd.f32 %v13085_v15, %v13084_v52  ;;  %v13087_v44 = vpop.f32.mrb[6].mxu1  ;;  %13833 = vmatpush3.bf16.msra.mxu1 %v14849_v8  ;;  %v14870_v8 = vld [vmem:[%s15758_s28 + $0x6a0] sm:$0xff]   ;;  %v6888_v52 = vrot.slane %v6885_v1, 7 }
 0x766   : > { %v13088_v41 = vpop.f32.mrb[7].mxu1  ;;  %13300 = vmatprep.subr.bf16.mxu1 %v14851_v58  ;;  %13336 = vmatpush3.bf16.msra.mxu0 %v14880_v60  ;;  %v6882_v58 = vunpack.c.l.b16 %v6825_v22  ;;  %v14875_v44 = vld [vmem:[%s15758_s28 + $0x668] sm:$0xff]   ;;  %v14891_v1 = vld [vmem:[%s15758_s28 + $0x780] sm:$0xff]  }
 0x767   : > { %v4462_v48 = vadd.f32 %v13086_v50, %v16714_v31  ;;  %v7136_v31 = vrot.slane %v16724_v14, %v16318_v40  ;;  %13337 = vmatprep.subr.bf16.mxu0 %v14881_v32  ;;  %v16815_v50 = vld [vmem:[#allocation2 + $0x64] ss:$8 sm:$0x7]  ;;  %v16820_v41 = vld [vmem:[#allocation2 + $0x1b] ss:$8 sm:$0x7] }
 0x768   : > { %13835 = vmatmul.mubr.msk.bf16.vlgmr.msra.gmra.mrb[36].mxu1 %vm4185_vm13, %v6570_v63  ;;  %v16812_v63 = vld [vmem:[#allocation2 + $0x63] ss:$8 sm:$0x7]  ;;  %v6889_v56 = vsel %vm4042_vm12, %v6888_v52, %v6882_v58  ;;  %v7792_v61 = vrot.slane %v16815_v50, %v16314_v37  ;;  %v7458_v60 = vrot.slane %v16820_v41, %v16311_v33  ;;  %v14912_v58 = vld [vmem:[%s15758_s28 + $0x880] sm:$0xff]  }
 0x769   : > { %13301 = vmatpush3.bf16.msra.mxu1 %v14852_v10  ;;  %7066 = vmatprep.mubr.bf16.mxu1 %v6895_v11  ;;  %v7154_v19 = vpack.c.bf16 %v7136_v31, %v7136_v31  ;;  %v14897_v11 = vld [vmem:[%s15758_s28 + $0x818] sm:$0xff]   ;;  %v14882_v32 = vld [vmem:[%s15758_s28 + $0x768] sm:$0xff]  }
 0x76a   : > { %13302 = vmatprep.subr.bf16.mxu1 %v14854_v9  ;;  %13338 = vmatpush3.bf16.msra.mxu0 %v14883_v21  ;;  %v6894_v9 = vpack.c.b16 %v6889_v56, %v6889_v56  ;;  %v7466_v21 = vrot.slane %v16812_v63, %v16314_v37  ;;  %v14913_v56 = vld [vmem:[%s15758_s28 + $0x840] sm:$0xff]  }
 0x76b   : > { %v7211_v29 = vunpack.c.l.b16 %v7154_v19  ;;  %13339 = vmatprep.subr.bf16.mxu0 %v14884_v2  ;;  %v7479_v19 = vpack.c.bf16 %v7458_v60, %v7458_v60  ;;  %v14885_v2 = vld [vmem:[%s15758_s28 + $0x770] sm:$0xff]  }
 0x76c   : > { %v13113_v34 = vpop.f32.mrb[4].mxu0  ;;  %v14920_v60 = vld [vmem:[%s15758_s28 + $0x890] sm:$0xff]  }
 0x76d   : > { %13303 = vmatpush3.bf16.msra.mxu1 %v14855_v53  ;;  %v13114_v27 = vpop.f32.mrb[5].mxu0  ;;  %v7214_v55 = vrot.slane %v7211_v29, 7  ;;  %v7470_v53 = vrot.slane %v16812_v63, %v16311_v33 }
 0x76e   : > { %13304 = vmatprep.subr.bf16.mxu1 %v14857_v13  ;;  %v16802_v4 = vadd.f32 %v13114_v27, %v13113_v34  ;;  %13340 = vmatpush3.bf16.msra.mxu0 %v14886_v39  ;;  %v13116_v47 = vpop.f32.mrb[6].mxu0  ;;  %v7144_v13 = vrot.slane %v16724_v14, %v16311_v33  ;;  %v14888_v27 = vld [vmem:[%s15758_s28 + $0x778] sm:$0xff]  }
 0x76f   : > { %13341 = vmatprep.subr.bf16.mxu0 %v14887_v24  ;;  %v13117_v49 = vpop.f32.mrb[7].mxu0  ;;  %v7215_v35 = vsel %vm4042_vm12, %v7214_v55, %v7208_v45  ;;  %v7482_v31 = vpack.c.bf16 %v7470_v53, %v7470_v53  ;;  %v7454_v24 = vrot.slane %v16820_v41, %v16314_v37  ;;  %v14895_v53 = vld [vmem:[%s15758_s28 + $0x7d0] sm:$0xff]  }
 0x770   : > { %v7220_v15 = vpack.c.b16 %v7215_v35, %v7215_v35  ;;  %v7156_v14 = vpack.c.bf16 %v7144_v13, %v7144_v13 }
 0x771   : > { %13305 = vmatpush3.bf16.msra.mxu1 %v14858_v23  ;;  %v14900_v23 = vld [vmem:[%s15758_s28 + $0x820] sm:$0xff]   ;;  %v7539_v62 = vunpack.c.l.b16 %v7482_v31  ;;  %v7478_v49 = vpack.c.bf16 %v7454_v24, %v7454_v24  ;;  %v14898_v31 = vld [vmem:[%s15758_s28 + $0x7d8] sm:$0xff]   ;;  %v14928_v24 = vld [vmem:[%s15758_s28 + $0x8a8] sm:$0xff]  }
 0x772   : > { %13306 = vmatprep.subr.bf16.mxu1 %v14860_v5  ;;  %13342 = vmatpush3.bf16.msra.mxu0 %v14889_v43  ;;  %v7213_v29 = vunpack.c.l.b16 %v7156_v14  ;;  %v14922_v14 = vld [vmem:[%s15758_s28 + $0x898] sm:$0xff]  }
 0x773   : > { %13343 = vmatprep.subr.bf16.mxu0 %v14890_v30 }
 0x774   : > { %v7218_v30 = vrot.slane %v7213_v29, 7 }
 0x775   : > { %13307 = vmatpush3.bf16.msra.mxu1 %v14861_v20  ;;  %v7807_v20 = vpack.c.bf16 %v7792_v61, %v7792_v61 }
 0x776   : > { %13308 = vmatprep.subr.bf16.mxu1 %v14863_v17  ;;  %13344 = vmatpush3.bf16.msra.mxu0 %v14892_v28  ;;  %v7132_v17 = vrot.slane %v16722_v57, %v16311_v33  ;;  %v7536_v57 = vunpack.c.l.b16 %v7479_v19  ;;  %v14924_v19 = vld [vmem:[%s15758_s28 + $0x858] sm:$0xff]  }
 0x777   : > { %13870 = vmatprep.subr.bf16.mxu0 %v15435_v18  ;;  %v7864_v39 = vunpack.c.l.b16 %v7807_v20  ;;  %v14921_v20 = vld [vmem:[%s15758_s28 + $0x850] sm:$0xff]  }
 0x778   : > { %v7153_v43 = vpack.c.bf16 %v7132_v17, %v7132_v17  ;;  %v14904_v17 = vld [vmem:[%s15758_s28 + $0x7e8] sm:$0xff]  }
 0x779   : > { %13309 = vmatpush3.bf16.msra.mxu1 %v14864_v3  ;;  %7393 = vmatmul.mubr.bf16.vlgmr.msra.gmra.mrb[36].mxu0 %v7220_v15  ;;  %v7868_v47 = vrot.slane %v7864_v39, 7 }
 0x77a   : > { %13310 = vmatprep.subr.bf16.mxu1 %v14866_v25  ;;  %13871 = vmatpush3.bf16.msra.mxu0 %v14894_v36  ;;  %v7481_v25 = vpack.c.bf16 %v7466_v21, %v7466_v21  ;;  %v7535_v36 = vunpack.c.l.b16 %v7478_v49  ;;  %v14901_v21 = vld [vmem:[%s15758_s28 + $0x7e0] sm:$0xff]  }
 0x77b   : > { %v4501_v0 = vpop.f32.mrb[8].mxu1  ;;  %13882 = vmatprep.mubr.msk.bf16.mxu0 %vm15436_vm11, %v15435_v18  ;;  %13872 = vmatprep.subr.bf16.mxu0 %v15435_v18 }
 0x77c   : > { %v16806_v46 = vadd.f32 %v4501_v0, %v4462_v48  ;;  %v13724_v54 = vpop.f32.mrb[9].mxu1  ;;  %v16827_v48 = vld [vmem:[#allocation2 + $0x1c] ss:$8 sm:$0x7] }
 0x77d   : > { %v4504_v16 = vpop.f32.mrb[10].mxu1  ;;  %13311 = vmatpush3.bf16.msra.mxu1 %v14867_v38  ;;  %v7780_v5 = vrot.slane %v16827_v48, %v16314_v37  ;;  %v7544_v38 = vrot.slane %v7539_v62, 7  ;;  %v7788_v62 = vrot.slane %v16815_v50, %v16318_v40  ;;  %v7776_v39 = vrot.slane %v16827_v48, %v16318_v40 }
 0x77e   : > { %v13725_v10 = vpop.f32.mrb[11].mxu1  ;;  %13312 = vmatprep.subr.bf16.mxu1 %v14870_v8  ;;  %13873 = vmatpush3.bf16.msra.mxu0 %v14897_v11  ;;  %v7538_v8 = vunpack.c.l.b16 %v7481_v25  ;;  %v7210_v16 = vunpack.c.l.b16 %v7153_v43  ;;  %v14907_v25 = vld [vmem:[%s15758_s28 + $0x7f0] sm:$0xff]   ;;  %v7450_v43 = vrot.slane %v16820_v41, %v16318_v40  ;;  %v14911_v41 = vld [vmem:[%s15758_s28 + $0x7b8] sm:$0xff]  }
 0x77f   : > { %13874 = vmatprep.subr.bf16.mxu0 %v15435_v18  ;;  %v7804_v3 = vpack.c.bf16 %v7780_v5, %v7780_v5  ;;  %v7545_v28 = vsel %vm4042_vm12, %v7544_v38, %v7536_v57  ;;  %v14899_v5 = vld [vmem:[%s15758_s28 + $0x798] sm:$0xff]   ;;  %v7806_v29 = vpack.c.bf16 %v7788_v62, %v7788_v62  ;;  %v14930_v57 = vld [vmem:[%s15758_s28 + $0x868] sm:$0xff]   ;;  %v7803_v38 = vpack.c.bf16 %v7776_v39, %v7776_v39  ;;  %v14944_v62 = vld [vmem:[%s15758_s28 + $0x980] sm:$0xff]  }
 0x780   : > { %v7548_v15 = vpack.c.b16 %v7545_v28, %v7545_v28  ;;  %v7219_v11 = vsel %vm4042_vm12, %v7218_v30, %v7210_v16 }
 0x781   : > { %13313 = vmatpush3.bf16.msra.mxu1 %v14871_v26  ;;  %v7861_v55 = vunpack.c.l.b16 %v7804_v3  ;;  %v14909_v26 = vld [vmem:[%s15758_s28 + $0x838] sm:$0xff]   ;;  %v7222_v13 = vpack.c.b16 %v7219_v11, %v7219_v11  ;;  %v14927_v3 = vld [vmem:[%s15758_s28 + $0x860] sm:$0xff]   ;;  %v7860_v49 = vunpack.c.l.b16 %v7803_v38 }
 0x782   : > { %13314 = vmatprep.subr.bf16.mxu1 %v14874_v12  ;;  %13875 = vmatpush3.bf16.msra.mxu0 %v14900_v23  ;;  %v14893_v12 = vld [vmem:[%s15758_s28 + $0x788] sm:$0xff]  }
 0x783   : > { %13876 = vmatprep.subr.bf16.mxu0 %v15435_v18  ;;  %v7869_v52 = vsel %vm4042_vm12, %v7868_v47, %v7861_v55  ;;  %v14917_v23 = vld [vmem:[%s15758_s28 + $0x848] sm:$0xff]   ;;  %v14910_v55 = vld [vmem:[%s15758_s28 + $0x7f8] sm:$0xff]  }
 0x784   : > { %v16854_v6 = vpop.f32.mrb[8].mxu0 }
 0x785   : > { %13315 = vmatpush3.bf16.msra.mxu1 %v14875_v44  ;;  %v13756_v7 = vpop.f32.mrb[9].mxu0  ;;  %v7542_v44 = vrot.slane %v7538_v8, 7 }
 0x786   : > { %13854 = vmatprep.subr.bf16.mxu1 %v15435_v18  ;;  %13877 = vmatpush3.bf16.msra.mxu0 %v14903_v59  ;;  %v5155_v34 = vpop.f32.mrb[10].mxu0  ;;  %v14902_v59 = vld [vmem:[%s15758_s28 + $0x7a0] sm:$0xff]   ;;  %v7462_v7 = vrot.slane %v16812_v63, %v16318_v40  ;;  %v14931_v63 = vld [vmem:[%s15758_s28 + $0x8b0] sm:$0xff]  }
 0x787   : > { %13878 = vmatprep.subr.bf16.mxu0 %v15435_v18  ;;  %v13757_v45 = vpop.f32.mrb[11].mxu0  ;;  %v7543_v61 = vsel %vm4042_vm12, %v7542_v44, %v7535_v36  ;;  %v14908_v34 = vld [vmem:[%s15758_s28 + $0x7b0] sm:$0xff]  }
 0x788   : > { %7067 = vmatmul.mubr.bf16.vlgmr.msra.gmra.mrb[40].mxu1 %v6894_v9  ;;  %v7873_v9 = vpack.c.b16 %v7869_v52, %v7869_v52  ;;  %v7480_v45 = vpack.c.bf16 %v7462_v7, %v7462_v7  ;;  %v14915_v52 = vld [vmem:[%s15758_s28 + $0x7c0] sm:$0xff]   ;;  %v14947_v7 = vld [vmem:[%s15758_s28 + $0x988] sm:$0xff]  }
 0x789   : > { %13855 = vmatpush3.bf16.msra.mxu1 %v14879_v51  ;;  %13866 = vmatprep.mubr.msk.bf16.mxu1 %vm15436_vm11, %v15435_v18  ;;  %v14896_v51 = vld [vmem:[%s15758_s28 + $0x790] sm:$0xff]  }
 0x78a   : > { %13856 = vmatprep.subr.bf16.mxu1 %v15435_v18  ;;  %13879 = vmatpush3.bf16.msra.mxu0 %v14906_v42  ;;  %v14905_v42 = vld [vmem:[%s15758_s28 + $0x7a8] sm:$0xff]   ;;  %v7537_v28 = vunpack.c.l.b16 %v7480_v45 }
 0x78b   : > { %13880 = vmatprep.subr.bf16.mxu0 %v15435_v18 }
 0x78d   : > { %13857 = vmatpush3.bf16.msra.mxu1 %v14882_v32  ;;  %v7547_v32 = vpack.c.b16 %v7543_v61, %v7543_v61  ;;  %v16921_v61 = vld [vmem:[#allocation2 + $0x65] ss:$8 sm:$0x7] }
 0x78e   : > { %13858 = vmatprep.subr.bf16.mxu1 %v15435_v18  ;;  %13881 = vmatpush3.bf16.msra.mxu0 %v14909_v26  ;;  %v7477_v26 = vpack.c.bf16 %v7450_v43, %v7450_v43 }
 0x78f   : > { %13387 = vmatprep.subr.bf16.mxu0 %v14912_v58 }
 0x791   : > { %13859 = vmatpush3.bf16.msra.mxu1 %v14885_v2  ;;  %13883 = vmatmul.mubr.msk.bf16.vlgmr.msra.gmra.mrb[40].mxu0 %vm4185_vm13, %v7548_v15  ;;  %v14925_v2 = vld [vmem:[%s15758_s28 + $0x8a0] sm:$0xff]  }
 0x792   : > { %13860 = vmatprep.subr.bf16.mxu1 %v15435_v18  ;;  %13388 = vmatpush3.bf16.msra.mxu0 %v14913_v56  ;;  %v7534_v56 = vunpack.c.l.b16 %v7477_v26 }
 0x793   : > { %v4826_v22 = vpop.f32.mrb[12].mxu1  ;;  %8044 = vmatprep.mubr.bf16.mxu0 %v7873_v9  ;;  %v7540_v9 = vrot.slane %v7537_v28, 7 }
 0x794   : > { %v4827_v0 = vadd.f32 %v16802_v4, %v4826_v22  ;;  %v13740_v54 = vpop.f32.mrb[13].mxu1 }
 0x795   : > { %v4829_v35 = vpop.f32.mrb[14].mxu1  ;;  %13861 = vmatpush3.bf16.msra.mxu1 %v14888_v27  ;;  %v7863_v27 = vunpack.c.l.b16 %v7806_v29  ;;  %v14914_v54 = vld [vmem:[%s15758_s28 + $0x800] sm:$0xff]  }
 0x796   : > { %v16870_v10 = vadd.f32 %v4827_v0, %v16806_v46  ;;  %v13741_v4 = vpop.f32.mrb[15].mxu1  ;;  %13862 = vmatprep.subr.bf16.mxu1 %v15435_v18  ;;  %v14916_v46 = vld [vmem:[%s15758_s28 + $0x888] sm:$0xff]   ;;  %v14934_v35 = vld [vmem:[%s15758_s28 + $0x8b8] sm:$0xff]  }
 0x797   : > { %13389 = vmatprep.subr.bf16.mxu0 %v14916_v46  ;;  %v7866_v8 = vrot.slane %v7863_v27, 7  ;;  %v14918_v46 = vld [vmem:[%s15758_s28 + $0x808] sm:$0xff]  }
 0x798   : > { %13390 = vmatpush3.bf16.msra.mxu0 %v14917_v23  ;;  %v16924_v23 = vld [vmem:[#allocation2 + $0x66] ss:$8 sm:$0x7] }
 0x799   : > { %13863 = vmatpush3.bf16.msra.mxu1 %v14891_v1  ;;  %13391 = vmatprep.subr.bf16.mxu0 %v14920_v60  ;;  %v14933_v1 = vld [vmem:[%s15758_s28 + $0x870] sm:$0xff]   ;;  %v7867_v15 = vsel %vm4042_vm12, %v7866_v8, %v7860_v49 }
 0x79a   : > { %13864 = vmatprep.subr.bf16.mxu1 %v15435_v18 }
 0x79c   : > { %13392 = vmatpush3.bf16.msra.mxu0 %v14921_v20  ;;  %v14941_v20 = vld [vmem:[%s15758_s28 + $0x978] sm:$0xff]  }
 0x79d   : > { %13865 = vmatpush3.bf16.msra.mxu1 %v14893_v12  ;;  %13393 = vmatprep.subr.bf16.mxu0 %v14922_v14  ;;  %v14936_v12 = vld [vmem:[%s15758_s28 + $0x878] sm:$0xff]   ;;  %v14923_v14 = vld [vmem:[%s15758_s28 + $0x8c0] sm:$0xff]  }
 0x79e   : > { %13358 = vmatprep.subr.bf16.mxu1 %v14895_v53 }
 0x7a0   : > { %13867 = vmatmul.mubr.msk.bf16.vlgmr.msra.gmra.mrb[44].mxu1 %vm4185_vm13, %v7222_v13  ;;  %13394 = vmatpush3.bf16.msra.mxu0 %v14924_v19  ;;  %v14938_v13 = vld [vmem:[%s15758_s28 + $0x970] sm:$0xff]   ;;  %v7796_v19 = vrot.slane %v16815_v50, %v16311_v33 }
 0x7a1   : > { %13359 = vmatpush3.bf16.msra.mxu1 %v14896_v51  ;;  %7718 = vmatprep.mubr.bf16.mxu1 %v7547_v32  ;;  %v7872_v51 = vpack.c.b16 %v7867_v15, %v7867_v15  ;;  %v7541_v32 = vsel %vm4042_vm12, %v7540_v9, %v7534_v56  ;;  %v14953_v15 = vld [vmem:[%s15758_s28 + $0x998] sm:$0xff]   ;;  %v14956_v9 = vld [vmem:[%s15758_s28 + $0x9e0] sm:$0xff]  }
 0x7a2   : > { %13360 = vmatprep.subr.bf16.mxu1 %v14898_v31  ;;  %13395 = vmatprep.subr.bf16.mxu0 %v14925_v2  ;;  %v14919_v31 = vld [vmem:[%s15758_s28 + $0x7c8] sm:$0xff]   ;;  %v7808_v50 = vpack.c.bf16 %v7796_v19, %v7796_v19 }
 0x7a4   : > { %13396 = vmatpush3.bf16.msra.mxu0 %v14927_v3  ;;  %v13171_v47 = vpop.f32.mrb[12].mxu0  ;;  %v14926_v3 = vld [vmem:[%s15758_s28 + $0x8c8] sm:$0xff]   ;;  %v7865_v45 = vunpack.c.l.b16 %v7808_v50  ;;  %v14966_v50 = vld [vmem:[%s15758_s28 + $0x9f8] sm:$0xff]  }
 0x7a5   : > { %13361 = vmatpush3.bf16.msra.mxu1 %v14899_v5  ;;  %13397 = vmatprep.subr.bf16.mxu0 %v14928_v24  ;;  %v13172_v22 = vpop.f32.mrb[13].mxu0  ;;  %v7546_v5 = vpack.c.b16 %v7541_v32, %v7541_v32  ;;  %v14957_v32 = vld [vmem:[%s15758_s28 + $0x9a0] sm:$0xff]  }
 0x7a6   : > { %13362 = vmatprep.subr.bf16.mxu1 %v14901_v21  ;;  %v16911_v30 = vadd.f32 %v13172_v22, %v13171_v47  ;;  %v13174_v0 = vpop.f32.mrb[14].mxu0  ;;  %v8444_v21 = vrot.slane %v16924_v23, %v16314_v37  ;;  %v14932_v22 = vld [vmem:[%s15758_s28 + $0x8d8] sm:$0xff]  }
 0x7a7   : > { %v13175_v16 = vpop.f32.mrb[15].mxu0 }
 0x7a8   : > { %13398 = vmatpush3.bf16.msra.mxu0 %v14930_v57  ;;  %v8459_v29 = vpack.c.bf16 %v8444_v21, %v8444_v21  ;;  %v7784_v57 = vrot.slane %v16827_v48, %v16311_v33  ;;  %v7870_v16 = vrot.slane %v7865_v45, 7 }
 0x7a9   : > { %13363 = vmatpush3.bf16.msra.mxu1 %v14902_v59  ;;  %13399 = vmatprep.subr.bf16.mxu0 %v14931_v63  ;;  %v16944_v59 = vld [vmem:[#allocation2 + $0x1e] ss:$8 sm:$0x7] }
 0x7aa   : > { %13364 = vmatprep.subr.bf16.mxu1 %v14904_v17  ;;  %v8432_v39 = vrot.slane %v16944_v59, %v16314_v37  ;;  %v8516_v27 = vunpack.c.l.b16 %v8459_v29  ;;  %v7805_v0 = vpack.c.bf16 %v7784_v57, %v7784_v57  ;;  %v14965_v29 = vld [vmem:[%s15758_s28 + $0x9b0] sm:$0xff]   ;;  %v14948_v57 = vld [vmem:[%s15758_s28 + $0x948] sm:$0xff]   ;;  %v8428_v45 = vrot.slane %v16944_v59, %v16318_v40 }
 0x7ac   : > { %13400 = vmatpush3.bf16.msra.mxu0 %v14933_v1  ;;  %v8456_v38 = vpack.c.bf16 %v8432_v39, %v8432_v39  ;;  %v14950_v1 = vld [vmem:[%s15758_s28 + $0x990] sm:$0xff]   ;;  %v8520_v26 = vrot.slane %v8516_v27, 7  ;;  %v7862_v56 = vunpack.c.l.b16 %v7805_v0  ;;  %v14943_v39 = vld [vmem:[%s15758_s28 + $0x8f8] sm:$0xff]   ;;  %v14971_v27 = vld [vmem:[%s15758_s28 + $0x9c0] sm:$0xff]  }
 0x7ad   : > { %13365 = vmatpush3.bf16.msra.mxu1 %v14905_v42  ;;  %13401 = vmatprep.subr.bf16.mxu0 %v14934_v35  ;;  %v8118_v42 = vrot.slane %v16921_v61, %v16314_v37  ;;  %v14935_v35 = vld [vmem:[%s15758_s28 + $0x8e0] sm:$0xff]  }
 0x7ae   : > { %13366 = vmatprep.subr.bf16.mxu1 %v14907_v25 }
 0x7af   : > { %v8133_v47 = vpack.c.bf16 %v8118_v42, %v8118_v42  ;;  %v14945_v42 = vld [vmem:[%s15758_s28 + $0x940] sm:$0xff]  }
 0x7b0   : > { %13402 = vmatpush3.bf16.msra.mxu0 %v14936_v12 }
 0x7b1   : > { %13367 = vmatpush3.bf16.msra.mxu1 %v14908_v34  ;;  %13902 = vmatprep.subr.bf16.mxu0 %v15435_v18  ;;  %v14929_v34 = vld [vmem:[%s15758_s28 + $0x8d0] sm:$0xff]  }
 0x7b2   : > { %13368 = vmatprep.subr.bf16.mxu1 %v14910_v55 }
 0x7b3   : > { %v13142_v58 = vpop.f32.mrb[16].mxu1  ;;  %8045 = vmatmul.mubr.bf16.vlgmr.msra.gmra.mrb[44].mxu0 %v7872_v51 }
 0x7b4   : > { %v13143_v4 = vpop.f32.mrb[17].mxu1  ;;  %13903 = vmatpush3.bf16.msra.mxu0 %v14938_v13  ;;  %13914 = vmatprep.mubr.msk.bf16.mxu0 %vm15436_vm11, %v15435_v18 }
 0x7b5   : > { %v13144_v36 = vadd.f32 %v13143_v4, %v13142_v58  ;;  %v13145_v44 = vpop.f32.mrb[18].mxu1  ;;  %13369 = vmatpush3.bf16.msra.mxu1 %v14911_v41  ;;  %13904 = vmatprep.subr.bf16.mxu0 %v15435_v18 }
 0x7b6   : > { %v13146_v11 = vpop.f32.mrb[19].mxu1  ;;  %13370 = vmatprep.subr.bf16.mxu1 %v14914_v54  ;;  %v8513_v54 = vunpack.c.l.b16 %v8456_v38  ;;  %v14949_v38 = vld [vmem:[%s15758_s28 + $0x908] sm:$0xff]  }
 0x7b7   : > { %v5153_v53 = vadd.f32 %v13144_v36, %v16854_v6  ;;  %v16932_v6 = vld [vmem:[#allocation2 + $0x1d] ss:$8 sm:$0x7] }
 0x7b8   : > { %13905 = vmatpush3.bf16.msra.mxu0 %v14941_v20  ;;  %v8110_v2 = vrot.slane %v16932_v6, %v16311_v33  ;;  %v8106_v55 = vrot.slane %v16932_v6, %v16314_v37  ;;  %v8521_v11 = vsel %vm4042_vm12, %v8520_v26, %v8513_v54  ;;  %v7871_v20 = vsel %vm4042_vm12, %v7870_v16, %v7862_v56  ;;  %v14975_v54 = vld [vmem:[%s15758_s28 + $0xa10] sm:$0xff]   ;;  %v14958_v56 = vld [vmem:[%s15758_s28 + $0x960] sm:$0xff]  }
 0x7b9   : > { %v16927_v60 = vadd.f32 %v5153_v53, %v16870_v10  ;;  %13371 = vmatpush3.bf16.msra.mxu1 %v14915_v52  ;;  %v8122_v10 = vrot.slane %v16921_v61, %v16311_v33  ;;  %13906 = vmatprep.subr.bf16.mxu0 %v15435_v18  ;;  %v8190_v52 = vunpack.c.l.b16 %v8133_v47  ;;  %v14937_v53 = vld [vmem:[%s15758_s28 + $0x8e8] sm:$0xff]   ;;  %v7874_v19 = vpack.c.b16 %v7871_v20, %v7871_v20  ;;  %v14977_v16 = vld [vmem:[%s15758_s28 + $0x9d0] sm:$0xff]  }
 0x7ba   : > { %13372 = vmatprep.subr.bf16.mxu1 %v14918_v46  ;;  %v8131_v24 = vpack.c.bf16 %v8110_v2, %v8110_v2  ;;  %v8130_v58 = vpack.c.bf16 %v8106_v55, %v8106_v55  ;;  %v14964_v2 = vld [vmem:[%s15758_s28 + $0x9f0] sm:$0xff]   ;;  %v8114_v55 = vrot.slane %v16921_v61, %v16318_v40  ;;  %v14972_v47 = vld [vmem:[%s15758_s28 + $0xa08] sm:$0xff]   ;;  %v8102_v0 = vrot.slane %v16932_v6, %v16318_v40  ;;  %v14954_v61 = vld [vmem:[%s15758_s28 + $0x958] sm:$0xff]  }
 0x7bb   : > { %v8134_v17 = vpack.c.bf16 %v8122_v10, %v8122_v10  ;;  %v14939_v10 = vld [vmem:[%s15758_s28 + $0x930] sm:$0xff]  }
 0x7bc   : > { %13907 = vmatpush3.bf16.msra.mxu0 %v14944_v62  ;;  %v16966_v43 = vpop.f32.mrb[16].mxu0  ;;  %v8188_v48 = vunpack.c.l.b16 %v8131_v24  ;;  %v8187_v13 = vunpack.c.l.b16 %v8130_v58  ;;  %v14961_v62 = vld [vmem:[%s15758_s28 + $0x9a8] sm:$0xff]   ;;  %v14968_v24 = vld [vmem:[%s15758_s28 + $0x9b8] sm:$0xff]   ;;  %v8129_v6 = vpack.c.bf16 %v8102_v0, %v8102_v0 }
 0x7bd   : > { %13373 = vmatpush3.bf16.msra.mxu1 %v14919_v31  ;;  %v8191_v25 = vunpack.c.l.b16 %v8134_v17  ;;  %13908 = vmatprep.subr.bf16.mxu0 %v15435_v18  ;;  %v13788_v63 = vpop.f32.mrb[17].mxu0  ;;  %v8194_v31 = vrot.slane %v8190_v52, 7  ;;  %v14942_v17 = vld [vmem:[%s15758_s28 + $0x938] sm:$0xff]  }
 0x7be   : > { %13886 = vmatprep.subr.bf16.mxu1 %v15435_v18  ;;  %v5807_v49 = vpop.f32.mrb[18].mxu0 }
 0x7bf   : > { %v8196_v8 = vrot.slane %v8191_v25, 7  ;;  %v13789_v41 = vpop.f32.mrb[19].mxu0  ;;  %v8195_v21 = vsel %vm4042_vm12, %v8194_v31, %v8187_v13  ;;  %v8440_v25 = vrot.slane %v16924_v23, %v16318_v40  ;;  %v14974_v49 = vld [vmem:[%s15758_s28 + $0x9c8] sm:$0xff]   ;;  %v14959_v31 = vld [vmem:[%s15758_s28 + $0x920] sm:$0xff]  }
 0x7c0   : > { %7719 = vmatmul.mubr.bf16.vlgmr.msra.gmra.mrb[48].mxu1 %v7546_v5  ;;  %13909 = vmatpush3.bf16.msra.mxu0 %v14947_v7  ;;  %v8525_v5 = vpack.c.b16 %v8521_v11, %v8521_v11  ;;  %v14946_v7 = vld [vmem:[%s15758_s28 + $0x900] sm:$0xff]   ;;  %v8132_v41 = vpack.c.bf16 %v8114_v55, %v8114_v55  ;;  %v14991_v55 = vld [vmem:[%s15758_s28 + $0xae8] sm:$0xff]  }
 0x7c1   : > { %13887 = vmatpush3.bf16.msra.mxu1 %v14923_v14  ;;  %13898 = vmatprep.mubr.msk.bf16.mxu1 %vm15436_vm11, %v15435_v18  ;;  %v8197_v36 = vsel %vm4042_vm12, %v8196_v8, %v8188_v48  ;;  %v14940_v14 = vld [vmem:[%s15758_s28 + $0x8f0] sm:$0xff]   ;;  %v8458_v63 = vpack.c.bf16 %v8440_v25, %v8440_v25  ;;  %v8455_v48 = vpack.c.bf16 %v8428_v45, %v8428_v45  ;;  %v14988_v25 = vld [vmem:[%s15758_s28 + $0xae0] sm:$0xff]  }
 0x7c2   : > { %13888 = vmatprep.subr.bf16.mxu1 %v15435_v18  ;;  %13910 = vmatprep.subr.bf16.mxu0 %v15435_v18  ;;  %v8200_v51 = vpack.c.b16 %v8197_v36, %v8197_v36  ;;  %v14978_v36 = vld [vmem:[%s15758_s28 + $0xa18] sm:$0xff]  }
 0x7c3   : > { %v8515_v8 = vunpack.c.l.b16 %v8458_v63  ;;  %v8512_v52 = vunpack.c.l.b16 %v8455_v48 }
 0x7c4   : > { %13911 = vmatpush3.bf16.msra.mxu0 %v14950_v1  ;;  %v14952_v1 = vld [vmem:[%s15758_s28 + $0x910] sm:$0xff]  }
 0x7c5   : > { %13889 = vmatpush3.bf16.msra.mxu1 %v14926_v3  ;;  %13912 = vmatprep.subr.bf16.mxu0 %v15435_v18  ;;  %v8199_v3 = vpack.c.b16 %v8195_v21, %v8195_v21  ;;  %v17033_v21 = vld [vmem:[#allocation2 + $0x67] ss:$8 sm:$0x7] }
 0x7c6   : > { %13890 = vmatprep.subr.bf16.mxu1 %v15435_v18  ;;  %v8770_v63 = vrot.slane %v17033_v21, %v16314_v37 }
 0x7c8   : > { %13913 = vmatpush3.bf16.msra.mxu0 %v14953_v15  ;;  %v8189_v15 = vunpack.c.l.b16 %v8132_v41  ;;  %v14976_v41 = vld [vmem:[%s15758_s28 + $0xa38] sm:$0xff]  }
 0x7c9   : > { %13891 = vmatpush3.bf16.msra.mxu1 %v14929_v34  ;;  %13445 = vmatprep.subr.bf16.mxu0 %v14956_v9  ;;  %v14969_v34 = vld [vmem:[%s15758_s28 + $0xa00] sm:$0xff]  }
 0x7ca   : > { %13892 = vmatprep.subr.bf16.mxu1 %v15435_v18 }
 0x7cb   : > { %v5478_v28 = vpop.f32.mrb[20].mxu1  ;;  %13915 = vmatmul.mubr.msk.bf16.vlgmr.msra.gmra.mrb[48].mxu0 %vm4185_vm13, %v8200_v51 }
 0x7cc   : > { %v5479_v4 = vadd.f32 %v16911_v30, %v5478_v28  ;;  %v13772_v12 = vpop.f32.mrb[21].mxu1  ;;  %13446 = vmatpush3.bf16.msra.mxu0 %v14957_v32  ;;  %8696 = vmatprep.mubr.bf16.mxu0 %v8525_v5  ;;  %v14955_v28 = vld [vmem:[%s15758_s28 + $0x918] sm:$0xff]   ;;  %v8186_v32 = vunpack.c.l.b16 %v8129_v6  ;;  %v8192_v5 = vrot.slane %v8189_v15, 7 }
 0x7cd   : > { %v5481_v44 = vpop.f32.mrb[22].mxu1  ;;  %13893 = vmatpush3.bf16.msra.mxu1 %v14932_v22  ;;  %v14951_v22 = vld [vmem:[%s15758_s28 + $0x950] sm:$0xff]  }
 0x7ce   : > { %v16982_v46 = vadd.f32 %v5479_v4, %v16927_v60  ;;  %v13773_v30 = vpop.f32.mrb[23].mxu1  ;;  %13894 = vmatprep.subr.bf16.mxu1 %v15435_v18  ;;  %v14960_v60 = vld [vmem:[%s15758_s28 + $0x9e8] sm:$0xff]   ;;  %v8518_v4 = vrot.slane %v8515_v8, 7 }
 0x7cf   : > { %13447 = vmatprep.subr.bf16.mxu0 %v14960_v60  ;;  %v14980_v30 = vld [vmem:[%s15758_s28 + $0x9d8] sm:$0xff]   ;;  %v14962_v60 = vld [vmem:[%s15758_s28 + $0x968] sm:$0xff]  }
 0x7d0   : > { %13448 = vmatpush3.bf16.msra.mxu0 %v14961_v62  ;;  %v17036_v62 = vld [vmem:[#allocation2 + $0x78] ss:$8 sm:$0x7] }
 0x7d1   : > { %13895 = vmatpush3.bf16.msra.mxu1 %v14935_v35  ;;  %13449 = vmatprep.subr.bf16.mxu0 %v14964_v2 }
 0x7d2   : > { %13896 = vmatprep.subr.bf16.mxu1 %v15435_v18 }
 0x7d4   : > { %13450 = vmatpush3.bf16.msra.mxu0 %v14965_v29  ;;  %v14985_v29 = vld [vmem:[%s15758_s28 + $0xad8] sm:$0xff]  }
 0x7d5   : > { %13897 = vmatpush3.bf16.msra.mxu1 %v14937_v53  ;;  %13451 = vmatprep.subr.bf16.mxu0 %v14966_v50  ;;  %v8519_v53 = vsel %vm4042_vm12, %v8518_v4, %v8512_v52  ;;  %v14967_v50 = vld [vmem:[%s15758_s28 + $0xa20] sm:$0xff]  }
 0x7d6   : > { %13416 = vmatprep.subr.bf16.mxu1 %v14939_v10 }
 0x7d8   : > { %13899 = vmatmul.mubr.msk.bf16.vlgmr.msra.gmra.mrb[52].mxu1 %vm4185_vm13, %v7874_v19  ;;  %13452 = vmatpush3.bf16.msra.mxu0 %v14968_v24  ;;  %v14982_v19 = vld [vmem:[%s15758_s28 + $0xad0] sm:$0xff]   ;;  %v8448_v24 = vrot.slane %v16924_v23, %v16311_v33 }
 0x7d9   : > { %13417 = vmatpush3.bf16.msra.mxu1 %v14940_v14  ;;  %8370 = vmatprep.mubr.bf16.mxu1 %v8199_v3  ;;  %v8524_v14 = vpack.c.b16 %v8519_v53, %v8519_v53  ;;  %v8193_v3 = vsel %vm4042_vm12, %v8192_v5, %v8186_v32  ;;  %v15000_v5 = vld [vmem:[%s15758_s28 + $0xb40] sm:$0xff]  }
 0x7da   : > { %13418 = vmatprep.subr.bf16.mxu1 %v14942_v17  ;;  %13453 = vmatprep.subr.bf16.mxu0 %v14969_v34  ;;  %v14963_v17 = vld [vmem:[%s15758_s28 + $0x928] sm:$0xff]   ;;  %v8460_v23 = vpack.c.bf16 %v8448_v24, %v8448_v24 }
 0x7dc   : > { %13454 = vmatpush3.bf16.msra.mxu0 %v14971_v27  ;;  %v13229_v26 = vpop.f32.mrb[20].mxu0 }
 0x7dd   : > { %13419 = vmatpush3.bf16.msra.mxu1 %v14943_v39  ;;  %13455 = vmatprep.subr.bf16.mxu0 %v14972_v47  ;;  %v13230_v35 = vpop.f32.mrb[21].mxu0  ;;  %v8198_v39 = vpack.c.b16 %v8193_v3, %v8193_v3  ;;  %v15001_v3 = vld [vmem:[%s15758_s28 + $0xb00] sm:$0xff]  }
 0x7de   : > { %13420 = vmatprep.subr.bf16.mxu1 %v14945_v42  ;;  %v17024_v58 = vadd.f32 %v13230_v35, %v13229_v26  ;;  %v13232_v12 = vpop.f32.mrb[22].mxu0  ;;  %v9096_v42 = vrot.slane %v17036_v62, %v16314_v37  ;;  %v8785_v35 = vpack.c.bf16 %v8770_v63, %v8770_v63  ;;  %v14989_v63 = vld [vmem:[%s15758_s28 + $0xaa0] sm:$0xff]  }
 0x7df   : > { %v13233_v44 = vpop.f32.mrb[23].mxu0 }
 0x7e0   : > { %13456 = vmatpush3.bf16.msra.mxu0 %v14974_v49  ;;  %v9111_v45 = vpack.c.bf16 %v9096_v42, %v9096_v42  ;;  %v8436_v49 = vrot.slane %v16944_v59, %v16311_v33  ;;  %v14979_v44 = vld [vmem:[%s15758_s28 + $0xa40] sm:$0xff]  }
 0x7e1   : > { %13421 = vmatpush3.bf16.msra.mxu1 %v14946_v7  ;;  %13457 = vmatprep.subr.bf16.mxu0 %v14975_v54  ;;  %v17056_v7 = vld [vmem:[#allocation2 + $0x30] ss:$8 sm:$0x7]  ;;  %v8517_v54 = vunpack.c.l.b16 %v8460_v23 }
 0x7e2   : > { %13422 = vmatprep.subr.bf16.mxu1 %v14948_v57  ;;  %v9084_v27 = vrot.slane %v17056_v7, %v16314_v37  ;;  %v9168_v8 = vunpack.c.l.b16 %v9111_v45  ;;  %v8457_v4 = vpack.c.bf16 %v8436_v49, %v8436_v49  ;;  %v15009_v45 = vld [vmem:[%s15758_s28 + $0xb10] sm:$0xff]   ;;  %v15010_v23 = vld [vmem:[%s15758_s28 + $0xb58] sm:$0xff]   ;;  %v14992_v49 = vld [vmem:[%s15758_s28 + $0xaa8] sm:$0xff]  }
 0x7e4   : > { %13458 = vmatpush3.bf16.msra.mxu0 %v14977_v16  ;;  %v9108_v48 = vpack.c.bf16 %v9084_v27, %v9084_v27  ;;  %v9172_v15 = vrot.slane %v9168_v8, 7  ;;  %v8514_v32 = vunpack.c.l.b16 %v8457_v4  ;;  %v14987_v27 = vld [vmem:[%s15758_s28 + $0xa58] sm:$0xff]   ;;  %v15015_v8 = vld [vmem:[%s15758_s28 + $0xb20] sm:$0xff]  }
 0x7e5   : > { %13423 = vmatpush3.bf16.msra.mxu1 %v14949_v38  ;;  %13459 = vmatprep.subr.bf16.mxu0 %v14978_v36  ;;  %v14970_v38 = vld [vmem:[%s15758_s28 + $0xa28] sm:$0xff]  }
 0x7e6   : > { %13424 = vmatprep.subr.bf16.mxu1 %v14951_v22  ;;  %v9165_v6 = vunpack.c.l.b16 %v9108_v48  ;;  %v14993_v48 = vld [vmem:[%s15758_s28 + $0xa68] sm:$0xff]  }
 0x7e8   : > { %13460 = vmatpush3.bf16.msra.mxu0 %v14980_v30 }
 0x7e9   : > { %13425 = vmatpush3.bf16.msra.mxu1 %v14952_v1  ;;  %13934 = vmatprep.subr.bf16.mxu0 %v15435_v18  ;;  %v14973_v1 = vld [vmem:[%s15758_s28 + $0xa30] sm:$0xff]  }
 0x7ea   : > { %13426 = vmatprep.subr.bf16.mxu1 %v14954_v61  ;;  %v14994_v61 = vld [vmem:[%s15758_s28 + $0xaf0] sm:$0xff]  }
 0x7eb   : > { %v13200_v9 = vpop.f32.mrb[24].mxu1  ;;  %8697 = vmatmul.mubr.bf16.vlgmr.msra.gmra.mrb[52].mxu0 %v8524_v14 }
 0x7ec   : > { %v13201_v11 = vpop.f32.mrb[25].mxu1  ;;  %13935 = vmatpush3.bf16.msra.mxu0 %v14982_v19  ;;  %13946 = vmatprep.mubr.msk.bf16.mxu0 %vm15436_vm11, %v15435_v18 }
 0x7ed   : > { %v13202_v51 = vadd.f32 %v13201_v11, %v13200_v9  ;;  %v13203_v13 = vpop.f32.mrb[26].mxu1  ;;  %13427 = vmatpush3.bf16.msra.mxu1 %v14955_v28  ;;  %13936 = vmatprep.subr.bf16.mxu0 %v15435_v18  ;;  %v8842_v11 = vunpack.c.l.b16 %v8785_v35  ;;  %v14996_v35 = vld [vmem:[%s15758_s28 + $0xa70] sm:$0xff]  }
 0x7ee   : > { %v13204_v20 = vpop.f32.mrb[27].mxu1  ;;  %13428 = vmatprep.subr.bf16.mxu1 %v14958_v56  ;;  %v8522_v56 = vrot.slane %v8517_v54, 7 }
 0x7ef   : > { %v5805_v10 = vadd.f32 %v13202_v51, %v16966_v43  ;;  %v17044_v43 = vld [vmem:[#allocation2 + $0x1f] ss:$8 sm:$0x7]  ;;  %v14997_v51 = vld [vmem:[%s15758_s28 + $0xaf8] sm:$0xff]   ;;  %v9173_v20 = vsel %vm4042_vm12, %v9172_v15, %v9165_v6 }
 0x7f0   : > { %13937 = vmatpush3.bf16.msra.mxu0 %v14985_v29  ;;  %v8762_v34 = vrot.slane %v17044_v43, %v16311_v33  ;;  %v8758_v28 = vrot.slane %v17044_v43, %v16314_v37  ;;  %v8523_v29 = vsel %vm4042_vm12, %v8522_v56, %v8514_v32  ;;  %v8754_v4 = vrot.slane %v17044_v43, %v16318_v40  ;;  %v15019_v6 = vld [vmem:[%s15758_s28 + $0xb70] sm:$0xff]   ;;  %v15002_v32 = vld [vmem:[%s15758_s28 + $0xac0] sm:$0xff]  }
 0x7f1   : > { %v17039_v2 = vadd.f32 %v5805_v10, %v16982_v46  ;;  %13429 = vmatpush3.bf16.msra.mxu1 %v14959_v31  ;;  %v8774_v46 = vrot.slane %v17033_v21, %v16311_v33  ;;  %13938 = vmatprep.subr.bf16.mxu0 %v15435_v18  ;;  %v14981_v10 = vld [vmem:[%s15758_s28 + $0xa48] sm:$0xff]   ;;  %v8526_v24 = vpack.c.b16 %v8523_v29, %v8523_v29  ;;  %v15021_v56 = vld [vmem:[%s15758_s28 + $0xb30] sm:$0xff]  }
 0x7f2   : > { %13430 = vmatprep.subr.bf16.mxu1 %v14962_v60  ;;  %v8783_v47 = vpack.c.bf16 %v8762_v34, %v8762_v34  ;;  %v8782_v9 = vpack.c.bf16 %v8758_v28, %v8758_v28  ;;  %v15008_v34 = vld [vmem:[%s15758_s28 + $0xb50] sm:$0xff]   ;;  %v8781_v43 = vpack.c.bf16 %v8754_v4, %v8754_v4 }
 0x7f3   : > { %v8786_v57 = vpack.c.bf16 %v8774_v46, %v8774_v46  ;;  %v14983_v46 = vld [vmem:[%s15758_s28 + $0xa90] sm:$0xff]  }
 0x7f4   : > { %13939 = vmatpush3.bf16.msra.mxu0 %v14988_v25  ;;  %v17078_v0 = vpop.f32.mrb[24].mxu0  ;;  %v8840_v59 = vunpack.c.l.b16 %v8783_v47  ;;  %v8839_v19 = vunpack.c.l.b16 %v8782_v9  ;;  %v15005_v25 = vld [vmem:[%s15758_s28 + $0xb08] sm:$0xff]   ;;  %v15012_v47 = vld [vmem:[%s15758_s28 + $0xb18] sm:$0xff]   ;;  %v14995_v28 = vld [vmem:[%s15758_s28 + $0xab0] sm:$0xff]  }
 0x7f5   : > { %13431 = vmatpush3.bf16.msra.mxu1 %v14963_v17  ;;  %v8843_v22 = vunpack.c.l.b16 %v8786_v57  ;;  %13940 = vmatprep.subr.bf16.mxu0 %v15435_v18  ;;  %v13820_v26 = vpop.f32.mrb[25].mxu0  ;;  %v8846_v17 = vrot.slane %v8842_v11, 7  ;;  %v14986_v57 = vld [vmem:[%s15758_s28 + $0xa98] sm:$0xff]  }
 0x7f6   : > { %13918 = vmatprep.subr.bf16.mxu1 %v15435_v18  ;;  %v6459_v16 = vpop.f32.mrb[26].mxu0  ;;  %v15016_v26 = vld [vmem:[%s15758_s28 + $0xb68] sm:$0xff]  }
 0x7f7   : > { %v8848_v52 = vrot.slane %v8843_v22, 7  ;;  %v13821_v12 = vpop.f32.mrb[27].mxu0  ;;  %v8847_v42 = vsel %vm4042_vm12, %v8846_v17, %v8839_v19  ;;  %v9092_v22 = vrot.slane %v17036_v62, %v16318_v40  ;;  %v15018_v16 = vld [vmem:[%s15758_s28 + $0xb28] sm:$0xff]   ;;  %v15003_v17 = vld [vmem:[%s15758_s28 + $0xa80] sm:$0xff]  }
 0x7f8   : > { %8371 = vmatmul.mubr.bf16.vlgmr.msra.gmra.mrb[56].mxu1 %v8198_v39  ;;  %13941 = vmatpush3.bf16.msra.mxu0 %v14991_v55  ;;  %v9177_v39 = vpack.c.b16 %v9173_v20, %v9173_v20  ;;  %v14990_v55 = vld [vmem:[%s15758_s28 + $0xa60] sm:$0xff]  }
 0x7f9   : > { %13919 = vmatpush3.bf16.msra.mxu1 %v14967_v50  ;;  %13930 = vmatprep.mubr.msk.bf16.mxu1 %vm15436_vm11, %v15435_v18  ;;  %v8849_v13 = vsel %vm4042_vm12, %v8848_v52, %v8840_v59  ;;  %v14984_v50 = vld [vmem:[%s15758_s28 + $0xa50] sm:$0xff]   ;;  %v9110_v54 = vpack.c.bf16 %v9092_v22, %v9092_v22  ;;  %v15032_v22 = vld [vmem:[%s15758_s28 + $0xc40] sm:$0xff]  }
 0x7fa   : > { %13920 = vmatprep.subr.bf16.mxu1 %v15435_v18  ;;  %13942 = vmatprep.subr.bf16.mxu0 %v15435_v18  ;;  %v8852_v14 = vpack.c.b16 %v8849_v13, %v8849_v13  ;;  %v15022_v13 = vld [vmem:[%s15758_s28 + $0xb78] sm:$0xff]  }
 0x7fb   : > { %v9167_v52 = vunpack.c.l.b16 %v9110_v54 }
 0x7fc   : > { %13943 = vmatpush3.bf16.msra.mxu0 %v14994_v61  ;;  %v8766_v61 = vrot.slane %v17033_v21, %v16318_v40  ;;  %v14998_v21 = vld [vmem:[%s15758_s28 + $0xab8] sm:$0xff]  }
 0x7fd   : > { %13921 = vmatpush3.bf16.msra.mxu1 %v14970_v38  ;;  %13944 = vmatprep.subr.bf16.mxu0 %v15435_v18  ;;  %v8851_v38 = vpack.c.b16 %v8847_v42, %v8847_v42  ;;  %v17145_v42 = vld [vmem:[#allocation2 + $0x79] ss:$8 sm:$0x7] }
 0x7fe   : > { %13922 = vmatprep.subr.bf16.mxu1 %v15435_v18  ;;  %v8784_v12 = vpack.c.bf16 %v8766_v61, %v8766_v61  ;;  %v15035_v61 = vld [vmem:[%s15758_s28 + $0xc48] sm:$0xff]  }
 0x800   : > { %13945 = vmatpush3.bf16.msra.mxu0 %v14997_v51  ;;  %v8841_v51 = vunpack.c.l.b16 %v8784_v12  ;;  %v15020_v12 = vld [vmem:[%s15758_s28 + $0xb98] sm:$0xff]  }
 0x801   : > { %13923 = vmatpush3.bf16.msra.mxu1 %v14973_v1  ;;  %13503 = vmatprep.subr.bf16.mxu0 %v15000_v5  ;;  %v15013_v1 = vld [vmem:[%s15758_s28 + $0xb60] sm:$0xff]  }
 0x802   : > { %13924 = vmatprep.subr.bf16.mxu1 %v15435_v18 }
 0x803   : > { %v6130_v36 = vpop.f32.mrb[28].mxu1  ;;  %13947 = vmatmul.mubr.msk.bf16.vlgmr.msra.gmra.mrb[56].mxu0 %vm4185_vm13, %v8852_v14 }
 0x804   : > { %v6131_v30 = vadd.f32 %v17024_v58, %v6130_v36  ;;  %v13804_v53 = vpop.f32.mrb[29].mxu1  ;;  %13504 = vmatpush3.bf16.msra.mxu0 %v15001_v3  ;;  %9348 = vmatprep.mubr.bf16.mxu0 %v9177_v39  ;;  %v14999_v36 = vld [vmem:[%s15758_s28 + $0xa78] sm:$0xff]   ;;  %v8838_v3 = vunpack.c.l.b16 %v8781_v43  ;;  %v8844_v39 = vrot.slane %v8841_v51, 7 }
 0x805   : > { %v6133_v31 = vpop.f32.mrb[30].mxu1  ;;  %13925 = vmatpush3.bf16.msra.mxu1 %v14976_v41  ;;  %v9080_v41 = vrot.slane %v17056_v7, %v16318_v40 }
 0x806   : > { %v17094_v60 = vadd.f32 %v6131_v30, %v17039_v2  ;;  %v13805_v58 = vpop.f32.mrb[31].mxu1  ;;  %13926 = vmatprep.subr.bf16.mxu1 %v15435_v18  ;;  %v15004_v2 = vld [vmem:[%s15758_s28 + $0xb48] sm:$0xff]   ;;  %v9170_v30 = vrot.slane %v9167_v52, 7 }
 0x807   : > { %13505 = vmatprep.subr.bf16.mxu0 %v15004_v2  ;;  %v9107_v59 = vpack.c.bf16 %v9080_v41, %v9080_v41  ;;  %v15024_v58 = vld [vmem:[%s15758_s28 + $0xb38] sm:$0xff]   ;;  %v15006_v2 = vld [vmem:[%s15758_s28 + $0xac8] sm:$0xff]  }
 0x808   : > { %13506 = vmatpush3.bf16.msra.mxu0 %v15005_v25  ;;  %v17148_v25 = vld [vmem:[#allocation2 + $0x7a] ss:$8 sm:$0x7] }
 0x809   : > { %13927 = vmatpush3.bf16.msra.mxu1 %v14979_v44  ;;  %13507 = vmatprep.subr.bf16.mxu0 %v15008_v34  ;;  %v9164_v11 = vunpack.c.l.b16 %v9107_v59 }
 0x80a   : > { %13928 = vmatprep.subr.bf16.mxu1 %v15435_v18 }
 0x80c   : > { %13508 = vmatpush3.bf16.msra.mxu0 %v15009_v45  ;;  %v15029_v45 = vld [vmem:[%s15758_s28 + $0xc38] sm:$0xff]  }
 0x80d   : > { %13929 = vmatpush3.bf16.msra.mxu1 %v14981_v10  ;;  %13509 = vmatprep.subr.bf16.mxu0 %v15010_v23  ;;  %v9171_v10 = vsel %vm4042_vm12, %v9170_v30, %v9164_v11  ;;  %v17163_v23 = vld [vmem:[#allocation2 + $0x32] ss:$8 sm:$0x7] }
 0x80e   : > { %13474 = vmatprep.subr.bf16.mxu1 %v14983_v46 }
 0x810   : > { %13931 = vmatmul.mubr.msk.bf16.vlgmr.msra.gmra.mrb[60].mxu1 %vm4185_vm13, %v8526_v24  ;;  %13510 = vmatpush3.bf16.msra.mxu0 %v15012_v47  ;;  %v15026_v24 = vld [vmem:[%s15758_s28 + $0xc30] sm:$0xff]   ;;  %v9100_v47 = vrot.slane %v17036_v62, %v16311_v33  ;;  %v9422_v62 = vrot.slane %v17145_v42, %v16314_v37 }
 0x811   : > { %13475 = vmatpush3.bf16.msra.mxu1 %v14984_v50  ;;  %9022 = vmatprep.mubr.bf16.mxu1 %v8851_v38  ;;  %v9176_v50 = vpack.c.b16 %v9171_v10, %v9171_v10  ;;  %v8845_v38 = vsel %vm4042_vm12, %v8844_v39, %v8838_v3  ;;  %v15044_v39 = vld [vmem:[%s15758_s28 + $0xca0] sm:$0xff]  }
 0x812   : > { %13476 = vmatprep.subr.bf16.mxu1 %v14986_v57  ;;  %13511 = vmatprep.subr.bf16.mxu0 %v15013_v1  ;;  %v15007_v57 = vld [vmem:[%s15758_s28 + $0xa88] sm:$0xff]   ;;  %v9112_v54 = vpack.c.bf16 %v9100_v47, %v9100_v47 }
 0x814   : > { %13512 = vmatpush3.bf16.msra.mxu0 %v15015_v8  ;;  %v13287_v15 = vpop.f32.mrb[28].mxu0  ;;  %v9736_v8 = vrot.slane %v17163_v23, %v16314_v37 }
 0x815   : > { %13477 = vmatpush3.bf16.msra.mxu1 %v14987_v27  ;;  %13513 = vmatprep.subr.bf16.mxu0 %v15016_v26  ;;  %v13288_v44 = vpop.f32.mrb[29].mxu0  ;;  %v8850_v27 = vpack.c.b16 %v8845_v38, %v8845_v38 }
 0x816   : > { %13478 = vmatprep.subr.bf16.mxu1 %v14989_v63  ;;  %v17136_v9 = vadd.f32 %v13288_v44, %v13287_v15  ;;  %v13290_v53 = vpop.f32.mrb[30].mxu0  ;;  %v15011_v63 = vld [vmem:[%s15758_s28 + $0xb80] sm:$0xff]   ;;  %v9760_v59 = vpack.c.bf16 %v9736_v8, %v9736_v8  ;;  %v9169_v44 = vunpack.c.l.b16 %v9112_v54 }
 0x817   : > { %v13291_v31 = vpop.f32.mrb[31].mxu0  ;;  %v15033_v54 = vld [vmem:[%s15758_s28 + $0xc00] sm:$0xff]  }
 0x818   : > { %13514 = vmatpush3.bf16.msra.mxu0 %v15018_v16  ;;  %v9088_v16 = vrot.slane %v17056_v7, %v16311_v33  ;;  %v9817_v43 = vunpack.c.l.b16 %v9760_v59  ;;  %v9174_v10 = vrot.slane %v9169_v44, 7  ;;  %v15059_v59 = vld [vmem:[%s15758_s28 + $0xc80] sm:$0xff]   ;;  %v15062_v44 = vld [vmem:[%s15758_s28 + $0xc88] sm:$0xff]  }
 0x819   : > { %13479 = vmatpush3.bf16.msra.mxu1 %v14990_v55  ;;  %13515 = vmatprep.subr.bf16.mxu0 %v15019_v6  ;;  %v9748_v55 = vrot.slane %v17148_v25, %v16314_v37  ;;  %v15038_v6 = vld [vmem:[%s15758_s28 + $0xc50] sm:$0xff]  }
 0x81a   : > { %13480 = vmatprep.subr.bf16.mxu1 %v14992_v49  ;;  %v9109_v30 = vpack.c.bf16 %v9088_v16, %v9088_v16  ;;  %v15036_v16 = vld [vmem:[%s15758_s28 + $0xc08] sm:$0xff]  }
 0x81b   : > { %v9763_v41 = vpack.c.bf16 %v9748_v55, %v9748_v55  ;;  %v15049_v55 = vld [vmem:[%s15758_s28 + $0xc68] sm:$0xff]  }
 0x81c   : > { %13516 = vmatpush3.bf16.msra.mxu0 %v15021_v56  ;;  %v9166_v3 = vunpack.c.l.b16 %v9109_v30 }
 0x81d   : > { %13481 = vmatpush3.bf16.msra.mxu1 %v14993_v48  ;;  %13517 = vmatprep.subr.bf16.mxu0 %v15022_v13  ;;  %v15014_v48 = vld [vmem:[%s15758_s28 + $0xb88] sm:$0xff]   ;;  %v9820_v52 = vunpack.c.l.b16 %v9763_v41  ;;  %v15031_v41 = vld [vmem:[%s15758_s28 + $0xbb8] sm:$0xff]  }
 0x81e   : > { %13482 = vmatprep.subr.bf16.mxu1 %v14995_v28 }
 0x81f   : > { %v9824_v51 = vrot.slane %v9820_v52, 7  ;;  %v9732_v52 = vrot.slane %v17163_v23, %v16318_v40 }
 0x820   : > { %13518 = vmatpush3.bf16.msra.mxu0 %v15024_v58  ;;  %v15023_v58 = vld [vmem:[%s15758_s28 + $0xba0] sm:$0xff]  }
 0x821   : > { %13483 = vmatpush3.bf16.msra.mxu1 %v14996_v35  ;;  %13966 = vmatprep.subr.bf16.mxu0 %v15435_v18  ;;  %v15017_v35 = vld [vmem:[%s15758_s28 + $0xb90] sm:$0xff]  }
 0x822   : > { %13484 = vmatprep.subr.bf16.mxu1 %v14998_v21 }
 0x823   : > { %v13258_v5 = vpop.f32.mrb[32].mxu1  ;;  %9349 = vmatmul.mubr.bf16.vlgmr.msra.gmra.mrb[60].mxu0 %v9176_v50 }
 0x824   : > { %v13259_v20 = vpop.f32.mrb[33].mxu1  ;;  %13967 = vmatpush3.bf16.msra.mxu0 %v15026_v24  ;;  %13978 = vmatprep.mubr.msk.bf16.mxu0 %vm15436_vm11, %v15435_v18  ;;  %v15045_v24 = vld [vmem:[%s15758_s28 + $0xc60] sm:$0xff]  }
 0x825   : > { %v13260_v14 = vadd.f32 %v13259_v20, %v13258_v5  ;;  %v13261_v19 = vpop.f32.mrb[34].mxu1  ;;  %13485 = vmatpush3.bf16.msra.mxu1 %v14999_v36  ;;  %13968 = vmatprep.subr.bf16.mxu0 %v15435_v18  ;;  %v9437_v36 = vpack.c.bf16 %v9422_v62, %v9422_v62  ;;  %v15054_v62 = vld [vmem:[%s15758_s28 + $0xcb8] sm:$0xff]  }
 0x826   : > { %v13262_v29 = vpop.f32.mrb[35].mxu1  ;;  %13486 = vmatprep.subr.bf16.mxu1 %v15002_v32 }
 0x827   : > { %v6457_v46 = vadd.f32 %v13260_v14, %v17078_v0  ;;  %v17156_v0 = vld [vmem:[#allocation2 + $0x31] ss:$8 sm:$0x7]  ;;  %v9494_v32 = vunpack.c.l.b16 %v9437_v36  ;;  %v9825_v29 = vsel %vm4042_vm12, %v9824_v51, %v9817_v43 }
 0x828   : > { %13969 = vmatpush3.bf16.msra.mxu0 %v15029_v45  ;;  %v9414_v1 = vrot.slane %v17156_v0, %v16311_v33  ;;  %v9410_v15 = vrot.slane %v17156_v0, %v16314_v37  ;;  %v15041_v14 = vld [vmem:[%s15758_s28 + $0xc58] sm:$0xff]   ;;  %v9175_v45 = vsel %vm4042_vm12, %v9174_v10, %v9166_v3  ;;  %v15039_v36 = vld [vmem:[%s15758_s28 + $0xc10] sm:$0xff]   ;;  %v9406_v30 = vrot.slane %v17156_v0, %v16318_v40  ;;  %v15046_v3 = vld [vmem:[%s15758_s28 + $0xc20] sm:$0xff]  }
 0x829   : > { %v17151_v34 = vadd.f32 %v6457_v46, %v17094_v60  ;;  %13487 = vmatpush3.bf16.msra.mxu1 %v15003_v17  ;;  %v9426_v60 = vrot.slane %v17145_v42, %v16311_v33  ;;  %13970 = vmatprep.subr.bf16.mxu0 %v15435_v18  ;;  %v15025_v46 = vld [vmem:[%s15758_s28 + $0xba8] sm:$0xff]   ;;  %v9498_v38 = vrot.slane %v9494_v32, 7  ;;  %v15063_v43 = vld [vmem:[%s15758_s28 + $0xcd0] sm:$0xff]   ;;  %v15043_v10 = vld [vmem:[%s15758_s28 + $0xbd8] sm:$0xff]  }
 0x82a   : > { %13488 = vmatprep.subr.bf16.mxu1 %v15006_v2  ;;  %v9435_v26 = vpack.c.bf16 %v9414_v1, %v9414_v1  ;;  %v9434_v31 = vpack.c.bf16 %v9410_v15, %v9410_v15  ;;  %v15030_v1 = vld [vmem:[%s15758_s28 + $0xbf8] sm:$0xff]   ;;  %v15060_v15 = vld [vmem:[%s15758_s28 + $0xcc8] sm:$0xff]   ;;  %v15065_v32 = vld [vmem:[%s15758_s28 + $0xc90] sm:$0xff]   ;;  %v9433_v0 = vpack.c.bf16 %v9406_v30, %v9406_v30 }
 0x82b   : > { %v9438_v49 = vpack.c.bf16 %v9426_v60, %v9426_v60  ;;  %v15027_v60 = vld [vmem:[%s15758_s28 + $0xbf0] sm:$0xff]  }
 0x82c   : > { %13971 = vmatpush3.bf16.msra.mxu0 %v15032_v22  ;;  %v17190_v4 = vpop.f32.mrb[32].mxu0  ;;  %v9492_v7 = vunpack.c.l.b16 %v9435_v26  ;;  %v9178_v22 = vpack.c.b16 %v9175_v45, %v9175_v45  ;;  %v9744_v26 = vrot.slane %v17148_v25, %v16318_v40 }
 0x82d   : > { %13489 = vmatpush3.bf16.msra.mxu1 %v15007_v57  ;;  %v9495_v28 = vunpack.c.l.b16 %v9438_v49  ;;  %13972 = vmatprep.subr.bf16.mxu0 %v15435_v18  ;;  %v13852_v21 = vpop.f32.mrb[33].mxu0  ;;  %v9491_v57 = vunpack.c.l.b16 %v9434_v31  ;;  %v15052_v49 = vld [vmem:[%s15758_s28 + $0xcb0] sm:$0xff]  }
 0x82e   : > { %13950 = vmatprep.subr.bf16.mxu1 %v15435_v18  ;;  %v7111_v56 = vpop.f32.mrb[34].mxu0  ;;  %v9418_v21 = vrot.slane %v17145_v42, %v16318_v40  ;;  %v15042_v42 = vld [vmem:[%s15758_s28 + $0xc18] sm:$0xff]  }
 0x82f   : > { %v9500_v11 = vrot.slane %v9495_v28, 7  ;;  %v13853_v53 = vpop.f32.mrb[35].mxu0  ;;  %v9499_v47 = vsel %vm4042_vm12, %v9498_v38, %v9491_v57  ;;  %v15034_v28 = vld [vmem:[%s15758_s28 + $0xbc0] sm:$0xff]   ;;  %v9759_v56 = vpack.c.bf16 %v9732_v52, %v9732_v52  ;;  %v9490_v38 = vunpack.c.l.b16 %v9433_v0 }
 0x830   : > { %9023 = vmatmul.mubr.bf16.vlgmr.msra.gmra.mrb[64].mxu1 %v8850_v27  ;;  %13973 = vmatpush3.bf16.msra.mxu0 %v15035_v61  ;;  %v9829_v27 = vpack.c.b16 %v9825_v29, %v9825_v29  ;;  %v9503_v8 = vpack.c.b16 %v9499_v47, %v9499_v47  ;;  %v15056_v61 = vld [vmem:[%s15758_s28 + $0xc78] sm:$0xff]   ;;  %v9436_v53 = vpack.c.bf16 %v9418_v21, %v9418_v21  ;;  %v15047_v57 = vld [vmem:[%s15758_s28 + $0xbe0] sm:$0xff]   ;;  %v15079_v21 = vld [vmem:[%s15758_s28 + $0xda8] sm:$0xff]  }
 0x831   : > { %13951 = vmatpush3.bf16.msra.mxu1 %v15011_v63  ;;  %13962 = vmatprep.mubr.msk.bf16.mxu1 %vm15436_vm11, %v15435_v18  ;;  %v9501_v19 = vsel %vm4042_vm12, %v9500_v11, %v9492_v7  ;;  %v15028_v63 = vld [vmem:[%s15758_s28 + $0xbb0] sm:$0xff]  }
 0x832   : > { %13952 = vmatprep.subr.bf16.mxu1 %v15435_v18  ;;  %13974 = vmatprep.subr.bf16.mxu0 %v15435_v18  ;;  %v9504_v50 = vpack.c.b16 %v9501_v19, %v9501_v19  ;;  %v15040_v11 = vld [vmem:[%s15758_s28 + $0xbd0] sm:$0xff]   ;;  %v15066_v19 = vld [vmem:[%s15758_s28 + $0xcd8] sm:$0xff]  }
 0x834   : > { %13975 = vmatpush3.bf16.msra.mxu0 %v15038_v6  ;;  %v15037_v6 = vld [vmem:[%s15758_s28 + $0xbc8] sm:$0xff]  }
 0x835   : > { %13953 = vmatpush3.bf16.msra.mxu1 %v15014_v48  ;;  %13976 = vmatprep.subr.bf16.mxu0 %v15435_v18  ;;  %v15053_v48 = vld [vmem:[%s15758_s28 + $0xc70] sm:$0xff]  }
 0x836   : > { %13954 = vmatprep.subr.bf16.mxu1 %v15435_v18 }
 0x838   : > { %13977 = vmatpush3.bf16.msra.mxu0 %v15041_v14  ;;  %v9493_v14 = vunpack.c.l.b16 %v9436_v53 }
 0x839   : > { %13955 = vmatpush3.bf16.msra.mxu1 %v15017_v35  ;;  %13561 = vmatprep.subr.bf16.mxu0 %v15044_v39  ;;  %v15057_v35 = vld [vmem:[%s15758_s28 + $0xcc0] sm:$0xff]  }
 0x83a   : > { %13956 = vmatprep.subr.bf16.mxu1 %v15435_v18 }
 0x83b   : > { %v6782_v13 = vpop.f32.mrb[36].mxu1  ;;  %13979 = vmatmul.mubr.msk.bf16.vlgmr.msra.gmra.mrb[64].mxu0 %vm4185_vm13, %v9504_v50 }
 0x83c   : > { %v6783_v5 = vadd.f32 %v17136_v9, %v6782_v13  ;;  %v13836_v20 = vpop.f32.mrb[37].mxu1  ;;  %13562 = vmatpush3.bf16.msra.mxu0 %v15045_v24  ;;  %10000 = vmatprep.mubr.bf16.mxu0 %v9829_v27  ;;  %v9496_v27 = vrot.slane %v9493_v14, 7 }
 0x83d   : > { %v6785_v17 = vpop.f32.mrb[38].mxu1  ;;  %13957 = vmatpush3.bf16.msra.mxu1 %v15020_v12  ;;  %v9762_v12 = vpack.c.bf16 %v9744_v26, %v9744_v26  ;;  %v15076_v26 = vld [vmem:[%s15758_s28 + $0xda0] sm:$0xff]  }
 0x83e   : > { %v17206_v9 = vadd.f32 %v6783_v5, %v17151_v34  ;;  %v13837_v2 = vpop.f32.mrb[39].mxu1  ;;  %13958 = vmatprep.subr.bf16.mxu1 %v15435_v18  ;;  %v15048_v34 = vld [vmem:[%s15758_s28 + $0xca8] sm:$0xff]   ;;  %v9816_v5 = vunpack.c.l.b16 %v9759_v56 }
 0x83f   : > { %13563 = vmatprep.subr.bf16.mxu0 %v15048_v34  ;;  %v9819_v7 = vunpack.c.l.b16 %v9762_v12  ;;  %v15068_v2 = vld [vmem:[%s15758_s28 + $0xc98] sm:$0xff]   ;;  %v15050_v34 = vld [vmem:[%s15758_s28 + $0xc28] sm:$0xff]  }
 0x840   : > { %13564 = vmatpush3.bf16.msra.mxu0 %v15049_v55  ;;  %v15070_v55 = vld [vmem:[%s15758_s28 + $0xd90] sm:$0xff]  }
 0x841   : > { %13959 = vmatpush3.bf16.msra.mxu1 %v15023_v58  ;;  %13565 = vmatprep.subr.bf16.mxu0 %v15052_v49  ;;  %v9822_v20 = vrot.slane %v9819_v7, 7  ;;  %v17264_v49 = vld [vmem:[#allocation2 + $0x7b] ss:$8 sm:$0x7] }
 0x842   : > { %13960 = vmatprep.subr.bf16.mxu1 %v15435_v18 }
 0x844   : > { %13566 = vmatpush3.bf16.msra.mxu0 %v15053_v48  ;;  %v17266_v48 = vld [vmem:[#allocation2 + $0x7c] ss:$8 sm:$0x7] }
 0x845   : > { %13961 = vmatpush3.bf16.msra.mxu1 %v15025_v46  ;;  %13567 = vmatprep.subr.bf16.mxu0 %v15054_v62  ;;  %v9823_v46 = vsel %vm4042_vm12, %v9822_v20, %v9816_v5  ;;  %v17275_v62 = vld [vmem:[#allocation2 + $0x33] ss:$8 sm:$0x7] }
 0x846   : > { %13532 = vmatprep.subr.bf16.mxu1 %v15027_v60  ;;  %v15064_v5 = vld [vmem:[%s15758_s28 + $0xcf8] sm:$0xff]  }
 0x848   : > { %13963 = vmatmul.mubr.msk.bf16.vlgmr.msra.gmra.mrb[68].mxu1 %vm4185_vm13, %v9178_v22  ;;  %13568 = vmatpush3.bf16.msra.mxu0 %v15056_v61  ;;  %v15051_v22 = vld [vmem:[%s15758_s28 + $0xbe8] sm:$0xff]  }
 0x849   : > { %13533 = vmatpush3.bf16.msra.mxu1 %v15028_v63  ;;  %9674 = vmatprep.mubr.bf16.mxu1 %v9503_v8  ;;  %v9828_v63 = vpack.c.b16 %v9823_v46, %v9823_v46  ;;  %v15073_v8 = vld [vmem:[%s15758_s28 + $0xd98] sm:$0xff]  }
 0x84a   : > { %13534 = vmatprep.subr.bf16.mxu1 %v15030_v1  ;;  %13569 = vmatprep.subr.bf16.mxu0 %v15057_v35  ;;  %v9497_v1 = vsel %vm4042_vm12, %v9496_v27, %v9490_v38  ;;  %v17280_v61 = vld [vmem:[#allocation2 + $0x34] ss:$8 sm:$0x7] }
 0x84b   : > { %v10388_v52 = vrot.slane %v17280_v61, %v16314_v37  ;;  %v15088_v27 = vld [vmem:[%s15758_s28 + $0xe00] sm:$0xff]  }
 0x84c   : > { %13570 = vmatpush3.bf16.msra.mxu0 %v15059_v59  ;;  %v13345_v51 = vpop.f32.mrb[36].mxu0  ;;  %v9752_v59 = vrot.slane %v17148_v25, %v16311_v33  ;;  %v15061_v25 = vld [vmem:[%s15758_s28 + $0xcf0] sm:$0xff]  }
 0x84d   : > { %13535 = vmatpush3.bf16.msra.mxu1 %v15031_v41  ;;  %13571 = vmatprep.subr.bf16.mxu0 %v15060_v15  ;;  %v13346_v13 = vpop.f32.mrb[37].mxu0  ;;  %v15055_v41 = vld [vmem:[%s15758_s28 + $0xce0] sm:$0xff]   ;;  %v10412_v7 = vpack.c.bf16 %v10388_v52, %v10388_v52  ;;  %v15097_v52 = vld [vmem:[%s15758_s28 + $0xdd0] sm:$0xff]  }
 0x84e   : > { %13536 = vmatprep.subr.bf16.mxu1 %v15033_v54  ;;  %v17246_v31 = vadd.f32 %v13346_v13, %v13345_v51  ;;  %v13348_v58 = vpop.f32.mrb[38].mxu0  ;;  %v10400_v54 = vrot.slane %v17266_v48, %v16314_v37  ;;  %v9764_v56 = vpack.c.bf16 %v9752_v59, %v9752_v59  ;;  %v15082_v51 = vld [vmem:[%s15758_s28 + $0xdb0] sm:$0xff]  }
 0x84f   : > { %v13349_v17 = vpop.f32.mrb[39].mxu0  ;;  %v10469_v0 = vunpack.c.l.b16 %v10412_v7  ;;  %v15103_v7 = vld [vmem:[%s15758_s28 + $0xde0] sm:$0xff]  }
 0x850   : > { %13572 = vmatpush3.bf16.msra.mxu0 %v15062_v44  ;;  %v10415_v12 = vpack.c.bf16 %v10400_v54, %v10400_v54  ;;  %v9740_v44 = vrot.slane %v17163_v23, %v16311_v33  ;;  %v9821_v58 = vunpack.c.l.b16 %v9764_v56  ;;  %v15080_v56 = vld [vmem:[%s15758_s28 + $0xd68] sm:$0xff]  }
 0x851   : > { %13537 = vmatpush3.bf16.msra.mxu1 %v15034_v28  ;;  %13573 = vmatprep.subr.bf16.mxu0 %v15063_v43  ;;  %v10066_v28 = vrot.slane %v17275_v62, %v16311_v33  ;;  %v10062_v43 = vrot.slane %v17275_v62, %v16314_v37 }
 0x852   : > { %13538 = vmatprep.subr.bf16.mxu1 %v15036_v16  ;;  %v15058_v16 = vld [vmem:[%s15758_s28 + $0xce8] sm:$0xff]   ;;  %v9761_v20 = vpack.c.bf16 %v9740_v44, %v9740_v44  ;;  %v9826_v38 = vrot.slane %v9821_v58, 7  ;;  %v15101_v44 = vld [vmem:[%s15758_s28 + $0xe20] sm:$0xff]   ;;  %v10058_v58 = vrot.slane %v17275_v62, %v16318_v40 }
 0x853   : > { %v10087_v15 = vpack.c.bf16 %v10066_v28, %v10066_v28  ;;  %v10086_v17 = vpack.c.bf16 %v10062_v43, %v10062_v43  ;;  %v15072_v28 = vld [vmem:[%s15758_s28 + $0xd10] sm:$0xff]   ;;  %v15081_v43 = vld [vmem:[%s15758_s28 + $0xd28] sm:$0xff]  }
 0x854   : > { %13574 = vmatpush3.bf16.msra.mxu0 %v15065_v32  ;;  %v10085_v62 = vpack.c.bf16 %v10058_v58, %v10058_v58 }
 0x855   : > { %13539 = vmatpush3.bf16.msra.mxu1 %v15037_v6  ;;  %13575 = vmatprep.subr.bf16.mxu0 %v15066_v19  ;;  %v10074_v6 = vrot.slane %v17264_v49, %v16314_v37  ;;  %v10144_v32 = vunpack.c.l.b16 %v10087_v15  ;;  %v15100_v15 = vld [vmem:[%s15758_s28 + $0xdd8] sm:$0xff]  }
 0x856   : > { %13540 = vmatprep.subr.bf16.mxu1 %v15039_v36 }
 0x858   : > { %13576 = vmatpush3.bf16.msra.mxu0 %v15068_v2  ;;  %v15085_v2 = vld [vmem:[%s15758_s28 + $0xdb8] sm:$0xff]  }
 0x859   : > { %13541 = vmatpush3.bf16.msra.mxu1 %v15040_v11  ;;  %13998 = vmatprep.subr.bf16.mxu0 %v15435_v18  ;;  %v10472_v11 = vunpack.c.l.b16 %v10415_v12  ;;  %v15075_v12 = vld [vmem:[%s15758_s28 + $0xd18] sm:$0xff]  }
 0x85a   : > { %13542 = vmatprep.subr.bf16.mxu1 %v15042_v42  ;;  %v10089_v42 = vpack.c.bf16 %v10074_v6, %v10074_v6  ;;  %v15098_v6 = vld [vmem:[%s15758_s28 + $0xe18] sm:$0xff]  }
 0x85b   : > { %v13316_v39 = vpop.f32.mrb[40].mxu1  ;;  %10001 = vmatmul.mubr.bf16.vlgmr.msra.gmra.mrb[68].mxu0 %v9828_v63  ;;  %v10476_v14 = vrot.slane %v10472_v11, 7  ;;  %v10143_v63 = vunpack.c.l.b16 %v10086_v17  ;;  %v10384_v11 = vrot.slane %v17280_v61, %v16318_v40 }
 0x85c   : > { %v13317_v29 = vpop.f32.mrb[41].mxu1  ;;  %13999 = vmatpush3.bf16.msra.mxu0 %v15070_v55  ;;  %14010 = vmatprep.mubr.msk.bf16.mxu0 %vm15436_vm11, %v15435_v18 }
 0x85d   : > { %v13318_v50 = vadd.f32 %v13317_v29, %v13316_v39  ;;  %v13319_v24 = vpop.f32.mrb[42].mxu1  ;;  %13543 = vmatpush3.bf16.msra.mxu1 %v15043_v10  ;;  %14000 = vmatprep.subr.bf16.mxu0 %v15435_v18 }
 0x85e   : > { %v13320_v45 = vpop.f32.mrb[43].mxu1  ;;  %13544 = vmatprep.subr.bf16.mxu1 %v15046_v3  ;;  %v10146_v3 = vunpack.c.l.b16 %v10089_v42  ;;  %v15067_v24 = vld [vmem:[%s15758_s28 + $0xd00] sm:$0xff]   ;;  %v10070_v42 = vrot.slane %v17264_v49, %v16318_v40 }
 0x85f   : > { %v7109_v60 = vadd.f32 %v13318_v50, %v17190_v4  ;;  %v9502_v4 = vpack.c.b16 %v9497_v1, %v9497_v1  ;;  %v10477_v45 = vsel %vm4042_vm12, %v10476_v14, %v10469_v0  ;;  %v15107_v0 = vld [vmem:[%s15758_s28 + $0xe30] sm:$0xff]  }
 0x860   : > { %14001 = vmatpush3.bf16.msra.mxu0 %v15073_v8  ;;  %v10150_v55 = vrot.slane %v10146_v3, 7  ;;  %v10481_v1 = vpack.c.b16 %v10477_v45, %v10477_v45  ;;  %v15109_v3 = vld [vmem:[%s15758_s28 + $0xdf0] sm:$0xff]  }
 0x861   : > { %v17259_v47 = vadd.f32 %v7109_v60, %v17206_v9  ;;  %13545 = vmatpush3.bf16.msra.mxu1 %v15047_v57  ;;  %v10078_v9 = vrot.slane %v17264_v49, %v16311_v33  ;;  %14002 = vmatprep.subr.bf16.mxu0 %v15435_v18  ;;  %v9818_v57 = vunpack.c.l.b16 %v9761_v20  ;;  %v15084_v20 = vld [vmem:[%s15758_s28 + $0xd30] sm:$0xff]   ;;  %v15086_v49 = vld [vmem:[%s15758_s28 + $0xd78] sm:$0xff]  }
 0x862   : > { %13546 = vmatprep.subr.bf16.mxu1 %v15050_v34 }
 0x863   : > { %v10090_v35 = vpack.c.bf16 %v10078_v9, %v10078_v9  ;;  %v9827_v8 = vsel %vm4042_vm12, %v9826_v38, %v9818_v57  ;;  %v15071_v9 = vld [vmem:[%s15758_s28 + $0xd50] sm:$0xff]   ;;  %v15090_v38 = vld [vmem:[%s15758_s28 + $0xd80] sm:$0xff]  }
 0x864   : > { %14003 = vmatpush3.bf16.msra.mxu0 %v15076_v26  ;;  %v17302_v30 = vpop.f32.mrb[40].mxu0  ;;  %v9830_v54 = vpack.c.b16 %v9827_v8, %v9827_v8  ;;  %v15093_v26 = vld [vmem:[%s15758_s28 + $0xdc8] sm:$0xff]  }
 0x865   : > { %13547 = vmatpush3.bf16.msra.mxu1 %v15051_v22  ;;  %v10147_v36 = vunpack.c.l.b16 %v10090_v35  ;;  %14004 = vmatprep.subr.bf16.mxu0 %v15435_v18  ;;  %v13884_v53 = vpop.f32.mrb[41].mxu0  ;;  %v15089_v22 = vld [vmem:[%s15758_s28 + $0xdc0] sm:$0xff]   ;;  %v15096_v35 = vld [vmem:[%s15758_s28 + $0xe10] sm:$0xff]  }
 0x866   : > { %13982 = vmatprep.subr.bf16.mxu1 %v15435_v18  ;;  %v7763_v13 = vpop.f32.mrb[42].mxu0 }
 0x867   : > { %v10152_v23 = vrot.slane %v10147_v36, 7  ;;  %v13885_v10 = vpop.f32.mrb[43].mxu0  ;;  %v10396_v36 = vrot.slane %v17266_v48, %v16318_v40  ;;  %v15083_v13 = vld [vmem:[%s15758_s28 + $0xd70] sm:$0xff]  }
 0x868   : > { %9675 = vmatmul.mubr.bf16.vlgmr.msra.gmra.mrb[72].mxu1 %v9502_v4  ;;  %14005 = vmatpush3.bf16.msra.mxu0 %v15079_v21  ;;  %v15069_v4 = vld [vmem:[%s15758_s28 + $0xd08] sm:$0xff]   ;;  %v15077_v21 = vld [vmem:[%s15758_s28 + $0xd60] sm:$0xff]   ;;  %v10088_v10 = vpack.c.bf16 %v10070_v42, %v10070_v42 }
 0x869   : > { %13983 = vmatpush3.bf16.msra.mxu1 %v15055_v41  ;;  %13994 = vmatprep.mubr.msk.bf16.mxu1 %vm15436_vm11, %v15435_v18  ;;  %v10153_v46 = vsel %vm4042_vm12, %v10152_v23, %v10144_v32  ;;  %v10151_v41 = vsel %vm4042_vm12, %v10150_v55, %v10143_v63  ;;  %v10414_v53 = vpack.c.bf16 %v10396_v36, %v10396_v36  ;;  %v15106_v32 = vld [vmem:[%s15758_s28 + $0xde8] sm:$0xff]  }
 0x86a   : > { %13984 = vmatprep.subr.bf16.mxu1 %v15435_v18  ;;  %14006 = vmatprep.subr.bf16.mxu0 %v15435_v18  ;;  %v10156_v60 = vpack.c.b16 %v10153_v46, %v10153_v46  ;;  %v10155_v59 = vpack.c.b16 %v10151_v41, %v10151_v41  ;;  %v10411_v23 = vpack.c.bf16 %v10384_v11, %v10384_v11  ;;  %v15087_v46 = vld [vmem:[%s15758_s28 + $0xd38] sm:$0xff]   ;;  %v15102_v36 = vld [vmem:[%s15758_s28 + $0xe48] sm:$0xff]  }
 0x86c   : > { %14007 = vmatpush3.bf16.msra.mxu0 %v15082_v51  ;;  %v15104_v51 = vld [vmem:[%s15758_s28 + $0xe28] sm:$0xff]  }
 0x86d   : > { %13985 = vmatpush3.bf16.msra.mxu1 %v15058_v16  ;;  %14008 = vmatprep.subr.bf16.mxu0 %v15435_v18  ;;  %v15074_v16 = vld [vmem:[%s15758_s28 + $0xd58] sm:$0xff]  }
 0x86e   : > { %13986 = vmatprep.subr.bf16.mxu1 %v15435_v18 }
 0x870   : > { %14009 = vmatpush3.bf16.msra.mxu0 %v15085_v2 }
 0x871   : > { %13987 = vmatpush3.bf16.msra.mxu1 %v15061_v25  ;;  %13619 = vmatprep.subr.bf16.mxu0 %v15088_v27  ;;  %v15078_v25 = vld [vmem:[%s15758_s28 + $0xd20] sm:$0xff]  }
 0x872   : > { %13988 = vmatprep.subr.bf16.mxu1 %v15435_v18 }
 0x873   : > { %v7434_v19 = vpop.f32.mrb[44].mxu1  ;;  %14011 = vmatmul.mubr.msk.bf16.vlgmr.msra.gmra.mrb[72].mxu0 %vm4185_vm13, %v10156_v60 }
 0x874   : > { %v7435_v39 = vadd.f32 %v17246_v31, %v7434_v19  ;;  %v13868_v29 = vpop.f32.mrb[45].mxu1  ;;  %13620 = vmatpush3.bf16.msra.mxu0 %v15089_v22  ;;  %10652 = vmatprep.mubr.bf16.mxu0 %v10481_v1  ;;  %v15091_v22 = vld [vmem:[%s15758_s28 + $0xd40] sm:$0xff]   ;;  %v10142_v1 = vunpack.c.l.b16 %v10085_v62 }
 0x875   : > { %v7437_v50 = vpop.f32.mrb[46].mxu1  ;;  %13989 = vmatpush3.bf16.msra.mxu1 %v15064_v5  ;;  %v10471_v5 = vunpack.c.l.b16 %v10414_v53  ;;  %v15105_v53 = vld [vmem:[%s15758_s28 + $0xe50] sm:$0xff]  }
 0x876   : > { %v17318_v31 = vadd.f32 %v7435_v39, %v17259_v47  ;;  %v13869_v34 = vpop.f32.mrb[47].mxu1  ;;  %13990 = vmatprep.subr.bf16.mxu1 %v15435_v18  ;;  %v15092_v47 = vld [vmem:[%s15758_s28 + $0xe08] sm:$0xff]   ;;  %v10468_v39 = vunpack.c.l.b16 %v10411_v23  ;;  %v10145_v50 = vunpack.c.l.b16 %v10088_v10 }
 0x877   : > { %13621 = vmatprep.subr.bf16.mxu0 %v15092_v47  ;;  %v10474_v29 = vrot.slane %v10471_v5, 7  ;;  %v15112_v34 = vld [vmem:[%s15758_s28 + $0xdf8] sm:$0xff]   ;;  %v15094_v47 = vld [vmem:[%s15758_s28 + $0xd88] sm:$0xff]   ;;  %v15132_v5 = vld [vmem:[%s15758_s28 + $0xf10] sm:$0xff]  }
 0x878   : > { %13622 = vmatpush3.bf16.msra.mxu0 %v15093_v26 }
 0x879   : > { %13991 = vmatpush3.bf16.msra.mxu1 %v15067_v24  ;;  %13623 = vmatprep.subr.bf16.mxu0 %v15096_v35  ;;  %v15110_v24 = vld [vmem:[%s15758_s28 + $0xe38] sm:$0xff]   ;;  %v10475_v60 = vsel %vm4042_vm12, %v10474_v29, %v10468_v39 }
 0x87a   : > { %13992 = vmatprep.subr.bf16.mxu1 %v15435_v18  ;;  %v10480_v41 = vpack.c.b16 %v10475_v60, %v10475_v60  ;;  %v15135_v39 = vld [vmem:[%s15758_s28 + $0xf18] sm:$0xff]   ;;  %v15114_v60 = vld [vmem:[%s15758_s28 + $0xeb0] sm:$0xff]  }
 0x87c   : > { %13624 = vmatpush3.bf16.msra.mxu0 %v15097_v52 }
 0x87d   : > { %13993 = vmatpush3.bf16.msra.mxu1 %v15069_v4  ;;  %13625 = vmatprep.subr.bf16.mxu0 %v15098_v6  ;;  %v10148_v4 = vrot.slane %v10145_v50, 7  ;;  %v15126_v6 = vld [vmem:[%s15758_s28 + $0xf00] sm:$0xff]  }
 0x87e   : > { %13590 = vmatprep.subr.bf16.mxu1 %v15071_v9 }
 0x87f   : > { %v10149_v35 = vsel %vm4042_vm12, %v10148_v4, %v10142_v1  ;;  %v15116_v4 = vld [vmem:[%s15758_s28 + $0xeb8] sm:$0xff]  }
 0x880   : > { %13995 = vmatmul.mubr.msk.bf16.vlgmr.msra.gmra.mrb[76].mxu1 %vm4185_vm13, %v9830_v54  ;;  %13626 = vmatpush3.bf16.msra.mxu0 %v15100_v15  ;;  %v15120_v54 = vld [vmem:[%s15758_s28 + $0xef0] sm:$0xff]  }
 0x881   : > { %13591 = vmatpush3.bf16.msra.mxu1 %v15072_v28  ;;  %10326 = vmatprep.mubr.bf16.mxu1 %v10155_v59  ;;  %v15095_v28 = vld [vmem:[%s15758_s28 + $0xd48] sm:$0xff]   ;;  %v10154_v59 = vpack.c.b16 %v10149_v35, %v10149_v35 }
 0x882   : > { %13592 = vmatprep.subr.bf16.mxu1 %v15074_v16  ;;  %13627 = vmatprep.subr.bf16.mxu0 %v15101_v44  ;;  %v17376_v16 = vld [vmem:[#allocation2 + $0x7d] ss:$8 sm:$0x7] }
 0x883   : > { %v10730_v52 = vrot.slane %v17376_v16, %v16311_v33  ;;  %v10726_v44 = vrot.slane %v17376_v16, %v16314_v37 }
 0x884   : > { %13628 = vmatpush3.bf16.msra.mxu0 %v15103_v7 }
 0x885   : > { %13593 = vmatpush3.bf16.msra.mxu1 %v15075_v12  ;;  %13629 = vmatprep.subr.bf16.mxu0 %v15104_v51  ;;  %v17385_v12 = vld [vmem:[#allocation2 + $0x35] ss:$8 sm:$0x7]  ;;  %v10742_v15 = vpack.c.bf16 %v10730_v52, %v10730_v52 }
 0x886   : > { %13594 = vmatprep.subr.bf16.mxu1 %v15077_v21  ;;  %v13403_v14 = vpop.f32.mrb[44].mxu0  ;;  %v10718_v21 = vrot.slane %v17385_v12, %v16311_v33  ;;  %v10714_v51 = vrot.slane %v17385_v12, %v16314_v37  ;;  %v10710_v35 = vrot.slane %v17385_v12, %v16318_v40 }
 0x887   : > { %v13404_v19 = vpop.f32.mrb[45].mxu0  ;;  %v10799_v11 = vunpack.c.l.b16 %v10742_v15  ;;  %v15128_v15 = vld [vmem:[%s15758_s28 + $0xe98] sm:$0xff]  }
 0x888   : > { %v17358_v17 = vadd.f32 %v13404_v19, %v13403_v14  ;;  %13630 = vmatpush3.bf16.msra.mxu0 %v15106_v32  ;;  %v13406_v2 = vpop.f32.mrb[46].mxu0  ;;  %v10739_v7 = vpack.c.bf16 %v10718_v21, %v10718_v21 }
 0x889   : > { %13595 = vmatpush3.bf16.msra.mxu1 %v15078_v25  ;;  %13631 = vmatprep.subr.bf16.mxu0 %v15107_v0  ;;  %v13407_v57 = vpop.f32.mrb[47].mxu0  ;;  %v10404_v25 = vrot.slane %v17266_v48, %v16311_v33  ;;  %v10392_v48 = vrot.slane %v17280_v61, %v16311_v33  ;;  %v10804_v58 = vrot.slane %v10799_v11, 7  ;;  %v15108_v33 = vld [vmem:[%s15758_s28 + $0xe58] sm:$0xff]   ;;  %v15131_v11 = vld [vmem:[%s15758_s28 + $0xea0] sm:$0xff]  }
 0x88a   : > { %13596 = vmatprep.subr.bf16.mxu1 %v15080_v56  ;;  %v15129_v56 = vld [vmem:[%s15758_s28 + $0xf08] sm:$0xff]  }
 0x88b   : > { %v10413_v61 = vpack.c.bf16 %v10392_v48, %v10392_v48 }
 0x88c   : > { %13632 = vmatpush3.bf16.msra.mxu0 %v15109_v3 }
 0x88d   : > { %13597 = vmatpush3.bf16.msra.mxu1 %v15081_v43  ;;  %13633 = vmatprep.subr.bf16.mxu0 %v15110_v24  ;;  %v10416_v43 = vpack.c.bf16 %v10404_v25, %v10404_v25  ;;  %v10470_v62 = vunpack.c.l.b16 %v10413_v61 }
 0x88e   : > { %13598 = vmatprep.subr.bf16.mxu1 %v15083_v13  ;;  %v10741_v13 = vpack.c.bf16 %v10726_v44, %v10726_v44  ;;  %v15130_v44 = vld [vmem:[%s15758_s28 + $0xee0] sm:$0xff]  }
 0x88f   : > { %v10473_v10 = vunpack.c.l.b16 %v10416_v43 }
 0x890   : > { %13634 = vmatpush3.bf16.msra.mxu0 %v15112_v34  ;;  %v10798_v37 = vunpack.c.l.b16 %v10741_v13 }
 0x891   : > { %13599 = vmatpush3.bf16.msra.mxu1 %v15084_v20  ;;  %14030 = vmatprep.subr.bf16.mxu0 %v15435_v18  ;;  %v10796_v20 = vunpack.c.l.b16 %v10739_v7  ;;  %v10478_v50 = vrot.slane %v10473_v10, 7 }
 0x892   : > { %13600 = vmatprep.subr.bf16.mxu1 %v15086_v49  ;;  %v10738_v49 = vpack.c.bf16 %v10714_v51, %v10714_v51  ;;  %v15133_v51 = vld [vmem:[%s15758_s28 + $0xee8] sm:$0xff]  }
 0x893   : > { %v13374_v27 = vpop.f32.mrb[48].mxu1  ;;  %10653 = vmatmul.mubr.bf16.vlgmr.msra.gmra.mrb[76].mxu0 %v10480_v41  ;;  %v10805_v29 = vsel %vm4042_vm12, %v10804_v58, %v10796_v20  ;;  %v10479_v34 = vsel %vm4042_vm12, %v10478_v50, %v10470_v62  ;;  %v15122_v41 = vld [vmem:[%s15758_s28 + $0xe88] sm:$0xff]  }
 0x894   : > { %v13375_v45 = vpop.f32.mrb[49].mxu1  ;;  %14031 = vmatpush3.bf16.msra.mxu0 %v15120_v54  ;;  %14042 = vmatprep.mubr.msk.bf16.mxu0 %vm15436_vm11, %v15435_v18  ;;  %v10722_v54 = vrot.slane %v17376_v16, %v16318_v40  ;;  %v10737_v16 = vpack.c.bf16 %v10710_v35, %v10710_v35 }
 0x895   : > { %v13376_v63 = vadd.f32 %v13375_v45, %v13374_v27  ;;  %v13377_v55 = vpop.f32.mrb[50].mxu1  ;;  %13601 = vmatpush3.bf16.msra.mxu1 %v15087_v46  ;;  %14032 = vmatprep.subr.bf16.mxu0 %v15435_v18  ;;  %v15111_v46 = vld [vmem:[%s15758_s28 + $0xe60] sm:$0xff]   ;;  %v10808_v27 = vpack.c.b16 %v10805_v29, %v10805_v29  ;;  %v15113_v45 = vld [vmem:[%s15758_s28 + $0xe68] sm:$0xff]  }
 0x896   : > { %v13378_v8 = vpop.f32.mrb[51].mxu1  ;;  %13602 = vmatprep.subr.bf16.mxu1 %v15090_v38  ;;  %v10802_v38 = vrot.slane %v10798_v37, 7  ;;  %v10482_v55 = vpack.c.b16 %v10479_v34, %v10479_v34  ;;  %v11038_v34 = vld [vmem:[%s15774_s25 + $0x8] sm:$0xff] }
 0x897   : > { %v7761_v9 = vadd.f32 %v13376_v63, %v17302_v30  ;;  %v15123_v30 = vld [vmem:[%s15758_s28 + $0xef8] sm:$0xff]  }
 0x898   : > { %14033 = vmatpush3.bf16.msra.mxu0 %v15123_v30  ;;  %v15117_v8 = vld [vmem:[%s15758_s28 + $0xe78] sm:$0xff]  }
 0x899   : > { %v17371_v26 = vadd.f32 %v7761_v9, %v17318_v31  ;;  %13603 = vmatpush3.bf16.msra.mxu1 %v15091_v22  ;;  %v15099_v31 = vld [vmem:[%s15758_s28 + $0xe40] sm:$0xff]   ;;  %14034 = vmatprep.subr.bf16.mxu0 %v15435_v18  ;;  %v15115_v22 = vld [vmem:[%s15758_s28 + $0xe70] sm:$0xff]   ;;  %v15127_v30 = vld [vmem:[%s15758_s28 + $0xed8] sm:$0xff]  }
 0x89a   : > { %13604 = vmatprep.subr.bf16.mxu1 %v15094_v47  ;;  %v15118_v47 = vld [vmem:[%s15758_s28 + $0xec0] sm:$0xff]  }
 0x89b   : > { %v15119_v9 = vld [vmem:[%s15758_s28 + $0xe80] sm:$0xff]  }
 0x89c   : > { %14035 = vmatpush3.bf16.msra.mxu0 %v15126_v6 }
 0x89d   : > { %13605 = vmatpush3.bf16.msra.mxu1 %v15095_v28  ;;  %14036 = vmatprep.subr.bf16.mxu0 %v15435_v18  ;;  %v15125_v28 = vld [vmem:[%s15758_s28 + $0xe90] sm:$0xff]  }
 0x89e   : > { %14014 = vmatprep.subr.bf16.mxu1 %v15435_v18  ;;  %v17406_v42 = vpop.f32.mrb[48].mxu0 }
 0x89f   : > { %v13916_v32 = vpop.f32.mrb[49].mxu0 }
 0x8a0   : > { %10327 = vmatmul.mubr.bf16.vlgmr.msra.gmra.mrb[80].mxu1 %v10154_v59  ;;  %14037 = vmatpush3.bf16.msra.mxu0 %v15129_v56  ;;  %v8415_v23 = vpop.f32.mrb[50].mxu0  ;;  %v10740_v59 = vpack.c.bf16 %v10722_v54, %v10722_v54 }
 0x8a1   : > { %14015 = vmatpush3.bf16.msra.mxu1 %v15099_v31  ;;  %14026 = vmatprep.mubr.msk.bf16.mxu1 %vm15436_vm11, %v15435_v18  ;;  %v13917_v0 = vpop.f32.mrb[51].mxu0  ;;  %v15134_v23 = vld [vmem:[%s15758_s28 + $0xea8] sm:$0xff]  }
 0x8a2   : > { %14016 = vmatprep.subr.bf16.mxu1 %v15435_v18  ;;  %14038 = vmatprep.subr.bf16.mxu0 %v15435_v18 }
 0x8a4   : > { %14039 = vmatpush3.bf16.msra.mxu0 %v15132_v5 }
 0x8a5   : > { %14017 = vmatpush3.bf16.msra.mxu1 %v15102_v36  ;;  %14040 = vmatprep.subr.bf16.mxu0 %v15435_v18  ;;  %v10797_v36 = vunpack.c.l.b16 %v10740_v59  ;;  %v11045_v59 = vld [vmem:[%s15774_s25 + $0x40] sm:$0xff] }
 0x8a6   : > { %14018 = vmatprep.subr.bf16.mxu1 %v15435_v18 }
 0x8a7   : > { %v10800_v48 = vrot.slane %v10797_v36, 7 }
 0x8a8   : > { %14041 = vmatpush3.bf16.msra.mxu0 %v15135_v39 }
 0x8a9   : > { %14019 = vmatpush3.bf16.msra.mxu1 %v15105_v53  ;;  %v10794_v53 = vunpack.c.l.b16 %v10737_v16 }
 0x8aa   : > { %14020 = vmatprep.subr.bf16.mxu1 %v15435_v18 }
 0x8ab   : > { %v8086_v14 = vpop.f32.mrb[52].mxu1  ;;  %14043 = vmatmul.mubr.msk.bf16.vlgmr.msra.gmra.mrb[80].mxu0 %vm4185_vm13, %v10808_v27  ;;  %v10801_v5 = vsel %vm4042_vm12, %v10800_v48, %v10794_v53  ;;  %v11052_v53 = vld [vmem:[%s15774_s25 + $0x78] sm:$0xff] }
 0x8ac   : > { %v8087_v19 = vadd.f32 %v17358_v17, %v8086_v14  ;;  %v13900_v3 = vpop.f32.mrb[53].mxu1  ;;  %v10795_v17 = vunpack.c.l.b16 %v10738_v49  ;;  %14078 = vmatprep.mubr.msk.f32.mxu0 %vm15436_vm11, %v15435_v18  ;;  %v10806_v20 = vpack.c.b16 %v10801_v5, %v10801_v5 }
 0x8ad   : > { %v8089_v2 = vpop.f32.mrb[54].mxu1  ;;  %14021 = vmatpush3.bf16.msra.mxu1 %v15108_v33 }
 0x8ae   : > { %v17420_v24 = vadd.f32 %v8087_v19, %v17371_v26  ;;  %v13901_v57 = vpop.f32.mrb[55].mxu1  ;;  %14022 = vmatprep.subr.bf16.mxu1 %v15435_v18  ;;  %v10803_v63 = vsel %vm4042_vm12, %v10802_v38, %v10795_v17  ;;  %v15124_v26 = vld [vmem:[%s15758_s28 + $0xed0] sm:$0xff]  }
 0x8af   : > { %v10807_v1 = vpack.c.b16 %v10803_v63, %v10803_v63  ;;  %v15437_v63 = vmov 0.0|0.0  }
 0x8b0   : > { %14081 = vmatprep.subr.bf16.mxu0 %v15437_v63 }
 0x8b1   : > { %14023 = vmatpush3.bf16.msra.mxu1 %v15111_v46 }
 0x8b2   : > { %14024 = vmatprep.subr.bf16.mxu1 %v15435_v18  ;;  %v15121_v18 = vld [vmem:[%s15758_s28 + $0xec8] sm:$0xff]  }
 0x8b5   : > { %14025 = vmatpush3.bf16.msra.mxu1 %v15113_v45  ;;  %v11037_v45 = vld [vmem:[%s15774_s25] sm:$0xff] }
 0x8b6   : > { %13648 = vmatprep.subr.bf16.mxu1 %v15114_v60  ;;  %v11039_v60 = vld [vmem:[%s15774_s25 + $0x10] sm:$0xff] }
 0x8b8   : > { %14027 = vmatmul.mubr.msk.bf16.vlgmr.msra.gmra.mrb[84].mxu1 %vm4185_vm13, %v10482_v55  ;;  %v14082_v55 = vpack.c.bf16 %v11038_v34, %v11037_v45 }
 0x8b9   : > { %13649 = vmatpush3.bf16.msra.mxu1 %v15115_v22  ;;  %10978 = vmatprep.mubr.bf16.mxu1 %v10807_v1  ;;  %v11040_v22 = vld [vmem:[%s15774_s25 + $0x18] sm:$0xff] }
 0x8ba   : > { %13650 = vmatprep.subr.bf16.mxu1 %v15116_v4  ;;  %14083 = vmatpush3.bf16.msra.mxu0 %v14082_v55  ;;  %v14085_v1 = vpack.c.bf16 %v11040_v22, %v11039_v60  ;;  %v11041_v4 = vld [vmem:[%s15774_s25 + $0x20] sm:$0xff] }
 0x8bb   : > { %14084 = vmatprep.subr.bf16.mxu0 %v15437_v63 }
 0x8bd   : > { %13651 = vmatpush3.bf16.msra.mxu1 %v15117_v8  ;;  %v11042_v8 = vld [vmem:[%s15774_s25 + $0x28] sm:$0xff] }
 0x8be   : > { %13652 = vmatprep.subr.bf16.mxu1 %v15118_v47  ;;  %v13461_v52 = vpop.f32.mrb[52].mxu0  ;;  %14086 = vmatpush3.bf16.msra.mxu0 %v14085_v1  ;;  %v14088_v47 = vpack.c.bf16 %v11042_v8, %v11041_v4 }
 0x8bf   : > { %v13462_v31 = vpop.f32.mrb[53].mxu0  ;;  %14087 = vmatprep.subr.bf16.mxu0 %v15437_v63 }
 0x8c0   : > { %v13463_v6 = vadd.f32 %v13462_v31, %v13461_v52  ;;  %v13464_v21 = vpop.f32.mrb[54].mxu0 }
 0x8c1   : > { %13653 = vmatpush3.bf16.msra.mxu1 %v15119_v9  ;;  %v13465_v25 = vpop.f32.mrb[55].mxu0 }
 0x8c2   : > { %13654 = vmatprep.subr.bf16.mxu1 %v15121_v18  ;;  %v11043_v18 = vld [vmem:[%s15774_s25 + $0x30] sm:$0xff]  ;;  %14089 = vmatpush3.bf16.msra.mxu0 %v14088_v47 }
 0x8c3   : > { %14090 = vmatprep.subr.bf16.mxu0 %v15437_v63  ;;  %v11047_v25 = vld [vmem:[%s15774_s25 + $0x50] sm:$0xff] }
 0x8c5   : > { %13655 = vmatpush3.bf16.msra.mxu1 %v15122_v41  ;;  %v11044_v41 = vld [vmem:[%s15774_s25 + $0x38] sm:$0xff] }
 0x8c6   : > { %13656 = vmatprep.subr.bf16.mxu1 %v15124_v26  ;;  %v14091_v35 = vpack.c.bf16 %v11044_v41, %v11043_v18 }
 0x8c8   : > { %14092 = vmatpush3.bf16.msra.mxu0 %v14091_v35 }
 0x8c9   : > { %13657 = vmatpush3.bf16.msra.mxu1 %v15125_v28  ;;  %14093 = vmatprep.subr.bf16.mxu0 %v15437_v63 }
 0x8ca   : > { %13658 = vmatprep.subr.bf16.mxu1 %v15127_v30  ;;  %v11046_v30 = vld [vmem:[%s15774_s25 + $0x48] sm:$0xff] }
 0x8cb   : > { %v13432_v56 = vpop.f32.mrb[56].mxu1 }
 0x8cc   : > { %v13433_v7 = vpop.f32.mrb[57].mxu1 }
 0x8cd   : > { %v13434_v40 = vadd.f32 %v13433_v7, %v13432_v56  ;;  %v13435_v12 = vpop.f32.mrb[58].mxu1  ;;  %13659 = vmatpush3.bf16.msra.mxu1 %v15128_v15  ;;  %v14094_v15 = vpack.c.bf16 %v11046_v30, %v11045_v59  ;;  %v11049_v7 = vld [vmem:[%s15774_s25 + $0x60] sm:$0xff] }
 0x8ce   : > { %v13436_v43 = vpop.f32.mrb[59].mxu1  ;;  %13660 = vmatprep.subr.bf16.mxu1 %v15130_v44  ;;  %v11048_v44 = vld [vmem:[%s15774_s25 + $0x58] sm:$0xff] }
 0x8cf   : > { %v8413_v13 = vadd.f32 %v13434_v40, %v17406_v42  ;;  %14095 = vmatpush3.bf16.msra.mxu0 %v14094_v15  ;;  %v14097_v56 = vpack.c.bf16 %v11048_v44, %v11047_v25  ;;  %v11050_v40 = vld [vmem:[%s15774_s25 + $0x68] sm:$0xff] }
 0x8d0   : > { %14096 = vmatprep.subr.bf16.mxu0 %v15437_v63  ;;  %v14100_v12 = vpack.c.bf16 %v11050_v40, %v11049_v7  ;;  %v13034_v40 = vld [vmem:[#allocation13] ss:$0 sm:$0xff] (!%p13033_p7) }
 0x8d1   : > { %v8418_v32 = vadd.f32 %v8413_v13, %v17420_v24  ;;  %13661 = vmatpush3.bf16.msra.mxu1 %v15131_v11  ;;  %v11051_v11 = vld [vmem:[%s15774_s25 + $0x70] sm:$0xff] }
 0x8d2   : > { %13662 = vmatprep.subr.bf16.mxu1 %v15133_v51  ;;  %v14103_v48 = vpack.c.bf16 %v11052_v53, %v11051_v11 }
 0x8d3   : > { %14098 = vmatpush3.bf16.msra.mxu0 %v14097_v56 }
 0x8d4   : > { %14099 = vmatprep.subr.bf16.mxu0 %v15437_v63 }
 0x8d5   : > { %13663 = vmatpush3.bf16.msra.mxu1 %v15134_v23 }
 0x8d6   : > { %v9064_v58 = vpop.f32.mrb[56].mxu0 }
 0x8d7   : > { %v13948_v33 = vpop.f32.mrb[57].mxu0  ;;  %14101 = vmatpush3.bf16.msra.mxu0 %v14100_v12 }
 0x8d8   : > { %10979 = vmatmul.mubr.bf16.vlgmr.msra.gmra.mrb[88].mxu1 %v10806_v20  ;;  %v9067_v61 = vpop.f32.mrb[58].mxu0  ;;  %14102 = vmatprep.subr.bf16.mxu0 %v15437_v63 }
 0x8d9   : > { %v13949_v10 = vpop.f32.mrb[59].mxu0 }
 0x8db   : > { %14104 = vmatpush3.bf16.msra.mxu0 %v14103_v48 }
 0x8e3   : > { %v8738_v0 = vpop.f32.mrb[60].mxu1 }
 0x8e4   : > { %v8739_v49 = vadd.f32 %v13463_v6, %v8738_v0  ;;  %v13932_v37 = vpop.f32.mrb[61].mxu1 }
 0x8e5   : > { %v8741_v14 = vpop.f32.mrb[62].mxu1 }
 0x8e6   : > { %v8744_v42 = vadd.f32 %v8739_v49, %v8418_v32  ;;  %v13933_v19 = vpop.f32.mrb[63].mxu1 }
 0x8f6   : > { %v13519_v3 = vpop.f32.mrb[60].mxu0 }
 0x8f7   : > { %v13520_v39 = vpop.f32.mrb[61].mxu0 }
 0x8f8   : > { %v13521_v29 = vadd.f32 %v13520_v39, %v13519_v3  ;;  %v13522_v2 = vpop.f32.mrb[62].mxu0 }
 0x8f9   : > { %v13523_v46 = vpop.f32.mrb[63].mxu0 }
 0x903   : > { %v13490_v62 = vpop.f32.mrb[64].mxu1 }
 0x904   : > { %v13491_v50 = vpop.f32.mrb[65].mxu1 }
 0x905   : > { %v13492_v24 = vadd.f32 %v13491_v50, %v13490_v62  ;;  %v13493_v57 = vpop.f32.mrb[66].mxu1 }
 0x906   : > { %v13494_v17 = vpop.f32.mrb[67].mxu1 }
 0x907   : > { %v9065_v38 = vadd.f32 %v13492_v24, %v9064_v58 }
 0x909   : > { %v9070_v27 = vadd.f32 %v9065_v38, %v8744_v42 }
 0x90e   : > { %v9716_v9 = vpop.f32.mrb[64].mxu0 }
 0x90f   : > { %v13980_v54 = vpop.f32.mrb[65].mxu0 }
 0x910   : > { %v9719_v26 = vpop.f32.mrb[66].mxu0 }
 0x911   : > { %v13981_v28 = vpop.f32.mrb[67].mxu0 }
 0x91b   : > { %v9390_v52 = vpop.f32.mrb[68].mxu1 }
 0x91c   : > { %v9391_v31 = vadd.f32 %v13521_v29, %v9390_v52  ;;  %v13964_v6 = vpop.f32.mrb[69].mxu1 }
 0x91d   : > { %v9393_v21 = vpop.f32.mrb[70].mxu1  ;;  %v13032_v6 = vld [vmem:[%s15764_s29] ss:$0 sm:$0xff] }
 0x91e   : > { %v9396_v16 = vadd.f32 %v9391_v31, %v9070_v27  ;;  %v13965_v36 = vpop.f32.mrb[71].mxu1 }
 0x91f   : > { %v11036_v36 = vld [vmem:[#allocation14] sm:$0x3] }
 0x92e   : > { %v13577_v43 = vpop.f32.mrb[68].mxu0 }
 0x92f   : > { %v13578_v51 = vpop.f32.mrb[69].mxu0 }
 0x930   : > { %v13579_v13 = vadd.f32 %v13578_v51, %v13577_v43  ;;  %v13580_v32 = vpop.f32.mrb[70].mxu0 }
 0x931   : > { %v13581_v23 = vpop.f32.mrb[71].mxu0 }
 0x93b   : > { %v13548_v5 = vpop.f32.mrb[72].mxu1 }
 0x93c   : > { %v13549_v20 = vpop.f32.mrb[73].mxu1 }
 0x93d   : > { %v13550_v58 = vadd.f32 %v13549_v20, %v13548_v5  ;;  %v13551_v33 = vpop.f32.mrb[74].mxu1 }
 0x93e   : > { %v13552_v61 = vpop.f32.mrb[75].mxu1 }
 0x93f   : > { %v9717_v10 = vadd.f32 %v13550_v58, %v9716_v9 }
 0x941   : > { %v9722_v0 = vadd.f32 %v9717_v10, %v9396_v16 }
 0x946   : > { %v10368_v49 = vpop.f32.mrb[72].mxu0 }
 0x947   : > { %v14012_v37 = vpop.f32.mrb[73].mxu0 }
 0x948   : > { %v10371_v14 = vpop.f32.mrb[74].mxu0 }
 0x949   : > { %v14013_v42 = vpop.f32.mrb[75].mxu0 }
 0x953   : > { %v10042_v19 = vpop.f32.mrb[76].mxu1 }
 0x954   : > { %v10043_v3 = vadd.f32 %v13579_v13, %v10042_v19  ;;  %v13996_v39 = vpop.f32.mrb[77].mxu1 }
 0x955   : > { %v10045_v29 = vpop.f32.mrb[78].mxu1 }
 0x956   : > { %v10048_v2 = vadd.f32 %v10043_v3, %v9722_v0  ;;  %v13997_v46 = vpop.f32.mrb[79].mxu1 }
 0x966   : > { %v13635_v62 = vpop.f32.mrb[76].mxu0 }
 0x967   : > { %v13636_v50 = vpop.f32.mrb[77].mxu0 }
 0x968   : > { %v13637_v24 = vadd.f32 %v13636_v50, %v13635_v62  ;;  %v13638_v57 = vpop.f32.mrb[78].mxu0 }
 0x969   : > { %v13639_v17 = vpop.f32.mrb[79].mxu0 }
 0x973   : > { %v13606_v38 = vpop.f32.mrb[80].mxu1 }
 0x974   : > { %v13607_v27 = vpop.f32.mrb[81].mxu1 }
 0x975   : > { %v13608_v45 = vadd.f32 %v13607_v27, %v13606_v38  ;;  %v13609_v34 = vpop.f32.mrb[82].mxu1 }
 0x976   : > { %v13610_v60 = vpop.f32.mrb[83].mxu1 }
 0x977   : > { %v10369_v63 = vadd.f32 %v13608_v45, %v10368_v49 }
 0x979   : > { %v10374_v55 = vadd.f32 %v10369_v63, %v10048_v2 }
 0x97e   : > { %v11020_v22 = vpop.f32.mrb[80].mxu0 }
 0x97f   : > { %v14044_v1 = vpop.f32.mrb[81].mxu0 }
 0x980   : > { %v11023_v4 = vpop.f32.mrb[82].mxu0 }
 0x981   : > { %v14045_v8 = vpop.f32.mrb[83].mxu0 }
 0x98b   : > { %v10694_v47 = vpop.f32.mrb[84].mxu1 }
 0x98c   : > { %v10695_v9 = vadd.f32 %v13637_v24, %v10694_v47  ;;  %v14028_v18 = vpop.f32.mrb[85].mxu1 }
 0x98d   : > { %v10697_v41 = vpop.f32.mrb[86].mxu1 }
 0x98e   : > { %v10700_v54 = vadd.f32 %v10695_v9, %v10374_v55  ;;  %v14029_v26 = vpop.f32.mrb[87].mxu1 }
 0x9ab   : > { %v13664_v28 = vpop.f32.mrb[88].mxu1 }
 0x9ac   : > { %v13665_v35 = vpop.f32.mrb[89].mxu1 }
 0x9ad   : > { %v13666_v59 = vadd.f32 %v13665_v35, %v13664_v28  ;;  %v13667_v30 = vpop.f32.mrb[90].mxu1 }
 0x9ae   : > { %v13668_v52 = vpop.f32.mrb[91].mxu1 }
 0x9af   : > { %v11021_v31 = vadd.f32 %v13666_v59, %v11020_v22 }
 0x9b1   : > { %v11026_v21 = vadd.f32 %v11021_v31, %v10700_v54 }
 0x9b3   : > { %v11034_v15 = vadd.f32 %v13032_v6, %v11026_v21 }
 0x9b5   : > { %v11035_v16 = vmax.f32 %v11034_v15, 0.0 }
 0x9b7   : > { %14079 = vmatmul.mubr.f32.vlgmr.msra.gmra.mrb[84].mxu0 %v11035_v16 }
 0xa87   : > { %11129 = sbr.rel (%p13033_p7) target bundleno = 2712 (0xa98), region = 92 }
 0xa8a   : > { %v11119_v25 = vpop.f32.mrb[84].mxu0 }
 0xa8b   : > { %v11123_v44 = vadd.f32 %v11119_v25, %v11036_v36  ;;  %v14080_v56 = vpop.f32.mrb[85].mxu0 }
 0xa8d   : > { %11125 = vst.msk [vmem:[#allocation14] sm:$0x3] %vm11124_vm14, %v11123_v44 }
 0xa94   : > { %v11130_v7 = vld [vmem:[#allocation14] sm:$0x3] }
 0xa95   : > { %v11138_v12 = vadd.f32 %v13034_v40, %v11130_v7 }
 0xa97   : > { %11139 = vst.msk [vmem:[#allocation14] sm:$0x3] %vm11124_vm14, %v11138_v12 }
 0xa98 PF: > { %p14217_p13 = scmp.eq.s32.totalorder %s15508_s13, 1  ;;  %s15438_s28 = smov [#allocation14]  }
 0xa99   : > { %s11147_s29 = sshll.u32 %s15438_s28, 4  ;;  %s11148_s29 = int_to_ptr.vmem [resolvable:$true] %s11147_s29 }
 0xa9a   : > { %s15336_s18 = scalar_lea.vmem %s11148_s29, 32  ;;  %p15343_p9 = scmp.lt.s32.totalorder %s11148_s29, %s11148_s29 }
 0xa9b   : > { %p15337_p8 = scmp.ne.s32.totalorder %s11148_s29, %s15336_s18  ;;  %p15344_p1 = scmp.lt.s32.totalorder %s15336_s18, %s15336_s18 }
 0xa9d   : > { %p15338_p0 = pnand %p15337_p8, %p14217_p13  ;;  %p15345_p4 = por %p15344_p1, %p15343_p9 }
 0xa9f   : > { %p15339_p3 = pneg %p15338_p0 }
 0xaa1   : > { %p15346_p2 = pnand %p15345_p4, %p15339_p3 }
 0xaa3   : > { %15349 = shalt.err (!%p15346_p2)
}
 0xaa4   : > { %s17558_s19 = sld [smem:[#allocation26_spill]] }
 0xaaa   : > { %s15350_s2 = scalar_lea.hbm %s17558_s19, 32 }
 0xaab   : > { %p15351_p5 = scmp.ne.s32.totalorder %s17558_s19, %s15350_s2  ;;  %p15356_p6 = scmp.lt.u32.totalorder %s15350_s2, %s17558_s19 }
 0xaad   : > { %p15352_p11 = pnand %p15351_p5, %p14217_p13 }
 0xaaf   : > { %p15353_p10 = pneg %p15352_p11 }
 0xab1   : > { %p15358_p12 = pnand %p15356_p6, %p15353_p10 }
 0xab3   : > { %15361 = shalt.err (!%p15358_p12)
}
 0xab4   : > { %14180 = dma.vmem_to_hbm [thread:$0]  (%p14217_p13), %s11148_s29, 32, %s17558_s19, [#allocation5]  }
 0xab5   : > { %15399 = dma.done.wait (%p14217_p13), [#allocation5], 32  }
 0xab6   : > { %15401 = vsyncadd (%p14217_p13), [#allocation5], 4294967264 }
 0xab7 PF: > { %s17559_s1 = sld [smem:[#allocation21_spill]]  ;;  %p20_p7 = scmp.ge.s32.totalorder %s15613_s23, 4  }
 0xab8   : > { %s17560_s30 = smov %s15408_s10  ;;  %s17561_s10 = smov %s15412_s11 }
 0xab9   : > { %s17563_s12 = smov %s15613_s23  ;;  %22 = sbr.rel (!%p20_p7) target bundleno = 11 (0xb), region = 204 }
 0xabd   : > { %s17562_s11 = smov %s17559_s1 }
 0xac0   :  { %11160 = vsyncpa [#allocation4], 1 }
 0xac1   :  { %11162 = vsyncpa [#allocation4 + $0x1], 1 }
 0xac2   :  { %11163 = vsyncpa [#allocation7], 1 }
 0xac3   :  { %11164 = vsyncpa [#allocation10], 1 }
 0xac4   :  { %11165 = vsyncpa [#allocation5], 1 }
 0xac5   :  { %11167 = vsyncpa [#allocation5 + $0x1], 1 }

</bundles_post_ra>
